<compile_context>
chip_gen: v5e
topology: v5e:2x2
jax: 0.10.0
libtpu: 0.0.40
codegen_flags: <defaults>
</compile_context>

<pallas_src>
import math
from functools import partial

import jax
import jax.numpy as jnp
from jax.experimental import pallas as pl
from jax.experimental.pallas import tpu as pltpu


# -----------------------------------------------------------------------------
# Kernel (one grid step per batch element)
# -----------------------------------------------------------------------------
def _stock_transformer_kernel(x_ref, pe_ref,
                              wq_ref, wk_ref, wv_ref, bq_ref, bk_ref, bv_ref,
                              wo_ref, bo_ref,
                              g1_ref, be1_ref,
                              w1_ref, b1_ref, w2_ref, b2_ref,
                              g2_ref, be2_ref,
                              wd_ref, bd_ref,
                              out_ref,
                              *, S, D, H, hdp):
    f32, bf16 = jnp.float32, jnp.bfloat16
    Dp = x_ref.shape[-1]            # padded feature dim (256)
    inv_d = 1.0 / D                 # reductions over the real 250 features
    eps = 1e-5

    # lane mask of the real (unpadded) features, used by layer norm
    lane = jax.lax.broadcasted_iota(jnp.int32, (S, Dp), 1)
    feat_mask = (lane < D).astype(f32)

    def layer_norm(v, g, be):
        # padded lanes of v are zero; divide by the real D.  Two-pass variance
        # with the padded lanes masked out; padded gamma/beta are zero so the
        # padded lanes stay exactly zero.
        mu = jnp.sum(v, axis=-1, keepdims=True) * inv_d
        d = (v - mu) * feat_mask
        var = jnp.sum(d * d, axis=-1, keepdims=True) * inv_d
        return d * jax.lax.rsqrt(var + eps) * g + be

    # ---- positional encoding ------------------------------------------------
    x = x_ref[...] + pe_ref[...]                       # (S, Dp) f32
    x16 = x.astype(bf16)

    # ---- wide QKV projections (scale already folded into wq / bq) ------------
    q2 = jnp.dot(x16, wq_ref[...], preferred_element_type=f32) + bq_ref[...]   # (S, H*hdp)
    k2 = jnp.dot(x16, wk_ref[...], preferred_element_type=f32) + bk_ref[...]
    v2 = jnp.dot(x16, wv_ref[...], preferred_element_type=f32) + bv_ref[...]

    # ---- in-kernel causal mask (large finite negative, robust under exp) -----
    row = jax.lax.broadcasted_iota(jnp.int32, (S, S), 0)
    col = jax.lax.broadcasted_iota(jnp.int32, (S, S), 1)
    neg = jnp.where(row >= col, 0.0, -1e30).astype(f32)

    nt_dims = (((1,), (1,)), ((), ()))                 # q @ k.T (contraction on last dims)

    # ---- per-head attention, out-proj fused into an (S, Dp) accumulator ------
    attn = jnp.zeros((S, Dp), f32)
    for h in range(H):                                 # static unroll, H = 10
        sl = slice(h * hdp, (h + 1) * hdp)
        qh = q2[:, sl].astype(bf16)                    # (S, hdp)
        kh = k2[:, sl].astype(bf16)
        vh = v2[:, sl].astype(bf16)

        s = jax.lax.dot_general(qh, kh, nt_dims, preferred_element_type=f32) + neg
        m = jnp.max(s, axis=-1, keepdims=True)
        e = jnp.exp(s - m)
        p = e * pl.reciprocal(jnp.sum(e, axis=-1, keepdims=True), approx=True)

        ctx = jnp.dot(p.astype(bf16), vh, preferred_element_type=f32)          # (S, hdp)
        attn = attn + jnp.dot(ctx.astype(bf16), wo_ref[h],
                              preferred_element_type=f32)                      # (S, Dp)
    attn = attn + bo_ref[...]

    # TODO(synk): nn.Dropout (p=0.1, training) has no deterministic Pallas
    # equivalent; identity (eval semantics).
    src = layer_norm(x + attn, g1_ref[...], be1_ref[...])

    # ---- feed-forward (untiled: whole 2048-wide hidden in one pass) ----------
    hidden = jnp.dot(src.astype(bf16), w1_ref[...],
                     preferred_element_type=f32) + b1_ref[...]                 # (S, F)
    hidden = jnp.maximum(hidden, 0.0)                                          # ReLU
    ffn = jnp.dot(hidden.astype(bf16), w2_ref[...],
                  preferred_element_type=f32) + b2_ref[...]                    # (S, Dp)

    y = layer_norm(src + ffn, g2_ref[...], be2_ref[...])

    # ---- decoder: (S, 250) -> (S, 1) as a VPU multiply + lane reduce ---------
    out_ref[...] = jnp.sum(y * wd_ref[...], axis=-1, keepdims=True) + bd_ref[...]


# -----------------------------------------------------------------------------
# Wrapper / glue
# -----------------------------------------------------------------------------
def _positional_encoding(S, D):
    pos = jnp.arange(S, dtype=jnp.float32)[:, None]
    div = jnp.exp(jnp.arange(0, D, 2, dtype=jnp.float32) * (-math.log(10000.0) / D))
    pe = jnp.zeros((S, D), jnp.float32)
    pe = pe.at[:, 0::2].set(jnp.sin(pos * div))
    pe = pe.at[:, 1::2].set(jnp.cos(pos * div))
    return pe


def prepare_kernel_params(p, S, *, D=250, F=2048, H=10, Dp=256, hdp=32):
    """Convert PyTorch-layout params to padded, head-split, bf16 kernel params."""
    hd = D // H
    HP = H * hdp
    scale = 1.0 / math.sqrt(hd)
    f32, bf16 = jnp.float32, jnp.bfloat16

    def wide_w(wt):
        # torch (out=D, in=D) -> (Dp, H*hdp); kernel computes x @ W
        w = wt.T.reshape(D, H, hd)                           # [d, h, e] = wt[h*hd+e, d]
        w = jnp.pad(w, ((0, Dp - D), (0, 0), (0, hdp - hd)))
        return w.reshape(Dp, HP)

    def wide_b(bv):
        # (D,) -> (1, H*hdp)
        return jnp.pad(bv.reshape(H, hd), ((0, 0), (0, hdp - hd))).reshape(1, HP)

    row = lambda v: jnp.pad(v, (0, Dp - D)).reshape(1, Dp).astype(f32)

    # QKV: 1/sqrt(head_dim) folded into the Q weights / bias (one-time, host side)
    wq = (wide_w(p["wq"]) * scale).astype(bf16)
    wk = wide_w(p["wk"]).astype(bf16)
    wv = wide_w(p["wv"]).astype(bf16)
    bq = (wide_b(p["bq"]) * scale).astype(f32)
    bk = wide_b(p["bk"]).astype(f32)
    bv = wide_b(p["bv"]).astype(f32)

    # out_proj: wo[h, e, dout] = Wo[dout, h*hd + e]
    wo = jnp.pad(p["wo"].T.reshape(H, hd, D),
                 ((0, 0), (0, hdp - hd), (0, Dp - D))).astype(bf16)   # (H, hdp, Dp)

    w1 = jnp.pad(p["w1"].T, ((0, Dp - D), (0, 0))).astype(bf16)       # (Dp, F)
    w2 = jnp.pad(p["w2"].T, ((0, 0), (0, Dp - D))).astype(bf16)       # (F, Dp)

    pe = jnp.pad(_positional_encoding(S, D), ((0, 0), (0, Dp - D)))   # (S, Dp)

    return dict(
        pe=pe,
        wq=wq, wk=wk, wv=wv, bq=bq, bk=bk, bv=bv,
        wo=wo, bo=row(p["bo"]),
        g1=row(p["g1"]), be1=row(p["be1"]),
        w1=w1, b1=p["b1"].reshape(1, F).astype(f32),
        w2=w2, b2=row(p["b2"]),
        g2=row(p["g2"]), be2=row(p["be2"]),
        wd=row(p["wd"].reshape(-1)),                                  # (1, Dp)
        bd=p["bd"].reshape(1, 1).astype(f32),
    )


def stock_transformer_forward(src, kp):
    """src: (S, B, D) float32, seq-first like PyTorch.  Returns (S, B, 1)."""
    S, B, D = src.shape
    Dp = kp["pe"].shape[1]
    H, hdp, _ = kp["wo"].shape
    HP = H * hdp
    F = kp["w1"].shape[1]
    assert kp["pe"].shape[0] == S

    x = jnp.transpose(src, (1, 0, 2))                                 # (B, S, D)
    x = jnp.pad(x, ((0, 0), (0, 0), (0, Dp - D)))                     # (B, S, Dp)

    c2 = lambda b: (0, 0)
    c3 = lambda b: (0, 0, 0)

    grid_spec = pltpu.PrefetchScalarGridSpec(
        num_scalar_prefetch=0,
        grid=(B,),
        in_specs=[
            pl.BlockSpec((None, S, Dp), lambda b: (b, 0, 0)),         # x
            pl.BlockSpec((S, Dp), c2),                                # pe
            pl.BlockSpec((Dp, HP), c2),                               # wq
            pl.BlockSpec((Dp, HP), c2),                               # wk
            pl.BlockSpec((Dp, HP), c2),                               # wv
            pl.BlockSpec((1, HP), c2),                                # bq
            pl.BlockSpec((1, HP), c2),                                # bk
            pl.BlockSpec((1, HP), c2),                                # bv
            pl.BlockSpec((H, hdp, Dp), c3),                           # wo
            pl.BlockSpec((1, Dp), c2),                                # bo
            pl.BlockSpec((1, Dp), c2),                                # g1
            pl.BlockSpec((1, Dp), c2),                                # be1
            pl.BlockSpec((Dp, F), c2),                                # w1
            pl.BlockSpec((1, F), c2),                                 # b1
            pl.BlockSpec((F, Dp), c2),                                # w2
            pl.BlockSpec((1, Dp), c2),                                # b2
            pl.BlockSpec((1, Dp), c2),                                # g2
            pl.BlockSpec((1, Dp), c2),                                # be2
            pl.BlockSpec((1, Dp), c2),                                # wd
            pl.BlockSpec((1, 1), c2),                                 # bd
        ],
        out_specs=pl.BlockSpec((None, S, 1), lambda b: (b, 0, 0)),
    )

    kernel = partial(_stock_transformer_kernel, S=S, D=D, H=H, hdp=hdp)

    out = pl.pallas_call(
        kernel,
        out_shape=jax.ShapeDtypeStruct((B, S, 1), jnp.float32),
        grid_spec=grid_spec,
        compiler_params=pltpu.CompilerParams(
            dimension_semantics=("parallel",)),
    )(x, kp["pe"],
      kp["wq"], kp["wk"], kp["wv"], kp["bq"], kp["bk"], kp["bv"],
      kp["wo"], kp["bo"],
      kp["g1"], kp["be1"],
      kp["w1"], kp["b1"], kp["w2"], kp["b2"],
      kp["g2"], kp["be2"],
      kp["wd"], kp["bd"])

    return jnp.transpose(out, (1, 0, 2))                              # (S, B, 1)


# -----------------------------------------------------------------------------
# Deterministic PyTorch-layout parameter init (StockTransformer(feature_size=D))
# -----------------------------------------------------------------------------
def init_torch_params(key, D=250, F=2048):
    ks = jax.random.split(key, 13)
    w = lambda k, shape, s=0.02: (s * jax.random.normal(k, shape)).astype(jnp.float32)
    b = lambda k, n, s=0.01: (s * jax.random.normal(k, (n,))).astype(jnp.float32)
    return dict(
        # MHA in_proj (q/k/v) and out_proj, torch layout (out, in)
        wq=w(ks[0], (D, D)), bq=b(ks[6], D),
        wk=w(ks[1], (D, D)), bk=b(ks[7], D),
        wv=w(ks[2], (D, D)), bv=b(ks[8], D),
        wo=w(ks[3], (D, D)), bo=b(ks[9], D),
        # LayerNorm 1 / 2 (PyTorch default: weight=1, bias=0)
        g1=jnp.ones((D,), jnp.float32), be1=jnp.zeros((D,), jnp.float32),
        g2=jnp.ones((D,), jnp.float32), be2=jnp.zeros((D,), jnp.float32),
        # Feed-forward: Linear(D, F) then Linear(F, D), torch weight = (out, in)
        w1=w(ks[4], (F, D)), b1=b(ks[10], F),
        w2=w(ks[5], (D, F)), b2=b(ks[11], D),
        # decoder: Linear(D, 1): weight ~ U(-0.1, 0.1), bias = 0 (init_weights)
        wd=jax.random.uniform(ks[12], (1, D), jnp.float32, -0.1, 0.1),
        bd=jnp.zeros((1,), jnp.float32),
    )


if __name__ == "__main__":
    S, B, D, F, H = 8, 2, 250, 2048, 10   # d_model=250, nhead=10 per the module
    key = jax.random.PRNGKey(0)
    k_x, k_p = jax.random.split(key)

    src = jax.random.normal(k_x, (S, B, D), dtype=jnp.float32)   # (seq, batch, feature)
    torch_params = init_torch_params(k_p, D, F)
    kparams = prepare_kernel_params(torch_params, S, D=D, F=F, H=H)

    out = stock_transformer_forward(src, kparams)
    out = jax.block_until_ready(out)
    assert out.shape == (S, B, 1) and out.dtype == jnp.float32
    assert bool(jnp.all(jnp.isfinite(out)))
    print("KERNEL_OK")
</pallas_src>

<mosaic_0001>
module attributes {stable_mosaic.version = 11 : i64} {
  func.func @_stock_transformer_kernel(%arg0: i32, %arg1: memref<1x8x256xf32, #tpu.memory_space<vmem>>, %arg2: memref<8x256xf32, #tpu.memory_space<vmem>>, %arg3: memref<256x320xbf16, #tpu.memory_space<vmem>>, %arg4: memref<256x320xbf16, #tpu.memory_space<vmem>>, %arg5: memref<256x320xbf16, #tpu.memory_space<vmem>>, %arg6: memref<1x320xf32, #tpu.memory_space<vmem>>, %arg7: memref<1x320xf32, #tpu.memory_space<vmem>>, %arg8: memref<1x320xf32, #tpu.memory_space<vmem>>, %arg9: memref<10x32x256xbf16, #tpu.memory_space<vmem>>, %arg10: memref<1x256xf32, #tpu.memory_space<vmem>>, %arg11: memref<1x256xf32, #tpu.memory_space<vmem>>, %arg12: memref<1x256xf32, #tpu.memory_space<vmem>>, %arg13: memref<256x2048xbf16, #tpu.memory_space<vmem>>, %arg14: memref<1x2048xf32, #tpu.memory_space<vmem>>, %arg15: memref<2048x256xbf16, #tpu.memory_space<vmem>>, %arg16: memref<1x256xf32, #tpu.memory_space<vmem>>, %arg17: memref<1x256xf32, #tpu.memory_space<vmem>>, %arg18: memref<1x256xf32, #tpu.memory_space<vmem>>, %arg19: memref<1x256xf32, #tpu.memory_space<vmem>>, %arg20: memref<1x1xf32, #tpu.memory_space<vmem>>, %arg21: memref<1x8x1xf32, #tpu.memory_space<vmem>>) attributes {dimension_semantics = [#tpu.dimension_semantics<parallel>], iteration_bounds = array<i64: 2>, scalar_prefetch = 0 : i64, scratch_operands = 0 : i64, tpu.core_type = #tpu.core_type<tc>, window_params = [{transform_indices = @transform_0, window_bounds = array<i64: 1, 8, 256>}, {pipeline_mode = #tpu.pipeline_mode<synchronous>, transform_indices = @transform_1, window_bounds = array<i64: 8, 256>}, {pipeline_mode = #tpu.pipeline_mode<synchronous>, transform_indices = @transform_2, window_bounds = array<i64: 256, 320>}, {pipeline_mode = #tpu.pipeline_mode<synchronous>, transform_indices = @transform_3, window_bounds = array<i64: 256, 320>}, {pipeline_mode = #tpu.pipeline_mode<synchronous>, transform_indices = @transform_4, window_bounds = array<i64: 256, 320>}, {pipeline_mode = #tpu.pipeline_mode<synchronous>, transform_indices = @transform_5, window_bounds = array<i64: 1, 320>}, {pipeline_mode = #tpu.pipeline_mode<synchronous>, transform_indices = @transform_6, window_bounds = array<i64: 1, 320>}, {pipeline_mode = #tpu.pipeline_mode<synchronous>, transform_indices = @transform_7, window_bounds = array<i64: 1, 320>}, {pipeline_mode = #tpu.pipeline_mode<synchronous>, transform_indices = @transform_8, window_bounds = array<i64: 10, 32, 256>}, {pipeline_mode = #tpu.pipeline_mode<synchronous>, transform_indices = @transform_9, window_bounds = array<i64: 1, 256>}, {pipeline_mode = #tpu.pipeline_mode<synchronous>, transform_indices = @transform_10, window_bounds = array<i64: 1, 256>}, {pipeline_mode = #tpu.pipeline_mode<synchronous>, transform_indices = @transform_11, window_bounds = array<i64: 1, 256>}, {pipeline_mode = #tpu.pipeline_mode<synchronous>, transform_indices = @transform_12, window_bounds = array<i64: 256, 2048>}, {pipeline_mode = #tpu.pipeline_mode<synchronous>, transform_indices = @transform_13, window_bounds = array<i64: 1, 2048>}, {pipeline_mode = #tpu.pipeline_mode<synchronous>, transform_indices = @transform_14, window_bounds = array<i64: 2048, 256>}, {pipeline_mode = #tpu.pipeline_mode<synchronous>, transform_indices = @transform_15, window_bounds = array<i64: 1, 256>}, {pipeline_mode = #tpu.pipeline_mode<synchronous>, transform_indices = @transform_16, window_bounds = array<i64: 1, 256>}, {pipeline_mode = #tpu.pipeline_mode<synchronous>, transform_indices = @transform_17, window_bounds = array<i64: 1, 256>}, {pipeline_mode = #tpu.pipeline_mode<synchronous>, transform_indices = @transform_18, window_bounds = array<i64: 1, 256>}, {pipeline_mode = #tpu.pipeline_mode<synchronous>, transform_indices = @transform_19, window_bounds = array<i64: 1, 1>}, {transform_indices = @transform_20, window_bounds = array<i64: 1, 8, 1>}]} {
    %0 = tpu.iota {dimensions = array<i32: 1>} : vector<8x256xi32>
    %c250_i32 = arith.constant 250 : i32
    %1 = vector.broadcast %c250_i32 : i32 to vector<8x256xi32>
    %2 = arith.cmpi slt, %0, %1 : vector<8x256xi32>
    %3 = arith.extui %2 : vector<8x256xi1> to vector<8x256xi32>
    %4 = arith.sitofp %3 : vector<8x256xi32> to vector<8x256xf32>
    %c0 = arith.constant 0 : index
    %c0_0 = arith.constant 0 : index
    %c0_1 = arith.constant 0 : index
    %5 = vector.load %arg1[%c0, %c0_0, %c0_1] : memref<1x8x256xf32, #tpu.memory_space<vmem>>, vector<1x8x256xf32>
    %6 = vector.shape_cast %5 : vector<1x8x256xf32> to vector<8x256xf32>
    %c0_2 = arith.constant 0 : index
    %c0_3 = arith.constant 0 : index
    %7 = vector.load %arg2[%c0_2, %c0_3] : memref<8x256xf32, #tpu.memory_space<vmem>>, vector<8x256xf32>
    %8 = arith.addf %6, %7 : vector<8x256xf32>
    %9 = arith.truncf %8 : vector<8x256xf32> to vector<8x256xbf16>
    %c0_4 = arith.constant 0 : index
    %c0_5 = arith.constant 0 : index
    %10 = vector.load %arg3[%c0_4, %c0_5] : memref<256x320xbf16, #tpu.memory_space<vmem>>, vector<256x320xbf16>
    %cst = arith.constant dense<0.000000e+00> : vector<8x320xf32>
    %11 = tpu.matmul %9, %10, %cst {dimension_numbers = #tpu.dot_dimension_numbers<[1], [0], [0], [1], [0, 0, 1, 1], [], []>} : vector<8x256xbf16>, vector<256x320xbf16>, vector<8x320xf32> -> vector<8x320xf32>
    %c0_6 = arith.constant 0 : index
    %c0_7 = arith.constant 0 : index
    %12 = vector.load %arg6[%c0_6, %c0_7] : memref<1x320xf32, #tpu.memory_space<vmem>>, vector<1x320xf32>
    %13 = vector.broadcast %12 : vector<1x320xf32> to vector<8x320xf32>
    %14 = arith.addf %11, %13 : vector<8x320xf32>
    %c0_8 = arith.constant 0 : index
    %c0_9 = arith.constant 0 : index
    %15 = vector.load %arg4[%c0_8, %c0_9] : memref<256x320xbf16, #tpu.memory_space<vmem>>, vector<256x320xbf16>
    %cst_10 = arith.constant dense<0.000000e+00> : vector<8x320xf32>
    %16 = tpu.matmul %9, %15, %cst_10 {dimension_numbers = #tpu.dot_dimension_numbers<[1], [0], [0], [1], [0, 0, 1, 1], [], []>} : vector<8x256xbf16>, vector<256x320xbf16>, vector<8x320xf32> -> vector<8x320xf32>
    %c0_11 = arith.constant 0 : index
    %c0_12 = arith.constant 0 : index
    %17 = vector.load %arg7[%c0_11, %c0_12] : memref<1x320xf32, #tpu.memory_space<vmem>>, vector<1x320xf32>
    %18 = vector.broadcast %17 : vector<1x320xf32> to vector<8x320xf32>
    %19 = arith.addf %16, %18 : vector<8x320xf32>
    %c0_13 = arith.constant 0 : index
    %c0_14 = arith.constant 0 : index
    %20 = vector.load %arg5[%c0_13, %c0_14] : memref<256x320xbf16, #tpu.memory_space<vmem>>, vector<256x320xbf16>
    %cst_15 = arith.constant dense<0.000000e+00> : vector<8x320xf32>
    %21 = tpu.matmul %9, %20, %cst_15 {dimension_numbers = #tpu.dot_dimension_numbers<[1], [0], [0], [1], [0, 0, 1, 1], [], []>} : vector<8x256xbf16>, vector<256x320xbf16>, vector<8x320xf32> -> vector<8x320xf32>
    %c0_16 = arith.constant 0 : index
    %c0_17 = arith.constant 0 : index
    %22 = vector.load %arg8[%c0_16, %c0_17] : memref<1x320xf32, #tpu.memory_space<vmem>>, vector<1x320xf32>
    %23 = vector.broadcast %22 : vector<1x320xf32> to vector<8x320xf32>
    %24 = arith.addf %21, %23 : vector<8x320xf32>
    %25 = tpu.iota {dimensions = array<i32: 0>} : vector<8x8xi32>
    %26 = tpu.iota {dimensions = array<i32: 1>} : vector<8x8xi32>
    %27 = arith.cmpi sge, %25, %26 : vector<8x8xi32>
    %cst_18 = arith.constant 0.000000e+00 : f32
    %cst_19 = arith.constant -1.000000e+30 : f32
    %28 = vector.broadcast %cst_18 : f32 to vector<8x8xf32>
    %29 = vector.broadcast %cst_19 : f32 to vector<8x8xf32>
    %30 = arith.select %27, %28, %29 : vector<8x8xi1>, vector<8x8xf32>
    %cst_20 = arith.constant 0.000000e+00 : f32
    %31 = vector.broadcast %cst_20 : f32 to vector<8x256xf32>
    %32 = vector.extract_strided_slice %14 {offsets = [0, 0], sizes = [8, 32], strides = [1, 1]} : vector<8x320xf32> to vector<8x32xf32>
    %33 = arith.truncf %32 : vector<8x32xf32> to vector<8x32xbf16>
    %34 = vector.extract_strided_slice %19 {offsets = [0, 0], sizes = [8, 32], strides = [1, 1]} : vector<8x320xf32> to vector<8x32xf32>
    %35 = arith.truncf %34 : vector<8x32xf32> to vector<8x32xbf16>
    %36 = vector.extract_strided_slice %24 {offsets = [0, 0], sizes = [8, 32], strides = [1, 1]} : vector<8x320xf32> to vector<8x32xf32>
    %37 = arith.truncf %36 : vector<8x32xf32> to vector<8x32xbf16>
    %cst_21 = arith.constant dense<0.000000e+00> : vector<8x8xf32>
    %38 = tpu.matmul %33, %35, %cst_21 {dimension_numbers = #tpu.dot_dimension_numbers<[1], [1], [0], [0], [0, 0, 1, 0], [], []>} : vector<8x32xbf16>, vector<8x32xbf16>, vector<8x8xf32> -> vector<8x8xf32>
    %39 = arith.addf %38, %30 : vector<8x8xf32>
    %cst_22 = arith.constant dense<0xFF800000> : vector<8xf32>
    %40 = vector.multi_reduction <maximumf>, %39, %cst_22 [1] : vector<8x8xf32> to vector<8xf32>
    %41 = vector.shape_cast %40 : vector<8xf32> to vector<8x1xf32>
    %42 = vector.broadcast %41 : vector<8x1xf32> to vector<8x8xf32>
    %43 = arith.subf %39, %42 : vector<8x8xf32>
    %44 = math.exp %43 : vector<8x8xf32>
    %cst_23 = arith.constant dense<0.000000e+00> : vector<8xf32>
    %45 = vector.multi_reduction <add>, %44, %cst_23 [1] : vector<8x8xf32> to vector<8xf32>
    %46 = vector.shape_cast %45 : vector<8xf32> to vector<8x1xf32>
    %47 = tpu.reciprocal %46 {approx = true} : vector<8x1xf32> -> vector<8x1xf32>
    %48 = vector.broadcast %47 : vector<8x1xf32> to vector<8x8xf32>
    %49 = arith.mulf %44, %48 : vector<8x8xf32>
    %50 = arith.truncf %49 : vector<8x8xf32> to vector<8x8xbf16>
    %cst_24 = arith.constant dense<0.000000e+00> : vector<8x32xf32>
    %51 = tpu.matmul %50, %37, %cst_24 {dimension_numbers = #tpu.dot_dimension_numbers<[1], [0], [0], [1], [0, 0, 1, 1], [], []>} : vector<8x8xbf16>, vector<8x32xbf16>, vector<8x32xf32> -> vector<8x32xf32>
    %52 = arith.truncf %51 : vector<8x32xf32> to vector<8x32xbf16>
    %c0_25 = arith.constant 0 : index
    %c0_26 = arith.constant 0 : index
    %c0_27 = arith.constant 0 : index
    %53 = vector.load %arg9[%c0_25, %c0_26, %c0_27] : memref<10x32x256xbf16, #tpu.memory_space<vmem>>, vector<1x32x256xbf16>
    %54 = vector.shape_cast %53 : vector<1x32x256xbf16> to vector<32x256xbf16>
    %cst_28 = arith.constant dense<0.000000e+00> : vector<8x256xf32>
    %55 = tpu.matmul %52, %54, %cst_28 {dimension_numbers = #tpu.dot_dimension_numbers<[1], [0], [0], [1], [0, 0, 1, 1], [], []>} : vector<8x32xbf16>, vector<32x256xbf16>, vector<8x256xf32> -> vector<8x256xf32>
    %56 = arith.addf %31, %55 : vector<8x256xf32>
    %57 = vector.extract_strided_slice %14 {offsets = [0, 32], sizes = [8, 32], strides = [1, 1]} : vector<8x320xf32> to vector<8x32xf32>
    %58 = arith.truncf %57 : vector<8x32xf32> to vector<8x32xbf16>
    %59 = vector.extract_strided_slice %19 {offsets = [0, 32], sizes = [8, 32], strides = [1, 1]} : vector<8x320xf32> to vector<8x32xf32>
    %60 = arith.truncf %59 : vector<8x32xf32> to vector<8x32xbf16>
    %61 = vector.extract_strided_slice %24 {offsets = [0, 32], sizes = [8, 32], strides = [1, 1]} : vector<8x320xf32> to vector<8x32xf32>
    %62 = arith.truncf %61 : vector<8x32xf32> to vector<8x32xbf16>
    %cst_29 = arith.constant dense<0.000000e+00> : vector<8x8xf32>
    %63 = tpu.matmul %58, %60, %cst_29 {dimension_numbers = #tpu.dot_dimension_numbers<[1], [1], [0], [0], [0, 0, 1, 0], [], []>} : vector<8x32xbf16>, vector<8x32xbf16>, vector<8x8xf32> -> vector<8x8xf32>
    %64 = arith.addf %63, %30 : vector<8x8xf32>
    %cst_30 = arith.constant dense<0xFF800000> : vector<8xf32>
    %65 = vector.multi_reduction <maximumf>, %64, %cst_30 [1] : vector<8x8xf32> to vector<8xf32>
    %66 = vector.shape_cast %65 : vector<8xf32> to vector<8x1xf32>
    %67 = vector.broadcast %66 : vector<8x1xf32> to vector<8x8xf32>
    %68 = arith.subf %64, %67 : vector<8x8xf32>
    %69 = math.exp %68 : vector<8x8xf32>
    %cst_31 = arith.constant dense<0.000000e+00> : vector<8xf32>
    %70 = vector.multi_reduction <add>, %69, %cst_31 [1] : vector<8x8xf32> to vector<8xf32>
    %71 = vector.shape_cast %70 : vector<8xf32> to vector<8x1xf32>
    %72 = tpu.reciprocal %71 {approx = true} : vector<8x1xf32> -> vector<8x1xf32>
    %73 = vector.broadcast %72 : vector<8x1xf32> to vector<8x8xf32>
    %74 = arith.mulf %69, %73 : vector<8x8xf32>
    %75 = arith.truncf %74 : vector<8x8xf32> to vector<8x8xbf16>
    %cst_32 = arith.constant dense<0.000000e+00> : vector<8x32xf32>
    %76 = tpu.matmul %75, %62, %cst_32 {dimension_numbers = #tpu.dot_dimension_numbers<[1], [0], [0], [1], [0, 0, 1, 1], [], []>} : vector<8x8xbf16>, vector<8x32xbf16>, vector<8x32xf32> -> vector<8x32xf32>
    %77 = arith.truncf %76 : vector<8x32xf32> to vector<8x32xbf16>
    %c1 = arith.constant 1 : index
    %c0_33 = arith.constant 0 : index
    %c0_34 = arith.constant 0 : index
    %78 = vector.load %arg9[%c1, %c0_33, %c0_34] : memref<10x32x256xbf16, #tpu.memory_space<vmem>>, vector<1x32x256xbf16>
    %79 = vector.shape_cast %78 : vector<1x32x256xbf16> to vector<32x256xbf16>
    %cst_35 = arith.constant dense<0.000000e+00> : vector<8x256xf32>
    %80 = tpu.matmul %77, %79, %cst_35 {dimension_numbers = #tpu.dot_dimension_numbers<[1], [0], [0], [1], [0, 0, 1, 1], [], []>} : vector<8x32xbf16>, vector<32x256xbf16>, vector<8x256xf32> -> vector<8x256xf32>
    %81 = arith.addf %56, %80 : vector<8x256xf32>
    %82 = vector.extract_strided_slice %14 {offsets = [0, 64], sizes = [8, 32], strides = [1, 1]} : vector<8x320xf32> to vector<8x32xf32>
    %83 = arith.truncf %82 : vector<8x32xf32> to vector<8x32xbf16>
    %84 = vector.extract_strided_slice %19 {offsets = [0, 64], sizes = [8, 32], strides = [1, 1]} : vector<8x320xf32> to vector<8x32xf32>
    %85 = arith.truncf %84 : vector<8x32xf32> to vector<8x32xbf16>
    %86 = vector.extract_strided_slice %24 {offsets = [0, 64], sizes = [8, 32], strides = [1, 1]} : vector<8x320xf32> to vector<8x32xf32>
    %87 = arith.truncf %86 : vector<8x32xf32> to vector<8x32xbf16>
    %cst_36 = arith.constant dense<0.000000e+00> : vector<8x8xf32>
    %88 = tpu.matmul %83, %85, %cst_36 {dimension_numbers = #tpu.dot_dimension_numbers<[1], [1], [0], [0], [0, 0, 1, 0], [], []>} : vector<8x32xbf16>, vector<8x32xbf16>, vector<8x8xf32> -> vector<8x8xf32>
    %89 = arith.addf %88, %30 : vector<8x8xf32>
    %cst_37 = arith.constant dense<0xFF800000> : vector<8xf32>
    %90 = vector.multi_reduction <maximumf>, %89, %cst_37 [1] : vector<8x8xf32> to vector<8xf32>
    %91 = vector.shape_cast %90 : vector<8xf32> to vector<8x1xf32>
    %92 = vector.broadcast %91 : vector<8x1xf32> to vector<8x8xf32>
    %93 = arith.subf %89, %92 : vector<8x8xf32>
    %94 = math.exp %93 : vector<8x8xf32>
    %cst_38 = arith.constant dense<0.000000e+00> : vector<8xf32>
    %95 = vector.multi_reduction <add>, %94, %cst_38 [1] : vector<8x8xf32> to vector<8xf32>
    %96 = vector.shape_cast %95 : vector<8xf32> to vector<8x1xf32>
    %97 = tpu.reciprocal %96 {approx = true} : vector<8x1xf32> -> vector<8x1xf32>
    %98 = vector.broadcast %97 : vector<8x1xf32> to vector<8x8xf32>
    %99 = arith.mulf %94, %98 : vector<8x8xf32>
    %100 = arith.truncf %99 : vector<8x8xf32> to vector<8x8xbf16>
    %cst_39 = arith.constant dense<0.000000e+00> : vector<8x32xf32>
    %101 = tpu.matmul %100, %87, %cst_39 {dimension_numbers = #tpu.dot_dimension_numbers<[1], [0], [0], [1], [0, 0, 1, 1], [], []>} : vector<8x8xbf16>, vector<8x32xbf16>, vector<8x32xf32> -> vector<8x32xf32>
    %102 = arith.truncf %101 : vector<8x32xf32> to vector<8x32xbf16>
    %c2 = arith.constant 2 : index
    %c0_40 = arith.constant 0 : index
    %c0_41 = arith.constant 0 : index
    %103 = vector.load %arg9[%c2, %c0_40, %c0_41] : memref<10x32x256xbf16, #tpu.memory_space<vmem>>, vector<1x32x256xbf16>
    %104 = vector.shape_cast %103 : vector<1x32x256xbf16> to vector<32x256xbf16>
    %cst_42 = arith.constant dense<0.000000e+00> : vector<8x256xf32>
    %105 = tpu.matmul %102, %104, %cst_42 {dimension_numbers = #tpu.dot_dimension_numbers<[1], [0], [0], [1], [0, 0, 1, 1], [], []>} : vector<8x32xbf16>, vector<32x256xbf16>, vector<8x256xf32> -> vector<8x256xf32>
    %106 = arith.addf %81, %105 : vector<8x256xf32>
    %107 = vector.extract_strided_slice %14 {offsets = [0, 96], sizes = [8, 32], strides = [1, 1]} : vector<8x320xf32> to vector<8x32xf32>
    %108 = arith.truncf %107 : vector<8x32xf32> to vector<8x32xbf16>
    %109 = vector.extract_strided_slice %19 {offsets = [0, 96], sizes = [8, 32], strides = [1, 1]} : vector<8x320xf32> to vector<8x32xf32>
    %110 = arith.truncf %109 : vector<8x32xf32> to vector<8x32xbf16>
    %111 = vector.extract_strided_slice %24 {offsets = [0, 96], sizes = [8, 32], strides = [1, 1]} : vector<8x320xf32> to vector<8x32xf32>
    %112 = arith.truncf %111 : vector<8x32xf32> to vector<8x32xbf16>
    %cst_43 = arith.constant dense<0.000000e+00> : vector<8x8xf32>
    %113 = tpu.matmul %108, %110, %cst_43 {dimension_numbers = #tpu.dot_dimension_numbers<[1], [1], [0], [0], [0, 0, 1, 0], [], []>} : vector<8x32xbf16>, vector<8x32xbf16>, vector<8x8xf32> -> vector<8x8xf32>
    %114 = arith.addf %113, %30 : vector<8x8xf32>
    %cst_44 = arith.constant dense<0xFF800000> : vector<8xf32>
    %115 = vector.multi_reduction <maximumf>, %114, %cst_44 [1] : vector<8x8xf32> to vector<8xf32>
    %116 = vector.shape_cast %115 : vector<8xf32> to vector<8x1xf32>
    %117 = vector.broadcast %116 : vector<8x1xf32> to vector<8x8xf32>
    %118 = arith.subf %114, %117 : vector<8x8xf32>
    %119 = math.exp %118 : vector<8x8xf32>
    %cst_45 = arith.constant dense<0.000000e+00> : vector<8xf32>
    %120 = vector.multi_reduction <add>, %119, %cst_45 [1] : vector<8x8xf32> to vector<8xf32>
    %121 = vector.shape_cast %120 : vector<8xf32> to vector<8x1xf32>
    %122 = tpu.reciprocal %121 {approx = true} : vector<8x1xf32> -> vector<8x1xf32>
    %123 = vector.broadcast %122 : vector<8x1xf32> to vector<8x8xf32>
    %124 = arith.mulf %119, %123 : vector<8x8xf32>
    %125 = arith.truncf %124 : vector<8x8xf32> to vector<8x8xbf16>
    %cst_46 = arith.constant dense<0.000000e+00> : vector<8x32xf32>
    %126 = tpu.matmul %125, %112, %cst_46 {dimension_numbers = #tpu.dot_dimension_numbers<[1], [0], [0], [1], [0, 0, 1, 1], [], []>} : vector<8x8xbf16>, vector<8x32xbf16>, vector<8x32xf32> -> vector<8x32xf32>
    %127 = arith.truncf %126 : vector<8x32xf32> to vector<8x32xbf16>
    %c3 = arith.constant 3 : index
    %c0_47 = arith.constant 0 : index
    %c0_48 = arith.constant 0 : index
    %128 = vector.load %arg9[%c3, %c0_47, %c0_48] : memref<10x32x256xbf16, #tpu.memory_space<vmem>>, vector<1x32x256xbf16>
    %129 = vector.shape_cast %128 : vector<1x32x256xbf16> to vector<32x256xbf16>
    %cst_49 = arith.constant dense<0.000000e+00> : vector<8x256xf32>
    %130 = tpu.matmul %127, %129, %cst_49 {dimension_numbers = #tpu.dot_dimension_numbers<[1], [0], [0], [1], [0, 0, 1, 1], [], []>} : vector<8x32xbf16>, vector<32x256xbf16>, vector<8x256xf32> -> vector<8x256xf32>
    %131 = arith.addf %106, %130 : vector<8x256xf32>
    %132 = vector.extract_strided_slice %14 {offsets = [0, 128], sizes = [8, 32], strides = [1, 1]} : vector<8x320xf32> to vector<8x32xf32>
    %133 = arith.truncf %132 : vector<8x32xf32> to vector<8x32xbf16>
    %134 = vector.extract_strided_slice %19 {offsets = [0, 128], sizes = [8, 32], strides = [1, 1]} : vector<8x320xf32> to vector<8x32xf32>
    %135 = arith.truncf %134 : vector<8x32xf32> to vector<8x32xbf16>
    %136 = vector.extract_strided_slice %24 {offsets = [0, 128], sizes = [8, 32], strides = [1, 1]} : vector<8x320xf32> to vector<8x32xf32>
    %137 = arith.truncf %136 : vector<8x32xf32> to vector<8x32xbf16>
    %cst_50 = arith.constant dense<0.000000e+00> : vector<8x8xf32>
    %138 = tpu.matmul %133, %135, %cst_50 {dimension_numbers = #tpu.dot_dimension_numbers<[1], [1], [0], [0], [0, 0, 1, 0], [], []>} : vector<8x32xbf16>, vector<8x32xbf16>, vector<8x8xf32> -> vector<8x8xf32>
    %139 = arith.addf %138, %30 : vector<8x8xf32>
    %cst_51 = arith.constant dense<0xFF800000> : vector<8xf32>
    %140 = vector.multi_reduction <maximumf>, %139, %cst_51 [1] : vector<8x8xf32> to vector<8xf32>
    %141 = vector.shape_cast %140 : vector<8xf32> to vector<8x1xf32>
    %142 = vector.broadcast %141 : vector<8x1xf32> to vector<8x8xf32>
    %143 = arith.subf %139, %142 : vector<8x8xf32>
    %144 = math.exp %143 : vector<8x8xf32>
    %cst_52 = arith.constant dense<0.000000e+00> : vector<8xf32>
    %145 = vector.multi_reduction <add>, %144, %cst_52 [1] : vector<8x8xf32> to vector<8xf32>
    %146 = vector.shape_cast %145 : vector<8xf32> to vector<8x1xf32>
    %147 = tpu.reciprocal %146 {approx = true} : vector<8x1xf32> -> vector<8x1xf32>
    %148 = vector.broadcast %147 : vector<8x1xf32> to vector<8x8xf32>
    %149 = arith.mulf %144, %148 : vector<8x8xf32>
    %150 = arith.truncf %149 : vector<8x8xf32> to vector<8x8xbf16>
    %cst_53 = arith.constant dense<0.000000e+00> : vector<8x32xf32>
    %151 = tpu.matmul %150, %137, %cst_53 {dimension_numbers = #tpu.dot_dimension_numbers<[1], [0], [0], [1], [0, 0, 1, 1], [], []>} : vector<8x8xbf16>, vector<8x32xbf16>, vector<8x32xf32> -> vector<8x32xf32>
    %152 = arith.truncf %151 : vector<8x32xf32> to vector<8x32xbf16>
    %c4 = arith.constant 4 : index
    %c0_54 = arith.constant 0 : index
    %c0_55 = arith.constant 0 : index
    %153 = vector.load %arg9[%c4, %c0_54, %c0_55] : memref<10x32x256xbf16, #tpu.memory_space<vmem>>, vector<1x32x256xbf16>
    %154 = vector.shape_cast %153 : vector<1x32x256xbf16> to vector<32x256xbf16>
    %cst_56 = arith.constant dense<0.000000e+00> : vector<8x256xf32>
    %155 = tpu.matmul %152, %154, %cst_56 {dimension_numbers = #tpu.dot_dimension_numbers<[1], [0], [0], [1], [0, 0, 1, 1], [], []>} : vector<8x32xbf16>, vector<32x256xbf16>, vector<8x256xf32> -> vector<8x256xf32>
    %156 = arith.addf %131, %155 : vector<8x256xf32>
    %157 = vector.extract_strided_slice %14 {offsets = [0, 160], sizes = [8, 32], strides = [1, 1]} : vector<8x320xf32> to vector<8x32xf32>
    %158 = arith.truncf %157 : vector<8x32xf32> to vector<8x32xbf16>
    %159 = vector.extract_strided_slice %19 {offsets = [0, 160], sizes = [8, 32], strides = [1, 1]} : vector<8x320xf32> to vector<8x32xf32>
    %160 = arith.truncf %159 : vector<8x32xf32> to vector<8x32xbf16>
    %161 = vector.extract_strided_slice %24 {offsets = [0, 160], sizes = [8, 32], strides = [1, 1]} : vector<8x320xf32> to vector<8x32xf32>
    %162 = arith.truncf %161 : vector<8x32xf32> to vector<8x32xbf16>
    %cst_57 = arith.constant dense<0.000000e+00> : vector<8x8xf32>
    %163 = tpu.matmul %158, %160, %cst_57 {dimension_numbers = #tpu.dot_dimension_numbers<[1], [1], [0], [0], [0, 0, 1, 0], [], []>} : vector<8x32xbf16>, vector<8x32xbf16>, vector<8x8xf32> -> vector<8x8xf32>
    %164 = arith.addf %163, %30 : vector<8x8xf32>
    %cst_58 = arith.constant dense<0xFF800000> : vector<8xf32>
    %165 = vector.multi_reduction <maximumf>, %164, %cst_58 [1] : vector<8x8xf32> to vector<8xf32>
    %166 = vector.shape_cast %165 : vector<8xf32> to vector<8x1xf32>
    %167 = vector.broadcast %166 : vector<8x1xf32> to vector<8x8xf32>
    %168 = arith.subf %164, %167 : vector<8x8xf32>
    %169 = math.exp %168 : vector<8x8xf32>
    %cst_59 = arith.constant dense<0.000000e+00> : vector<8xf32>
    %170 = vector.multi_reduction <add>, %169, %cst_59 [1] : vector<8x8xf32> to vector<8xf32>
    %171 = vector.shape_cast %170 : vector<8xf32> to vector<8x1xf32>
    %172 = tpu.reciprocal %171 {approx = true} : vector<8x1xf32> -> vector<8x1xf32>
    %173 = vector.broadcast %172 : vector<8x1xf32> to vector<8x8xf32>
    %174 = arith.mulf %169, %173 : vector<8x8xf32>
    %175 = arith.truncf %174 : vector<8x8xf32> to vector<8x8xbf16>
    %cst_60 = arith.constant dense<0.000000e+00> : vector<8x32xf32>
    %176 = tpu.matmul %175, %162, %cst_60 {dimension_numbers = #tpu.dot_dimension_numbers<[1], [0], [0], [1], [0, 0, 1, 1], [], []>} : vector<8x8xbf16>, vector<8x32xbf16>, vector<8x32xf32> -> vector<8x32xf32>
    %177 = arith.truncf %176 : vector<8x32xf32> to vector<8x32xbf16>
    %c5 = arith.constant 5 : index
    %c0_61 = arith.constant 0 : index
    %c0_62 = arith.constant 0 : index
    %178 = vector.load %arg9[%c5, %c0_61, %c0_62] : memref<10x32x256xbf16, #tpu.memory_space<vmem>>, vector<1x32x256xbf16>
    %179 = vector.shape_cast %178 : vector<1x32x256xbf16> to vector<32x256xbf16>
    %cst_63 = arith.constant dense<0.000000e+00> : vector<8x256xf32>
    %180 = tpu.matmul %177, %179, %cst_63 {dimension_numbers = #tpu.dot_dimension_numbers<[1], [0], [0], [1], [0, 0, 1, 1], [], []>} : vector<8x32xbf16>, vector<32x256xbf16>, vector<8x256xf32> -> vector<8x256xf32>
    %181 = arith.addf %156, %180 : vector<8x256xf32>
    %182 = vector.extract_strided_slice %14 {offsets = [0, 192], sizes = [8, 32], strides = [1, 1]} : vector<8x320xf32> to vector<8x32xf32>
    %183 = arith.truncf %182 : vector<8x32xf32> to vector<8x32xbf16>
    %184 = vector.extract_strided_slice %19 {offsets = [0, 192], sizes = [8, 32], strides = [1, 1]} : vector<8x320xf32> to vector<8x32xf32>
    %185 = arith.truncf %184 : vector<8x32xf32> to vector<8x32xbf16>
    %186 = vector.extract_strided_slice %24 {offsets = [0, 192], sizes = [8, 32], strides = [1, 1]} : vector<8x320xf32> to vector<8x32xf32>
    %187 = arith.truncf %186 : vector<8x32xf32> to vector<8x32xbf16>
    %cst_64 = arith.constant dense<0.000000e+00> : vector<8x8xf32>
    %188 = tpu.matmul %183, %185, %cst_64 {dimension_numbers = #tpu.dot_dimension_numbers<[1], [1], [0], [0], [0, 0, 1, 0], [], []>} : vector<8x32xbf16>, vector<8x32xbf16>, vector<8x8xf32> -> vector<8x8xf32>
    %189 = arith.addf %188, %30 : vector<8x8xf32>
    %cst_65 = arith.constant dense<0xFF800000> : vector<8xf32>
    %190 = vector.multi_reduction <maximumf>, %189, %cst_65 [1] : vector<8x8xf32> to vector<8xf32>
    %191 = vector.shape_cast %190 : vector<8xf32> to vector<8x1xf32>
    %192 = vector.broadcast %191 : vector<8x1xf32> to vector<8x8xf32>
    %193 = arith.subf %189, %192 : vector<8x8xf32>
    %194 = math.exp %193 : vector<8x8xf32>
    %cst_66 = arith.constant dense<0.000000e+00> : vector<8xf32>
    %195 = vector.multi_reduction <add>, %194, %cst_66 [1] : vector<8x8xf32> to vector<8xf32>
    %196 = vector.shape_cast %195 : vector<8xf32> to vector<8x1xf32>
    %197 = tpu.reciprocal %196 {approx = true} : vector<8x1xf32> -> vector<8x1xf32>
    %198 = vector.broadcast %197 : vector<8x1xf32> to vector<8x8xf32>
    %199 = arith.mulf %194, %198 : vector<8x8xf32>
    %200 = arith.truncf %199 : vector<8x8xf32> to vector<8x8xbf16>
    %cst_67 = arith.constant dense<0.000000e+00> : vector<8x32xf32>
    %201 = tpu.matmul %200, %187, %cst_67 {dimension_numbers = #tpu.dot_dimension_numbers<[1], [0], [0], [1], [0, 0, 1, 1], [], []>} : vector<8x8xbf16>, vector<8x32xbf16>, vector<8x32xf32> -> vector<8x32xf32>
    %202 = arith.truncf %201 : vector<8x32xf32> to vector<8x32xbf16>
    %c6 = arith.constant 6 : index
    %c0_68 = arith.constant 0 : index
    %c0_69 = arith.constant 0 : index
    %203 = vector.load %arg9[%c6, %c0_68, %c0_69] : memref<10x32x256xbf16, #tpu.memory_space<vmem>>, vector<1x32x256xbf16>
    %204 = vector.shape_cast %203 : vector<1x32x256xbf16> to vector<32x256xbf16>
    %cst_70 = arith.constant dense<0.000000e+00> : vector<8x256xf32>
    %205 = tpu.matmul %202, %204, %cst_70 {dimension_numbers = #tpu.dot_dimension_numbers<[1], [0], [0], [1], [0, 0, 1, 1], [], []>} : vector<8x32xbf16>, vector<32x256xbf16>, vector<8x256xf32> -> vector<8x256xf32>
    %206 = arith.addf %181, %205 : vector<8x256xf32>
    %207 = vector.extract_strided_slice %14 {offsets = [0, 224], sizes = [8, 32], strides = [1, 1]} : vector<8x320xf32> to vector<8x32xf32>
    %208 = arith.truncf %207 : vector<8x32xf32> to vector<8x32xbf16>
    %209 = vector.extract_strided_slice %19 {offsets = [0, 224], sizes = [8, 32], strides = [1, 1]} : vector<8x320xf32> to vector<8x32xf32>
    %210 = arith.truncf %209 : vector<8x32xf32> to vector<8x32xbf16>
    %211 = vector.extract_strided_slice %24 {offsets = [0, 224], sizes = [8, 32], strides = [1, 1]} : vector<8x320xf32> to vector<8x32xf32>
    %212 = arith.truncf %211 : vector<8x32xf32> to vector<8x32xbf16>
    %cst_71 = arith.constant dense<0.000000e+00> : vector<8x8xf32>
    %213 = tpu.matmul %208, %210, %cst_71 {dimension_numbers = #tpu.dot_dimension_numbers<[1], [1], [0], [0], [0, 0, 1, 0], [], []>} : vector<8x32xbf16>, vector<8x32xbf16>, vector<8x8xf32> -> vector<8x8xf32>
    %214 = arith.addf %213, %30 : vector<8x8xf32>
    %cst_72 = arith.constant dense<0xFF800000> : vector<8xf32>
    %215 = vector.multi_reduction <maximumf>, %214, %cst_72 [1] : vector<8x8xf32> to vector<8xf32>
    %216 = vector.shape_cast %215 : vector<8xf32> to vector<8x1xf32>
    %217 = vector.broadcast %216 : vector<8x1xf32> to vector<8x8xf32>
    %218 = arith.subf %214, %217 : vector<8x8xf32>
    %219 = math.exp %218 : vector<8x8xf32>
    %cst_73 = arith.constant dense<0.000000e+00> : vector<8xf32>
    %220 = vector.multi_reduction <add>, %219, %cst_73 [1] : vector<8x8xf32> to vector<8xf32>
    %221 = vector.shape_cast %220 : vector<8xf32> to vector<8x1xf32>
    %222 = tpu.reciprocal %221 {approx = true} : vector<8x1xf32> -> vector<8x1xf32>
    %223 = vector.broadcast %222 : vector<8x1xf32> to vector<8x8xf32>
    %224 = arith.mulf %219, %223 : vector<8x8xf32>
    %225 = arith.truncf %224 : vector<8x8xf32> to vector<8x8xbf16>
    %cst_74 = arith.constant dense<0.000000e+00> : vector<8x32xf32>
    %226 = tpu.matmul %225, %212, %cst_74 {dimension_numbers = #tpu.dot_dimension_numbers<[1], [0], [0], [1], [0, 0, 1, 1], [], []>} : vector<8x8xbf16>, vector<8x32xbf16>, vector<8x32xf32> -> vector<8x32xf32>
    %227 = arith.truncf %226 : vector<8x32xf32> to vector<8x32xbf16>
    %c7 = arith.constant 7 : index
    %c0_75 = arith.constant 0 : index
    %c0_76 = arith.constant 0 : index
    %228 = vector.load %arg9[%c7, %c0_75, %c0_76] : memref<10x32x256xbf16, #tpu.memory_space<vmem>>, vector<1x32x256xbf16>
    %229 = vector.shape_cast %228 : vector<1x32x256xbf16> to vector<32x256xbf16>
    %cst_77 = arith.constant dense<0.000000e+00> : vector<8x256xf32>
    %230 = tpu.matmul %227, %229, %cst_77 {dimension_numbers = #tpu.dot_dimension_numbers<[1], [0], [0], [1], [0, 0, 1, 1], [], []>} : vector<8x32xbf16>, vector<32x256xbf16>, vector<8x256xf32> -> vector<8x256xf32>
    %231 = arith.addf %206, %230 : vector<8x256xf32>
    %232 = vector.extract_strided_slice %14 {offsets = [0, 256], sizes = [8, 32], strides = [1, 1]} : vector<8x320xf32> to vector<8x32xf32>
    %233 = arith.truncf %232 : vector<8x32xf32> to vector<8x32xbf16>
    %234 = vector.extract_strided_slice %19 {offsets = [0, 256], sizes = [8, 32], strides = [1, 1]} : vector<8x320xf32> to vector<8x32xf32>
    %235 = arith.truncf %234 : vector<8x32xf32> to vector<8x32xbf16>
    %236 = vector.extract_strided_slice %24 {offsets = [0, 256], sizes = [8, 32], strides = [1, 1]} : vector<8x320xf32> to vector<8x32xf32>
    %237 = arith.truncf %236 : vector<8x32xf32> to vector<8x32xbf16>
    %cst_78 = arith.constant dense<0.000000e+00> : vector<8x8xf32>
    %238 = tpu.matmul %233, %235, %cst_78 {dimension_numbers = #tpu.dot_dimension_numbers<[1], [1], [0], [0], [0, 0, 1, 0], [], []>} : vector<8x32xbf16>, vector<8x32xbf16>, vector<8x8xf32> -> vector<8x8xf32>
    %239 = arith.addf %238, %30 : vector<8x8xf32>
    %cst_79 = arith.constant dense<0xFF800000> : vector<8xf32>
    %240 = vector.multi_reduction <maximumf>, %239, %cst_79 [1] : vector<8x8xf32> to vector<8xf32>
    %241 = vector.shape_cast %240 : vector<8xf32> to vector<8x1xf32>
    %242 = vector.broadcast %241 : vector<8x1xf32> to vector<8x8xf32>
    %243 = arith.subf %239, %242 : vector<8x8xf32>
    %244 = math.exp %243 : vector<8x8xf32>
    %cst_80 = arith.constant dense<0.000000e+00> : vector<8xf32>
    %245 = vector.multi_reduction <add>, %244, %cst_80 [1] : vector<8x8xf32> to vector<8xf32>
    %246 = vector.shape_cast %245 : vector<8xf32> to vector<8x1xf32>
    %247 = tpu.reciprocal %246 {approx = true} : vector<8x1xf32> -> vector<8x1xf32>
    %248 = vector.broadcast %247 : vector<8x1xf32> to vector<8x8xf32>
    %249 = arith.mulf %244, %248 : vector<8x8xf32>
    %250 = arith.truncf %249 : vector<8x8xf32> to vector<8x8xbf16>
    %cst_81 = arith.constant dense<0.000000e+00> : vector<8x32xf32>
    %251 = tpu.matmul %250, %237, %cst_81 {dimension_numbers = #tpu.dot_dimension_numbers<[1], [0], [0], [1], [0, 0, 1, 1], [], []>} : vector<8x8xbf16>, vector<8x32xbf16>, vector<8x32xf32> -> vector<8x32xf32>
    %252 = arith.truncf %251 : vector<8x32xf32> to vector<8x32xbf16>
    %c8 = arith.constant 8 : index
    %c0_82 = arith.constant 0 : index
    %c0_83 = arith.constant 0 : index
    %253 = vector.load %arg9[%c8, %c0_82, %c0_83] : memref<10x32x256xbf16, #tpu.memory_space<vmem>>, vector<1x32x256xbf16>
    %254 = vector.shape_cast %253 : vector<1x32x256xbf16> to vector<32x256xbf16>
    %cst_84 = arith.constant dense<0.000000e+00> : vector<8x256xf32>
    %255 = tpu.matmul %252, %254, %cst_84 {dimension_numbers = #tpu.dot_dimension_numbers<[1], [0], [0], [1], [0, 0, 1, 1], [], []>} : vector<8x32xbf16>, vector<32x256xbf16>, vector<8x256xf32> -> vector<8x256xf32>
    %256 = arith.addf %231, %255 : vector<8x256xf32>
    %257 = vector.extract_strided_slice %14 {offsets = [0, 288], sizes = [8, 32], strides = [1, 1]} : vector<8x320xf32> to vector<8x32xf32>
    %258 = arith.truncf %257 : vector<8x32xf32> to vector<8x32xbf16>
    %259 = vector.extract_strided_slice %19 {offsets = [0, 288], sizes = [8, 32], strides = [1, 1]} : vector<8x320xf32> to vector<8x32xf32>
    %260 = arith.truncf %259 : vector<8x32xf32> to vector<8x32xbf16>
    %261 = vector.extract_strided_slice %24 {offsets = [0, 288], sizes = [8, 32], strides = [1, 1]} : vector<8x320xf32> to vector<8x32xf32>
    %262 = arith.truncf %261 : vector<8x32xf32> to vector<8x32xbf16>
    %cst_85 = arith.constant dense<0.000000e+00> : vector<8x8xf32>
    %263 = tpu.matmul %258, %260, %cst_85 {dimension_numbers = #tpu.dot_dimension_numbers<[1], [1], [0], [0], [0, 0, 1, 0], [], []>} : vector<8x32xbf16>, vector<8x32xbf16>, vector<8x8xf32> -> vector<8x8xf32>
    %264 = arith.addf %263, %30 : vector<8x8xf32>
    %cst_86 = arith.constant dense<0xFF800000> : vector<8xf32>
    %265 = vector.multi_reduction <maximumf>, %264, %cst_86 [1] : vector<8x8xf32> to vector<8xf32>
    %266 = vector.shape_cast %265 : vector<8xf32> to vector<8x1xf32>
    %267 = vector.broadcast %266 : vector<8x1xf32> to vector<8x8xf32>
    %268 = arith.subf %264, %267 : vector<8x8xf32>
    %269 = math.exp %268 : vector<8x8xf32>
    %cst_87 = arith.constant dense<0.000000e+00> : vector<8xf32>
    %270 = vector.multi_reduction <add>, %269, %cst_87 [1] : vector<8x8xf32> to vector<8xf32>
    %271 = vector.shape_cast %270 : vector<8xf32> to vector<8x1xf32>
    %272 = tpu.reciprocal %271 {approx = true} : vector<8x1xf32> -> vector<8x1xf32>
    %273 = vector.broadcast %272 : vector<8x1xf32> to vector<8x8xf32>
    %274 = arith.mulf %269, %273 : vector<8x8xf32>
    %275 = arith.truncf %274 : vector<8x8xf32> to vector<8x8xbf16>
    %cst_88 = arith.constant dense<0.000000e+00> : vector<8x32xf32>
    %276 = tpu.matmul %275, %262, %cst_88 {dimension_numbers = #tpu.dot_dimension_numbers<[1], [0], [0], [1], [0, 0, 1, 1], [], []>} : vector<8x8xbf16>, vector<8x32xbf16>, vector<8x32xf32> -> vector<8x32xf32>
    %277 = arith.truncf %276 : vector<8x32xf32> to vector<8x32xbf16>
    %c9 = arith.constant 9 : index
    %c0_89 = arith.constant 0 : index
    %c0_90 = arith.constant 0 : index
    %278 = vector.load %arg9[%c9, %c0_89, %c0_90] : memref<10x32x256xbf16, #tpu.memory_space<vmem>>, vector<1x32x256xbf16>
    %279 = vector.shape_cast %278 : vector<1x32x256xbf16> to vector<32x256xbf16>
    %cst_91 = arith.constant dense<0.000000e+00> : vector<8x256xf32>
    %280 = tpu.matmul %277, %279, %cst_91 {dimension_numbers = #tpu.dot_dimension_numbers<[1], [0], [0], [1], [0, 0, 1, 1], [], []>} : vector<8x32xbf16>, vector<32x256xbf16>, vector<8x256xf32> -> vector<8x256xf32>
    %281 = arith.addf %256, %280 : vector<8x256xf32>
    %c0_92 = arith.constant 0 : index
    %c0_93 = arith.constant 0 : index
    %282 = vector.load %arg10[%c0_92, %c0_93] : memref<1x256xf32, #tpu.memory_space<vmem>>, vector<1x256xf32>
    %283 = vector.broadcast %282 : vector<1x256xf32> to vector<8x256xf32>
    %284 = arith.addf %281, %283 : vector<8x256xf32>
    %285 = arith.addf %8, %284 : vector<8x256xf32>
    %c0_94 = arith.constant 0 : index
    %c0_95 = arith.constant 0 : index
    %286 = vector.load %arg11[%c0_94, %c0_95] : memref<1x256xf32, #tpu.memory_space<vmem>>, vector<1x256xf32>
    %c0_96 = arith.constant 0 : index
    %c0_97 = arith.constant 0 : index
    %287 = vector.load %arg12[%c0_96, %c0_97] : memref<1x256xf32, #tpu.memory_space<vmem>>, vector<1x256xf32>
    %cst_98 = arith.constant dense<0.000000e+00> : vector<8xf32>
    %288 = vector.multi_reduction <add>, %285, %cst_98 [1] : vector<8x256xf32> to vector<8xf32>
    %289 = vector.shape_cast %288 : vector<8xf32> to vector<8x1xf32>
    %cst_99 = arith.constant 4.000000e-03 : f32
    %290 = vector.broadcast %cst_99 : f32 to vector<8x1xf32>
    %291 = arith.mulf %289, %290 : vector<8x1xf32>
    %292 = vector.broadcast %291 : vector<8x1xf32> to vector<8x256xf32>
    %293 = arith.subf %285, %292 : vector<8x256xf32>
    %294 = arith.mulf %293, %4 : vector<8x256xf32>
    %295 = arith.mulf %294, %294 : vector<8x256xf32>
    %cst_100 = arith.constant dense<0.000000e+00> : vector<8xf32>
    %296 = vector.multi_reduction <add>, %295, %cst_100 [1] : vector<8x256xf32> to vector<8xf32>
    %297 = vector.shape_cast %296 : vector<8xf32> to vector<8x1xf32>
    %cst_101 = arith.constant 4.000000e-03 : f32
    %298 = vector.broadcast %cst_101 : f32 to vector<8x1xf32>
    %299 = arith.mulf %297, %298 : vector<8x1xf32>
    %cst_102 = arith.constant 9.99999974E-6 : f32
    %300 = vector.broadcast %cst_102 : f32 to vector<8x1xf32>
    %301 = arith.addf %299, %300 : vector<8x1xf32>
    %302 = math.rsqrt %301 : vector<8x1xf32>
    %303 = vector.broadcast %302 : vector<8x1xf32> to vector<8x256xf32>
    %304 = arith.mulf %294, %303 : vector<8x256xf32>
    %305 = vector.broadcast %286 : vector<1x256xf32> to vector<8x256xf32>
    %306 = arith.mulf %304, %305 : vector<8x256xf32>
    %307 = vector.broadcast %287 : vector<1x256xf32> to vector<8x256xf32>
    %308 = arith.addf %306, %307 : vector<8x256xf32>
    %309 = arith.truncf %308 : vector<8x256xf32> to vector<8x256xbf16>
    %c0_103 = arith.constant 0 : index
    %c0_104 = arith.constant 0 : index
    %310 = vector.load %arg13[%c0_103, %c0_104] : memref<256x2048xbf16, #tpu.memory_space<vmem>>, vector<256x2048xbf16>
    %cst_105 = arith.constant dense<0.000000e+00> : vector<8x2048xf32>
    %311 = tpu.matmul %309, %310, %cst_105 {dimension_numbers = #tpu.dot_dimension_numbers<[1], [0], [0], [1], [0, 0, 1, 1], [], []>} : vector<8x256xbf16>, vector<256x2048xbf16>, vector<8x2048xf32> -> vector<8x2048xf32>
    %c0_106 = arith.constant 0 : index
    %c0_107 = arith.constant 0 : index
    %312 = vector.load %arg14[%c0_106, %c0_107] : memref<1x2048xf32, #tpu.memory_space<vmem>>, vector<1x2048xf32>
    %313 = vector.broadcast %312 : vector<1x2048xf32> to vector<8x2048xf32>
    %314 = arith.addf %311, %313 : vector<8x2048xf32>
    %cst_108 = arith.constant 0.000000e+00 : f32
    %315 = vector.broadcast %cst_108 : f32 to vector<8x2048xf32>
    %316 = arith.maximumf %314, %315 : vector<8x2048xf32>
    %317 = arith.truncf %316 : vector<8x2048xf32> to vector<8x2048xbf16>
    %c0_109 = arith.constant 0 : index
    %c0_110 = arith.constant 0 : index
    %318 = vector.load %arg15[%c0_109, %c0_110] : memref<2048x256xbf16, #tpu.memory_space<vmem>>, vector<2048x256xbf16>
    %cst_111 = arith.constant dense<0.000000e+00> : vector<8x256xf32>
    %319 = tpu.matmul %317, %318, %cst_111 {dimension_numbers = #tpu.dot_dimension_numbers<[1], [0], [0], [1], [0, 0, 1, 1], [], []>} : vector<8x2048xbf16>, vector<2048x256xbf16>, vector<8x256xf32> -> vector<8x256xf32>
    %c0_112 = arith.constant 0 : index
    %c0_113 = arith.constant 0 : index
    %320 = vector.load %arg16[%c0_112, %c0_113] : memref<1x256xf32, #tpu.memory_space<vmem>>, vector<1x256xf32>
    %321 = vector.broadcast %320 : vector<1x256xf32> to vector<8x256xf32>
    %322 = arith.addf %319, %321 : vector<8x256xf32>
    %323 = arith.addf %308, %322 : vector<8x256xf32>
    %c0_114 = arith.constant 0 : index
    %c0_115 = arith.constant 0 : index
    %324 = vector.load %arg17[%c0_114, %c0_115] : memref<1x256xf32, #tpu.memory_space<vmem>>, vector<1x256xf32>
    %c0_116 = arith.constant 0 : index
    %c0_117 = arith.constant 0 : index
    %325 = vector.load %arg18[%c0_116, %c0_117] : memref<1x256xf32, #tpu.memory_space<vmem>>, vector<1x256xf32>
    %cst_118 = arith.constant dense<0.000000e+00> : vector<8xf32>
    %326 = vector.multi_reduction <add>, %323, %cst_118 [1] : vector<8x256xf32> to vector<8xf32>
    %327 = vector.shape_cast %326 : vector<8xf32> to vector<8x1xf32>
    %cst_119 = arith.constant 4.000000e-03 : f32
    %328 = vector.broadcast %cst_119 : f32 to vector<8x1xf32>
    %329 = arith.mulf %327, %328 : vector<8x1xf32>
    %330 = vector.broadcast %329 : vector<8x1xf32> to vector<8x256xf32>
    %331 = arith.subf %323, %330 : vector<8x256xf32>
    %332 = arith.mulf %331, %4 : vector<8x256xf32>
    %333 = arith.mulf %332, %332 : vector<8x256xf32>
    %cst_120 = arith.constant dense<0.000000e+00> : vector<8xf32>
    %334 = vector.multi_reduction <add>, %333, %cst_120 [1] : vector<8x256xf32> to vector<8xf32>
    %335 = vector.shape_cast %334 : vector<8xf32> to vector<8x1xf32>
    %cst_121 = arith.constant 4.000000e-03 : f32
    %336 = vector.broadcast %cst_121 : f32 to vector<8x1xf32>
    %337 = arith.mulf %335, %336 : vector<8x1xf32>
    %cst_122 = arith.constant 9.99999974E-6 : f32
    %338 = vector.broadcast %cst_122 : f32 to vector<8x1xf32>
    %339 = arith.addf %337, %338 : vector<8x1xf32>
    %340 = math.rsqrt %339 : vector<8x1xf32>
    %341 = vector.broadcast %340 : vector<8x1xf32> to vector<8x256xf32>
    %342 = arith.mulf %332, %341 : vector<8x256xf32>
    %343 = vector.broadcast %324 : vector<1x256xf32> to vector<8x256xf32>
    %344 = arith.mulf %342, %343 : vector<8x256xf32>
    %345 = vector.broadcast %325 : vector<1x256xf32> to vector<8x256xf32>
    %346 = arith.addf %344, %345 : vector<8x256xf32>
    %c0_123 = arith.constant 0 : index
    %c0_124 = arith.constant 0 : index
    %347 = vector.load %arg19[%c0_123, %c0_124] : memref<1x256xf32, #tpu.memory_space<vmem>>, vector<1x256xf32>
    %348 = vector.broadcast %347 : vector<1x256xf32> to vector<8x256xf32>
    %349 = arith.mulf %346, %348 : vector<8x256xf32>
    %cst_125 = arith.constant dense<0.000000e+00> : vector<8xf32>
    %350 = vector.multi_reduction <add>, %349, %cst_125 [1] : vector<8x256xf32> to vector<8xf32>
    %351 = vector.shape_cast %350 : vector<8xf32> to vector<8x1xf32>
    %c0_126 = arith.constant 0 : index
    %c0_127 = arith.constant 0 : index
    %352 = vector.load %arg20[%c0_126, %c0_127] : memref<1x1xf32, #tpu.memory_space<vmem>>, vector<1x1xf32>
    %353 = vector.broadcast %352 : vector<1x1xf32> to vector<8x1xf32>
    %354 = arith.addf %351, %353 : vector<8x1xf32>
    %c0_128 = arith.constant 0 : index
    %c0_129 = arith.constant 0 : index
    %c0_130 = arith.constant 0 : index
    %355 = vector.load %arg21[%c0_128, %c0_129, %c0_130] : memref<1x8x1xf32, #tpu.memory_space<vmem>>, vector<1x8x1xf32>
    %356 = vector.shape_cast %355 : vector<1x8x1xf32> to vector<8x1xf32>
    %357 = vector.shape_cast %354 : vector<8x1xf32> to vector<1x8x1xf32>
    tpu.vector_store %arg21[%c0_128, %c0_129, %c0_130], %357 {strides = array<i32>} : memref<1x8x1xf32, #tpu.memory_space<vmem>>, vector<1x8x1xf32>,
    return
  }
  func.func @transform_0(%arg0: i32) -> (i32, i32, i32) {
    %c0_i32 = arith.constant 0 : i32
    %c0_i32_0 = arith.constant 0 : i32
    %c0_i32_1 = arith.constant 0 : i32
    return %arg0, %c0_i32, %c0_i32_0 : i32, i32, i32
  }
  func.func @transform_1(%arg0: i32) -> (i32, i32) {
    %c0_i32 = arith.constant 0 : i32
    %c0_i32_0 = arith.constant 0 : i32
    %c0_i32_1 = arith.constant 0 : i32
    return %c0_i32, %c0_i32_0 : i32, i32
  }
  func.func @transform_2(%arg0: i32) -> (i32, i32) {
    %c0_i32 = arith.constant 0 : i32
    %c0_i32_0 = arith.constant 0 : i32
    %c0_i32_1 = arith.constant 0 : i32
    return %c0_i32, %c0_i32_0 : i32, i32
  }
  func.func @transform_3(%arg0: i32) -> (i32, i32) {
    %c0_i32 = arith.constant 0 : i32
    %c0_i32_0 = arith.constant 0 : i32
    %c0_i32_1 = arith.constant 0 : i32
    return %c0_i32, %c0_i32_0 : i32, i32
  }
  func.func @transform_4(%arg0: i32) -> (i32, i32) {
    %c0_i32 = arith.constant 0 : i32
    %c0_i32_0 = arith.constant 0 : i32
    %c0_i32_1 = arith.constant 0 : i32
    return %c0_i32, %c0_i32_0 : i32, i32
  }
  func.func @transform_5(%arg0: i32) -> (i32, i32) {
    %c0_i32 = arith.constant 0 : i32
    %c0_i32_0 = arith.constant 0 : i32
    %c0_i32_1 = arith.constant 0 : i32
    return %c0_i32, %c0_i32_0 : i32, i32
  }
  func.func @transform_6(%arg0: i32) -> (i32, i32) {
    %c0_i32 = arith.constant 0 : i32
    %c0_i32_0 = arith.constant 0 : i32
    %c0_i32_1 = arith.constant 0 : i32
    return %c0_i32, %c0_i32_0 : i32, i32
  }
  func.func @transform_7(%arg0: i32) -> (i32, i32) {
    %c0_i32 = arith.constant 0 : i32
    %c0_i32_0 = arith.constant 0 : i32
    %c0_i32_1 = arith.constant 0 : i32
    return %c0_i32, %c0_i32_0 : i32, i32
  }
  func.func @transform_8(%arg0: i32) -> (i32, i32, i32) {
    %c0_i32 = arith.constant 0 : i32
    %c0_i32_0 = arith.constant 0 : i32
    %c0_i32_1 = arith.constant 0 : i32
    %c0_i32_2 = arith.constant 0 : i32
    return %c0_i32, %c0_i32_0, %c0_i32_1 : i32, i32, i32
  }
  func.func @transform_9(%arg0: i32) -> (i32, i32) {
    %c0_i32 = arith.constant 0 : i32
    %c0_i32_0 = arith.constant 0 : i32
    %c0_i32_1 = arith.constant 0 : i32
    return %c0_i32, %c0_i32_0 : i32, i32
  }
  func.func @transform_10(%arg0: i32) -> (i32, i32) {
    %c0_i32 = arith.constant 0 : i32
    %c0_i32_0 = arith.constant 0 : i32
    %c0_i32_1 = arith.constant 0 : i32
    return %c0_i32, %c0_i32_0 : i32, i32
  }
  func.func @transform_11(%arg0: i32) -> (i32, i32) {
    %c0_i32 = arith.constant 0 : i32
    %c0_i32_0 = arith.constant 0 : i32
    %c0_i32_1 = arith.constant 0 : i32
    return %c0_i32, %c0_i32_0 : i32, i32
  }
  func.func @transform_12(%arg0: i32) -> (i32, i32) {
    %c0_i32 = arith.constant 0 : i32
    %c0_i32_0 = arith.constant 0 : i32
    %c0_i32_1 = arith.constant 0 : i32
    return %c0_i32, %c0_i32_0 : i32, i32
  }
  func.func @transform_13(%arg0: i32) -> (i32, i32) {
    %c0_i32 = arith.constant 0 : i32
    %c0_i32_0 = arith.constant 0 : i32
    %c0_i32_1 = arith.constant 0 : i32
    return %c0_i32, %c0_i32_0 : i32, i32
  }
  func.func @transform_14(%arg0: i32) -> (i32, i32) {
    %c0_i32 = arith.constant 0 : i32
    %c0_i32_0 = arith.constant 0 : i32
    %c0_i32_1 = arith.constant 0 : i32
    return %c0_i32, %c0_i32_0 : i32, i32
  }
  func.func @transform_15(%arg0: i32) -> (i32, i32) {
    %c0_i32 = arith.constant 0 : i32
    %c0_i32_0 = arith.constant 0 : i32
    %c0_i32_1 = arith.constant 0 : i32
    return %c0_i32, %c0_i32_0 : i32, i32
  }
  func.func @transform_16(%arg0: i32) -> (i32, i32) {
    %c0_i32 = arith.constant 0 : i32
    %c0_i32_0 = arith.constant 0 : i32
    %c0_i32_1 = arith.constant 0 : i32
    return %c0_i32, %c0_i32_0 : i32, i32
  }
  func.func @transform_17(%arg0: i32) -> (i32, i32) {
    %c0_i32 = arith.constant 0 : i32
    %c0_i32_0 = arith.constant 0 : i32
    %c0_i32_1 = arith.constant 0 : i32
    return %c0_i32, %c0_i32_0 : i32, i32
  }
  func.func @transform_18(%arg0: i32) -> (i32, i32) {
    %c0_i32 = arith.constant 0 : i32
    %c0_i32_0 = arith.constant 0 : i32
    %c0_i32_1 = arith.constant 0 : i32
    return %c0_i32, %c0_i32_0 : i32, i32
  }
  func.func @transform_19(%arg0: i32) -> (i32, i32) {
    %c0_i32 = arith.constant 0 : i32
    %c0_i32_0 = arith.constant 0 : i32
    %c0_i32_1 = arith.constant 0 : i32
    return %c0_i32, %c0_i32_0 : i32, i32
  }
  func.func @transform_20(%arg0: i32) -> (i32, i32, i32) {
    %c0_i32 = arith.constant 0 : i32
    %c0_i32_0 = arith.constant 0 : i32
    %c0_i32_1 = arith.constant 0 : i32
    return %arg0, %c0_i32, %c0_i32_0 : i32, i32, i32
  }
}

</mosaic_0001>

<bundles_post_ra>
// kernel: tpu_custom_call.1
= control target key start
LH: loop header
LB: loop body
LE: loop exit
PB: predicated region body
PF: predicated region fallthrough
CT: control target
= control target key end

     0   :  { %s12736_s0 = inlined_call_operand.vmem [shape: f32[2,8,256], index: 0, kind: input, shape index: {}]   ;;  %s12737_s1 = inlined_call_operand.vmem [shape: f32[8,256], index: 1, kind: input, shape index: {}]   ;;  %s12738_s2 = inlined_call_operand.vmem [shape: bf16[256,320], index: 2, kind: input, shape index: {}]   ;;  %s12739_s3 = inlined_call_operand.vmem [shape: bf16[256,320], index: 3, kind: input, shape index: {}]   ;;  %s12740_s4 = inlined_call_operand.vmem [shape: bf16[256,320], index: 4, kind: input, shape index: {}]   ;;  %s12741_s5 = inlined_call_operand.vmem [shape: f32[1,320], index: 5, kind: input, shape index: {}]   ;;  %s12742_s6 = inlined_call_operand.vmem [shape: f32[1,320], index: 6, kind: input, shape index: {}]   ;;  %s12743_s7 = inlined_call_operand.vmem [shape: f32[1,320], index: 7, kind: input, shape index: {}]   ;;  %s12744_s8 = inlined_call_operand.vmem [shape: bf16[10,32,256], index: 8, kind: input, shape index: {}]   ;;  %s12745_s9 = inlined_call_operand.vmem [shape: f32[1,256], index: 9, kind: input, shape index: {}]   ;;  %s12746_s10 = inlined_call_operand.vmem [shape: f32[1,256], index: 10, kind: input, shape index: {}]   ;;  %s12747_s11 = inlined_call_operand.vmem [shape: f32[1,256], index: 11, kind: input, shape index: {}]   ;;  %s12748_s12 = inlined_call_operand.hbm [shape: bf16[256,2048], index: 12, kind: input, shape index: {}]   ;;  %s12749_s13 = inlined_call_operand.vmem [shape: f32[1,2048], index: 13, kind: input, shape index: {}]   ;;  %s12750_s14 = inlined_call_operand.hbm [shape: bf16[2048,256], index: 14, kind: input, shape index: {}]   ;;  %s12751_s15 = inlined_call_operand.vmem [shape: f32[1,256], index: 15, kind: input, shape index: {}]   ;;  %s12752_s16 = inlined_call_operand.vmem [shape: f32[1,256], index: 16, kind: input, shape index: {}]   ;;  %s12753_s17 = inlined_call_operand.vmem [shape: f32[1,256], index: 17, kind: input, shape index: {}]   ;;  %s12754_s18 = inlined_call_operand.vmem [shape: f32[1,256], index: 18, kind: input, shape index: {}]   ;;  %s12755_s19 = inlined_call_operand.<no memory space> [shape: f32[1,1], index: 19, kind: input, shape index: {}]   ;;  %s12756_s20 = inlined_call_operand.vmem [shape: f32[2,8,1], index: 20, kind: output, shape index: {}]  }
   0x1   :  { %12768 = sst [smem:[#allocation9_spill]] %s12736_s0  ;;  %v25_v0 = vstv %s12755_s19 }
   0x2   :  { %12769 = sst [smem:[#allocation10_spill]] %s12737_s1  ;;  %26 = vst [vmem:[#allocation2] sm:$0x1] %v25_v0 }
   0x3   :  { %12770 = sst [smem:[#allocation11_spill]] %s12738_s2 }
   0x4   :  { %12771 = sst [smem:[#allocation12_spill]] %s12739_s3 }
   0x5   :  { %12772 = sst [smem:[#allocation13_spill]] %s12740_s4 }
   0x6   :  { %12773 = sst [smem:[#allocation14_spill]] %s12741_s5 }
   0x7   :  { %12774 = sst [smem:[#allocation15_spill]] %s12742_s6 }
   0x8   :  { %27 = vsyncpa [#allocation4], 0 }
   0x9   :  { %28 = vsyncpa [#allocation6], 0  ;;  %s11054_s23 = smov 0  }
   0xa LB: > { %s534_s25 = sshll.u32 %s12748_s12, 4  ;;  %s11063_s3 = sadd.s32 4294967295, %s10933_s23   ;;  %s10933_s23 = sphi %s11054_s23, %s34_s23   ;;  %s535_s25 = int_to_ptr.hbm [resolvable:$true] %s534_s25 }
   0xb   : > { %p7205_p0 = scmp.ge.s32.totalorder %s10933_s23, 1  ;;  %p490_p1 = scmp.lt.s32.totalorder %s10933_s23, 3 }
   0xc   : > { %p10790_p2 = scmp.eq.s32.totalorder %s11063_s3, 0  ;;  %s10935_s26 = smov [#allocation3]  }
   0xd   : > { %p11068_p3 = pnand %p7205_p0, %p490_p1  ;;  %s536_s27 = sshll.u32 %s10935_s26, 4  ;;  %s537_s27 = int_to_ptr.vmem [resolvable:$true] %s536_s27 }
   0xe   : > { %s551_s29 = sshll.u32 %s12750_s14, 4  ;;  %s10936_s30 = smov [#allocation5]   ;;  %s552_s29 = int_to_ptr.hbm [resolvable:$true] %s551_s29 }
   0xf   : > { %p10783_p4 = pneg %p11068_p3  ;;  %s553_s0 = sshll.u32 %s10936_s30, 4  ;;  %s554_s0 = int_to_ptr.vmem [resolvable:$true] %s553_s0 }
  0x10   : > { %s10937_s21 = smov 1024   ;;  %s10938_s1 = smov 64  }
  0x11   : > { %p10784_p5 = pnand %p10790_p2, %p10783_p4  ;;  %s10939_s22 = smov 128  }
  0x12   : > { %s10940_s24 = smov 8   ;;  %592 = sbr.rel (%p11068_p3) target bundleno = 2959 (0xb8f), region = 100 }
  0x13   : > { %10786 = dma.hbm_to_vmem [thread:$0]  (!%p10784_p5), %s535_s25, 32768, %s537_s27, [#allocation4], %s10937_s21, %s10937_s21, %s10938_s1  }
  0x14   : > { %10789 = dma.hbm_to_vmem [thread:$0]  (!%p10784_p5), %s552_s29, 32768, %s554_s0, [#allocation6], %s10939_s22, %s10939_s22, %s10940_s24  }
  0x17   : > { %10924 = dma.done.wait (%p10790_p2), [#allocation4], 32768  }
  0x18   : > { %10926 = vsyncadd (%p10790_p2), [#allocation4], 4294934528 }
  0x19   : > { %10928 = dma.done.wait (%p10790_p2), [#allocation6], 32768  }
  0x1a   : > { %10930 = vsyncadd (%p10790_p2), [#allocation6], 4294934528  ;;  %s12776_s26 = sld [smem:[#allocation11_spill]]  ;;  %p655_p6 = scmp.lt.s32.totalorder %s11063_s3, 1  ;;  %vm1907_vm0 = vcmask 261120   ;;  %vm1927_vm2 = vcmask 64512  }
  0x1b   : > { %s12777_s0 = sld [smem:[#allocation9_spill]]  ;;  %s12763_s29 = smov 32   ;;  %vm1943_vm3 = vcmask 1043456   ;;  %vm7126_vm11 = vcmask 7168  }
  0x1c   : > { %s12787_s3 = smov (!%p655_p6, %s11063_s3), 1  ;;  %s12778_s30 = sld [smem:[#allocation12_spill]] }
  0x1d   : > { %s10078_s4 = sshll.u32 %s12787_s3, 4  ;;  %s12779_s1 = sld [smem:[#allocation10_spill]] }
  0x1e   : > { %s12780_s27 = sld [smem:[#allocation13_spill]]  ;;  %s12766_s22 = smov 64  }
  0x1f   : > { %s12781_s5 = sld [smem:[#allocation14_spill]] }
  0x20   : > { %v7302_v1 = vld [vmem:[%s12776_s26 + $0xa8] sm:$0xf]  ;;  %v10101_v2 = vld [vmem:[%s12776_s26 + $0xb0] sm:$0xf0]  ;;  %v10100_v3 = vld [vmem:[%s12776_s26 + $0xac] sm:$0xf] }
  0x21   : > { %v7303_v4 = vor.u32 %v10101_v2, %v7302_v1  ;;  %v7304_v5 = vld [vmem:[%s12776_s26 + $0xb4] sm:$0xf0]  ;;  %v10124_v6 = vld [vmem:[%s12776_s26 + $0x16c] sm:$0xf]  ;;  %v7398_v10 = vld [vmem:[%s12776_s26 + $0x168] sm:$0xf]  ;;  %s11279_s21 = scalar_lea.vmem %s12777_s0, %s10078_s4 }
  0x22   : > { %v7400_v7 = vld [vmem:[%s12776_s26 + $0x174] sm:$0xf0]  ;;  %v7307_v8 = vor.u32 %v10100_v3, %v7304_v5  ;;  %v10125_v11 = vld [vmem:[%s12776_s26 + $0x170] sm:$0xf0]  ;;  %v7290_v12 = vld [vmem:[%s12776_s26 + $0x90] sm:$0xf] }
  0x23   : > { %v7403_v9 = vor.u32 %v10124_v6, %v7400_v7  ;;  %1010 = vmatpush.bf16.msra.mxu0 %v7303_v4  ;;  %v7399_v13 = vor.u32 %v10125_v11, %v7398_v10  ;;  %v10098_v14 = vld [vmem:[%s12776_s26 + $0x98] sm:$0xf0]  ;;  %v10097_v15 = vld [vmem:[%s12776_s26 + $0x94] sm:$0xf]  ;;  %v7292_v16 = vld [vmem:[%s12776_s26 + $0x9c] sm:$0xf0] }
  0x24   : > { %1036 = vmatpush.bf16.msra.mxu2 %v7307_v8  ;;  %v7291_v17 = vor.u32 %v10098_v14, %v7290_v12  ;;  %v7295_v18 = vor.u32 %v10097_v15, %v7292_v16  ;;  %v10121_v19 = vld [vmem:[%s12776_s26 + $0x154] sm:$0xf]  ;;  %v7388_v20 = vld [vmem:[%s12776_s26 + $0x15c] sm:$0xf0]  ;;  %v7386_v21 = vld [vmem:[%s12776_s26 + $0x150] sm:$0xf] }
  0x25   : > { %1049 = vmatpush.bf16.msra.mxu3 %v7403_v9  ;;  %1023 = vmatpush.bf16.msra.mxu1 %v7399_v13  ;;  %v7391_v22 = vor.u32 %v10121_v19, %v7388_v20  ;;  %v10122_v23 = vld [vmem:[%s12776_s26 + $0x158] sm:$0xf0]  ;;  %v7278_v24 = vld [vmem:[%s12776_s26 + $0x78] sm:$0xf]  ;;  %v10095_v25 = vld [vmem:[%s12776_s26 + $0x80] sm:$0xf0] }
  0x26   : > { %v7387_v26 = vor.u32 %v10122_v23, %v7386_v21  ;;  %v10094_v27 = vld [vmem:[%s12776_s26 + $0x7c] sm:$0xf]  ;;  %v7280_v28 = vld [vmem:[%s12776_s26 + $0x84] sm:$0xf0]  ;;  %v7279_v30 = vor.u32 %v10095_v25, %v7278_v24  ;;  %v7374_v32 = vld [vmem:[%s12776_s26 + $0x138] sm:$0xf] }
  0x27   : > { %v10118_v29 = vld [vmem:[%s12776_s26 + $0x13c] sm:$0xf]  ;;  %1011 = vmatpush.bf16.msra.mxu0 %v7291_v17  ;;  %v7376_v31 = vld [vmem:[%s12776_s26 + $0x144] sm:$0xf0]  ;;  %v10119_v33 = vld [vmem:[%s12776_s26 + $0x140] sm:$0xf0]  ;;  %v7283_v34 = vor.u32 %v10094_v27, %v7280_v28 }
  0x28   : > { %1037 = vmatpush.bf16.msra.mxu2 %v7295_v18  ;;  %v7379_v35 = vor.u32 %v10118_v29, %v7376_v31  ;;  %v7266_v36 = vld [vmem:[%s12776_s26 + $0x60] sm:$0xf]  ;;  %v10092_v37 = vld [vmem:[%s12776_s26 + $0x68] sm:$0xf0]  ;;  %v10091_v38 = vld [vmem:[%s12776_s26 + $0x64] sm:$0xf]  ;;  %v7375_v39 = vor.u32 %v10119_v33, %v7374_v32 }
  0x29   : > { %1050 = vmatpush.bf16.msra.mxu3 %v7391_v22  ;;  %1024 = vmatpush.bf16.msra.mxu1 %v7387_v26  ;;  %v7268_v40 = vld [vmem:[%s12776_s26 + $0x6c] sm:$0xf0]  ;;  %v10115_v41 = vld [vmem:[%s12776_s26 + $0x124] sm:$0xf]  ;;  %v7362_v43 = vld [vmem:[%s12776_s26 + $0x120] sm:$0xf]  ;;  %v7267_v45 = vor.u32 %v10092_v37, %v7266_v36 }
  0x2a   : > { %v7364_v42 = vld [vmem:[%s12776_s26 + $0x12c] sm:$0xf0]  ;;  %v10116_v44 = vld [vmem:[%s12776_s26 + $0x128] sm:$0xf0]  ;;  %v7271_v46 = vor.u32 %v10091_v38, %v7268_v40  ;;  %v7254_v48 = vld [vmem:[%s12776_s26 + $0x48] sm:$0xf] }
  0x2b   : > { %1012 = vmatpush.bf16.msra.mxu0 %v7279_v30  ;;  %v7367_v47 = vor.u32 %v10115_v41, %v7364_v42  ;;  %v10089_v49 = vld [vmem:[%s12776_s26 + $0x50] sm:$0xf0]  ;;  %v10088_v50 = vld [vmem:[%s12776_s26 + $0x4c] sm:$0xf]  ;;  %v7363_v51 = vor.u32 %v10116_v44, %v7362_v43  ;;  %v7256_v52 = vld [vmem:[%s12776_s26 + $0x54] sm:$0xf0] }
  0x2c   : > { %1038 = vmatpush.bf16.msra.mxu2 %v7283_v34  ;;  %v10112_v53 = vld [vmem:[%s12776_s26 + $0x10c] sm:$0xf]  ;;  %v7352_v54 = vld [vmem:[%s12776_s26 + $0x114] sm:$0xf0]  ;;  %v7350_v55 = vld [vmem:[%s12776_s26 + $0x108] sm:$0xf]  ;;  %v7255_v57 = vor.u32 %v10089_v49, %v7254_v48  ;;  %v7259_v58 = vor.u32 %v10088_v50, %v7256_v52 }
  0x2d   : > { %1051 = vmatpush.bf16.msra.mxu3 %v7379_v35  ;;  %1025 = vmatpush.bf16.msra.mxu1 %v7375_v39  ;;  %v10113_v56 = vld [vmem:[%s12776_s26 + $0x110] sm:$0xf0]  ;;  %v7355_v59 = vor.u32 %v10112_v53, %v7352_v54  ;;  %v7242_v60 = vld [vmem:[%s12776_s26 + $0x30] sm:$0xf]  ;;  %v10086_v61 = vld [vmem:[%s12776_s26 + $0x38] sm:$0xf0] }
  0x2e   : > { %v10085_v62 = vld [vmem:[%s12776_s26 + $0x34] sm:$0xf]  ;;  %v7351_v63 = vor.u32 %v10113_v56, %v7350_v55  ;;  %v7244_v0 = vld [vmem:[%s12776_s26 + $0x3c] sm:$0xf0]  ;;  %v7338_v3 = vld [vmem:[%s12776_s26 + $0xf0] sm:$0xf]  ;;  %v7243_v5 = vor.u32 %v10086_v61, %v7242_v60 }
  0x2f   : > { %1013 = vmatpush.bf16.msra.mxu0 %v7267_v45  ;;  %v10109_v1 = vld [vmem:[%s12776_s26 + $0xf4] sm:$0xf]  ;;  %v7340_v2 = vld [vmem:[%s12776_s26 + $0xfc] sm:$0xf0]  ;;  %v10110_v4 = vld [vmem:[%s12776_s26 + $0xf8] sm:$0xf0]  ;;  %v7247_v6 = vor.u32 %v10085_v62, %v7244_v0 }
  0x30   : > { %1039 = vmatpush.bf16.msra.mxu2 %v7271_v46  ;;  %v7343_v7 = vor.u32 %v10109_v1, %v7340_v2  ;;  %v7230_v8 = vld [vmem:[%s12776_s26 + $0x18] sm:$0xf]  ;;  %v10083_v9 = vld [vmem:[%s12776_s26 + $0x20] sm:$0xf0]  ;;  %v10082_v10 = vld [vmem:[%s12776_s26 + $0x1c] sm:$0xf]  ;;  %v7339_v11 = vor.u32 %v10110_v4, %v7338_v3 }
  0x31   : > { %1052 = vmatpush.bf16.msra.mxu3 %v7367_v47  ;;  %1026 = vmatpush.bf16.msra.mxu1 %v7363_v51  ;;  %v7232_v12 = vld [vmem:[%s12776_s26 + $0x24] sm:$0xf0]  ;;  %v10106_v13 = vld [vmem:[%s12776_s26 + $0xdc] sm:$0xf]  ;;  %v7326_v15 = vld [vmem:[%s12776_s26 + $0xd8] sm:$0xf]  ;;  %v7231_v18 = vor.u32 %v10083_v9, %v7230_v8 }
  0x32   : > { %v7328_v14 = vld [vmem:[%s12776_s26 + $0xe4] sm:$0xf0]  ;;  %v10107_v16 = vld [vmem:[%s12776_s26 + $0xe0] sm:$0xf0]  ;;  %v7218_v17 = vld [vmem:[%s12776_s26] sm:$0xf]  ;;  %v7235_v22 = vor.u32 %v10082_v10, %v7232_v12 }
  0x33   : > { %1014 = vmatpush.bf16.msra.mxu0 %v7255_v57  ;;  %v10080_v19 = vld [vmem:[%s12776_s26 + $0x8] sm:$0xf0]  ;;  %v10079_v20 = vld [vmem:[%s12776_s26 + $0x4] sm:$0xf]  ;;  %v7220_v21 = vld [vmem:[%s12776_s26 + $0xc] sm:$0xf0]  ;;  %v7331_v23 = vor.u32 %v10106_v13, %v7328_v14  ;;  %v7327_v27 = vor.u32 %v10107_v16, %v7326_v15 }
  0x34   : > { %1040 = vmatpush.bf16.msra.mxu2 %v7259_v58  ;;  %v10103_v24 = vld [vmem:[%s12776_s26 + $0xc4] sm:$0xf]  ;;  %v7316_v25 = vld [vmem:[%s12776_s26 + $0xcc] sm:$0xf0]  ;;  %v10102_v28 = vld [vmem:[%s12776_s26 + $0xb8] sm:$0xf0]  ;;  %v7219_v34 = vor.u32 %v10080_v19, %v7218_v17  ;;  %v7223_v38 = vor.u32 %v10079_v20, %v7220_v21 }
  0x35   : > { %1053 = vmatpush.bf16.msra.mxu3 %v7355_v59  ;;  %1027 = vmatpush.bf16.msra.mxu1 %v7351_v63  ;;  %v7310_v26 = vld [vmem:[%s12776_s26 + $0xb0] sm:$0xf]  ;;  %v7494_v29 = vld [vmem:[%s12778_s30 + $0xa8] sm:$0xf]  ;;  %v10149_v30 = vld [vmem:[%s12778_s30 + $0xb0] sm:$0xf0]  ;;  %v7319_v39 = vor.u32 %v10103_v24, %v7316_v25 }
  0x36   : > { %v7590_v31 = vld [vmem:[%s12778_s30 + $0x168] sm:$0xf]  ;;  %v10173_v32 = vld [vmem:[%s12778_s30 + $0x170] sm:$0xf0]  ;;  %v674_v33 = vld [vmem:[%s11279_s21] sm:$0xff]  ;;  %v7311_v43 = vor.u32 %v10102_v28, %v7310_v26  ;;  %v7495_v44 = vor.u32 %v10149_v30, %v7494_v29  ;;  %s12782_s6 = sld [smem:[#allocation15_spill]] }
  0x37   : > { %1015 = vmatpush.bf16.msra.mxu0 %v7243_v5  ;;  %v7314_v35 = vld [vmem:[%s12776_s26 + $0xc0] sm:$0xf]  ;;  %v10104_v36 = vld [vmem:[%s12776_s26 + $0xc8] sm:$0xf0]  ;;  %v7406_v40 = vld [vmem:[%s12776_s26 + $0x170] sm:$0xf]  ;;  %v7591_v48 = vor.u32 %v10173_v32, %v7590_v31 }
  0x38   : > { %1041 = vmatpush.bf16.msra.mxu2 %v7247_v6  ;;  %v676_v37 = vld [vmem:[%s12779_s1] sm:$0xff]  ;;  %v10126_v41 = vld [vmem:[%s12776_s26 + $0x178] sm:$0xf0]  ;;  %v7298_v45 = vld [vmem:[%s12776_s26 + $0x98] sm:$0xf]  ;;  %v7315_v49 = vor.u32 %v10104_v36, %v7314_v35  ;;  %s12761_s4 = smov 96  }
  0x39   : > { %1054 = vmatpush.bf16.msra.mxu3 %v7343_v7  ;;  %1028 = vmatpush.bf16.msra.mxu1 %v7339_v11  ;;  %v11321_v42 = vadd.f32 %v676_v37, %v674_v33  ;;  %v675_v46 = vld [vmem:[%s11279_s21 + $0x8] sm:$0xff]  ;;  %v10099_v50 = vld [vmem:[%s12776_s26 + $0xa0] sm:$0xf0]  ;;  %v7482_v51 = vld [vmem:[%s12778_s30 + $0x90] sm:$0xf]  ;;  %v7407_v54 = vor.u32 %v10126_v41, %v7406_v40  ;;  %s12783_s0 = smov 96  }
  0x3a   : > { %v677_v47 = vld [vmem:[%s12779_s1 + $0x8] sm:$0xff]  ;;  %v10146_v52 = vld [vmem:[%s12778_s30 + $0x98] sm:$0xf0]  ;;  %v7578_v55 = vld [vmem:[%s12778_s30 + $0x150] sm:$0xf]  ;;  %v7299_v61 = vor.u32 %v10099_v50, %v7298_v45  ;;  %s7214_s1 = sshll.u32 %s12787_s3, 3 }
  0x3b   : > { %1016 = vmatpush.bf16.msra.mxu0 %v7231_v18  ;;  %v11339_v53 = vadd.f32 %v677_v47, %v675_v46  ;;  %v10170_v56 = vld [vmem:[%s12778_s30 + $0x158] sm:$0xf0]  ;;  %v11349_v57 = vpack.c.bf16 %v11321_v42, %v11321_v42  ;;  %v7394_v58 = vld [vmem:[%s12776_s26 + $0x158] sm:$0xf]  ;;  %v10123_v59 = vld [vmem:[%s12776_s26 + $0x160] sm:$0xf0]  ;;  %v7483_v62 = vor.u32 %v10146_v52, %v7482_v51 }
  0x3c   : > { %1042 = vmatpush.bf16.msra.mxu2 %v7235_v22  ;;  %v7286_v63 = vld [vmem:[%s12776_s26 + $0x80] sm:$0xf]  ;;  %v7579_v0 = vor.u32 %v10170_v56, %v7578_v55  ;;  %v10096_v1 = vld [vmem:[%s12776_s26 + $0x88] sm:$0xf0]  ;;  %v7470_v2 = vld [vmem:[%s12778_s30 + $0x78] sm:$0xf]  ;;  %v7395_v4 = vor.u32 %v10123_v59, %v7394_v58 }
  0x3d   : > { %1055 = vmatpush.bf16.msra.mxu3 %v7331_v23  ;;  %1029 = vmatpush.bf16.msra.mxu1 %v7327_v27  ;;  %v11359_v60 = vpack.c.bf16 %v11339_v53, %v11339_v53  ;;  %v10143_v3 = vld [vmem:[%s12778_s30 + $0x80] sm:$0xf0]  ;;  %v7566_v5 = vld [vmem:[%s12778_s30 + $0x138] sm:$0xf]  ;;  %v7382_v7 = vld [vmem:[%s12776_s26 + $0x140] sm:$0xf]  ;;  %v7287_v9 = vor.u32 %v10096_v1, %v7286_v63 }
  0x3e   : > { %v10167_v6 = vld [vmem:[%s12778_s30 + $0x140] sm:$0xf0]  ;;  %v10120_v8 = vld [vmem:[%s12776_s26 + $0x148] sm:$0xf0]  ;;  %v7471_v10 = vor.u32 %v10143_v3, %v7470_v2  ;;  %v7274_v11 = vld [vmem:[%s12776_s26 + $0x68] sm:$0xf] }
  0x3f   : > { %1017 = vmatpush.bf16.msra.mxu0 %v7219_v34  ;;  %v7567_v12 = vor.u32 %v10167_v6, %v7566_v5  ;;  %v10093_v13 = vld [vmem:[%s12776_s26 + $0x70] sm:$0xf0]  ;;  %v7458_v14 = vld [vmem:[%s12778_s30 + $0x60] sm:$0xf]  ;;  %v10140_v15 = vld [vmem:[%s12778_s30 + $0x68] sm:$0xf0]  ;;  %v7383_v16 = vor.u32 %v10120_v8, %v7382_v7 }
  0x40   : > { %1043 = vmatpush.bf16.msra.mxu2 %v7223_v38  ;;  %v7554_v17 = vld [vmem:[%s12778_s30 + $0x120] sm:$0xf]  ;;  %v10164_v18 = vld [vmem:[%s12778_s30 + $0x128] sm:$0xf0]  ;;  %v7370_v19 = vld [vmem:[%s12776_s26 + $0x128] sm:$0xf]  ;;  %v7275_v21 = vor.u32 %v10093_v13, %v7274_v11  ;;  %v7459_v22 = vor.u32 %v10140_v15, %v7458_v14 }
  0x41   : > { %1056 = vmatpush.bf16.msra.mxu3 %v7319_v39  ;;  %1030 = vmatpush.bf16.msra.mxu1 %v7315_v49  ;;  %v10117_v20 = vld [vmem:[%s12776_s26 + $0x130] sm:$0xf0]  ;;  %v7262_v23 = vld [vmem:[%s12776_s26 + $0x50] sm:$0xf]  ;;  %v7555_v24 = vor.u32 %v10164_v18, %v7554_v17  ;;  %v10090_v25 = vld [vmem:[%s12776_s26 + $0x58] sm:$0xf0] }
  0x42   : > { %1018 = vmatmul.bf16.vlgmr.msra.gmra.mxu0 %v11349_v57  ;;  %v7446_v26 = vld [vmem:[%s12778_s30 + $0x48] sm:$0xf]  ;;  %v10137_v27 = vld [vmem:[%s12778_s30 + $0x50] sm:$0xf0]  ;;  %v7371_v28 = vor.u32 %v10117_v20, %v7370_v19  ;;  %v7358_v31 = vld [vmem:[%s12776_s26 + $0x110] sm:$0xf]  ;;  %v7263_v33 = vor.u32 %v10090_v25, %v7262_v23 }
  0x43   : > { %1062 = vmatpush.bf16.msrb.mxu0 %v7311_v43  ;;  %1044 = vmatmul.bf16.vlgmr.msra.gmra.mxu2 %v11349_v57  ;;  %v7542_v29 = vld [vmem:[%s12778_s30 + $0x108] sm:$0xf]  ;;  %v10161_v30 = vld [vmem:[%s12778_s30 + $0x110] sm:$0xf0]  ;;  %v10114_v32 = vld [vmem:[%s12776_s26 + $0x118] sm:$0xf0]  ;;  %v7447_v34 = vor.u32 %v10137_v27, %v7446_v26 }
  0x44   : > { %1416 = vmatpush.bf16.msrb.mxu2 %v7495_v44  ;;  %1057 = vmatmul.bf16.vlgmr.msra.gmra.mxu3 %v11359_v60  ;;  %v7250_v35 = vld [vmem:[%s12776_s26 + $0x38] sm:$0xf]  ;;  %v7543_v36 = vor.u32 %v10161_v30, %v7542_v29  ;;  %v10087_v37 = vld [vmem:[%s12776_s26 + $0x40] sm:$0xf0]  ;;  %v7434_v38 = vld [vmem:[%s12778_s30 + $0x30] sm:$0xf]  ;;  %v7359_v40 = vor.u32 %v10114_v32, %v7358_v31 }
  0x45   : > { %1429 = vmatpush.bf16.msrb.mxu3 %v7591_v48  ;;  %1075 = vmatpush.bf16.msrb.mxu1 %v7407_v54  ;;  %v10134_v39 = vld [vmem:[%s12778_s30 + $0x38] sm:$0xf0]  ;;  %v7530_v41 = vld [vmem:[%s12778_s30 + $0xf0] sm:$0xf]  ;;  %v7346_v44 = vld [vmem:[%s12776_s26 + $0xf8] sm:$0xf]  ;;  %v7251_v46 = vor.u32 %v10087_v37, %v7250_v35 }
  0x46   : > { %1031 = vmatmul.bf16.vlgmr.msra.gmra.mxu1 %v11359_v60  ;;  %v10158_v43 = vld [vmem:[%s12778_s30 + $0xf8] sm:$0xf0]  ;;  %v10111_v45 = vld [vmem:[%s12776_s26 + $0x100] sm:$0xf0]  ;;  %v7435_v47 = vor.u32 %v10134_v39, %v7434_v38  ;;  %v7238_v48 = vld [vmem:[%s12776_s26 + $0x20] sm:$0xf] }
  0x47   : > { %1063 = vmatpush.bf16.msrb.mxu0 %v7299_v61  ;;  %v7531_v49 = vor.u32 %v10158_v43, %v7530_v41  ;;  %v10084_v50 = vld [vmem:[%s12776_s26 + $0x28] sm:$0xf0]  ;;  %v7422_v51 = vld [vmem:[%s12778_s30 + $0x18] sm:$0xf]  ;;  %v10131_v52 = vld [vmem:[%s12778_s30 + $0x20] sm:$0xf0]  ;;  %v7347_v54 = vor.u32 %v10111_v45, %v7346_v44 }
  0x48   : > { %1417 = vmatpush.bf16.msrb.mxu2 %v7483_v62  ;;  %v7518_v55 = vld [vmem:[%s12778_s30 + $0xd8] sm:$0xf]  ;;  %v10155_v56 = vld [vmem:[%s12778_s30 + $0xe0] sm:$0xf0]  ;;  %v7334_v58 = vld [vmem:[%s12776_s26 + $0xe0] sm:$0xf]  ;;  %v7239_v61 = vor.u32 %v10084_v50, %v7238_v48  ;;  %v7423_v62 = vor.u32 %v10131_v52, %v7422_v51 }
  0x49   : > { %1430 = vmatpush.bf16.msrb.mxu3 %v7579_v0  ;;  %1076 = vmatpush.bf16.msrb.mxu1 %v7395_v4  ;;  %v10108_v59 = vld [vmem:[%s12776_s26 + $0xe8] sm:$0xf0]  ;;  %v7226_v63 = vld [vmem:[%s12776_s26 + $0x8] sm:$0xf]  ;;  %v10081_v0 = vld [vmem:[%s12776_s26 + $0x10] sm:$0xf0]  ;;  %v7519_v1 = vor.u32 %v10155_v56, %v7518_v55 }
  0x4a   : > { %v7410_v2 = vld [vmem:[%s12778_s30] sm:$0xf]  ;;  %v10128_v3 = vld [vmem:[%s12778_s30 + $0x8] sm:$0xf0]  ;;  %v7335_v5 = vor.u32 %v10108_v59, %v7334_v58  ;;  %v7496_v8 = vld [vmem:[%s12778_s30 + $0xb4] sm:$0xf0]  ;;  %v7227_v11 = vor.u32 %v10081_v0, %v7226_v63 }
  0x4b   : > { %1064 = vmatpush.bf16.msrb.mxu0 %v7287_v9  ;;  %v7506_v4 = vld [vmem:[%s12778_s30 + $0xc0] sm:$0xf]  ;;  %v10152_v6 = vld [vmem:[%s12778_s30 + $0xc8] sm:$0xf0]  ;;  %v7322_v9 = vld [vmem:[%s12776_s26 + $0xc8] sm:$0xf] }
  0x4c   : > { %1418 = vmatpush.bf16.msrb.mxu2 %v7471_v10  ;;  %v10148_v7 = vld [vmem:[%s12778_s30 + $0xac] sm:$0xf]  ;;  %v10105_v10 = vld [vmem:[%s12776_s26 + $0xd0] sm:$0xf0]  ;;  %v7592_v14 = vld [vmem:[%s12778_s30 + $0x174] sm:$0xf0]  ;;  %v7507_v15 = vor.u32 %v10152_v6, %v7506_v4 }
  0x4d   : > { %1431 = vmatpush.bf16.msrb.mxu3 %v7567_v12  ;;  %1077 = vmatpush.bf16.msrb.mxu1 %v7383_v16  ;;  %v7411_v12 = vor.u32 %v10128_v3, %v7410_v2  ;;  %v10172_v13 = vld [vmem:[%s12778_s30 + $0x16c] sm:$0xf]  ;;  %v7499_v16 = vor.u32 %v10148_v7, %v7496_v8  ;;  %v7323_v17 = vor.u32 %v10105_v10, %v7322_v9  ;;  %v10145_v18 = vld [vmem:[%s12778_s30 + $0x94] sm:$0xf]  ;;  %v7484_v19 = vld [vmem:[%s12778_s30 + $0x9c] sm:$0xf0] }
  0x4e   : > { %v7595_v20 = vor.u32 %v10172_v13, %v7592_v14  ;;  %v7487_v23 = vor.u32 %v10145_v18, %v7484_v19  ;;  %v7472_v25 = vld [vmem:[%s12778_s30 + $0x84] sm:$0xf0]  ;;  %v10166_v27 = vld [vmem:[%s12778_s30 + $0x13c] sm:$0xf]  ;;  %v10139_v30 = vld [vmem:[%s12778_s30 + $0x64] sm:$0xf] }
  0x4f   : > { %1065 = vmatpush.bf16.msrb.mxu0 %v7275_v21  ;;  %v10169_v21 = vld [vmem:[%s12778_s30 + $0x154] sm:$0xf]  ;;  %v7460_v31 = vld [vmem:[%s12778_s30 + $0x6c] sm:$0xf0]  ;;  %v7448_v37 = vld [vmem:[%s12778_s30 + $0x54] sm:$0xf0] }
  0x50   : > { %1419 = vmatpush.bf16.msrb.mxu2 %v7459_v22  ;;  %v7580_v22 = vld [vmem:[%s12778_s30 + $0x15c] sm:$0xf0]  ;;  %v7463_v35 = vor.u32 %v10139_v30, %v7460_v31  ;;  %v10160_v39 = vld [vmem:[%s12778_s30 + $0x10c] sm:$0xf]  ;;  %v10133_v43 = vld [vmem:[%s12778_s30 + $0x34] sm:$0xf] }
  0x51   : > { %1432 = vmatpush.bf16.msrb.mxu3 %v7555_v24  ;;  %1078 = vmatpush.bf16.msrb.mxu1 %v7371_v28  ;;  %v10142_v24 = vld [vmem:[%s12778_s30 + $0x7c] sm:$0xf]  ;;  %v7583_v26 = vor.u32 %v10169_v21, %v7580_v22  ;;  %v7568_v28 = vld [vmem:[%s12778_s30 + $0x144] sm:$0xf0]  ;;  %v7436_v44 = vld [vmem:[%s12778_s30 + $0x3c] sm:$0xf0] }
  0x52   : > { %v7475_v29 = vor.u32 %v10142_v24, %v7472_v25  ;;  %v7571_v32 = vor.u32 %v10166_v27, %v7568_v28  ;;  %v7439_v48 = vor.u32 %v10133_v43, %v7436_v44  ;;  %v7424_v50 = vld [vmem:[%s12778_s30 + $0x24] sm:$0xf0]  ;;  %v10154_v52 = vld [vmem:[%s12778_s30 + $0xdc] sm:$0xf]  ;;  %v10127_v56 = vld [vmem:[%s12778_s30 + $0x4] sm:$0xf] }
  0x53   : > { %1066 = vmatpush.bf16.msrb.mxu0 %v7263_v33  ;;  %v10163_v33 = vld [vmem:[%s12778_s30 + $0x124] sm:$0xf]  ;;  %v7412_v58 = vld [vmem:[%s12778_s30 + $0xc] sm:$0xf0]  ;;  %v7782_v2 = vld [vmem:[%s12780_s27 + $0x168] sm:$0xf] }
  0x54   : > { %1420 = vmatpush.bf16.msrb.mxu2 %v7447_v34  ;;  %v7556_v34 = vld [vmem:[%s12778_s30 + $0x12c] sm:$0xf0]  ;;  %v10151_v63 = vld [vmem:[%s12778_s30 + $0xc4] sm:$0xf]  ;;  %v10221_v3 = vld [vmem:[%s12780_s27 + $0x170] sm:$0xf0] }
  0x55   : > { %1433 = vmatpush.bf16.msrb.mxu3 %v7543_v36  ;;  %1079 = vmatpush.bf16.msrb.mxu1 %v7359_v40  ;;  %v10136_v36 = vld [vmem:[%s12778_s30 + $0x4c] sm:$0xf]  ;;  %v7559_v38 = vor.u32 %v10163_v33, %v7556_v34  ;;  %v7544_v40 = vld [vmem:[%s12778_s30 + $0x114] sm:$0xf0]  ;;  %v7508_v0 = vld [vmem:[%s12778_s30 + $0xcc] sm:$0xf0]  ;;  %v7783_v8 = vor.u32 %v10221_v3, %v7782_v2 }
  0x56   : > { %v7451_v41 = vor.u32 %v10136_v36, %v7448_v37  ;;  %v7547_v45 = vor.u32 %v10160_v39, %v7544_v40  ;;  %v7674_v6 = vld [vmem:[%s12780_s27 + $0x90] sm:$0xf]  ;;  %v10194_v7 = vld [vmem:[%s12780_s27 + $0x98] sm:$0xf0]  ;;  %v10191_v13 = vld [vmem:[%s12780_s27 + $0x80] sm:$0xf0] }
  0x57   : > { %1067 = vmatpush.bf16.msrb.mxu0 %v7251_v46  ;;  %v10157_v46 = vld [vmem:[%s12778_s30 + $0xf4] sm:$0xf]  ;;  %v7770_v9 = vld [vmem:[%s12780_s27 + $0x150] sm:$0xf]  ;;  %v10218_v10 = vld [vmem:[%s12780_s27 + $0x158] sm:$0xf0] }
  0x58   : > { %1421 = vmatpush.bf16.msrb.mxu2 %v7435_v47  ;;  %v7532_v47 = vld [vmem:[%s12778_s30 + $0xfc] sm:$0xf0]  ;;  %v7502_v14 = vld [vmem:[%s12778_s30 + $0xb0] sm:$0xf]  ;;  %v7490_v18 = vld [vmem:[%s12778_s30 + $0x98] sm:$0xf] }
  0x59   : > { %1434 = vmatpush.bf16.msrb.mxu3 %v7531_v49  ;;  %1080 = vmatpush.bf16.msrb.mxu1 %v7347_v54  ;;  %v10130_v49 = vld [vmem:[%s12778_s30 + $0x1c] sm:$0xf]  ;;  %v7535_v51 = vor.u32 %v10157_v46, %v7532_v47  ;;  %v7520_v54 = vld [vmem:[%s12778_s30 + $0xe4] sm:$0xf0]  ;;  %v10147_v19 = vld [vmem:[%s12778_s30 + $0xa0] sm:$0xf0] }
  0x5a   : > { %v7427_v55 = vor.u32 %v10130_v49, %v7424_v50  ;;  %v7523_v59 = vor.u32 %v10154_v52, %v7520_v54  ;;  %v10215_v21 = vld [vmem:[%s12780_s27 + $0x140] sm:$0xf0]  ;;  %v10188_v24 = vld [vmem:[%s12780_s27 + $0x68] sm:$0xf0]  ;;  %v7491_v25 = vor.u32 %v10147_v19, %v7490_v18  ;;  %v7478_v27 = vld [vmem:[%s12778_s30 + $0x80] sm:$0xf] }
  0x5b   : > { %1068 = vmatpush.bf16.msrb.mxu0 %v7239_v61  ;;  %v7686_v61 = vld [vmem:[%s12780_s27 + $0xa8] sm:$0xf]  ;;  %v10144_v28 = vld [vmem:[%s12778_s30 + $0x88] sm:$0xf0]  ;;  %v10185_v33 = vld [vmem:[%s12780_s27 + $0x50] sm:$0xf0] }
  0x5c   : > { %1422 = vmatpush.bf16.msrb.mxu2 %v7423_v62  ;;  %v10197_v62 = vld [vmem:[%s12780_s27 + $0xb0] sm:$0xf0]  ;;  %v10212_v30 = vld [vmem:[%s12780_s27 + $0x128] sm:$0xf0]  ;;  %v7479_v34 = vor.u32 %v10144_v28, %v7478_v27  ;;  %v7466_v36 = vld [vmem:[%s12778_s30 + $0x68] sm:$0xf] }
  0x5d   : > { %1435 = vmatpush.bf16.msrb.mxu3 %v7519_v1  ;;  %1081 = vmatpush.bf16.msrb.mxu1 %v7335_v5  ;;  %v7415_v1 = vor.u32 %v10127_v56, %v7412_v58  ;;  %v7687_v4 = vor.u32 %v10197_v62, %v7686_v61  ;;  %v7511_v5 = vor.u32 %v10151_v63, %v7508_v0  ;;  %v10141_v37 = vld [vmem:[%s12778_s30 + $0x70] sm:$0xf0]  ;;  %v10182_v43 = vld [vmem:[%s12780_s27 + $0x38] sm:$0xf0]  ;;  %v7454_v46 = vld [vmem:[%s12778_s30 + $0x50] sm:$0xf] }
  0x5e   : > { %v10209_v39 = vld [vmem:[%s12780_s27 + $0x110] sm:$0xf0]  ;;  %v7467_v44 = vor.u32 %v10141_v37, %v7466_v36  ;;  %v10138_v47 = vld [vmem:[%s12778_s30 + $0x58] sm:$0xf0]  ;;  %v10179_v52 = vld [vmem:[%s12780_s27 + $0x20] sm:$0xf0] }
  0x5f   : > { %1069 = vmatpush.bf16.msrb.mxu0 %v7227_v11  ;;  %v7675_v11 = vor.u32 %v10194_v7, %v7674_v6  ;;  %v10206_v49 = vld [vmem:[%s12780_s27 + $0xf8] sm:$0xf0]  ;;  %v7455_v54 = vor.u32 %v10138_v47, %v7454_v46  ;;  %v7442_v56 = vld [vmem:[%s12778_s30 + $0x38] sm:$0xf]  ;;  %v10135_v58 = vld [vmem:[%s12778_s30 + $0x40] sm:$0xf0] }
  0x60   : > { %1423 = vmatpush.bf16.msrb.mxu2 %v7411_v12  ;;  %v7662_v12 = vld [vmem:[%s12780_s27 + $0x78] sm:$0xf]  ;;  %v10203_v61 = vld [vmem:[%s12780_s27 + $0xe0] sm:$0xf0]  ;;  %v7602_v63 = vld [vmem:[%s12780_s27] sm:$0xf] }
  0x61   : > { %1436 = vmatpush.bf16.msrb.mxu3 %v7507_v15  ;;  %1082 = vmatpush.bf16.msrb.mxu1 %v7323_v17  ;;  %v10150_v15 = vld [vmem:[%s12778_s30 + $0xb8] sm:$0xf0]  ;;  %v7663_v22 = vor.u32 %v10191_v13, %v7662_v12  ;;  %v10176_v0 = vld [vmem:[%s12780_s27 + $0x8] sm:$0xf0]  ;;  %v7430_v3 = vld [vmem:[%s12778_s30 + $0x20] sm:$0xf] }
  0x62   : > { %1070 = vmatmul.bf16.vlgmr.msrb.gmra.mxu0 %v11349_v57  ;;  %v7503_v17 = vor.u32 %v10150_v15, %v7502_v14  ;;  %v10200_v6 = vld [vmem:[%s12780_s27 + $0xc8] sm:$0xf0]  ;;  %v7603_v7 = vor.u32 %v10176_v0, %v7602_v63  ;;  %v7688_v13 = vld [vmem:[%s12780_s27 + $0xb4] sm:$0xf0]  ;;  %v10190_v19 = vld [vmem:[%s12780_s27 + $0x7c] sm:$0xf] }
  0x63   : > { %1442 = vmatpush.bf16.msra.mxu0 %v7499_v16  ;;  %1424 = vmatmul.bf16.vlgmr.msrb.gmra.mxu2 %v11349_v57  ;;  %v7771_v16 = vor.u32 %v10218_v10, %v7770_v9  ;;  %v7418_v10 = vld [vmem:[%s12778_s30 + $0x8] sm:$0xf]  ;;  %v10196_v12 = vld [vmem:[%s12780_s27 + $0xac] sm:$0xf]  ;;  %v10181_v28 = vld [vmem:[%s12780_s27 + $0x34] sm:$0xf] }
  0x64   : > { %1437 = vmatmul.bf16.vlgmr.msrb.gmra.mxu3 %v11359_v60  ;;  %1083 = vmatmul.bf16.vlgmr.msrb.gmra.mxu1 %v11359_v60  ;;  %v7691_v15 = vor.u32 %v10196_v12, %v7688_v13  ;;  %v746_v37 = vld [vmem:[%s12781_s5] sm:$0x7]  ;;  %v7586_v0 = vld [vmem:[%s12778_s30 + $0x158] sm:$0xf]  ;;  %v7562_v13 = vld [vmem:[%s12778_s30 + $0x128] sm:$0xf] }
  0x65   : > { %1455 = vmatpush.bf16.msra.mxu1 %v7595_v20  ;;  %v7758_v20 = vld [vmem:[%s12780_s27 + $0x138] sm:$0xf]  ;;  %1468 = vmatpush.bf16.msra.mxu2 %v7503_v17  ;;  %v7676_v17 = vld [vmem:[%s12780_s27 + $0x9c] sm:$0xf0]  ;;  %v748_v63 = vperm.slane %v746_v37, 0 }
  0x67   : > { %1443 = vmatpush.bf16.msra.mxu0 %v7487_v23  ;;  %v7650_v23 = vld [vmem:[%s12780_s27 + $0x60] sm:$0xf] }
  0x68   : > { %v7651_v31 = vor.u32 %v10188_v24, %v7650_v23  ;;  %v7652_v23 = vld [vmem:[%s12780_s27 + $0x6c] sm:$0xf0] }
  0x69   : > { %1456 = vmatpush.bf16.msra.mxu1 %v7583_v26  ;;  %v7759_v26 = vor.u32 %v10215_v21, %v7758_v20  ;;  %1469 = vmatpush.bf16.msra.mxu2 %v7491_v25  ;;  %v7664_v20 = vld [vmem:[%s12780_s27 + $0x84] sm:$0xf0]  ;;  %v10184_v25 = vld [vmem:[%s12780_s27 + $0x4c] sm:$0xf] }
  0x6a   : > { %v7667_v21 = vor.u32 %v10190_v19, %v7664_v20 }
  0x6b   : > { %1444 = vmatpush.bf16.msra.mxu0 %v7475_v29  ;;  %v7746_v29 = vld [vmem:[%s12780_s27 + $0x120] sm:$0xf] }
  0x6d   : > { %1457 = vmatpush.bf16.msra.mxu1 %v7571_v32  ;;  %v7638_v32 = vld [vmem:[%s12780_s27 + $0x48] sm:$0xf]  ;;  %1470 = vmatpush.bf16.msra.mxu2 %v7479_v34  ;;  %v10175_v34 = vld [vmem:[%s12780_s27 + $0x4] sm:$0xf] }
  0x6e   : > { %v7639_v40 = vor.u32 %v10185_v33, %v7638_v32  ;;  %v7616_v32 = vld [vmem:[%s12780_s27 + $0x24] sm:$0xf0] }
  0x6f   : > { %1445 = vmatpush.bf16.msra.mxu0 %v7463_v35  ;;  %v7747_v35 = vor.u32 %v10212_v30, %v7746_v29  ;;  %v7628_v29 = vld [vmem:[%s12780_s27 + $0x3c] sm:$0xf0] }
  0x70   : > { %v7631_v30 = vor.u32 %v10181_v28, %v7628_v29  ;;  %v10159_v28 = vld [vmem:[%s12778_s30 + $0x100] sm:$0xf0] }
  0x71   : > { %1458 = vmatpush.bf16.msra.mxu1 %v7559_v38  ;;  %v7734_v38 = vld [vmem:[%s12780_s27 + $0x108] sm:$0xf]  ;;  %1471 = vmatpush.bf16.msra.mxu2 %v7467_v44 }
  0x73   : > { %1446 = vmatpush.bf16.msra.mxu0 %v7451_v41  ;;  %v7626_v41 = vld [vmem:[%s12780_s27 + $0x30] sm:$0xf] }
  0x74   : > { %v7627_v50 = vor.u32 %v10182_v43, %v7626_v41 }
  0x75   : > { %1459 = vmatpush.bf16.msra.mxu1 %v7547_v45  ;;  %v7735_v45 = vor.u32 %v10209_v39, %v7734_v38  ;;  %1472 = vmatpush.bf16.msra.mxu2 %v7455_v54  ;;  %v749_v39 = vperm.slane %v746_v37, 1 }
  0x77   : > { %1447 = vmatpush.bf16.msra.mxu0 %v7439_v48  ;;  %v7722_v48 = vld [vmem:[%s12780_s27 + $0xf0] sm:$0xf] }
  0x79   : > { %1460 = vmatpush.bf16.msra.mxu1 %v7535_v51  ;;  %v7614_v51 = vld [vmem:[%s12780_s27 + $0x18] sm:$0xf] }
  0x7a   : > { %v7615_v62 = vor.u32 %v10179_v52, %v7614_v51  ;;  %v11815_v51 = vld [vmem:[%s12782_s6] sm:$0x7] }
  0x7b   : > { %1448 = vmatpush.bf16.msra.mxu0 %v7427_v55  ;;  %v7723_v55 = vor.u32 %v10206_v49, %v7722_v48 }
  0x7d   : > { %1461 = vmatpush.bf16.msra.mxu1 %v7523_v59  ;;  %v7710_v59 = vld [vmem:[%s12780_s27 + $0xd8] sm:$0xf] }
  0x7e   : > { %v7711_v2 = vor.u32 %v10203_v61, %v7710_v59  ;;  %v1154_v59 = vperm.slane %v11815_v51, 0 }
  0x7f   : > { %1449 = vmatpush.bf16.msra.mxu0 %v7415_v1  ;;  %v7443_v1 = vor.u32 %v10135_v58, %v7442_v56  ;;  %v7598_v56 = vld [vmem:[%s12778_s30 + $0x170] sm:$0xf]  ;;  %v10174_v58 = vld [vmem:[%s12778_s30 + $0x178] sm:$0xf0] }
  0x80   : > { %v7599_v61 = vor.u32 %v10174_v58, %v7598_v56  ;;  %v10208_v56 = vld [vmem:[%s12780_s27 + $0x10c] sm:$0xf]  ;;  %v7736_v58 = vld [vmem:[%s12780_s27 + $0x114] sm:$0xf0] }
  0x81   : > { %1462 = vmatpush.bf16.msra.mxu1 %v7511_v5  ;;  %v7698_v5 = vld [vmem:[%s12780_s27 + $0xc0] sm:$0xf]  ;;  %1473 = vmatpush.bf16.msra.mxu2 %v7443_v1  ;;  %v10171_v1 = vld [vmem:[%s12778_s30 + $0x160] sm:$0xf0] }
  0x82   : > { %1450 = vmatmul.bf16.vlgmr.msra.gmra.mxu0 %v11349_v57  ;;  %v7699_v9 = vor.u32 %v10200_v6, %v7698_v5  ;;  %1481 = vmatpush.bf16.msra.mxu3 %v7599_v61  ;;  %v7574_v6 = vld [vmem:[%s12778_s30 + $0x140] sm:$0xf] }
  0x83   : > { %1822 = vmatpush.bf16.msrb.mxu0 %v7687_v4  ;;  %v10132_v4 = vld [vmem:[%s12778_s30 + $0x28] sm:$0xf0] }
  0x84   : > { %1463 = vmatmul.bf16.vlgmr.msra.gmra.mxu1 %v11359_v60 }
  0x85   : > { %1835 = vmatpush.bf16.msrb.mxu1 %v7783_v8  ;;  %v7431_v8 = vor.u32 %v10132_v4, %v7430_v3  ;;  %v7587_v3 = vor.u32 %v10171_v1, %v7586_v0  ;;  %v7724_v0 = vld [vmem:[%s12780_s27 + $0xfc] sm:$0xf0] }
  0x87   : > { %1823 = vmatpush.bf16.msrb.mxu0 %v7675_v11  ;;  %v10129_v11 = vld [vmem:[%s12778_s30 + $0x10] sm:$0xf0]  ;;  %1474 = vmatpush.bf16.msra.mxu2 %v7431_v8 }
  0x88   : > { %v7419_v14 = vor.u32 %v10129_v11, %v7418_v10  ;;  %1482 = vmatpush.bf16.msra.mxu3 %v7587_v3 }
  0x89   : > { %1836 = vmatpush.bf16.msrb.mxu1 %v7771_v16  ;;  %v10193_v16 = vld [vmem:[%s12780_s27 + $0x94] sm:$0xf] }
  0x8a   : > { %v7679_v18 = vor.u32 %v10193_v16, %v7676_v17 }
  0x8b   : > { %1824 = vmatpush.bf16.msrb.mxu0 %v7663_v22  ;;  %1475 = vmatpush.bf16.msra.mxu2 %v7419_v14  ;;  %v10187_v22 = vld [vmem:[%s12780_s27 + $0x64] sm:$0xf]  ;;  %v10165_v14 = vld [vmem:[%s12778_s30 + $0x130] sm:$0xf0] }
  0x8c   : > { %v7655_v24 = vor.u32 %v10187_v22, %v7652_v23  ;;  %v7550_v22 = vld [vmem:[%s12778_s30 + $0x110] sm:$0xf]  ;;  %v10162_v23 = vld [vmem:[%s12778_s30 + $0x118] sm:$0xf0] }
  0x8d   : > { %1837 = vmatpush.bf16.msrb.mxu1 %v7759_v26  ;;  %v7640_v26 = vld [vmem:[%s12780_s27 + $0x54] sm:$0xf0] }
  0x8e   : > { %1476 = vmatmul.bf16.vlgmr.msra.gmra.mxu2 %v11349_v57  ;;  %v7643_v27 = vor.u32 %v10184_v25, %v7640_v26  ;;  %v7551_v25 = vor.u32 %v10162_v23, %v7550_v22 }
  0x8f   : > { %1825 = vmatpush.bf16.msrb.mxu0 %v7651_v31  ;;  %1848 = vmatpush.bf16.msrb.mxu2 %v7691_v15  ;;  %v10178_v31 = vld [vmem:[%s12780_s27 + $0x1c] sm:$0xf] }
  0x90   : > { %v7619_v33 = vor.u32 %v10178_v31, %v7616_v32  ;;  %v10156_v31 = vld [vmem:[%s12778_s30 + $0xe8] sm:$0xf0] }
  0x91   : > { %1838 = vmatpush.bf16.msrb.mxu1 %v7747_v35  ;;  %v7604_v35 = vld [vmem:[%s12780_s27 + $0xc] sm:$0xf0] }
  0x92   : > { %v7607_v36 = vor.u32 %v10175_v34, %v7604_v35  ;;  %v7514_v35 = vld [vmem:[%s12778_s30 + $0xc8] sm:$0xf] }
  0x93   : > { %1826 = vmatpush.bf16.msrb.mxu0 %v7639_v40  ;;  %1849 = vmatpush.bf16.msrb.mxu2 %v7679_v18  ;;  %v7563_v18 = vor.u32 %v10165_v14, %v7562_v13 }
  0x95   : > { %1839 = vmatpush.bf16.msrb.mxu1 %v7735_v45 }
  0x97   : > { %1827 = vmatpush.bf16.msrb.mxu0 %v7627_v50  ;;  %1850 = vmatpush.bf16.msrb.mxu2 %v7667_v21  ;;  %v750_v50 = vperm.slane %v746_v37, 2 }
  0x99   : > { %1840 = vmatpush.bf16.msrb.mxu1 %v7723_v55 }
  0x9b   : > { %1828 = vmatpush.bf16.msrb.mxu0 %v7615_v62  ;;  %1851 = vmatpush.bf16.msrb.mxu2 %v7655_v24 }
  0x9d   : > { %1841 = vmatpush.bf16.msrb.mxu1 %v7711_v2 }
  0x9f   : > { %1829 = vmatpush.bf16.msrb.mxu0 %v7603_v7  ;;  %1852 = vmatpush.bf16.msrb.mxu2 %v7643_v27  ;;  %v10168_v7 = vld [vmem:[%s12778_s30 + $0x148] sm:$0xf0]  ;;  %v7538_v27 = vld [vmem:[%s12778_s30 + $0xf8] sm:$0xf] }
  0xa0   : > { %v7575_v11 = vor.u32 %v10168_v7, %v7574_v6  ;;  %v7539_v29 = vor.u32 %v10159_v28, %v7538_v27  ;;  %v10202_v6 = vld [vmem:[%s12780_s27 + $0xdc] sm:$0xf]  ;;  %v7712_v7 = vld [vmem:[%s12780_s27 + $0xe4] sm:$0xf0]  ;;  %v665_v28 = vlaneseq }
  0xa1   : > { %1842 = vmatpush.bf16.msrb.mxu1 %v7699_v9 }
  0xa2   : > { %1830 = vmatmul.bf16.vlgmr.msrb.gmra.mxu0 %v11349_v57  ;;  %1483 = vmatpush.bf16.msra.mxu3 %v7575_v11 }
  0xa3   : > { %1853 = vmatpush.bf16.msrb.mxu2 %v7631_v30  ;;  %v7526_v30 = vld [vmem:[%s12778_s30 + $0xe0] sm:$0xf] }
  0xa4   : > { %1843 = vmatmul.bf16.vlgmr.msrb.gmra.mxu1 %v11359_v60  ;;  %v7527_v32 = vor.u32 %v10156_v31, %v7526_v30  ;;  %v1901_v30 = vshrl.u32 %v665_v28, 7 }
  0xa6   : > { %1484 = vmatpush.bf16.msra.mxu3 %v7563_v18 }
  0xa7   : > { %1854 = vmatpush.bf16.msrb.mxu2 %v7619_v33 }
  0xaa   : > { %1485 = vmatpush.bf16.msra.mxu3 %v7551_v25 }
  0xab   : > { %1855 = vmatpush.bf16.msrb.mxu2 %v7607_v36  ;;  %v10153_v36 = vld [vmem:[%s12778_s30 + $0xd0] sm:$0xf0] }
  0xac   : > { %v7515_v37 = vor.u32 %v10153_v36, %v7514_v35  ;;  %v1156_v36 = vperm.slane %v11815_v51, 2 }
  0xae   : > { %1856 = vmatmul.bf16.vlgmr.msrb.gmra.mxu2 %v11349_v57  ;;  %1486 = vmatpush.bf16.msra.mxu3 %v7539_v29  ;;  %v11963_v29 = vand.u32 127, %v665_v28  ;;  %v10230_v28 = vld [vmem:[%s12744_s8 + $0x34] sm:$0xf0] }
  0xb0   : > { %vm1902_vm1 = vcmp.ge.s32.totalorder %v1901_v30, %v11963_v29 }
  0xb2   : > { %1487 = vmatpush.bf16.msra.mxu3 %v7527_v32 }
  0xb6   : > { %1488 = vmatpush.bf16.msra.mxu3 %v7515_v37 }
  0xb9   : > { %1489 = vmatmul.bf16.vlgmr.msra.gmra.mxu3 %v11359_v60 }
  0xbf   : > { %v1019_v38 = vpop.f32.mrf.mxu0 }
  0xc0   : > { %v1020_v8 = vadd.f32 %v1019_v38, %v748_v63  ;;  %v10220_v38 = vld [vmem:[%s12780_s27 + $0x16c] sm:$0xf]  ;;  %v7739_v63 = vor.u32 %v10208_v56, %v7736_v58 }
  0xc3   : > { %v1032_v41 = vpop.f32.mrf.mxu1 }
  0xc4   : > { %v1033_v16 = vadd.f32 %v1032_v41, %v1020_v8  ;;  %v10199_v8 = vld [vmem:[%s12780_s27 + $0xc4] sm:$0xf] }
  0xc6   : > { %v1045_v40 = vpop.f32.mrf.mxu2  ;;  %v11850_v21 = vpack.c.bf16 %v1033_v16, %v1033_v16  ;;  %v1155_v16 = vperm.slane %v11815_v51, 1 }
  0xc7   : > { %v1046_v43 = vadd.f32 %v1045_v40, %v749_v39  ;;  %v1058_v44 = vpop.f32.mrf.mxu3  ;;  %v1021_v46 = vpop.f32.mrf.mxu0  ;;  %v7784_v39 = vld [vmem:[%s12780_s27 + $0x174] sm:$0xf0]  ;;  %v10217_v40 = vld [vmem:[%s12780_s27 + $0x154] sm:$0xf] }
  0xc8   : > { %v7787_v41 = vor.u32 %v10220_v38, %v7784_v39  ;;  %v10214_v46 = vld [vmem:[%s12780_s27 + $0x13c] sm:$0xf] }
  0xc9   : > { %v11810_v45 = vadd.f32 %v1058_v44, %v1046_v43  ;;  %v7772_v43 = vld [vmem:[%s12780_s27 + $0x15c] sm:$0xf0] }
  0xca   : > { %1861 = vmatpush.bf16.msrb.mxu3 %v7787_v41  ;;  %v7775_v44 = vor.u32 %v10217_v40, %v7772_v43 }
  0xcb   : > { %v1034_v48 = vpop.f32.mrf.mxu1  ;;  %v11957_v22 = vpack.c.bf16 %v11810_v45, %v11810_v45  ;;  %v10944_v45 = vmov -1e+30  }
  0xcc   : > { %v10211_v48 = vld [vmem:[%s12780_s27 + $0x124] sm:$0xf]  ;;  %v11966_v31 = vsel %vm1902_vm1, 0.0, %v10944_v45 }
  0xce   : > { %v1047_v47 = vpop.f32.mrf.mxu2  ;;  %1862 = vmatpush.bf16.msrb.mxu3 %v7775_v44 }
  0xcf   : > { %v1060_v49 = vpop.f32.mrf.mxu3  ;;  %v7760_v47 = vld [vmem:[%s12780_s27 + $0x144] sm:$0xf0] }
  0xd0   : > { %v7763_v49 = vor.u32 %v10214_v46, %v7760_v47 }
  0xd2   : > { %1863 = vmatpush.bf16.msrb.mxu3 %v7763_v49 }
  0xdf   : > { %v1071_v52 = vpop.f32.mrf.mxu0 }
  0xe0   : > { %v1072_v54 = vadd.f32 %v1071_v52, %v750_v50  ;;  %v7748_v50 = vld [vmem:[%s12780_s27 + $0x12c] sm:$0xf0]  ;;  %v11912_v52 = vld [vmem:[%s12743_s7] sm:$0x7] }
  0xe1   : > { %v1084_v55 = vpop.f32.mrf.mxu1  ;;  %v1561_v43 = vperm.slane %v11912_v52, 1 }
  0xe2   : > { %v11824_v62 = vadd.f32 %v1084_v55, %v1072_v54  ;;  %v7751_v54 = vor.u32 %v10211_v48, %v7748_v50  ;;  %v1560_v55 = vperm.slane %v11912_v52, 0 }
  0xe4   : > { %1864 = vmatpush.bf16.msrb.mxu3 %v7751_v54 }
  0xe6   : > { %v1425_v2 = vpop.f32.mrf.mxu2 }
  0xe7   : > { %v1426_v4 = vadd.f32 %v1425_v2, %v1154_v59  ;;  %v1438_v5 = vpop.f32.mrf.mxu3  ;;  %v1073_v10 = vpop.f32.mrf.mxu0  ;;  %v10205_v59 = vld [vmem:[%s12780_s27 + $0xf4] sm:$0xf] }
  0xe8   : > { %1865 = vmatpush.bf16.msrb.mxu3 %v7739_v63  ;;  %v7727_v3 = vor.u32 %v10205_v59, %v7724_v0  ;;  %v7700_v10 = vld [vmem:[%s12780_s27 + $0xcc] sm:$0xf0]  ;;  %v7682_v63 = vld [vmem:[%s12780_s27 + $0x98] sm:$0xf] }
  0xe9   : > { %v1439_v9 = vadd.f32 %v1438_v5, %v1426_v4  ;;  %v1086_v12 = vpop.f32.mrf.mxu1  ;;  %v7694_v59 = vld [vmem:[%s12780_s27 + $0xb0] sm:$0xf] }
  0xea   : > { %v7703_v12 = vor.u32 %v10199_v8, %v7700_v10  ;;  %v10189_v10 = vld [vmem:[%s12780_s27 + $0x70] sm:$0xf0] }
  0xeb   : > { %v11844_v15 = vpack.c.bf16 %v1439_v9, %v1439_v9  ;;  %v7715_v9 = vor.u32 %v10202_v6, %v7712_v7  ;;  %v7670_v6 = vld [vmem:[%s12780_s27 + $0x80] sm:$0xf]  ;;  %v10192_v7 = vld [vmem:[%s12780_s27 + $0x88] sm:$0xf0] }
  0xec   : > { %1866 = vmatpush.bf16.msrb.mxu3 %v7727_v3  ;;  %v7671_v8 = vor.u32 %v10192_v7, %v7670_v6  ;;  %v10222_v6 = vld [vmem:[%s12780_s27 + $0x178] sm:$0xf0]  ;;  %v7778_v7 = vld [vmem:[%s12780_s27 + $0x158] sm:$0xf] }
  0xed   : > { %1969 = vrot.lane.b32.xlu0 %v11844_v15, %s12761_s4  ;;  %v1912_v17 = vsel %vm1907_vm0, %v11844_v15, 0 }
  0xee   : > { %v1427_v19 = vpop.f32.mrf.mxu2  ;;  %1921 = vmatpush.bf16.xpose.msra.mxu2 %v1912_v17 }
  0xef   : > { %v1440_v20 = vpop.f32.mrf.mxu3 }
  0xf0   : > { %1867 = vmatpush.bf16.msrb.mxu3 %v7715_v9  ;;  %v7658_v9 = vld [vmem:[%s12780_s27 + $0x68] sm:$0xf] }
  0xf4   : > { %1868 = vmatpush.bf16.msrb.mxu3 %v7703_v12  ;;  %v10186_v12 = vld [vmem:[%s12780_s27 + $0x58] sm:$0xf0] }
  0xf5   : > { %1966 = vrot.lane.b32.xlu0 %v11850_v21, %s12761_s4  ;;  %7792 = vmatmul.msk.bf16.vlgmr.msra.gmra.mxu2 %vm1907_vm0, %v11850_v21  ;;  %s663_s4 = scalar_lea.vmem %s12756_s20, %s7214_s1 }
  0xf7   : > { %1869 = vmatmul.bf16.vlgmr.msrb.gmra.mxu3 %v11359_v60 }
  0xff   : > { %v11862_v24 = vpop.f32.mrf.mxu0 }
 0x100   : > { %v1452_v17 = vadd.f32 %v11862_v24, %v1155_v16  ;;  %v10183_v16 = vld [vmem:[%s12780_s27 + $0x40] sm:$0xf0] }
 0x101   : > { %v11864_v26 = vpop.f32.mrf.mxu1 }
 0x102   : > { %v1465_v19 = vadd.f32 %v11864_v26, %v1452_v17 }
 0x104   : > { %v11951_v20 = vpack.c.bf16 %v1465_v19, %v1465_v19  ;;  %v10180_v19 = vld [vmem:[%s12780_s27 + $0x28] sm:$0xf0] }
 0x107   : > { %v1453_v33 = vpop.f32.mrf.mxu0 }
 0x109   : > { %v1466_v34 = vpop.f32.mrf.mxu1 }
 0x111   : > { %v1477_v14 = vpop.f32.mrf.mxu2 }
 0x112   : > { %v1478_v37 = vadd.f32 %v1477_v14, %v1156_v36  ;;  %v7634_v14 = vld [vmem:[%s12780_s27 + $0x38] sm:$0xf] }
 0x113   : > { %v7635_v17 = vor.u32 %v10183_v16, %v7634_v14 }
 0x119   : > { %v1479_v18 = vpop.f32.mrf.mxu2 }
 0x11a   : > { %v7622_v18 = vld [vmem:[%s12780_s27 + $0x20] sm:$0xf] }
 0x11f   : > { %v1831_v61 = vpop.f32.mrf.mxu0 }
 0x120   : > { %v1832_v1 = vadd.f32 %v1831_v61, %v1560_v55  ;;  %v10198_v61 = vld [vmem:[%s12780_s27 + $0xb8] sm:$0xf0] }
 0x121   : > { %v1844_v2 = vpop.f32.mrf.mxu1  ;;  %v7695_v0 = vor.u32 %v10198_v61, %v7694_v59  ;;  %v7820_v59 = vld [vmem:[%s12744_s8] sm:$0xf]  ;;  %v10224_v61 = vld [vmem:[%s12744_s8 + $0x4] sm:$0xf0] }
 0x122   : > { %v1845_v4 = vadd.f32 %v1844_v2, %v1832_v1  ;;  %v10195_v1 = vld [vmem:[%s12780_s27 + $0xa0] sm:$0xf0] }
 0x123   : > { %1874 = vmatpush.bf16.msra.mxu0 %v7695_v0  ;;  %v7821_v0 = vor.u32 %v10224_v61, %v7820_v59 }
 0x124   : > { %v11927_v5 = vpack.c.bf16 %v1845_v4, %v1845_v4  ;;  %v7683_v4 = vor.u32 %v10195_v1, %v7682_v63  ;;  %v10223_v63 = vld [vmem:[%s12744_s8 + $0x4] sm:$0xf]  ;;  %v7822_v1 = vld [vmem:[%s12744_s8 + $0x8] sm:$0xf0] }
 0x126   : > { %2003 = vrot.lane.b32.xlu0 %v11927_v5, %s12783_s0 }
 0x127   : > { %v1833_v11 = vpop.f32.mrf.mxu0  ;;  %1875 = vmatpush.bf16.msra.mxu0 %v7683_v4  ;;  %v7790_v4 = vld [vmem:[%s12780_s27 + $0x170] sm:$0xf] }
 0x128   : > { %v7659_v11 = vor.u32 %v10189_v10, %v7658_v9  ;;  %v10219_v9 = vld [vmem:[%s12780_s27 + $0x160] sm:$0xf0] }
 0x129   : > { %v1846_v13 = vpop.f32.mrf.mxu1 }
 0x12b   : > { %1876 = vmatpush.bf16.msra.mxu0 %v7671_v8  ;;  %v7791_v8 = vor.u32 %v10222_v6, %v7790_v4  ;;  %v1562_v6 = vperm.slane %v11912_v52, 2 }
 0x12d   : > { %1887 = vmatpush.bf16.msra.mxu1 %v7791_v8 }
 0x12e   : > { %2243 = vrot.lane.b32.xlu0 %v11844_v15, %s12763_s29 }
 0x12f   : > { %1877 = vmatpush.bf16.msra.mxu0 %v7659_v11  ;;  %v7779_v11 = vor.u32 %v10219_v9, %v7778_v7 }
 0x131   : > { %v1857_v23 = vpop.f32.mrf.mxu2  ;;  %1888 = vmatpush.bf16.msra.mxu1 %v7779_v11 }
 0x132   : > { %v1858_v44 = vadd.f32 %v1857_v23, %v1561_v43  ;;  %v7623_v23 = vor.u32 %v10180_v19, %v7622_v18  ;;  %v10213_v18 = vld [vmem:[%s12780_s27 + $0x130] sm:$0xf0] }
 0x136   : > { %2241 = vrot.lane.b32.xlu0 %v11850_v21, %s12763_s29  ;;  %s12784_s29 = smov 32  }
 0x139   : > { %v1859_v24 = vpop.f32.mrf.mxu2 }
 0x13a   : > { %v7610_v24 = vld [vmem:[%s12780_s27 + $0x8] sm:$0xf] }
 0x13c   : > { %v1490_v38 = vpop.f32.mrf.mxu3 }
 0x13d   : > { %v1491_v39 = vadd.f32 %v1490_v38, %v1478_v37 }
 0x13e   : > { %2468 = vrot.lane.b32.xlu0 %v11951_v20, %s12783_s0 }
 0x13f   : > { %v11971_v40 = vpack.c.bf16 %v1491_v39, %v1491_v39 }
 0x144   : > { %v1492_v41 = vpop.f32.mrf.mxu3 }
 0x146   : > { %2580 = vrot.lane.b32.xlu0 %v11957_v22, %s12766_s22 }
 0x14e   : > { %2920 = vrot.lane.b32.xlu0 %v11971_v40, %s12783_s0 }
 0x15f   : > { %v1970_v25 = vpop.permute.xlu0 %1969 }
 0x160   : > { %v1975_v26 = vsel %vm1907_vm0, %v1970_v25, 0  ;;  %v10177_v25 = vld [vmem:[%s12780_s27 + $0x10] sm:$0xf0] }
 0x161   : > { %1984 = vmatpush.bf16.xpose.msrb.mxu2 %v1975_v26  ;;  %v7611_v26 = vor.u32 %v10177_v25, %v7610_v24  ;;  %v10210_v24 = vld [vmem:[%s12780_s27 + $0x118] sm:$0xf0] }
 0x167   : > { %v1967_v27 = vpop.permute.xlu0 %1966 }
 0x168   : > { %7794 = vmatmul.msk.bf16.vlgmr.msrb.gmra.mxu2 %vm1907_vm0, %v1967_v27  ;;  %v7810_v27 = vld [vmem:[%s12744_s8 + $0x30] sm:$0xf] }
 0x169   : > { %v7811_v45 = vor.u32 %v10230_v28, %v7810_v27  ;;  %v10207_v27 = vld [vmem:[%s12780_s27 + $0x100] sm:$0xf0] }
 0x178   : > { %v1923_v32 = vpop.f32.mrf.mxu2 }
 0x179   : > { %v1924_v33 = vadd.f32 %v1923_v32, %v11966_v31 }
 0x17a   : > { %v1870_v46 = vpop.f32.mrf.mxu3 }
 0x17b   : > { %v1928_v34 = vsel %vm1927_vm2, %v1924_v33, -inf  ;;  %v11976_v47 = vadd.f32 %v1870_v46, %v1858_v44 }
 0x17c   : > { %1929 = vmax.xlane.f32.xlu1 %v1928_v34  ;;  %v7802_v34 = vld [vmem:[%s12744_s8 + $0x20] sm:$0xf] }
 0x180   : > { %v1925_v35 = vpop.f32.mrf.mxu2 }
 0x181   : > { %v10228_v35 = vld [vmem:[%s12744_s8 + $0x24] sm:$0xf0] }
 0x182   : > { %v1872_v48 = vpop.f32.mrf.mxu3  ;;  %v7803_v36 = vor.u32 %v10228_v35, %v7802_v34  ;;  %v7706_v35 = vld [vmem:[%s12780_s27 + $0xc8] sm:$0xf] }
 0x198   : > { %v2004_v30 = vpop.permute.xlu0 %2003 }
 0x199   : > { %v2009_v32 = vsel %vm1943_vm3, %v2004_v30, 0  ;;  %v7718_v30 = vld [vmem:[%s12780_s27 + $0xe0] sm:$0xf] }
 0x1eb   : > { %v1986_v49 = vpop.f32.mrf.mxu2 }
 0x1ec   : > { %v11979_v50 = vadd.f32 %v1986_v49, %v11966_v31 }
 0x1ee   : > { %v1990_v51 = vsel %vm1927_vm2, %v11979_v50, -inf }
 0x1ef   : > { %1991 = vmax.xlane.f32.xlu1 %v1990_v51  ;;  %v1930_v54 = vpop.xlane.xlu1 %1929 }
 0x1f0   : > { %v1931_v55 = vsub.f32 %v1924_v33, %v1930_v54  ;;  %v1945_v33 = vsel %vm1943_vm3, %v11927_v5, 0 }
 0x1f1   : > { %1954 = vmatpush.bf16.msra.mxu3 %v1945_v33 }
 0x1f2   : > { %v1932_v56 = vmul.f32 1.442695, %v1931_v55  ;;  %v10225_v55 = vld [vmem:[%s12744_s8 + $0x14] sm:$0xf] }
 0x1f3   : > { %v1988_v58 = vpop.f32.mrf.mxu2 }
 0x1f4   : > { %10814 = vpow2.f32 %v1932_v56 }
 0x1f5   : > { %2018 = vmatpush.bf16.msrb.mxu3 %v2009_v32 }
 0x1fa   : > { %v10815_v2 = vpop.eup %10814 }
 0x1fb   : > { %v1934_v3 = vsel %vm1927_vm2, %v10815_v2, 0.0 }
 0x1fc   : > { %1935 = vadd.xlane.f32.xlu2 %v1934_v3 }
 0x208   : > { %2130 = vrot.lane.b32.xlu1 %v11844_v15, %s12766_s22  ;;  %v7646_v15 = vld [vmem:[%s12780_s27 + $0x50] sm:$0xf] }
 0x209   : > { %v7647_v13 = vor.u32 %v10186_v12, %v7646_v15  ;;  %v7766_v12 = vld [vmem:[%s12780_s27 + $0x140] sm:$0xf] }
 0x20b   : > { %1878 = vmatpush.bf16.msra.mxu0 %v7647_v13  ;;  %v10216_v13 = vld [vmem:[%s12780_s27 + $0x148] sm:$0xf0] }
 0x20c   : > { %v7767_v16 = vor.u32 %v10216_v13, %v7766_v12 }
 0x20e   : > { %1889 = vmatpush.bf16.msra.mxu1 %v7767_v16 }
 0x20f   : > { %1879 = vmatpush.bf16.msra.mxu0 %v7635_v17  ;;  %v7754_v17 = vld [vmem:[%s12780_s27 + $0x128] sm:$0xf] }
 0x210   : > { %2582 = vrot.lane.b32.xlu1 %v11951_v20, %s12766_s22  ;;  %s12785_s22 = smov 64   ;;  %v7755_v19 = vor.u32 %v10213_v18, %v7754_v17 }
 0x212   : > { %1890 = vmatpush.bf16.msra.mxu1 %v7755_v19 }
 0x213   : > { %1880 = vmatpush.bf16.msra.mxu0 %v7623_v23  ;;  %v7742_v23 = vld [vmem:[%s12780_s27 + $0x110] sm:$0xf] }
 0x214   : > { %v7743_v25 = vor.u32 %v10210_v24, %v7742_v23 }
 0x216   : > { %1891 = vmatpush.bf16.msra.mxu1 %v7743_v25 }
 0x217   : > { %1881 = vmatpush.bf16.msra.mxu0 %v7611_v26  ;;  %v7730_v26 = vld [vmem:[%s12780_s27 + $0xf8] sm:$0xf] }
 0x218   : > { %2693 = vrot.lane.b32.xlu1 %v11957_v22, %s12784_s29  ;;  %v7731_v28 = vor.u32 %v10207_v27, %v7730_v26 }
 0x21a   : > { %1882 = vmatmul.bf16.vlgmr.msra.gmra.mxu0 %v11349_v57  ;;  %v12066_v57 = vpack.c.bf16 %v11824_v62, %v11824_v62  ;;  %v7830_v62 = vld [vmem:[%s12744_s8 + $0x18] sm:$0xf0]  ;;  %1892 = vmatpush.bf16.msra.mxu1 %v7731_v28 }
 0x21b   : > { %2059 = vmatpush.bf16.msrb.mxu0 %v7811_v45  ;;  %v7833_v58 = vor.u32 %v10225_v55, %v7830_v62  ;;  %v10204_v45 = vld [vmem:[%s12780_s27 + $0xe8] sm:$0xf0]  ;;  %v2361_v62 = vsel %vm1907_vm0, %v11951_v20, 0 }
 0x21c   : > { %v7719_v33 = vor.u32 %v10204_v45, %v7718_v30 }
 0x21e   : > { %1893 = vmatpush.bf16.msra.mxu1 %v7719_v33 }
 0x21f   : > { %2060 = vmatpush.bf16.msrb.mxu0 %v7803_v36  ;;  %v10201_v36 = vld [vmem:[%s12780_s27 + $0xd0] sm:$0xf0] }
 0x262   : > { %v1992_v37 = vpop.xlane.xlu1 %1991 }
 0x263   : > { %v1993_v38 = vsub.f32 %v11979_v50, %v1992_v37  ;;  %v7828_v50 = vld [vmem:[%s12744_s8 + $0x10] sm:$0xf]  ;;  %v10229_v37 = vld [vmem:[%s12744_s8 + $0x34] sm:$0xf] }
 0x265   : > { %v1994_v39 = vmul.f32 1.442695, %v1993_v38  ;;  %v7812_v38 = vld [vmem:[%s12744_s8 + $0x38] sm:$0xf0] }
 0x267   : > { %10816 = vpow2.f32 %v1994_v39  ;;  %v7707_v39 = vor.u32 %v10201_v36, %v7706_v35 }
 0x269   : > { %1894 = vmatpush.bf16.msra.mxu1 %v7707_v39 }
 0x26c   : > { %1895 = vmatmul.bf16.vlgmr.msra.gmra.mxu1 %v11359_v60 }
 0x26d   : > { %v10817_v41 = vpop.eup %10816 }
 0x26e   : > { %v1996_v43 = vsel %vm1927_vm2, %v10817_v41, 0.0 }
 0x26f   : > { %v1936_v44 = vpop.xlane.xlu2 %1935  ;;  %1997 = vadd.xlane.f32.xlu2 %v1996_v43 }
 0x270   : > { %10818 = vrcp.f32 %v1936_v44  ;;  %v10227_v44 = vld [vmem:[%s12744_s8 + $0x24] sm:$0xf] }
 0x276   : > { %v10819_v46 = vpop.eup %10818 }
 0x277   : > { %v1938_v48 = vmul.f32 %v10819_v46, %v10815_v2  ;;  %v7825_v2 = vor.u32 %v10223_v63, %v7822_v1  ;;  %v7804_v46 = vld [vmem:[%s12744_s8 + $0x28] sm:$0xf0] }
 0x279   : > { %v1939_v49 = vpack.c.bf16 %v1938_v48, %v1938_v48  ;;  %v7807_v48 = vor.u32 %v10227_v44, %v7804_v46 }
 0x27a   : > { %v2131_v51 = vpop.permute.xlu1 %2130 }
 0x27b   : > { %v2136_v54 = vsel %vm1907_vm0, %v2131_v51, 0  ;;  %7793 = vmatmul.msk.bf16.vlgmr.msra.gmra.mxu3 %vm1927_vm2, %v1939_v49  ;;  %v2244_v49 = vpop.permute.xlu0 %2243 }
 0x27c   : > { %2145 = vmatpush.bf16.xpose.msra.mxu0 %v2136_v54  ;;  %2121 = vmatpush.bf16.msra.mxu3 %v7833_v58 }
 0x280   : > { %2122 = vmatpush.bf16.msra.mxu3 %v7825_v2 }
 0x282   : > { %v2583_v1 = vpop.permute.xlu1 %2582 }
 0x283   : > { %v2242_v58 = vpop.permute.xlu0 %2241  ;;  %v2588_v2 = vsel %vm1907_vm0, %v2583_v1, 0 }
 0x287   : > { %2128 = vrot.lane.b32.xlu2 %v11850_v21, %s12785_s22  ;;  %v10226_v21 = vld [vmem:[%s12744_s8 + $0x14] sm:$0xf0] }
 0x288   : > { %v7829_v56 = vor.u32 %v10226_v21, %v7828_v50  ;;  %v2249_v50 = vsel %vm1907_vm0, %v2244_v49, 0 }
 0x28a   : > { %2108 = vmatpush.bf16.msra.mxu2 %v7829_v56 }
 0x28b   : > { %v2469_v63 = vpop.permute.xlu0 %2468 }
 0x28e   : > { %2109 = vmatpush.bf16.msra.mxu2 %v7821_v0  ;;  %v2474_v0 = vsel %vm1907_vm0, %v2469_v63, 0 }
 0x28f   : > { %2465 = vrot.lane.b32.xlu2 %v11957_v22, %s12783_s0 }
 0x293   : > { %v2581_v12 = vpop.permute.xlu0 %2580 }
 0x297   : > { %2695 = vrot.lane.b32.xlu2 %v11951_v20, %s12784_s29  ;;  %v1883_v7 = vpop.f32.mrf.mxu0 }
 0x298   : > { %v1884_v9 = vadd.f32 %v1883_v7, %v1562_v6 }
 0x29b   : > { %v2921_v13 = vpop.permute.xlu0 %2920 }
 0x29c   : > { %v2926_v16 = vsel %vm1907_vm0, %v2921_v13, 0 }
 0x29f   : > { %2917 = vrot.lane.b32.xlu2 %v12066_v57, %s12783_s0  ;;  %v1885_v11 = vpop.f32.mrf.mxu0 }
 0x2e2   : > { %v1998_v3 = vpop.xlane.xlu2 %1997 }
 0x2e3   : > { %10820 = vrcp.f32 %v1998_v3 }
 0x2e9   : > { %v10821_v10 = vpop.eup %10820  ;;  %v1896_v8 = vpop.f32.mrf.mxu1 }
 0x2ea   : > { %v2000_v15 = vmul.f32 %v10821_v10, %v10817_v41  ;;  %v7815_v41 = vor.u32 %v10229_v37, %v7812_v38  ;;  %v2129_v21 = vpop.permute.xlu2 %2128  ;;  %v12176_v10 = vadd.f32 %v1896_v8, %v1884_v9 }
 0x2ec   : > { %v2001_v14 = vpack.c.bf16 %v2000_v15, %v2000_v15  ;;  %2072 = vmatpush.bf16.msrb.mxu1 %v7815_v41 }
 0x2ee   : > { %7795 = vmatmul.msk.bf16.vlgmr.msrb.gmra.mxu3 %vm1927_vm2, %v2001_v14  ;;  %v2694_v14 = vpop.permute.xlu1 %2693 }
 0x2f0   : > { %2073 = vmatpush.bf16.msrb.mxu1 %v7807_v48 }
 0x2f1   : > { %v1898_v15 = vpop.f32.mrf.mxu1 }
 0x2f2   : > { %v2466_v3 = vpop.permute.xlu2 %2465 }
 0x2fa   : > { %v2696_v4 = vpop.permute.xlu2 %2695 }
 0x2fb   : > { %v2701_v20 = vsel %vm1907_vm0, %v2696_v4, 0 }
 0x2fe   : > { %v1956_v32 = vpop.f32.mrf.mxu3 }
 0x2ff   : > { %v1960_v34 = vpack.c.bf16 %v1956_v32, %v1956_v32 }
 0x301   : > { %7834 = vmatmul.msk.bf16.vlgmr.msra.gmra.mxu2 %vm1907_vm0, %v1960_v34  ;;  %7835 = vmatmul.msk.bf16.vlgmr.msra.gmra.mxu3 %vm1907_vm0, %v1960_v34 }
 0x302   : > { %v2918_v18 = vpop.permute.xlu2 %2917 }
 0x306   : > { %v1958_v43 = vpop.f32.mrf.mxu3 }
 0x371   : > { %v2020_v51 = vpop.f32.mrf.mxu3 }
 0x372   : > { %v2024_v54 = vpack.c.bf16 %v2020_v51, %v2020_v51 }
 0x374   : > { %7816 = vmatmul.msk.bf16.vlgmr.msrb.gmra.mxu0 %vm1907_vm0, %v2024_v54  ;;  %7817 = vmatmul.msk.bf16.vlgmr.msrb.gmra.mxu1 %vm1907_vm0, %v2024_v54  ;;  %v12208_v54 = vpack.c.bf16 %v11976_v47, %v11976_v47 }
 0x375   : > { %2258 = vmatpush.bf16.xpose.msrb.mxu0 %v2249_v50 }
 0x379   : > { %v2022_v60 = vpop.f32.mrf.mxu3 }
 0x384   : > { %v12161_v55 = vpop.f32.mrf.mxu2  ;;  %v12163_v56 = vpop.f32.mrf.mxu3  ;;  %7836 = vmatmul.msk.bf16.vlgmr.msra.gmra.mxu0 %vm1907_vm0, %v2129_v21 }
 0x385   : > { %2370 = vmatpush.bf16.xpose.msra.mxu0 %v2361_v62 }
 0x38c   : > { %v2113_v59 = vpop.f32.mrf.mxu2  ;;  %v2126_v61 = vpop.f32.mrf.mxu3 }
 0x394   : > { %7860 = vmatmul.msk.bf16.vlgmr.msrb.gmra.mxu0 %vm1907_vm0, %v2242_v58 }
 0x395   : > { %2483 = vmatpush.bf16.xpose.msrb.mxu0 %v2474_v0 }
 0x3a4   : > { %7884 = vmatmul.msk.bf16.vlgmr.msra.gmra.mxu0 %vm1907_vm0, %v11957_v22  ;;  %v2813_v22 = vsel %vm1907_vm0, %v11971_v40, 0 }
 0x3a5   : > { %2597 = vmatpush.bf16.xpose.msra.mxu0 %v2588_v2 }
 0x3b4   : > { %7908 = vmatmul.msk.bf16.vlgmr.msrb.gmra.mxu0 %vm1907_vm0, %v2466_v3 }
 0x3b5   : > { %2710 = vmatpush.bf16.xpose.msrb.mxu0 %v2701_v20 }
 0x3c4   : > { %7932 = vmatmul.msk.bf16.vlgmr.msra.gmra.mxu0 %vm1907_vm0, %v2581_v12 }
 0x3c5   : > { %2822 = vmatpush.bf16.xpose.msra.mxu0 %v2813_v22 }
 0x3d4   : > { %7956 = vmatmul.msk.bf16.vlgmr.msrb.gmra.mxu0 %vm1907_vm0, %v2694_v14 }
 0x3d5   : > { %2935 = vmatpush.bf16.xpose.msrb.mxu0 %v2926_v16 }
 0x3e4   : > { %7980 = vmatmul.msk.bf16.vlgmr.msra.gmra.mxu0 %vm1907_vm0, %v12066_v57 }
 0x3f1   : > { %v12185_v52 = vpop.f32.mrf.mxu0  ;;  %v12187_v17 = vpop.f32.mrf.mxu1 }
 0x3f4   : > { %8004 = vmatmul.msk.bf16.vlgmr.msrb.gmra.mxu0 %vm1907_vm0, %v2918_v18 }
 0x3f9   : > { %v2064_v40 = vpop.f32.mrf.mxu0  ;;  %v2077_v19 = vpop.f32.mrf.mxu1 }
 0x401   : > { %v2147_v23 = vpop.f32.mrf.mxu0 }
 0x402   : > { %v2148_v24 = vadd.f32 %v2147_v23, %v11966_v31 }
 0x404   : > { %v2151_v25 = vsel %vm1927_vm2, %v2148_v24, -inf }
 0x405   : > { %2152 = vmax.xlane.f32.xlu1 %v2151_v25 }
 0x409   : > { %v2149_v26 = vpop.f32.mrf.mxu0 }
 0x411   : > { %v2260_v27 = vpop.f32.mrf.mxu0 }
 0x412   : > { %v2261_v28 = vadd.f32 %v2260_v27, %v11966_v31 }
 0x414   : > { %v2264_v57 = vsel %vm1927_vm2, %v2261_v28, -inf }
 0x415   : > { %2265 = vmax.xlane.f32.xlu0 %v2264_v57 }
 0x419   : > { %v2262_v30 = vpop.f32.mrf.mxu0 }
 0x41e   : > { %2276 = vrot.lane.b32.xlu1 %v11927_v5, %s12784_s29 }
 0x421   : > { %v2372_v45 = vpop.f32.mrf.mxu0 }
 0x422   : > { %v2373_v32 = vadd.f32 %v2372_v45, %v11966_v31 }
 0x424   : > { %v2376_v33 = vsel %vm1927_vm2, %v2373_v32, -inf }
 0x425   : > { %2377 = vmax.xlane.f32.xlu2 %v2376_v33 }
 0x429   : > { %v2374_v34 = vpop.f32.mrf.mxu0  ;;  %2163 = vrot.lane.b32.xlu0 %v11927_v5, %s12785_s22 }
 0x42a   : > { %v12239_v34 = vpack.c.bf16 %v12176_v10, %v12176_v10 }
 0x431   : > { %v2485_v35 = vpop.f32.mrf.mxu0 }
 0x432   : > { %v2486_v38 = vadd.f32 %v2485_v35, %v11966_v31 }
 0x434   : > { %v2489_v39 = vsel %vm1927_vm2, %v2486_v38, -inf }
 0x439   : > { %v2487_v36 = vpop.f32.mrf.mxu0 }
 0x441   : > { %v2599_v37 = vpop.f32.mrf.mxu0 }
 0x442   : > { %v2600_v43 = vadd.f32 %v2599_v37, %v11966_v31 }
 0x444   : > { %v2603_v44 = vsel %vm1927_vm2, %v2600_v43, -inf }
 0x448   : > { %2490 = vmax.xlane.f32.xlu1 %v2489_v39 }
 0x449   : > { %v2601_v41 = vpop.f32.mrf.mxu0 }
 0x450   : > { %2604 = vmax.xlane.f32.xlu1 %v2603_v44  ;;  %v2392_v44 = vsel %vm1943_vm3, %v12208_v54, 0 }
 0x451   : > { %v2712_v46 = vpop.f32.mrf.mxu0 }
 0x452   : > { %v2713_v48 = vadd.f32 %v2712_v46, %v11966_v31 }
 0x454   : > { %v2716_v49 = vsel %vm1927_vm2, %v2713_v48, -inf }
 0x455   : > { %2717 = vmax.xlane.f32.xlu2 %v2716_v49 }
 0x459   : > { %v2714_v5 = vpop.f32.mrf.mxu0 }
 0x461   : > { %v2824_v51 = vpop.f32.mrf.mxu0 }
 0x462   : > { %v2825_v0 = vadd.f32 %v2824_v51, %v11966_v31 }
 0x464   : > { %v2828_v3 = vsel %vm1927_vm2, %v2825_v0, -inf }
 0x469   : > { %2502 = vrot.lane.b32.xlu1 %v12208_v54, %s12783_s0  ;;  %v2826_v50 = vpop.f32.mrf.mxu0 }
 0x471   : > { %v2937_v60 = vpop.f32.mrf.mxu0 }
 0x472   : > { %v12217_v6 = vadd.f32 %v2937_v60, %v11966_v31 }
 0x474   : > { %v2941_v22 = vsel %vm1927_vm2, %v12217_v6, -inf }
 0x478   : > { %v2153_v21 = vpop.xlane.xlu1 %2152 }
 0x479   : > { %v2154_v62 = vsub.f32 %v2148_v24, %v2153_v21  ;;  %v2939_v58 = vpop.f32.mrf.mxu0 }
 0x47b   : > { %v2155_v59 = vmul.f32 1.442695, %v2154_v62 }
 0x47d   : > { %10822 = vpow2.f32 %v2155_v59 }
 0x483   : > { %v10823_v61 = vpop.eup %10822 }
 0x484   : > { %v2157_v63 = vsel %vm1927_vm2, %v10823_v61, 0.0 }
 0x485   : > { %2158 = vadd.xlane.f32.xlu2 %v2157_v63 }
 0x488   : > { %v2266_v1 = vpop.xlane.xlu0 %2265 }
 0x489   : > { %v2267_v2 = vsub.f32 %v2261_v28, %v2266_v1 }
 0x48b   : > { %v2268_v47 = vmul.f32 1.442695, %v2267_v2 }
 0x48d   : > { %10824 = vpow2.f32 %v2268_v47  ;;  %2829 = vmax.xlane.f32.xlu2 %v2828_v3 }
 0x490   : > { %v2277_v9 = vpop.permute.xlu1 %2276 }
 0x491   : > { %v2282_v13 = vsel %vm1943_vm3, %v2277_v9, 0 }
 0x493   : > { %v10825_v4 = vpop.eup %10824 }
 0x494   : > { %v2270_v20 = vsel %vm1927_vm2, %v10825_v4, 0.0 }
 0x495   : > { %2271 = vadd.xlane.f32.xlu2 %v2270_v20 }
 0x498   : > { %v2378_v7 = vpop.xlane.xlu2 %2377 }
 0x499   : > { %v2379_v8 = vsub.f32 %v2373_v32, %v2378_v7 }
 0x49b   : > { %v2380_v11 = vmul.f32 1.442695, %v2379_v8  ;;  %v2164_v15 = vpop.permute.xlu0 %2163 }
 0x49c   : > { %v2169_v12 = vsel %vm1943_vm3, %v2164_v15, 0  ;;  %v10234_v15 = vld [vmem:[%s12744_s8 + $0x54] sm:$0xf0] }
 0x49d   : > { %10826 = vpow2.f32 %v2380_v11  ;;  %2178 = vmatpush.bf16.msra.mxu1 %v2169_v12  ;;  %2942 = vmax.xlane.f32.xlu2 %v2941_v22  ;;  %v7852_v11 = vld [vmem:[%s12744_s8 + $0x50] sm:$0xf]  ;;  %v10233_v12 = vld [vmem:[%s12744_s8 + $0x54] sm:$0xf] }
 0x49e   : > { %v7853_v22 = vor.u32 %v10234_v15, %v7852_v11  ;;  %v10245_v11 = vld [vmem:[%s12744_s8 + $0xb4] sm:$0xf] }
 0x4a0   : > { %2219 = vmatpush.bf16.msrb.mxu2 %v7853_v22 }
 0x4a1   : > { %2291 = vmatpush.bf16.msrb.mxu1 %v2282_v13  ;;  %v7854_v13 = vld [vmem:[%s12744_s8 + $0x58] sm:$0xf0] }
 0x4a3   : > { %v10827_v14 = vpop.eup %10826 }
 0x4a4   : > { %v2382_v31 = vsel %vm1927_vm2, %v10827_v14, 0.0 }
 0x4a5   : > { %2383 = vadd.xlane.f32.xlu0 %v2382_v31 }
 0x4b9   : > { %2728 = vrot.lane.b32.xlu0 %v12208_v54, %s12784_s29 }
 0x4bb   : > { %v2491_v16 = vpop.xlane.xlu1 %2490 }
 0x4bc   : > { %v2492_v18 = vsub.f32 %v2486_v38, %v2491_v16 }
 0x4be   : > { %v2493_v40 = vmul.f32 1.442695, %v2492_v18 }
 0x4c0   : > { %10828 = vpow2.f32 %v2493_v40 }
 0x4c3   : > { %v2605_v19 = vpop.xlane.xlu1 %2604 }
 0x4c4   : > { %v2606_v23 = vsub.f32 %v2600_v43, %v2605_v19  ;;  %v2844_v19 = vsel %vm1943_vm3, %v12239_v34, 0 }
 0x4c6   : > { %v10829_v24 = vpop.eup %10828  ;;  %v2607_v25 = vmul.f32 1.442695, %v2606_v23 }
 0x4c7   : > { %v2495_v26 = vsel %vm1927_vm2, %v10829_v24, 0.0 }
 0x4c8   : > { %10830 = vpow2.f32 %v2607_v25  ;;  %2496 = vadd.xlane.f32.xlu2 %v2495_v26  ;;  %v2718_v28 = vpop.xlane.xlu2 %2717  ;;  %v10232_v25 = vld [vmem:[%s12744_s8 + $0x44] sm:$0xf0]  ;;  %v10231_v26 = vld [vmem:[%s12744_s8 + $0x44] sm:$0xf] }
 0x4c9   : > { %v2719_v30 = vsub.f32 %v2713_v48, %v2718_v28  ;;  %v7846_v28 = vld [vmem:[%s12744_s8 + $0x48] sm:$0xf0] }
 0x4cb   : > { %v2720_v45 = vmul.f32 1.442695, %v2719_v30  ;;  %v7849_v30 = vor.u32 %v10231_v26, %v7846_v28  ;;  %v10243_v26 = vld [vmem:[%s12744_s8 + $0xa4] sm:$0xf] }
 0x4cd   : > { %10832 = vpow2.f32 %v2720_v45 }
 0x4ce   : > { %v12227_v27 = vpop.eup %10830 }
 0x4cf   : > { %v2609_v57 = vsel %vm1927_vm2, %v12227_v27, 0.0 }
 0x4d0   : > { %2610 = vadd.xlane.f32.xlu1 %v2609_v57 }
 0x4d3   : > { %v12231_v32 = vpop.eup %10832 }
 0x4d4   : > { %v2722_v33 = vsel %vm1927_vm2, %v12231_v32, 0.0 }
 0x4db   : > { %v2503_v50 = vpop.permute.xlu1 %2502 }
 0x4e0   : > { %2615 = vrot.lane.b32.xlu2 %v12208_v54, %s12785_s22  ;;  %v2508_v54 = vsel %vm1943_vm3, %v2503_v50, 0  ;;  %v10241_v50 = vld [vmem:[%s12744_s8 + $0x94] sm:$0xf] }
 0x4e3   : > { %2723 = vadd.xlane.f32.xlu0 %v2722_v33 }
 0x4f7   : > { %2954 = vrot.lane.b32.xlu0 %v12239_v34, %s12783_s0 }
 0x4f8   : > { %v2159_v35 = vpop.xlane.xlu2 %2158 }
 0x4f9   : > { %10834 = vrcp.f32 %v2159_v35  ;;  %v7876_v35 = vld [vmem:[%s12744_s8 + $0x70] sm:$0xf] }
 0x4ff   : > { %v10835_v36 = vpop.eup %10834 }
 0x500   : > { %v2161_v37 = vmul.f32 %v10835_v36, %v10823_v61  ;;  %v2830_v38 = vpop.xlane.xlu2 %2829  ;;  %v10238_v36 = vld [vmem:[%s12744_s8 + $0x74] sm:$0xf0] }
 0x501   : > { %v2831_v39 = vsub.f32 %v2825_v0, %v2830_v38  ;;  %v7878_v38 = vld [vmem:[%s12744_s8 + $0x78] sm:$0xf0] }
 0x502   : > { %v2162_v41 = vpack.c.bf16 %v2161_v37, %v2161_v37  ;;  %v7877_v37 = vor.u32 %v10238_v36, %v7876_v35  ;;  %v7950_v35 = vld [vmem:[%s12744_s8 + $0xd8] sm:$0xf0] }
 0x503   : > { %v2832_v43 = vmul.f32 1.442695, %v2831_v39 }
 0x504   : > { %7837 = vmatmul.msk.bf16.vlgmr.msra.gmra.mxu1 %vm1927_vm2, %v2162_v41  ;;  %v7868_v41 = vld [vmem:[%s12744_s8 + $0x60] sm:$0xf] }
 0x505   : > { %10836 = vpow2.f32 %v2832_v43  ;;  %2401 = vmatpush.bf16.msra.mxu1 %v2392_v44  ;;  %v10236_v43 = vld [vmem:[%s12744_s8 + $0x64] sm:$0xf0]  ;;  %v10235_v44 = vld [vmem:[%s12744_s8 + $0x64] sm:$0xf] }
 0x508   : > { %v2272_v10 = vpop.xlane.xlu2 %2271 }
 0x509   : > { %10838 = vrcp.f32 %v2272_v10  ;;  %v7869_v10 = vor.u32 %v10236_v43, %v7868_v41  ;;  %v7942_v41 = vld [vmem:[%s12744_s8 + $0xc8] sm:$0xf0] }
 0x50b   : > { %v12246_v46 = vpop.eup %10836 }
 0x50c   : > { %v2834_v48 = vsel %vm1927_vm2, %v12246_v46, 0.0 }
 0x50d   : > { %2835 = vadd.xlane.f32.xlu2 %v2834_v48  ;;  %v7870_v48 = vld [vmem:[%s12744_s8 + $0x68] sm:$0xf0] }
 0x50f   : > { %v10839_v49 = vpop.eup %10838 }
 0x510   : > { %v2274_v5 = vmul.f32 %v10839_v49, %v10825_v4  ;;  %v2943_v51 = vpop.xlane.xlu2 %2942  ;;  %v7873_v49 = vor.u32 %v10235_v44, %v7870_v48  ;;  %v7972_v44 = vld [vmem:[%s12744_s8 + $0xf0] sm:$0xf]  ;;  %v10253_v48 = vld [vmem:[%s12744_s8 + $0xf4] sm:$0xf] }
 0x511   : > { %v2944_v60 = vsub.f32 %v12217_v6, %v2943_v51  ;;  %v10242_v51 = vld [vmem:[%s12744_s8 + $0x94] sm:$0xf0] }
 0x512   : > { %v2275_v21 = vpack.c.bf16 %v2274_v5, %v2274_v5  ;;  %v7900_v5 = vld [vmem:[%s12744_s8 + $0x90] sm:$0xf] }
 0x513   : > { %v2945_v62 = vmul.f32 1.442695, %v2944_v60  ;;  %v7902_v60 = vld [vmem:[%s12744_s8 + $0x98] sm:$0xf0] }
 0x514   : > { %7861 = vmatmul.msk.bf16.vlgmr.msrb.gmra.mxu1 %vm1927_vm2, %v2275_v21 }
 0x515   : > { %10840 = vpow2.f32 %v2945_v62  ;;  %2517 = vmatpush.bf16.msrb.mxu1 %v2508_v54  ;;  %v7901_v54 = vor.u32 %v10242_v51, %v7900_v5 }
 0x518   : > { %v2384_v58 = vpop.xlane.xlu0 %2383 }
 0x519   : > { %10842 = vrcp.f32 %v2384_v58  ;;  %v7905_v58 = vor.u32 %v10241_v50, %v7902_v60  ;;  %v7964_v60 = vld [vmem:[%s12744_s8 + $0xe0] sm:$0xf] }
 0x51b   : > { %v12253_v59 = vpop.eup %10840 }
 0x51c   : > { %v2947_v61 = vsel %vm1927_vm2, %v12253_v59, 0.0 }
 0x51d   : > { %2948 = vadd.xlane.f32.xlu1 %v2947_v61  ;;  %v7892_v61 = vld [vmem:[%s12744_s8 + $0x80] sm:$0xf] }
 0x51f   : > { %v10843_v63 = vpop.eup %10842 }
 0x520   : > { %v2386_v0 = vmul.f32 %v10843_v63, %v10827_v14  ;;  %v7857_v14 = vor.u32 %v10233_v12, %v7854_v13 }
 0x522   : > { %v2387_v1 = vpack.c.bf16 %v2386_v0, %v2386_v0  ;;  %2232 = vmatpush.bf16.msrb.mxu3 %v7857_v14  ;;  %v10240_v0 = vld [vmem:[%s12744_s8 + $0x84] sm:$0xf0] }
 0x524   : > { %7885 = vmatmul.msk.bf16.vlgmr.msra.gmra.mxu1 %vm1927_vm2, %v2387_v1  ;;  %v10239_v1 = vld [vmem:[%s12744_s8 + $0x84] sm:$0xf] }
 0x526   : > { %2233 = vmatpush.bf16.msrb.mxu3 %v7849_v30  ;;  %v7948_v30 = vld [vmem:[%s12744_s8 + $0xd0] sm:$0xf] }
 0x52b   : > { %v2729_v20 = vpop.permute.xlu0 %2728 }
 0x52c   : > { %v2734_v9 = vsel %vm1943_vm3, %v2729_v20, 0 }
 0x53b   : > { %v2497_v2 = vpop.xlane.xlu2 %2496 }
 0x53c   : > { %10844 = vrcp.f32 %v2497_v2  ;;  %v7894_v2 = vld [vmem:[%s12744_s8 + $0x88] sm:$0xf0] }
 0x542   : > { %v10845_v47 = vpop.eup %10844 }
 0x543   : > { %v2499_v3 = vmul.f32 %v10845_v47, %v10829_v24  ;;  %v2616_v4 = vpop.permute.xlu2 %2615  ;;  %v2611_v8 = vpop.xlane.xlu1 %2610  ;;  %v7844_v24 = vld [vmem:[%s12744_s8 + $0x40] sm:$0xf]  ;;  %v7893_v47 = vor.u32 %v10240_v0, %v7892_v61 }
 0x544   : > { %v2621_v6 = vsel %vm1943_vm3, %v2616_v4, 0  ;;  %10846 = vrcp.f32 %v2611_v8  ;;  %v7924_v8 = vld [vmem:[%s12744_s8 + $0xb0] sm:$0xf] }
 0x545   : > { %v2500_v7 = vpack.c.bf16 %v2499_v3, %v2499_v3  ;;  %2630 = vmatpush.bf16.msra.mxu1 %v2621_v6  ;;  %v7897_v3 = vor.u32 %v10239_v1, %v7894_v2  ;;  %v7996_v1 = vld [vmem:[%s12744_s8 + $0x110] sm:$0xf]  ;;  %v10258_v2 = vld [vmem:[%s12744_s8 + $0x114] sm:$0xf0] }
 0x547   : > { %7909 = vmatmul.msk.bf16.vlgmr.msrb.gmra.mxu1 %vm1927_vm2, %v2500_v7 }
 0x549   : > { %2743 = vmatpush.bf16.msrb.mxu1 %v2734_v9  ;;  %v10246_v9 = vld [vmem:[%s12744_s8 + $0xb4] sm:$0xf0] }
 0x54a   : > { %v10847_v31 = vpop.eup %10846  ;;  %v7925_v22 = vor.u32 %v10246_v9, %v7924_v8 }
 0x54b   : > { %v2613_v16 = vmul.f32 %v10847_v31, %v12227_v27  ;;  %v7845_v27 = vor.u32 %v10232_v25, %v7844_v24  ;;  %v7916_v24 = vld [vmem:[%s12744_s8 + $0xa0] sm:$0xf]  ;;  %v10244_v25 = vld [vmem:[%s12744_s8 + $0xa4] sm:$0xf0] }
 0x54d   : > { %v2614_v18 = vpack.c.bf16 %v2613_v16, %v2613_v16  ;;  %2220 = vmatpush.bf16.msrb.mxu2 %v7845_v27  ;;  %v7917_v27 = vor.u32 %v10244_v25, %v7916_v24  ;;  %v8012_v25 = vld [vmem:[%s12744_s8 + $0x120] sm:$0xf] }
 0x551   : > { %2332 = vmatpush.bf16.msra.mxu2 %v7877_v37  ;;  %v10248_v37 = vld [vmem:[%s12744_s8 + $0xc4] sm:$0xf0] }
 0x555   : > { %2333 = vmatpush.bf16.msra.mxu2 %v7869_v10  ;;  %v10254_v10 = vld [vmem:[%s12744_s8 + $0xf4] sm:$0xf0] }
 0x556   : > { %v2724_v40 = vpop.xlane.xlu0 %2723  ;;  %v7973_v51 = vor.u32 %v10254_v10, %v7972_v44 }
 0x557   : > { %7933 = vmatmul.msk.bf16.vlgmr.msra.gmra.mxu1 %vm1927_vm2, %v2614_v18  ;;  %10848 = vrcp.f32 %v2724_v40 }
 0x558   : > { %2853 = vmatpush.bf16.msra.mxu1 %v2844_v19 }
 0x55d   : > { %v10849_v23 = vpop.eup %10848 }
 0x55e   : > { %v2726_v57 = vmul.f32 %v10849_v23, %v12231_v32  ;;  %v10237_v32 = vld [vmem:[%s12744_s8 + $0x74] sm:$0xf] }
 0x55f   : > { %v7881_v39 = vor.u32 %v10237_v32, %v7878_v38  ;;  %v7940_v32 = vld [vmem:[%s12744_s8 + $0xc0] sm:$0xf]  ;;  %v10247_v38 = vld [vmem:[%s12744_s8 + $0xc4] sm:$0xf] }
 0x560   : > { %v2727_v45 = vpack.c.bf16 %v2726_v57, %v2726_v57  ;;  %v7945_v43 = vor.u32 %v10247_v38, %v7942_v41 }
 0x561   : > { %2345 = vmatpush.bf16.msra.mxu3 %v7881_v39  ;;  %v7941_v39 = vor.u32 %v10248_v37, %v7940_v32 }
 0x565   : > { %2346 = vmatpush.bf16.msra.mxu3 %v7873_v49  ;;  %v7974_v49 = vld [vmem:[%s12744_s8 + $0xf8] sm:$0xf0] }
 0x566   : > { %v7977_v50 = vor.u32 %v10253_v48, %v7974_v49 }
 0x567   : > { %7957 = vmatmul.msk.bf16.vlgmr.msrb.gmra.mxu1 %vm1927_vm2, %v2727_v45  ;;  %v10250_v45 = vld [vmem:[%s12744_s8 + $0xd4] sm:$0xf0] }
 0x569   : > { %v2955_v33 = vpop.permute.xlu0 %2954 }
 0x56a   : > { %v2960_v34 = vsel %vm1943_vm3, %v2955_v33, 0  ;;  %v10249_v33 = vld [vmem:[%s12744_s8 + $0xd4] sm:$0xf] }
 0x56b   : > { %2969 = vmatpush.bf16.msrb.mxu1 %v2960_v34  ;;  %v7949_v34 = vor.u32 %v10250_v45, %v7948_v30  ;;  %v7953_v36 = vor.u32 %v10249_v33, %v7950_v35  ;;  %v2112_v30 = vadd.f32 %v12161_v55, %v12185_v52  ;;  %v2125_v45 = vadd.f32 %v12163_v56, %v12187_v17 }
 0x580   : > { %v2836_v21 = vpop.xlane.xlu2 %2835 }
 0x581   : > { %10850 = vrcp.f32 %v2836_v21  ;;  %v2180_v62 = vpop.f32.mrf.mxu1 }
 0x582   : > { %v2184_v63 = vpack.c.bf16 %v2180_v62, %v2180_v62  ;;  %v10252_v62 = vld [vmem:[%s12744_s8 + $0xe4] sm:$0xf0] }
 0x583   : > { %v7965_v61 = vor.u32 %v10252_v62, %v7964_v60 }
 0x584   : > { %7858 = vmatmul.msk.bf16.vlgmr.msrb.gmra.mxu2 %vm1907_vm0, %v2184_v63  ;;  %7859 = vmatmul.msk.bf16.vlgmr.msrb.gmra.mxu3 %vm1907_vm0, %v2184_v63 }
 0x585   : > { %2442 = vmatpush.bf16.msrb.mxu2 %v7901_v54  ;;  %2455 = vmatpush.bf16.msrb.mxu3 %v7905_v58  ;;  %v10251_v54 = vld [vmem:[%s12744_s8 + $0xe4] sm:$0xf]  ;;  %v7966_v58 = vld [vmem:[%s12744_s8 + $0xe8] sm:$0xf0] }
 0x586   : > { %v7969_v63 = vor.u32 %v10251_v54, %v7966_v58 }
 0x587   : > { %v10851_v4 = vpop.eup %10850 }
 0x588   : > { %v2838_v20 = vmul.f32 %v10851_v4, %v12246_v46  ;;  %v7926_v46 = vld [vmem:[%s12744_s8 + $0xb8] sm:$0xf0] }
 0x589   : > { %v2182_v6 = vpop.f32.mrf.mxu1  ;;  %2443 = vmatpush.bf16.msrb.mxu2 %v7893_v47  ;;  %2456 = vmatpush.bf16.msrb.mxu3 %v7897_v3  ;;  %v7929_v13 = vor.u32 %v10245_v11, %v7926_v46  ;;  %v10257_v47 = vld [vmem:[%s12744_s8 + $0x114] sm:$0xf]  ;;  %v7998_v3 = vld [vmem:[%s12744_s8 + $0x118] sm:$0xf0]  ;;  %v7988_v46 = vld [vmem:[%s12744_s8 + $0x100] sm:$0xf] }
 0x58a   : > { %v2839_v7 = vpack.c.bf16 %v2838_v20, %v2838_v20  ;;  %v7997_v20 = vor.u32 %v10258_v2, %v7996_v1  ;;  %v8001_v6 = vor.u32 %v10257_v47, %v7998_v3 }
 0x58c   : > { %7981 = vmatmul.msk.bf16.vlgmr.msra.gmra.mxu1 %vm1927_vm2, %v2839_v7 }
 0x590   : > { %v2949_v15 = vpop.xlane.xlu1 %2948 }
 0x591   : > { %10852 = vrcp.f32 %v2949_v15  ;;  %v2293_v12 = vpop.f32.mrf.mxu1  ;;  %v10256_v15 = vld [vmem:[%s12744_s8 + $0x104] sm:$0xf0] }
 0x592   : > { %v2297_v14 = vpack.c.bf16 %v2293_v12, %v2293_v12  ;;  %v10255_v12 = vld [vmem:[%s12744_s8 + $0x104] sm:$0xf] }
 0x594   : > { %7882 = vmatmul.msk.bf16.vlgmr.msra.gmra.mxu2 %vm1907_vm0, %v2297_v14  ;;  %7883 = vmatmul.msk.bf16.vlgmr.msra.gmra.mxu3 %vm1907_vm0, %v2297_v14 }
 0x595   : > { %2558 = vmatpush.bf16.msra.mxu2 %v7925_v22  ;;  %2571 = vmatpush.bf16.msra.mxu3 %v7929_v13  ;;  %v7989_v22 = vor.u32 %v10256_v15, %v7988_v46  ;;  %v7990_v13 = vld [vmem:[%s12744_s8 + $0x108] sm:$0xf0] }
 0x596   : > { %v7993_v14 = vor.u32 %v10255_v12, %v7990_v13  ;;  %v3032_v13 = vld [vmem:[%s12745_s9] sm:$0x3] }
 0x597   : > { %v10853_v31 = vpop.eup %10852 }
 0x598   : > { %v2951_v16 = vmul.f32 %v10853_v31, %v12253_v59  ;;  %v7918_v59 = vld [vmem:[%s12744_s8 + $0xa8] sm:$0xf0] }
 0x599   : > { %v2295_v18 = vpop.f32.mrf.mxu1  ;;  %v7921_v28 = vor.u32 %v10243_v26, %v7918_v59  ;;  %2559 = vmatpush.bf16.msra.mxu2 %v7917_v27  ;;  %v10260_v26 = vld [vmem:[%s12744_s8 + $0x124] sm:$0xf0]  ;;  %v10259_v27 = vld [vmem:[%s12744_s8 + $0x124] sm:$0xf] }
 0x59a   : > { %v2952_v40 = vpack.c.bf16 %v2951_v16, %v2951_v16  ;;  %v8020_v16 = vld [vmem:[%s12744_s8 + $0x130] sm:$0xf]  ;;  %v10262_v18 = vld [vmem:[%s12744_s8 + $0x134] sm:$0xf0]  ;;  %v8013_v59 = vor.u32 %v10260_v26, %v8012_v25 }
 0x59b   : > { %2572 = vmatpush.bf16.msra.mxu3 %v7921_v28  ;;  %v8014_v28 = vld [vmem:[%s12744_s8 + $0x128] sm:$0xf0] }
 0x59c   : > { %8005 = vmatmul.msk.bf16.vlgmr.msrb.gmra.mxu1 %vm1927_vm2, %v2952_v40  ;;  %v10261_v40 = vld [vmem:[%s12744_s8 + $0x134] sm:$0xf] }
 0x5a1   : > { %v2403_v19 = vpop.f32.mrf.mxu1 }
 0x5a2   : > { %v2407_v23 = vpack.c.bf16 %v2403_v19, %v2403_v19  ;;  %v8021_v19 = vor.u32 %v10262_v18, %v8020_v16 }
 0x5a4   : > { %7906 = vmatmul.msk.bf16.vlgmr.msrb.gmra.mxu2 %vm1907_vm0, %v2407_v23  ;;  %7907 = vmatmul.msk.bf16.vlgmr.msrb.gmra.mxu3 %vm1907_vm0, %v2407_v23  ;;  %v8022_v23 = vld [vmem:[%s12744_s8 + $0x138] sm:$0xf0] }
 0x5a5   : > { %2671 = vmatpush.bf16.msrb.mxu2 %v7949_v34  ;;  %2684 = vmatpush.bf16.msrb.mxu3 %v7953_v36  ;;  %v8025_v24 = vor.u32 %v10261_v40, %v8022_v23  ;;  %v3034_v40 = vperm.slane %v3032_v13, 0 }
 0x5a9   : > { %v2405_v57 = vpop.f32.mrf.mxu1  ;;  %2672 = vmatpush.bf16.msrb.mxu2 %v7941_v39  ;;  %2685 = vmatpush.bf16.msrb.mxu3 %v7945_v43 }
 0x5aa   : > { %v8017_v57 = vor.u32 %v10259_v27, %v8014_v28 }
 0x5c4   : > { %v2519_v5 = vpop.f32.mrf.mxu1 }
 0x5c5   : > { %v2523_v21 = vpack.c.bf16 %v2519_v5, %v2519_v5 }
 0x5c7   : > { %7930 = vmatmul.msk.bf16.vlgmr.msra.gmra.mxu2 %vm1907_vm0, %v2523_v21  ;;  %7931 = vmatmul.msk.bf16.vlgmr.msra.gmra.mxu3 %vm1907_vm0, %v2523_v21 }
 0x5c8   : > { %2784 = vmatpush.bf16.msra.mxu2 %v7973_v51  ;;  %2797 = vmatpush.bf16.msra.mxu3 %v7977_v50 }
 0x5cc   : > { %v2521_v0 = vpop.f32.mrf.mxu1  ;;  %2785 = vmatpush.bf16.msra.mxu2 %v7965_v61  ;;  %2798 = vmatpush.bf16.msra.mxu3 %v7969_v63 }
 0x5d4   : > { %v2632_v4 = vpop.f32.mrf.mxu1 }
 0x5d5   : > { %v2636_v7 = vpack.c.bf16 %v2632_v4, %v2632_v4 }
 0x5d7   : > { %7954 = vmatmul.msk.bf16.vlgmr.msrb.gmra.mxu2 %vm1907_vm0, %v2636_v7  ;;  %7955 = vmatmul.msk.bf16.vlgmr.msrb.gmra.mxu3 %vm1907_vm0, %v2636_v7 }
 0x5d8   : > { %2894 = vmatpush.bf16.msrb.mxu2 %v7997_v20  ;;  %2907 = vmatpush.bf16.msrb.mxu3 %v8001_v6 }
 0x5dc   : > { %v2634_v8 = vpop.f32.mrf.mxu1  ;;  %2895 = vmatpush.bf16.msrb.mxu2 %v7989_v22  ;;  %2908 = vmatpush.bf16.msrb.mxu3 %v7993_v14 }
 0x5e4   : > { %v2745_v9 = vpop.f32.mrf.mxu1 }
 0x5e5   : > { %v2749_v11 = vpack.c.bf16 %v2745_v9, %v2745_v9 }
 0x5e7   : > { %7978 = vmatmul.msk.bf16.vlgmr.msra.gmra.mxu2 %vm1907_vm0, %v2749_v11  ;;  %7979 = vmatmul.msk.bf16.vlgmr.msra.gmra.mxu3 %vm1907_vm0, %v2749_v11 }
 0x5e8   : > { %3010 = vmatpush.bf16.msra.mxu2 %v8021_v19  ;;  %3023 = vmatpush.bf16.msra.mxu3 %v8025_v24  ;;  %v3035_v19 = vperm.slane %v3032_v13, 1 }
 0x5ec   : > { %v2747_v31 = vpop.f32.mrf.mxu1  ;;  %3011 = vmatpush.bf16.msra.mxu2 %v8013_v59  ;;  %3024 = vmatpush.bf16.msra.mxu3 %v8017_v57 }
 0x607   : > { %v2222_v33 = vpop.f32.mrf.mxu2  ;;  %v2235_v34 = vpop.f32.mrf.mxu3 }
 0x608   : > { %v2239_v35 = vadd.f32 %v2222_v33, %v2112_v30  ;;  %v2240_v36 = vadd.f32 %v2235_v34, %v2125_v45  ;;  %v8478_v34 = vld [vmem:[#allocation3 + $0x380] sm:$0xf] }
 0x609   : > { %v2855_v32 = vpop.f32.mrf.mxu1 }
 0x60a   : > { %v2859_v37 = vpack.c.bf16 %v2855_v32, %v2855_v32 }
 0x60c   : > { %8002 = vmatmul.msk.bf16.vlgmr.msrb.gmra.mxu2 %vm1907_vm0, %v2859_v37  ;;  %8003 = vmatmul.msk.bf16.vlgmr.msrb.gmra.mxu3 %vm1907_vm0, %v2859_v37  ;;  %v10511_v37 = vld [vmem:[#allocation3 + $0x7bc] sm:$0xf0] }
 0x60f   : > { %v2224_v38 = vpop.f32.mrf.mxu2  ;;  %v2237_v39 = vpop.f32.mrf.mxu3 }
 0x610   : > { %v10375_v38 = vld [vmem:[#allocation3 + $0x384] sm:$0xf] }
 0x611   : > { %v2857_v41 = vpop.f32.mrf.mxu1  ;;  %v8480_v39 = vld [vmem:[#allocation3 + $0x3c0] sm:$0xf0] }
 0x617   : > { %v2335_v43 = vpop.f32.mrf.mxu2  ;;  %v2348_v44 = vpop.f32.mrf.mxu3 }
 0x618   : > { %v2352_v10 = vadd.f32 %v2335_v43, %v2239_v35  ;;  %v2353_v55 = vadd.f32 %v2348_v44, %v2240_v36  ;;  %v10383_v35 = vld [vmem:[#allocation3 + $0x3bc] sm:$0xf0]  ;;  %v8483_v43 = vor.u32 %v10375_v38, %v8480_v39  ;;  %v8992_v44 = vld [vmem:[#allocation3 + $0x7c0] sm:$0xf0] }
 0x619   : > { %v2971_v52 = vpop.f32.mrf.mxu1  ;;  %v8990_v36 = vld [vmem:[#allocation3 + $0x780] sm:$0xf]  ;;  %v8479_v32 = vor.u32 %v10383_v35, %v8478_v34  ;;  %v8160_v38 = vld [vmem:[#allocation3 + $0x140] sm:$0xf0] }
 0x61a   : > { %v2975_v48 = vpack.c.bf16 %v2971_v52, %v2971_v52  ;;  %v8991_v41 = vor.u32 %v10511_v37, %v8990_v36  ;;  %v8926_v52 = vld [vmem:[#allocation3 + $0x700] sm:$0xf]  ;;  %4685 = vmatpush.bf16.msrb.mxu2 %v8483_v43  ;;  %v10295_v37 = vld [vmem:[#allocation3 + $0x104] sm:$0xf] }
 0x61b   : > { %4659 = vmatpush.bf16.msra.mxu0 %v8479_v32  ;;  %v10303_v34 = vld [vmem:[#allocation3 + $0x13c] sm:$0xf0]  ;;  %v10423_v39 = vld [vmem:[#allocation3 + $0x504] sm:$0xf] }
 0x61c   : > { %8026 = vmatmul.msk.bf16.vlgmr.msra.gmra.mxu2 %vm1907_vm0, %v2975_v48  ;;  %8027 = vmatmul.msk.bf16.vlgmr.msra.gmra.mxu3 %vm1907_vm0, %v2975_v48  ;;  %v10495_v48 = vld [vmem:[#allocation3 + $0x73c] sm:$0xf0] }
 0x61d   : > { %4672 = vmatpush.bf16.msra.mxu1 %v8991_v41  ;;  %v8670_v35 = vld [vmem:[#allocation3 + $0x500] sm:$0xf]  ;;  %v8672_v41 = vld [vmem:[#allocation3 + $0x540] sm:$0xf0] }
 0x61e   : > { %v10431_v32 = vld [vmem:[#allocation3 + $0x53c] sm:$0xf0] }
 0x61f   : > { %v2337_v56 = vpop.f32.mrf.mxu2  ;;  %v2350_v17 = vpop.f32.mrf.mxu3 }
 0x620   : > { %v8927_v17 = vor.u32 %v10495_v48, %v8926_v52  ;;  %v8675_v48 = vor.u32 %v10423_v39, %v8672_v41  ;;  %v8358_v39 = vld [vmem:[#allocation3 + $0x288] sm:$0xf] }
 0x621   : > { %v2973_v49 = vpop.f32.mrf.mxu1  ;;  %v10352_v41 = vld [vmem:[#allocation3 + $0x2c4] sm:$0xf0] }
 0x622   : > { %v10359_v49 = vld [vmem:[#allocation3 + $0x304] sm:$0xf]  ;;  %4673 = vmatpush.bf16.msra.mxu1 %v8927_v17 }
 0x623   : > { %v8096_v17 = vld [vmem:[#allocation3 + $0xc0] sm:$0xf0] }
 0x627   : > { %v2445_v5 = vpop.f32.mrf.mxu2  ;;  %v2458_v51 = vpop.f32.mrf.mxu3 }
 0x628   : > { %v2462_v50 = vadd.f32 %v2445_v5, %v2352_v10  ;;  %v2463_v60 = vadd.f32 %v2458_v51, %v2353_v55  ;;  %v8414_v10 = vld [vmem:[#allocation3 + $0x300] sm:$0xf]  ;;  %v8416_v5 = vld [vmem:[#allocation3 + $0x340] sm:$0xf0] }
 0x629   : > { %v10367_v55 = vld [vmem:[#allocation3 + $0x33c] sm:$0xf0]  ;;  %v10487_v51 = vld [vmem:[#allocation3 + $0x704] sm:$0xf] }
 0x62a   : > { %v8415_v56 = vor.u32 %v10367_v55, %v8414_v10  ;;  %v10287_v10 = vld [vmem:[#allocation3 + $0xbc] sm:$0xf0] }
 0x62b   : > { %v10415_v55 = vld [vmem:[#allocation3 + $0x4bc] sm:$0xf0] }
 0x62c   : > { %4660 = vmatpush.bf16.msra.mxu0 %v8415_v56  ;;  %v10279_v56 = vld [vmem:[#allocation3 + $0x84] sm:$0xf] }
 0x62f   : > { %v2447_v21 = vpop.f32.mrf.mxu2  ;;  %v2460_v62 = vpop.f32.mrf.mxu3 }
 0x630   : > { %v8350_v21 = vld [vmem:[#allocation3 + $0x280] sm:$0xf] }
 0x631   : > { %v10351_v62 = vld [vmem:[#allocation3 + $0x2bc] sm:$0xf0] }
 0x64a   : > { %v2561_v54 = vpop.f32.mrf.mxu2  ;;  %v2574_v58 = vpop.f32.mrf.mxu3 }
 0x64b   : > { %v2578_v61 = vadd.f32 %v2561_v54, %v2462_v50  ;;  %v2579_v63 = vadd.f32 %v2574_v58, %v2463_v60  ;;  %v8419_v50 = vor.u32 %v10359_v49, %v8416_v5  ;;  %v8928_v60 = vld [vmem:[#allocation3 + $0x740] sm:$0xf0]  ;;  %v8862_v58 = vld [vmem:[#allocation3 + $0x680] sm:$0xf] }
 0x64c   : > { %v8931_v54 = vor.u32 %v10487_v51, %v8928_v60  ;;  %v10407_v5 = vld [vmem:[#allocation3 + $0x484] sm:$0xf] }
 0x64d   : > { %4686 = vmatpush.bf16.msrb.mxu2 %v8419_v50  ;;  %v8608_v51 = vld [vmem:[#allocation3 + $0x4c0] sm:$0xf0]  ;;  %v10945_v50 = vmov 0.0  }
 0x652   : > { %v2563_v0 = vpop.f32.mrf.mxu2  ;;  %v2576_v1 = vpop.f32.mrf.mxu3 }
 0x653   : > { %v8351_v0 = vor.u32 %v10351_v62, %v8350_v21  ;;  %v8352_v1 = vld [vmem:[#allocation3 + $0x2c0] sm:$0xf0] }
 0x655   : > { %4661 = vmatpush.bf16.msra.mxu0 %v8351_v0 }
 0x65a   : > { %v2674_v2 = vpop.f32.mrf.mxu2  ;;  %v2687_v47 = vpop.f32.mrf.mxu3 }
 0x65b   : > { %v2691_v12 = vadd.f32 %v2674_v2, %v2578_v61  ;;  %v2692_v22 = vadd.f32 %v2687_v47, %v2579_v63  ;;  %v10479_v61 = vld [vmem:[#allocation3 + $0x6bc] sm:$0xf0]  ;;  %v10343_v63 = vld [vmem:[#allocation3 + $0x284] sm:$0xf] }
 0x65c   : > { %v10471_v2 = vld [vmem:[#allocation3 + $0x684] sm:$0xf] }
 0x65d   : > { %v8864_v47 = vld [vmem:[#allocation3 + $0x6c0] sm:$0xf0] }
 0x662   : > { %v2676_v3 = vpop.f32.mrf.mxu2  ;;  %v2689_v4 = vpop.f32.mrf.mxu3 }
 0x663   : > { %v8863_v3 = vor.u32 %v10479_v61, %v8862_v58  ;;  %v8355_v4 = vor.u32 %v10343_v63, %v8352_v1  ;;  %v8099_v61 = vor.u32 %v10279_v56, %v8096_v17  ;;  %v8611_v63 = vor.u32 %v10407_v5, %v8608_v51  ;;  %v8294_v17 = vld [vmem:[#allocation3 + $0x208] sm:$0xf] }
 0x664   : > { %v8806_v5 = vld [vmem:[#allocation3 + $0x608] sm:$0xf] }
 0x665   : > { %4674 = vmatpush.bf16.msra.mxu1 %v8863_v3  ;;  %4687 = vmatpush.bf16.msrb.mxu2 %v8355_v4  ;;  %v8542_v3 = vld [vmem:[#allocation3 + $0x400] sm:$0xf] }
 0x66a   : > { %v2787_v20 = vpop.f32.mrf.mxu2  ;;  %v2800_v6 = vpop.f32.mrf.mxu3 }
 0x66b   : > { %v2804_v14 = vadd.f32 %v2787_v20, %v2691_v12  ;;  %v2805_v31 = vadd.f32 %v2800_v6, %v2692_v22  ;;  %v8286_v20 = vld [vmem:[#allocation3 + $0x200] sm:$0xf]  ;;  %v8800_v12 = vld [vmem:[#allocation3 + $0x640] sm:$0xf0] }
 0x66c   : > { %v10335_v6 = vld [vmem:[#allocation3 + $0x23c] sm:$0xf0] }
 0x66d   : > { %v8287_v22 = vor.u32 %v10335_v6, %v8286_v20  ;;  %v10399_v20 = vld [vmem:[#allocation3 + $0x43c] sm:$0xf0]  ;;  %v10263_v6 = vld [vmem:[#allocation3 + $0x4] sm:$0xf] }
 0x66f   : > { %4662 = vmatpush.bf16.msra.mxu0 %v8287_v22  ;;  %v10384_v22 = vld [vmem:[#allocation3 + $0x3c4] sm:$0xf0] }
 0x672   : > { %v2789_v7 = vpop.f32.mrf.mxu2  ;;  %v2802_v8 = vpop.f32.mrf.mxu3 }
 0x673   : > { %v8798_v7 = vld [vmem:[#allocation3 + $0x600] sm:$0xf]  ;;  %v8867_v8 = vor.u32 %v10471_v2, %v8864_v47 }
 0x674   : > { %v10271_v47 = vld [vmem:[#allocation3 + $0x3c] sm:$0xf0] }
 0x68f   : > { %v2897_v9 = vpop.f32.mrf.mxu2  ;;  %v2910_v11 = vpop.f32.mrf.mxu3 }
 0x690   : > { %v2914_v16 = vadd.f32 %v2897_v9, %v2804_v14  ;;  %v2915_v18 = vadd.f32 %v2910_v11, %v2805_v31  ;;  %v10463_v9 = vld [vmem:[#allocation3 + $0x63c] sm:$0xf0]  ;;  %v10327_v11 = vld [vmem:[#allocation3 + $0x204] sm:$0xf] }
 0x691   : > { %v8799_v13 = vor.u32 %v10463_v9, %v8798_v7  ;;  %v8222_v31 = vld [vmem:[#allocation3 + $0x180] sm:$0xf]  ;;  %v8032_v7 = vld [vmem:[#allocation3 + $0x40] sm:$0xf0] }
 0x692   : > { %v8035_v9 = vor.u32 %v10263_v6, %v8032_v7  ;;  %v8232_v6 = vld [vmem:[#allocation3 + $0x1c8] sm:$0xf0] }
 0x693   : > { %4675 = vmatpush.bf16.msra.mxu1 %v8799_v13  ;;  %v8998_v13 = vld [vmem:[#allocation3 + $0x788] sm:$0xf] }
 0x697   : > { %v2899_v46 = vpop.f32.mrf.mxu2  ;;  %v2912_v15 = vpop.f32.mrf.mxu3 }
 0x698   : > { %v8288_v46 = vld [vmem:[#allocation3 + $0x240] sm:$0xf0] }
 0x699   : > { %v10455_v15 = vld [vmem:[#allocation3 + $0x604] sm:$0xf]  ;;  %v8291_v14 = vor.u32 %v10327_v11, %v8288_v46 }
 0x69a   : > { %v10391_v11 = vld [vmem:[#allocation3 + $0x404] sm:$0xf] }
 0x69b   : > { %4688 = vmatpush.bf16.msrb.mxu2 %v8291_v14  ;;  %v8544_v46 = vld [vmem:[#allocation3 + $0x440] sm:$0xf0]  ;;  %v10512_v14 = vld [vmem:[#allocation3 + $0x7c4] sm:$0xf0] }
 0x69f   : > { %v3013_v23 = vpop.f32.mrf.mxu2  ;;  %v3026_v24 = vpop.f32.mrf.mxu3 }
 0x6a0   : > { %v3030_v25 = vadd.f32 %v3013_v23, %v2914_v16  ;;  %v3031_v26 = vadd.f32 %v3026_v24, %v2915_v18  ;;  %v10319_v16 = vld [vmem:[#allocation3 + $0x1bc] sm:$0xf0]  ;;  %v10311_v23 = vld [vmem:[#allocation3 + $0x184] sm:$0xf] }
 0x6a1   : > { %v8734_v18 = vld [vmem:[#allocation3 + $0x580] sm:$0xf]  ;;  %v8224_v24 = vld [vmem:[#allocation3 + $0x1c0] sm:$0xf0] }
 0x6a2   : > { %v3038_v27 = vadd.f32 %v3034_v40, %v3030_v25  ;;  %v3039_v59 = vadd.f32 %v3035_v19, %v3031_v26  ;;  %v8803_v40 = vor.u32 %v10455_v15, %v8800_v12  ;;  %v10447_v19 = vld [vmem:[#allocation3 + $0x5bc] sm:$0xf0]  ;;  %v10439_v25 = vld [vmem:[#allocation3 + $0x584] sm:$0xf]  ;;  %v8486_v15 = vld [vmem:[#allocation3 + $0x388] sm:$0xf]  ;;  %v8547_v12 = vor.u32 %v10391_v11, %v8544_v46 }
 0x6a3   : > { %v8736_v26 = vld [vmem:[#allocation3 + $0x5c0] sm:$0xf0]  ;;  %v8744_v11 = vld [vmem:[#allocation3 + $0x5c8] sm:$0xf0] }
 0x6a4   : > { %v12488_v28 = vadd.f32 %v3038_v27, %v11321_v42  ;;  %v12491_v57 = vadd.f32 %v3039_v59, %v11339_v53  ;;  %v10503_v42 = vld [vmem:[#allocation3 + $0x784] sm:$0xf]  ;;  %v667_v27 = vadd.s32 128, %v11963_v29  ;;  %v8223_v59 = vor.u32 %v10319_v16, %v8222_v31  ;;  %v8094_v29 = vld [vmem:[#allocation3 + $0x80] sm:$0xf] }
 0x6a5   : > { %v8995_v53 = vor.u32 %v10503_v42, %v8992_v44  ;;  %v8739_v36 = vor.u32 %v10439_v25, %v8736_v26  ;;  %v8671_v42 = vor.u32 %v10431_v32, %v8670_v35  ;;  %v8163_v44 = vor.u32 %v10295_v37, %v8160_v38  ;;  %v8422_v25 = vld [vmem:[#allocation3 + $0x308] sm:$0xf]  ;;  %v8424_v35 = vld [vmem:[#allocation3 + $0x348] sm:$0xf0] }
 0x6a6   : > { %v3044_v30 = vadd.f32 %v12491_v57, %v12488_v28  ;;  %vm669_vm4 = vcmp.lt.s32.totalorder %v667_v27, 250  ;;  %4663 = vmatpush.bf16.msra.mxu0 %v8223_v59  ;;  %v8095_v21 = vor.u32 %v10287_v10, %v8094_v29  ;;  %v8487_v31 = vor.u32 %v10384_v22, %v8486_v15  ;;  %v10368_v26 = vld [vmem:[#allocation3 + $0x344] sm:$0xf0]  ;;  %v8936_v32 = vld [vmem:[#allocation3 + $0x748] sm:$0xf0] }
 0x6a7   : > { %v3015_v45 = vpop.f32.mrf.mxu2  ;;  %v3028_v33 = vpop.f32.mrf.mxu3  ;;  %4698 = vmatpush.bf16.msrb.mxu3 %v8995_v53  ;;  %v8606_v53 = vld [vmem:[#allocation3 + $0x480] sm:$0xf]  ;;  %v12497_v60 = vsel %vm669_vm4, 1.0, %v10945_v50  ;;  %v8999_v16 = vor.u32 %v10512_v14, %v8998_v13  ;;  %v8423_v59 = vor.u32 %v10368_v26, %v8422_v25  ;;  %v8359_v29 = vor.u32 %v10352_v41, %v8358_v39  ;;  %v8360_v10 = vld [vmem:[#allocation3 + $0x2c8] sm:$0xf0] }
 0x6a8   : > { %3045 = vadd.xlane.f32.xlu1 %v3044_v30  ;;  %v8735_v30 = vor.u32 %v10447_v19, %v8734_v18  ;;  %v8227_v45 = vor.u32 %v10311_v23, %v8224_v24  ;;  %v8158_v33 = vld [vmem:[#allocation3 + $0x100] sm:$0xf]  ;;  %v8607_v62 = vor.u32 %v10415_v55, %v8606_v53  ;;  %v10376_v18 = vld [vmem:[#allocation3 + $0x38c] sm:$0xf]  ;;  %v10464_v50 = vld [vmem:[#allocation3 + $0x644] sm:$0xf0] }
 0x6a9   : > { %v8159_v43 = vor.u32 %v10303_v34, %v8158_v33  ;;  %v10504_v19 = vld [vmem:[#allocation3 + $0x78c] sm:$0xf]  ;;  %v8166_v15 = vld [vmem:[#allocation3 + $0x108] sm:$0xf] }
 0x6aa   : > { %4676 = vmatpush.bf16.msra.mxu1 %v8735_v30  ;;  %4689 = vmatpush.bf16.msrb.mxu2 %v8227_v45  ;;  %v9000_v24 = vld [vmem:[#allocation3 + $0x7c8] sm:$0xf0]  ;;  %v8934_v30 = vld [vmem:[#allocation3 + $0x708] sm:$0xf] }
 0x6ab   : > { %4699 = vmatpush.bf16.msrb.mxu3 %v8931_v54  ;;  %4664 = vmatpush.bf16.msra.mxu0 %v8159_v43  ;;  %v9003_v27 = vor.u32 %v10504_v19, %v9000_v24  ;;  %v10496_v45 = vld [vmem:[#allocation3 + $0x744] sm:$0xf0]  ;;  %v10360_v33 = vld [vmem:[#allocation3 + $0x30c] sm:$0xf] }
 0x6ac   : > { %v8935_v34 = vor.u32 %v10496_v45, %v8934_v30  ;;  %v8427_v37 = vor.u32 %v10360_v33, %v8424_v35  ;;  %v8870_v43 = vld [vmem:[#allocation3 + $0x688] sm:$0xf]  ;;  %v10424_v19 = vld [vmem:[#allocation3 + $0x50c] sm:$0xf] }
 0x6ad   : > { %v8678_v22 = vld [vmem:[#allocation3 + $0x508] sm:$0xf]  ;;  %v10280_v45 = vld [vmem:[#allocation3 + $0x8c] sm:$0xf] }
 0x6ae   : > { %4677 = vmatpush.bf16.msra.mxu1 %v8671_v42  ;;  %4690 = vmatpush.bf16.msrb.mxu2 %v8163_v44  ;;  %v10480_v42 = vld [vmem:[#allocation3 + $0x6c4] sm:$0xf0]  ;;  %v10344_v44 = vld [vmem:[#allocation3 + $0x28c] sm:$0xf] }
 0x6af   : > { %4700 = vmatpush.bf16.msrb.mxu3 %v8867_v8  ;;  %4665 = vmatpush.bf16.msra.mxu0 %v8095_v21  ;;  %v8543_v8 = vor.u32 %v10399_v20, %v8542_v3  ;;  %v8871_v53 = vor.u32 %v10480_v42, %v8870_v43  ;;  %v8363_v55 = vor.u32 %v10344_v44, %v8360_v10  ;;  %v10328_v21 = vld [vmem:[#allocation3 + $0x20c] sm:$0xf]  ;;  %v10432_v14 = vld [vmem:[#allocation3 + $0x544] sm:$0xf0] }
 0x6b0   : > { %v10312_v20 = vld [vmem:[#allocation3 + $0x18c] sm:$0xf]  ;;  %v8102_v25 = vld [vmem:[#allocation3 + $0x88] sm:$0xf] }
 0x6b1   : > { %v10288_v26 = vld [vmem:[#allocation3 + $0xc4] sm:$0xf0]  ;;  %v8104_v33 = vld [vmem:[#allocation3 + $0xc8] sm:$0xf0] }
 0x6b2   : > { %4678 = vmatpush.bf16.msra.mxu1 %v8607_v62  ;;  %4691 = vmatpush.bf16.msrb.mxu2 %v8099_v61  ;;  %v8296_v62 = vld [vmem:[#allocation3 + $0x248] sm:$0xf0]  ;;  %v10416_v30 = vld [vmem:[#allocation3 + $0x4c4] sm:$0xf0]  ;;  %v8107_v35 = vor.u32 %v10280_v45, %v8104_v33 }
 0x6b3   : > { %4701 = vmatpush.bf16.msrb.mxu3 %v8803_v40  ;;  %v8488_v40 = vld [vmem:[#allocation3 + $0x3c8] sm:$0xf0]  ;;  %v8299_v61 = vor.u32 %v10328_v21, %v8296_v62  ;;  %v10272_v39 = vld [vmem:[#allocation3 + $0x44] sm:$0xf0]  ;;  %v3042_v62 = vld [vmem:[%s12746_s10] sm:$0x3] }
 0x6b4   : > { %v8491_v23 = vor.u32 %v10376_v18, %v8488_v40  ;;  %v8679_v18 = vor.u32 %v10432_v14, %v8678_v22  ;;  %v8550_v41 = vld [vmem:[#allocation3 + $0x408] sm:$0xf]  ;;  %v10264_v42 = vld [vmem:[#allocation3 + $0xc] sm:$0xf]  ;;  %v8496_v22 = vld [vmem:[#allocation3 + $0x3d0] sm:$0xf0] }
 0x6b5   : > { %v8040_v44 = vld [vmem:[#allocation3 + $0x48] sm:$0xf0]  ;;  %v9008_v14 = vld [vmem:[#allocation3 + $0x7d0] sm:$0xf0] }
 0x6b6   : > { %4679 = vmatpush.bf16.msra.mxu1 %v8543_v8  ;;  %4692 = vmatpush.bf16.msrb.mxu2 %v8035_v9  ;;  %v8235_v8 = vor.u32 %v10312_v20, %v8232_v6  ;;  %v10440_v9 = vld [vmem:[#allocation3 + $0x58c] sm:$0xf] }
 0x6b7   : > { %4702 = vmatpush.bf16.msrb.mxu3 %v8739_v36  ;;  %v10488_v36 = vld [vmem:[#allocation3 + $0x70c] sm:$0xf]  ;;  %v8747_v46 = vor.u32 %v10440_v9, %v8744_v11  ;;  %v9006_v9 = vld [vmem:[#allocation3 + $0x790] sm:$0xf] }
 0x6b8   : > { %v8939_v38 = vor.u32 %v10488_v36, %v8936_v32  ;;  %v10408_v36 = vld [vmem:[#allocation3 + $0x48c] sm:$0xf]  ;;  %v10513_v11 = vld [vmem:[#allocation3 + $0x7cc] sm:$0xf0] }
 0x6b9   : > { %v8616_v32 = vld [vmem:[#allocation3 + $0x4c8] sm:$0xf0] }
 0x6ba   : > { %4724 = vmatpush.bf16.msrb.mxu1 %v8999_v16  ;;  %4737 = vmatpush.bf16.msra.mxu2 %v8491_v23  ;;  %v8168_v16 = vld [vmem:[#allocation3 + $0x148] sm:$0xf0] }
 0x6bb   : > { %4703 = vmatpush.bf16.msrb.mxu3 %v8675_v48  ;;  %v8872_v48 = vld [vmem:[#allocation3 + $0x6c8] sm:$0xf0] }
 0x6bc   : > { %v8680_v23 = vld [vmem:[#allocation3 + $0x548] sm:$0xf0] }
 0x6bd   : > { %v8683_v24 = vor.u32 %v10424_v19, %v8680_v23 }
 0x6be   : > { %4725 = vmatpush.bf16.msrb.mxu1 %v8935_v34  ;;  %4738 = vmatpush.bf16.msra.mxu2 %v8427_v37  ;;  %v8619_v37 = vor.u32 %v10408_v36, %v8616_v32 }
 0x6bf   : > { %4704 = vmatpush.bf16.msrb.mxu3 %v8611_v63  ;;  %v10456_v63 = vld [vmem:[#allocation3 + $0x60c] sm:$0xf] }
 0x6c2   : > { %4726 = vmatpush.bf16.msrb.mxu1 %v8871_v53  ;;  %4739 = vmatpush.bf16.msra.mxu2 %v8363_v55  ;;  %v8043_v53 = vor.u32 %v10264_v42, %v8040_v44  ;;  %v10392_v55 = vld [vmem:[#allocation3 + $0x40c] sm:$0xf] }
 0x6c3   : > { %4705 = vmatpush.bf16.msrb.mxu3 %v8547_v12  ;;  %v10304_v12 = vld [vmem:[#allocation3 + $0x144] sm:$0xf0] }
 0x6c4   : > { %v8167_v13 = vor.u32 %v10304_v12, %v8166_v15 }
 0x6c6   : > { %4740 = vmatpush.bf16.msra.mxu2 %v8299_v61  ;;  %v3043_v61 = vld [vmem:[%s12747_s11] sm:$0x3] }
 0x6c7   : > { %4750 = vmatpush.bf16.msra.mxu3 %v9003_v27  ;;  %v8614_v27 = vld [vmem:[#allocation3 + $0x488] sm:$0xf] }
 0x6c8   : > { %v8615_v34 = vor.u32 %v10416_v30, %v8614_v27  ;;  %v8432_v27 = vld [vmem:[#allocation3 + $0x350] sm:$0xf0] }
 0x6c9   : > { %v8944_v30 = vld [vmem:[#allocation3 + $0x750] sm:$0xf0] }
 0x6ca   : > { %4741 = vmatpush.bf16.msra.mxu2 %v8235_v8  ;;  %v10385_v8 = vld [vmem:[#allocation3 + $0x3cc] sm:$0xf0] }
 0x6cb   : > { %4751 = vmatpush.bf16.msra.mxu3 %v8939_v38  ;;  %v8038_v38 = vld [vmem:[#allocation3 + $0x8] sm:$0xf] }
 0x6cc   : > { %v8039_v43 = vor.u32 %v10272_v39, %v8038_v38  ;;  %v10481_v38 = vld [vmem:[#allocation3 + $0x6cc] sm:$0xf0]  ;;  %v10345_v39 = vld [vmem:[#allocation3 + $0x294] sm:$0xf] }
 0x71b   : > { %v3046_v52 = vpop.xlane.xlu1 %3045 }
 0x71c   : > { %v3047_v49 = vmul.f32 0.004, %v3046_v52  ;;  %v10472_v52 = vld [vmem:[#allocation3 + $0x68c] sm:$0xf] }
 0x71d   : > { %v8875_v56 = vor.u32 %v10472_v52, %v8872_v48  ;;  %v8552_v52 = vld [vmem:[#allocation3 + $0x448] sm:$0xf0] }
 0x71e   : > { %v12500_v54 = vsub.f32 %v12488_v28, %v3047_v49  ;;  %v3049_v58 = vsub.f32 %v12491_v57, %v3047_v49  ;;  %v8030_v57 = vld [vmem:[#allocation3] sm:$0xf]  ;;  %v10336_v49 = vld [vmem:[#allocation3 + $0x244] sm:$0xf0]  ;;  %v8555_v48 = vor.u32 %v10392_v55, %v8552_v52 }
 0x71f   : > { %v8031_v4 = vor.u32 %v10271_v47, %v8030_v57  ;;  %v8295_v51 = vor.u32 %v10336_v49, %v8294_v17  ;;  %4752 = vmatpush.bf16.msra.mxu3 %v8875_v56  ;;  %v10320_v57 = vld [vmem:[#allocation3 + $0x1c4] sm:$0xf0] }
 0x720   : > { %v12504_v0 = vmul.f32 %v12497_v60, %v3049_v58  ;;  %v3052_v1 = vmul.f32 %v12500_v54, %v12500_v54  ;;  %v8807_v58 = vor.u32 %v10464_v50, %v8806_v5  ;;  %v8742_v47 = vld [vmem:[#allocation3 + $0x588] sm:$0xf] }
 0x721   : > { %4666 = vmatpush.bf16.msra.mxu0 %v8031_v4  ;;  %v10448_v4 = vld [vmem:[#allocation3 + $0x5c4] sm:$0xf0] }
 0x722   : > { %v3053_v2 = vmul.f32 %v12504_v0, %v12504_v0  ;;  %4727 = vmatpush.bf16.msrb.mxu1 %v8807_v58  ;;  %v8743_v7 = vor.u32 %v10448_v4, %v8742_v47  ;;  %v3080_v47 = vperm.slane %v3043_v61, 1 }
 0x724   : > { %v3054_v28 = vadd.f32 %v3053_v2, %v3052_v1  ;;  %v8808_v1 = vld [vmem:[#allocation3 + $0x648] sm:$0xf0] }
 0x725   : > { %4711 = vmatpush.bf16.msrb.mxu0 %v8487_v31  ;;  %v8811_v2 = vor.u32 %v10456_v63, %v8808_v1  ;;  %v10296_v31 = vld [vmem:[#allocation3 + $0x10c] sm:$0xf]  ;;  %v3072_v1 = vperm.slane %v3042_v62, 0 }
 0x726   : > { %3055 = vadd.xlane.f32.xlu0 %v3054_v28  ;;  %v8230_v28 = vld [vmem:[#allocation3 + $0x188] sm:$0xf]  ;;  %4728 = vmatpush.bf16.msrb.mxu1 %v8743_v7  ;;  %v8171_v40 = vor.u32 %v10296_v31, %v8168_v16  ;;  %v8494_v7 = vld [vmem:[#allocation3 + $0x390] sm:$0xf]  ;;  %v9007_v16 = vor.u32 %v10513_v11, %v9006_v9 }
 0x727   : > { %v8231_v3 = vor.u32 %v10320_v57, %v8230_v28  ;;  %4753 = vmatpush.bf16.msra.mxu3 %v8811_v2  ;;  %v3073_v2 = vperm.slane %v3042_v62, 1  ;;  %v3079_v57 = vperm.slane %v3043_v61, 0  ;;  %v8238_v62 = vld [vmem:[#allocation3 + $0x190] sm:$0xf] }
 0x728   : > { %4742 = vmatpush.bf16.msra.mxu2 %v8171_v40  ;;  %v10369_v40 = vld [vmem:[#allocation3 + $0x34c] sm:$0xf0] }
 0x729   : > { %4712 = vmatpush.bf16.msrb.mxu0 %v8423_v59  ;;  %v8103_v59 = vor.u32 %v10288_v26, %v8102_v25  ;;  %v10497_v25 = vld [vmem:[#allocation3 + $0x74c] sm:$0xf0]  ;;  %v10361_v26 = vld [vmem:[#allocation3 + $0x314] sm:$0xf] }
 0x72a   : > { %4729 = vmatpush.bf16.msrb.mxu1 %v8679_v18  ;;  %v8430_v18 = vld [vmem:[#allocation3 + $0x310] sm:$0xf]  ;;  %v8435_v36 = vor.u32 %v10361_v26, %v8432_v27  ;;  %v10281_v27 = vld [vmem:[#allocation3 + $0x94] sm:$0xf] }
 0x72b   : > { %4754 = vmatpush.bf16.msra.mxu3 %v8747_v46  ;;  %v10377_v46 = vld [vmem:[#allocation3 + $0x394] sm:$0xf]  ;;  %v8431_v45 = vor.u32 %v10369_v40, %v8430_v18  ;;  %v8686_v11 = vld [vmem:[#allocation3 + $0x510] sm:$0xf] }
 0x72c   : > { %4743 = vmatpush.bf16.msra.mxu2 %v8107_v35  ;;  %v8499_v19 = vor.u32 %v10377_v46, %v8496_v22  ;;  %v10353_v35 = vld [vmem:[#allocation3 + $0x2cc] sm:$0xf0]  ;;  %v10297_v22 = vld [vmem:[#allocation3 + $0x114] sm:$0xf] }
 0x72d   : > { %4713 = vmatpush.bf16.msrb.mxu0 %v8359_v29  ;;  %v10400_v29 = vld [vmem:[#allocation3 + $0x444] sm:$0xf0]  ;;  %v10433_v46 = vld [vmem:[#allocation3 + $0x54c] sm:$0xf0] }
 0x72e   : > { %4730 = vmatpush.bf16.msrb.mxu1 %v8615_v34  ;;  %v8551_v10 = vor.u32 %v10400_v29, %v8550_v41  ;;  %v8366_v34 = vld [vmem:[#allocation3 + $0x290] sm:$0xf]  ;;  %v8368_v41 = vld [vmem:[#allocation3 + $0x2d0] sm:$0xf0]  ;;  %v8687_v18 = vor.u32 %v10433_v46, %v8686_v11  ;;  %v8886_v46 = vld [vmem:[#allocation3 + $0x698] sm:$0xf] }
 0x72f   : > { %4755 = vmatpush.bf16.msra.mxu3 %v8683_v24  ;;  %v8942_v24 = vld [vmem:[#allocation3 + $0x710] sm:$0xf]  ;;  %v8880_v29 = vld [vmem:[#allocation3 + $0x6d0] sm:$0xf0]  ;;  %v8367_v42 = vor.u32 %v10353_v35, %v8366_v34  ;;  %v8371_v55 = vor.u32 %v10345_v39, %v8368_v41 }
 0x730   : > { %4744 = vmatpush.bf16.msra.mxu2 %v8043_v53  ;;  %v8943_v33 = vor.u32 %v10497_v25, %v8942_v24  ;;  %v10337_v53 = vld [vmem:[#allocation3 + $0x24c] sm:$0xf0]  ;;  %v10265_v41 = vld [vmem:[#allocation3 + $0x14] sm:$0xf] }
 0x731   : > { %4714 = vmatpush.bf16.msrb.mxu0 %v8295_v51  ;;  %v8110_v40 = vld [vmem:[#allocation3 + $0x90] sm:$0xf] }
 0x732   : > { %4731 = vmatpush.bf16.msrb.mxu1 %v8551_v10  ;;  %v8302_v10 = vld [vmem:[#allocation3 + $0x210] sm:$0xf] }
 0x733   : > { %4756 = vmatpush.bf16.msra.mxu3 %v8619_v37  ;;  %v8878_v37 = vld [vmem:[#allocation3 + $0x690] sm:$0xf] }
 0x734   : > { %v8879_v44 = vor.u32 %v10481_v38, %v8878_v37  ;;  %v8622_v25 = vld [vmem:[#allocation3 + $0x490] sm:$0xf] }
 0x735   : > { %4715 = vmatpush.bf16.msrb.mxu0 %v8231_v3  ;;  %v10417_v26 = vld [vmem:[#allocation3 + $0x4cc] sm:$0xf0] }
 0x736   : > { %v8623_v35 = vor.u32 %v10417_v26, %v8622_v25  ;;  %v10401_v37 = vld [vmem:[#allocation3 + $0x44c] sm:$0xf0]  ;;  %v8822_v26 = vld [vmem:[#allocation3 + $0x618] sm:$0xf] }
 0x737   : > { %4757 = vmatpush.bf16.msra.mxu3 %v8555_v48  ;;  %v8814_v48 = vld [vmem:[#allocation3 + $0x610] sm:$0xf] }
 0x739   : > { %4716 = vmatpush.bf16.msrb.mxu0 %v8167_v13  ;;  %v10505_v13 = vld [vmem:[#allocation3 + $0x794] sm:$0xf] }
 0x73a   : > { %v9011_v23 = vor.u32 %v10505_v13, %v9008_v14  ;;  %v8176_v13 = vld [vmem:[#allocation3 + $0x150] sm:$0xf0] }
 0x73b   : > { %v10425_v14 = vld [vmem:[#allocation3 + $0x514] sm:$0xf] }
 0x73d   : > { %4717 = vmatpush.bf16.msrb.mxu0 %v8103_v59  ;;  %v10489_v59 = vld [vmem:[#allocation3 + $0x714] sm:$0xf] }
 0x73e   : > { %v8947_v32 = vor.u32 %v10489_v59, %v8944_v30  ;;  %v8112_v59 = vld [vmem:[#allocation3 + $0xd0] sm:$0xf0] }
 0x73f   : > { %v10409_v30 = vld [vmem:[#allocation3 + $0x494] sm:$0xf]  ;;  %v8115_v38 = vor.u32 %v10281_v27, %v8112_v59  ;;  %v10466_v27 = vld [vmem:[#allocation3 + $0x654] sm:$0xf0]  ;;  %v10330_v59 = vld [vmem:[#allocation3 + $0x21c] sm:$0xf] }
 0x741   : > { %4718 = vmatpush.bf16.msrb.mxu0 %v8039_v43  ;;  %v10473_v43 = vld [vmem:[#allocation3 + $0x694] sm:$0xf] }
 0x742   : > { %v8883_v52 = vor.u32 %v10473_v43, %v8880_v29  ;;  %v8048_v43 = vld [vmem:[#allocation3 + $0x50] sm:$0xf0] }
 0x743   : > { %v10393_v29 = vld [vmem:[#allocation3 + $0x414] sm:$0xf] }
 0x799   : > { %v3056_v56 = vpop.xlane.xlu0 %3055 }
 0x79a   : > { %v3057_v17 = vmul.f32 0.004, %v3056_v56  ;;  %v10465_v56 = vld [vmem:[#allocation3 + $0x64c] sm:$0xf0] }
 0x79c   : > { %v3058_v49 = vadd.f32 1e-05, %v3057_v17  ;;  %v10329_v17 = vld [vmem:[#allocation3 + $0x214] sm:$0xf] }
 0x79e   : > { %10854 = vrsqrt.f32 %v3058_v49  ;;  %vm3065_vm6 = vweird.f32 %v3058_v49 }
 0x7a4   : > { %v10855_v5 = vpop.eup %10854 }
 0x7a5   : > { %v3060_v51 = vmul.f32 %v10855_v5, %v3058_v49  ;;  %vm3066_vm5 = vweird.f32 %v10855_v5  ;;  %v8304_v49 = vld [vmem:[#allocation3 + $0x250] sm:$0xf0] }
 0x7a6   : > { %vm3067_vm7 = vmor %vm3065_vm6, %vm3066_vm5  ;;  %v8307_v61 = vor.u32 %v10329_v17, %v8304_v49  ;;  %v8504_v17 = vld [vmem:[#allocation3 + $0x3d8] sm:$0xf0] }
 0x7a7   : > { %v3061_v50 = vmul.f32 %v10855_v5, %v3060_v51  ;;  %v8816_v51 = vld [vmem:[#allocation3 + $0x650] sm:$0xf0]  ;;  %v10506_v49 = vld [vmem:[#allocation3 + $0x79c] sm:$0xf] }
 0x7a9   : > { %v3062_v21 = vmul.f32 0.5, %v3061_v50  ;;  %v8303_v50 = vor.u32 %v10337_v53, %v8302_v10  ;;  %v10386_v10 = vld [vmem:[#allocation3 + $0x3d4] sm:$0xf0] }
 0x7aa   : > { %v9014_v53 = vld [vmem:[#allocation3 + $0x798] sm:$0xf] }
 0x7ab   : > { %v3063_v58 = vsub.f32 1.5, %v3062_v21  ;;  %v8815_v21 = vor.u32 %v10465_v56, %v8814_v48 }
 0x7ad   : > { %v3064_v63 = vmul.f32 %v10855_v5, %v3063_v58  ;;  %v10321_v58 = vld [vmem:[#allocation3 + $0x1cc] sm:$0xf0] }
 0x7af   : > { %v3068_v28 = vsel %vm3067_vm7, %v10855_v5, %v3064_v63  ;;  %v10457_v5 = vld [vmem:[#allocation3 + $0x614] sm:$0xf] }
 0x7b0   : > { %v3069_v3 = vmul.f32 %v3068_v28, %v12500_v54  ;;  %v3070_v4 = vmul.f32 %v3068_v28, %v12504_v0  ;;  %v8495_v0 = vor.u32 %v10385_v8, %v8494_v7  ;;  %v8819_v63 = vor.u32 %v10457_v5, %v8816_v51  ;;  %v10313_v28 = vld [vmem:[#allocation3 + $0x194] sm:$0xf]  ;;  %v10305_v7 = vld [vmem:[#allocation3 + $0x14c] sm:$0xf0]  ;;  %v9016_v5 = vld [vmem:[#allocation3 + $0x7d8] sm:$0xf0] }
 0x7b1   : > { %v8051_v51 = vor.u32 %v10265_v41, %v8048_v43  ;;  %v10450_v41 = vld [vmem:[#allocation3 + $0x5d4] sm:$0xf0]  ;;  %v10314_v43 = vld [vmem:[#allocation3 + $0x19c] sm:$0xf] }
 0x7b2   : > { %v3076_v20 = vmul.f32 %v3072_v1, %v3069_v3  ;;  %v3077_v6 = vmul.f32 %v3073_v2, %v3070_v4  ;;  %v8750_v1 = vld [vmem:[#allocation3 + $0x590] sm:$0xf]  ;;  %v8752_v3 = vld [vmem:[#allocation3 + $0x5d0] sm:$0xf0]  ;;  %v8239_v4 = vor.u32 %v10321_v58, %v8238_v62  ;;  %v8438_v58 = vld [vmem:[#allocation3 + $0x318] sm:$0xf] }
 0x7b3   : > { %v10449_v2 = vld [vmem:[#allocation3 + $0x5cc] sm:$0xf0] }
 0x7b4   : > { %v12518_v15 = vadd.f32 %v3079_v57, %v3076_v20  ;;  %v12520_v12 = vadd.f32 %v3080_v47, %v3077_v6  ;;  %v8240_v57 = vld [vmem:[#allocation3 + $0x1d0] sm:$0xf0]  ;;  %v8751_v20 = vor.u32 %v10449_v2, %v8750_v1  ;;  %v8174_v6 = vld [vmem:[#allocation3 + $0x110] sm:$0xf]  ;;  %v9019_v1 = vor.u32 %v10506_v49, %v9016_v5  ;;  %v8950_v2 = vld [vmem:[#allocation3 + $0x718] sm:$0xf] }
 0x7b5   : > { %v10441_v47 = vld [vmem:[#allocation3 + $0x594] sm:$0xf]  ;;  %v8243_v8 = vor.u32 %v10313_v28, %v8240_v57  ;;  %v10498_v28 = vld [vmem:[#allocation3 + $0x754] sm:$0xf0]  ;;  %v10362_v57 = vld [vmem:[#allocation3 + $0x31c] sm:$0xf] }
 0x7b6   : > { %v12524_v31 = vpack.c.bf16 %v12518_v15, %v12518_v15  ;;  %v12528_v54 = vpack.c.bf16 %v12520_v12, %v12520_v12  ;;  %v8755_v9 = vor.u32 %v10441_v47, %v8752_v3  ;;  %v8440_v47 = vld [vmem:[#allocation3 + $0x358] sm:$0xf0]  ;;  %v10434_v49 = vld [vmem:[#allocation3 + $0x554] sm:$0xf0] }
 0x7b7   : > { %v10490_v3 = vld [vmem:[#allocation3 + $0x71c] sm:$0xf] }
 0x7b8   : > { %4667 = vmatmul.bf16.vlgmr.msra.gmra.mxu0 %v12524_v31  ;;  %4680 = vmatmul.bf16.vlgmr.msra.gmra.mxu1 %v12528_v54  ;;  %v10298_v5 = vld [vmem:[#allocation3 + $0x11c] sm:$0xf] }
 0x7b9   : > { %4693 = vmatmul.bf16.vlgmr.msrb.gmra.mxu2 %v12524_v31  ;;  %4706 = vmatmul.bf16.vlgmr.msrb.gmra.mxu3 %v12528_v54 }
 0x7ba   : > { %4763 = vmatpush.bf16.msra.mxu0 %v8495_v0  ;;  %4776 = vmatpush.bf16.msra.mxu1 %v9007_v16  ;;  %v8688_v0 = vld [vmem:[#allocation3 + $0x550] sm:$0xf0]  ;;  %v8175_v16 = vor.u32 %v10305_v7, %v8174_v6  ;;  %v8951_v6 = vor.u32 %v10498_v28, %v8950_v2  ;;  %v8374_v7 = vld [vmem:[#allocation3 + $0x298] sm:$0xf] }
 0x7bb   : > { %4789 = vmatpush.bf16.msrb.mxu2 %v8499_v19  ;;  %4802 = vmatpush.bf16.msrb.mxu3 %v9011_v23  ;;  %v10289_v19 = vld [vmem:[#allocation3 + $0xcc] sm:$0xf0]  ;;  %v8179_v23 = vor.u32 %v10297_v22, %v8176_v13  ;;  %v8691_v24 = vor.u32 %v10425_v14, %v8688_v0  ;;  %v10482_v22 = vld [vmem:[#allocation3 + $0x6d4] sm:$0xf0]  ;;  %v10346_v13 = vld [vmem:[#allocation3 + $0x29c] sm:$0xf] }
 0x7bc   : > { %v8111_v34 = vor.u32 %v10289_v19, %v8110_v40  ;;  %v8376_v14 = vld [vmem:[#allocation3 + $0x2d8] sm:$0xf0]  ;;  %v8887_v40 = vor.u32 %v10482_v22, %v8886_v46  ;;  %v8310_v19 = vld [vmem:[#allocation3 + $0x218] sm:$0xf] }
 0x7bd   : > { %v10474_v0 = vld [vmem:[#allocation3 + $0x69c] sm:$0xf]  ;;  %v8630_v28 = vld [vmem:[#allocation3 + $0x498] sm:$0xf] }
 0x7be   : > { %4764 = vmatpush.bf16.msra.mxu0 %v8431_v45  ;;  %4777 = vmatpush.bf16.msra.mxu1 %v8943_v33  ;;  %v8624_v45 = vld [vmem:[#allocation3 + $0x4d0] sm:$0xf0]  ;;  %v8046_v33 = vld [vmem:[#allocation3 + $0x10] sm:$0xf]  ;;  %v10402_v46 = vld [vmem:[#allocation3 + $0x454] sm:$0xf0] }
 0x7bf   : > { %4790 = vmatpush.bf16.msrb.mxu2 %v8435_v36  ;;  %4803 = vmatpush.bf16.msrb.mxu3 %v8947_v32  ;;  %v10273_v36 = vld [vmem:[#allocation3 + $0x4c] sm:$0xf0]  ;;  %v8627_v39 = vor.u32 %v10409_v30, %v8624_v45  ;;  %v8312_v30 = vld [vmem:[#allocation3 + $0x258] sm:$0xf0] }
 0x7c0   : > { %v8558_v32 = vld [vmem:[#allocation3 + $0x410] sm:$0xf]  ;;  %v8047_v48 = vor.u32 %v10273_v36, %v8046_v33  ;;  %v10458_v45 = vld [vmem:[#allocation3 + $0x61c] sm:$0xf]  ;;  %v8246_v36 = vld [vmem:[#allocation3 + $0x198] sm:$0xf] }
 0x7c1   : > { %v8559_v56 = vor.u32 %v10401_v37, %v8558_v32  ;;  %v8824_v33 = vld [vmem:[#allocation3 + $0x658] sm:$0xf0]  ;;  %v10322_v32 = vld [vmem:[#allocation3 + $0x1d4] sm:$0xf0]  ;;  %v8315_v37 = vor.u32 %v10330_v59, %v8312_v30  ;;  %v8512_v59 = vld [vmem:[#allocation3 + $0x3e0] sm:$0xf0] }
 0x7c2   : > { %4765 = vmatpush.bf16.msra.mxu0 %v8367_v42  ;;  %4778 = vmatpush.bf16.msra.mxu1 %v8879_v44  ;;  %v8560_v42 = vld [vmem:[#allocation3 + $0x450] sm:$0xf0]  ;;  %v8502_v44 = vld [vmem:[#allocation3 + $0x398] sm:$0xf]  ;;  %v10507_v30 = vld [vmem:[#allocation3 + $0x7a4] sm:$0xf] }
 0x7c3   : > { %4791 = vmatpush.bf16.msrb.mxu2 %v8371_v55  ;;  %4804 = vmatpush.bf16.msrb.mxu3 %v8883_v52  ;;  %v10514_v55 = vld [vmem:[#allocation3 + $0x7d4] sm:$0xf0]  ;;  %v10378_v52 = vld [vmem:[#allocation3 + $0x39c] sm:$0xf] }
 0x7c4   : > { %v9015_v62 = vor.u32 %v10514_v55, %v9014_v53  ;;  %v8182_v55 = vld [vmem:[#allocation3 + $0x118] sm:$0xf] }
 0x7c6   : > { %4766 = vmatpush.bf16.msra.mxu0 %v8303_v50  ;;  %4779 = vmatpush.bf16.msra.mxu1 %v8815_v21  ;;  %v8563_v50 = vor.u32 %v10393_v29, %v8560_v42  ;;  %v8503_v21 = vor.u32 %v10386_v10, %v8502_v44  ;;  %v8248_v29 = vld [vmem:[#allocation3 + $0x1d8] sm:$0xf0]  ;;  %v8247_v10 = vor.u32 %v10322_v32, %v8246_v36  ;;  %v8446_v32 = vld [vmem:[#allocation3 + $0x320] sm:$0xf] }
 0x7c7   : > { %4792 = vmatpush.bf16.msrb.mxu2 %v8307_v61  ;;  %4805 = vmatpush.bf16.msrb.mxu3 %v8819_v63  ;;  %v10370_v61 = vld [vmem:[#allocation3 + $0x354] sm:$0xf0]  ;;  %v8507_v63 = vor.u32 %v10378_v52, %v8504_v17  ;;  %v10442_v42 = vld [vmem:[#allocation3 + $0x59c] sm:$0xf] }
 0x7c8   : > { %4719 = vmatmul.bf16.vlgmr.msrb.gmra.mxu0 %v12524_v31  ;;  %4732 = vmatmul.bf16.vlgmr.msrb.gmra.mxu1 %v12528_v54  ;;  %v8760_v44 = vld [vmem:[#allocation3 + $0x5d8] sm:$0xf0]  ;;  %v10306_v52 = vld [vmem:[#allocation3 + $0x154] sm:$0xf0] }
 0x7c9   : > { %4745 = vmatmul.bf16.vlgmr.msra.gmra.mxu2 %v12524_v31  ;;  %4758 = vmatmul.bf16.vlgmr.msra.gmra.mxu3 %v12528_v54  ;;  %v8694_v17 = vld [vmem:[#allocation3 + $0x518] sm:$0xf] }
 0x7ca   : > { %4767 = vmatpush.bf16.msra.mxu0 %v8239_v4  ;;  %4780 = vmatpush.bf16.msra.mxu1 %v8751_v20  ;;  %v8952_v4 = vld [vmem:[#allocation3 + $0x758] sm:$0xf0]  ;;  %v8439_v20 = vor.u32 %v10370_v61, %v8438_v58  ;;  %v8695_v58 = vor.u32 %v10434_v49, %v8694_v17  ;;  %v8118_v61 = vld [vmem:[#allocation3 + $0x98] sm:$0xf]  ;;  %v8894_v49 = vld [vmem:[#allocation3 + $0x6a0] sm:$0xf] }
 0x7cb   : > { %4793 = vmatpush.bf16.msrb.mxu2 %v8243_v8  ;;  %4806 = vmatpush.bf16.msrb.mxu3 %v8755_v9  ;;  %v10354_v8 = vld [vmem:[#allocation3 + $0x2d4] sm:$0xf0]  ;;  %v8443_v9 = vor.u32 %v10362_v57, %v8440_v47  ;;  %v8955_v11 = vor.u32 %v10490_v3, %v8952_v4  ;;  %v10282_v47 = vld [vmem:[#allocation3 + $0x9c] sm:$0xf] }
 0x7cc   : > { %v10418_v57 = vld [vmem:[#allocation3 + $0x4d4] sm:$0xf0]  ;;  %v8120_v3 = vld [vmem:[#allocation3 + $0xd8] sm:$0xf0] }
 0x7cd   : > { %v10410_v4 = vld [vmem:[#allocation3 + $0x49c] sm:$0xf]  ;;  %v8123_v22 = vor.u32 %v10282_v47, %v8120_v3  ;;  %v10467_v47 = vld [vmem:[#allocation3 + $0x65c] sm:$0xf0]  ;;  %v10331_v3 = vld [vmem:[#allocation3 + $0x224] sm:$0xf] }
 0x7ce   : > { %4768 = vmatpush.bf16.msra.mxu0 %v8175_v16  ;;  %4781 = vmatpush.bf16.msra.mxu1 %v8687_v18  ;;  %v8888_v16 = vld [vmem:[#allocation3 + $0x6d8] sm:$0xf0]  ;;  %v8375_v18 = vor.u32 %v10354_v8, %v8374_v7  ;;  %v8631_v8 = vor.u32 %v10418_v57, %v8630_v28  ;;  %v8830_v57 = vld [vmem:[#allocation3 + $0x620] sm:$0xf] }
 0x7cf   : > { %4794 = vmatpush.bf16.msrb.mxu2 %v8179_v23  ;;  %4807 = vmatpush.bf16.msrb.mxu3 %v8691_v24  ;;  %v10338_v23 = vld [vmem:[#allocation3 + $0x254] sm:$0xf0]  ;;  %v8379_v24 = vor.u32 %v10346_v13, %v8376_v14  ;;  %v8891_v25 = vor.u32 %v10474_v0, %v8888_v16  ;;  %v10266_v14 = vld [vmem:[#allocation3 + $0x1c] sm:$0xf] }
 0x7d0   : > { %v8056_v0 = vld [vmem:[#allocation3 + $0x58] sm:$0xf0] }
 0x7d1   : > { %v10394_v16 = vld [vmem:[#allocation3 + $0x41c] sm:$0xf] }
 0x7d2   : > { %4769 = vmatpush.bf16.msra.mxu0 %v8111_v34  ;;  %4782 = vmatpush.bf16.msra.mxu1 %v8623_v35  ;;  %v8311_v34 = vor.u32 %v10338_v23, %v8310_v19  ;;  %v8823_v35 = vor.u32 %v10466_v27, %v8822_v26  ;;  %v10387_v19 = vld [vmem:[#allocation3 + $0x3dc] sm:$0xf0] }
 0x7d3   : > { %4795 = vmatpush.bf16.msrb.mxu2 %v8115_v38  ;;  %4808 = vmatpush.bf16.msrb.mxu3 %v8627_v39  ;;  %v8827_v38 = vor.u32 %v10458_v45, %v8824_v33  ;;  %v8758_v39 = vld [vmem:[#allocation3 + $0x598] sm:$0xf]  ;;  %v9022_v23 = vld [vmem:[#allocation3 + $0x7a0] sm:$0xf]  ;;  %v9024_v45 = vld [vmem:[#allocation3 + $0x7e0] sm:$0xf0]  ;;  %v8059_v33 = vor.u32 %v10266_v14, %v8056_v0 }
 0x7d4   : > { %v8759_v53 = vor.u32 %v10450_v41, %v8758_v39  ;;  %v9027_v39 = vor.u32 %v10507_v30, %v9024_v45  ;;  %v8958_v41 = vld [vmem:[#allocation3 + $0x720] sm:$0xf]  ;;  %v10315_v0 = vld [vmem:[#allocation3 + $0x1a4] sm:$0xf] }
 0x7d5   : > { %v10451_v14 = vld [vmem:[#allocation3 + $0x5dc] sm:$0xf0]  ;;  %v10299_v45 = vld [vmem:[#allocation3 + $0x124] sm:$0xf] }
 0x7d6   : > { %4770 = vmatpush.bf16.msra.mxu0 %v8047_v48  ;;  %4783 = vmatpush.bf16.msra.mxu1 %v8559_v56  ;;  %v8251_v48 = vor.u32 %v10314_v43, %v8248_v29  ;;  %v8763_v56 = vor.u32 %v10442_v42, %v8760_v44  ;;  %v10499_v43 = vld [vmem:[#allocation3 + $0x75c] sm:$0xf0]  ;;  %v10363_v29 = vld [vmem:[#allocation3 + $0x324] sm:$0xf] }
 0x7d7   : > { %4796 = vmatpush.bf16.msrb.mxu2 %v8051_v51  ;;  %4809 = vmatpush.bf16.msrb.mxu3 %v8563_v50  ;;  %v8184_v51 = vld [vmem:[#allocation3 + $0x158] sm:$0xf0]  ;;  %v8448_v42 = vld [vmem:[#allocation3 + $0x360] sm:$0xf0]  ;;  %v10435_v30 = vld [vmem:[#allocation3 + $0x55c] sm:$0xf0] }
 0x7d8   : > { %v10426_v50 = vld [vmem:[#allocation3 + $0x51c] sm:$0xf]  ;;  %v10491_v44 = vld [vmem:[#allocation3 + $0x724] sm:$0xf] }
 0x7d9   : > { %4771 = vmatmul.bf16.vlgmr.msra.gmra.mxu0 %v12524_v31  ;;  %4784 = vmatmul.bf16.vlgmr.msra.gmra.mxu1 %v12528_v54 }
 0x7da   : > { %4815 = vmatpush.bf16.msrb.mxu0 %v8503_v21  ;;  %4828 = vmatpush.bf16.msrb.mxu1 %v9015_v62  ;;  %v8696_v21 = vld [vmem:[#allocation3 + $0x558] sm:$0xf0]  ;;  %v8183_v62 = vor.u32 %v10306_v52, %v8182_v55  ;;  %v8959_v55 = vor.u32 %v10499_v43, %v8958_v41  ;;  %v8382_v52 = vld [vmem:[#allocation3 + $0x2a0] sm:$0xf] }
 0x7db   : > { %4841 = vmatpush.bf16.msra.mxu2 %v8507_v63  ;;  %4854 = vmatpush.bf16.msra.mxu3 %v9019_v1  ;;  %v10290_v63 = vld [vmem:[#allocation3 + $0xd4] sm:$0xf0]  ;;  %v8187_v1 = vor.u32 %v10298_v5, %v8184_v51  ;;  %v8699_v2 = vor.u32 %v10426_v50, %v8696_v21  ;;  %v10483_v5 = vld [vmem:[#allocation3 + $0x6dc] sm:$0xf0]  ;;  %v10347_v51 = vld [vmem:[#allocation3 + $0x2a4] sm:$0xf] }
 0x7dc   : > { %4797 = vmatmul.bf16.vlgmr.msrb.gmra.mxu2 %v12524_v31  ;;  %4810 = vmatmul.bf16.vlgmr.msrb.gmra.mxu3 %v12528_v54  ;;  %v8119_v7 = vor.u32 %v10290_v63, %v8118_v61  ;;  %v8384_v50 = vld [vmem:[#allocation3 + $0x2e0] sm:$0xf0]  ;;  %v8895_v61 = vor.u32 %v10483_v5, %v8894_v49  ;;  %v8318_v63 = vld [vmem:[#allocation3 + $0x220] sm:$0xf] }
 0x7dd   : > { %v10475_v21 = vld [vmem:[#allocation3 + $0x6a4] sm:$0xf]  ;;  %v8638_v43 = vld [vmem:[#allocation3 + $0x4a0] sm:$0xf] }
 0x7de   : > { %4816 = vmatpush.bf16.msrb.mxu0 %v8439_v20  ;;  %4829 = vmatpush.bf16.msrb.mxu1 %v8951_v6  ;;  %v8632_v20 = vld [vmem:[#allocation3 + $0x4d8] sm:$0xf0]  ;;  %v8054_v6 = vld [vmem:[#allocation3 + $0x18] sm:$0xf]  ;;  %v10403_v49 = vld [vmem:[#allocation3 + $0x45c] sm:$0xf0] }
 0x7df   : > { %4842 = vmatpush.bf16.msra.mxu2 %v8443_v9  ;;  %4855 = vmatpush.bf16.msra.mxu3 %v8955_v11  ;;  %v10274_v9 = vld [vmem:[#allocation3 + $0x54] sm:$0xf0]  ;;  %v8635_v13 = vor.u32 %v10410_v4, %v8632_v20  ;;  %v8320_v4 = vld [vmem:[#allocation3 + $0x260] sm:$0xf0] }
 0x7e0   : > { %v8566_v11 = vld [vmem:[#allocation3 + $0x418] sm:$0xf]  ;;  %v8055_v26 = vor.u32 %v10274_v9, %v8054_v6  ;;  %v10459_v20 = vld [vmem:[#allocation3 + $0x624] sm:$0xf]  ;;  %v8254_v9 = vld [vmem:[#allocation3 + $0x1a0] sm:$0xf] }
 0x7e1   : > { %v8567_v27 = vor.u32 %v10402_v46, %v8566_v11  ;;  %v8832_v6 = vld [vmem:[#allocation3 + $0x660] sm:$0xf0]  ;;  %v10323_v11 = vld [vmem:[#allocation3 + $0x1dc] sm:$0xf0]  ;;  %v8323_v46 = vor.u32 %v10331_v3, %v8320_v4  ;;  %v8520_v3 = vld [vmem:[#allocation3 + $0x3e8] sm:$0xf0] }
 0x7e2   : > { %4817 = vmatpush.bf16.msrb.mxu0 %v8375_v18  ;;  %4830 = vmatpush.bf16.msrb.mxu1 %v8887_v40  ;;  %v8568_v18 = vld [vmem:[#allocation3 + $0x458] sm:$0xf0]  ;;  %v8510_v40 = vld [vmem:[#allocation3 + $0x3a0] sm:$0xf]  ;;  %v10508_v4 = vld [vmem:[#allocation3 + $0x7ac] sm:$0xf] }
 0x7e3   : > { %4843 = vmatpush.bf16.msra.mxu2 %v8379_v24  ;;  %4856 = vmatpush.bf16.msra.mxu3 %v8891_v25  ;;  %v10515_v24 = vld [vmem:[#allocation3 + $0x7dc] sm:$0xf0]  ;;  %v10379_v25 = vld [vmem:[#allocation3 + $0x3a4] sm:$0xf] }
 0x7e4   : > { %v9023_v36 = vor.u32 %v10515_v24, %v9022_v23  ;;  %v8190_v24 = vld [vmem:[#allocation3 + $0x120] sm:$0xf] }
 0x7e6   : > { %4818 = vmatpush.bf16.msrb.mxu0 %v8311_v34  ;;  %4831 = vmatpush.bf16.msrb.mxu1 %v8823_v35  ;;  %v8571_v34 = vor.u32 %v10394_v16, %v8568_v18  ;;  %v8511_v35 = vor.u32 %v10387_v19, %v8510_v40  ;;  %v8256_v16 = vld [vmem:[#allocation3 + $0x1e0] sm:$0xf0]  ;;  %v8255_v19 = vor.u32 %v10323_v11, %v8254_v9  ;;  %v8454_v11 = vld [vmem:[#allocation3 + $0x328] sm:$0xf] }
 0x7e7   : > { %4844 = vmatpush.bf16.msra.mxu2 %v8315_v37  ;;  %4857 = vmatpush.bf16.msra.mxu3 %v8827_v38  ;;  %v10371_v37 = vld [vmem:[#allocation3 + $0x35c] sm:$0xf0]  ;;  %v8515_v38 = vor.u32 %v10379_v25, %v8512_v59  ;;  %v10443_v18 = vld [vmem:[#allocation3 + $0x5a4] sm:$0xf] }
 0x7e8   : > { %v8768_v40 = vld [vmem:[#allocation3 + $0x5e0] sm:$0xf0]  ;;  %v10307_v25 = vld [vmem:[#allocation3 + $0x15c] sm:$0xf0] }
 0x7e9   : > { %v8702_v59 = vld [vmem:[#allocation3 + $0x520] sm:$0xf] }
 0x7ea   : > { %4819 = vmatpush.bf16.msrb.mxu0 %v8247_v10  ;;  %4832 = vmatpush.bf16.msrb.mxu1 %v8759_v53  ;;  %v8960_v10 = vld [vmem:[#allocation3 + $0x760] sm:$0xf0]  ;;  %v8447_v53 = vor.u32 %v10371_v37, %v8446_v32  ;;  %v8703_v32 = vor.u32 %v10435_v30, %v8702_v59  ;;  %v8126_v37 = vld [vmem:[#allocation3 + $0xa0] sm:$0xf]  ;;  %v8902_v30 = vld [vmem:[#allocation3 + $0x6a8] sm:$0xf] }
 0x7eb   : > { %4845 = vmatpush.bf16.msra.mxu2 %v8251_v48  ;;  %4858 = vmatpush.bf16.msra.mxu3 %v8763_v56  ;;  %v10355_v48 = vld [vmem:[#allocation3 + $0x2dc] sm:$0xf0]  ;;  %v8451_v56 = vor.u32 %v10363_v29, %v8448_v42  ;;  %v8963_v17 = vor.u32 %v10491_v44, %v8960_v10  ;;  %v10283_v42 = vld [vmem:[#allocation3 + $0xa4] sm:$0xf] }
 0x7ec   : > { %v10419_v29 = vld [vmem:[#allocation3 + $0x4dc] sm:$0xf0]  ;;  %v8128_v44 = vld [vmem:[#allocation3 + $0xe0] sm:$0xf0] }
 0x7ed   : > { %v10411_v10 = vld [vmem:[#allocation3 + $0x4a4] sm:$0xf]  ;;  %v8131_v5 = vor.u32 %v10283_v42, %v8128_v44  ;;  %v10468_v42 = vld [vmem:[#allocation3 + $0x664] sm:$0xf0]  ;;  %v10332_v44 = vld [vmem:[#allocation3 + $0x22c] sm:$0xf] }
 0x7ee   : > { %4820 = vmatpush.bf16.msrb.mxu0 %v8183_v62  ;;  %4833 = vmatpush.bf16.msrb.mxu1 %v8695_v58  ;;  %v8896_v62 = vld [vmem:[#allocation3 + $0x6e0] sm:$0xf0]  ;;  %v8383_v58 = vor.u32 %v10355_v48, %v8382_v52  ;;  %v8639_v48 = vor.u32 %v10419_v29, %v8638_v43  ;;  %v8838_v29 = vld [vmem:[#allocation3 + $0x628] sm:$0xf] }
 0x7ef   : > { %4846 = vmatpush.bf16.msra.mxu2 %v8187_v1  ;;  %4859 = vmatpush.bf16.msra.mxu3 %v8699_v2  ;;  %v10339_v1 = vld [vmem:[#allocation3 + $0x25c] sm:$0xf0]  ;;  %v8387_v2 = vor.u32 %v10347_v51, %v8384_v50  ;;  %v8899_v28 = vor.u32 %v10475_v21, %v8896_v62  ;;  %v10267_v50 = vld [vmem:[#allocation3 + $0x24] sm:$0xf] }
 0x7f0   : > { %v8064_v21 = vld [vmem:[#allocation3 + $0x60] sm:$0xf0] }
 0x7f1   : > { %v10395_v62 = vld [vmem:[#allocation3 + $0x424] sm:$0xf] }
 0x7f2   : > { %4821 = vmatpush.bf16.msrb.mxu0 %v8119_v7  ;;  %4834 = vmatpush.bf16.msrb.mxu1 %v8631_v8  ;;  %v8319_v7 = vor.u32 %v10339_v1, %v8318_v63  ;;  %v8831_v8 = vor.u32 %v10467_v47, %v8830_v57  ;;  %v10388_v63 = vld [vmem:[#allocation3 + $0x3e4] sm:$0xf0] }
 0x7f3   : > { %4847 = vmatpush.bf16.msra.mxu2 %v8123_v22  ;;  %4860 = vmatpush.bf16.msra.mxu3 %v8635_v13  ;;  %v8835_v22 = vor.u32 %v10459_v20, %v8832_v6  ;;  %v8766_v13 = vld [vmem:[#allocation3 + $0x5a0] sm:$0xf]  ;;  %v9030_v1 = vld [vmem:[#allocation3 + $0x7a8] sm:$0xf]  ;;  %v9032_v20 = vld [vmem:[#allocation3 + $0x7e8] sm:$0xf0]  ;;  %v8067_v6 = vor.u32 %v10267_v50, %v8064_v21 }
 0x7f4   : > { %v8767_v23 = vor.u32 %v10451_v14, %v8766_v13  ;;  %v9035_v13 = vor.u32 %v10508_v4, %v9032_v20  ;;  %v8966_v14 = vld [vmem:[#allocation3 + $0x728] sm:$0xf]  ;;  %v10316_v21 = vld [vmem:[#allocation3 + $0x1ac] sm:$0xf] }
 0x7f5   : > { %v10452_v50 = vld [vmem:[#allocation3 + $0x5e4] sm:$0xf0]  ;;  %v10300_v20 = vld [vmem:[#allocation3 + $0x12c] sm:$0xf] }
 0x7f6   : > { %4822 = vmatpush.bf16.msrb.mxu0 %v8055_v26  ;;  %4835 = vmatpush.bf16.msrb.mxu1 %v8567_v27  ;;  %v8259_v26 = vor.u32 %v10315_v0, %v8256_v16  ;;  %v8771_v27 = vor.u32 %v10443_v18, %v8768_v40  ;;  %v10500_v0 = vld [vmem:[#allocation3 + $0x764] sm:$0xf0]  ;;  %v10364_v16 = vld [vmem:[#allocation3 + $0x32c] sm:$0xf] }
 0x7f7   : > { %4848 = vmatpush.bf16.msra.mxu2 %v8059_v33  ;;  %4861 = vmatpush.bf16.msra.mxu3 %v8571_v34  ;;  %v8192_v33 = vld [vmem:[#allocation3 + $0x160] sm:$0xf0]  ;;  %v8456_v18 = vld [vmem:[#allocation3 + $0x368] sm:$0xf0]  ;;  %v10436_v4 = vld [vmem:[#allocation3 + $0x564] sm:$0xf0] }
 0x7f8   : > { %v10427_v34 = vld [vmem:[#allocation3 + $0x524] sm:$0xf]  ;;  %v10492_v40 = vld [vmem:[#allocation3 + $0x72c] sm:$0xf] }
 0x7f9   : > { %4823 = vmatmul.bf16.vlgmr.msrb.gmra.mxu0 %v12524_v31  ;;  %4836 = vmatmul.bf16.vlgmr.msrb.gmra.mxu1 %v12528_v54 }
 0x7fa   : > { %4867 = vmatpush.bf16.msra.mxu0 %v8511_v35  ;;  %4880 = vmatpush.bf16.msra.mxu1 %v9023_v36  ;;  %v8704_v35 = vld [vmem:[#allocation3 + $0x560] sm:$0xf0]  ;;  %v8191_v36 = vor.u32 %v10307_v25, %v8190_v24  ;;  %v8967_v24 = vor.u32 %v10500_v0, %v8966_v14  ;;  %v8390_v25 = vld [vmem:[#allocation3 + $0x2a8] sm:$0xf] }
 0x7fb   : > { %4893 = vmatpush.bf16.msrb.mxu2 %v8515_v38  ;;  %4906 = vmatpush.bf16.msrb.mxu3 %v9027_v39  ;;  %v10291_v38 = vld [vmem:[#allocation3 + $0xdc] sm:$0xf0]  ;;  %v8195_v39 = vor.u32 %v10299_v45, %v8192_v33  ;;  %v8707_v41 = vor.u32 %v10427_v34, %v8704_v35  ;;  %v10484_v45 = vld [vmem:[#allocation3 + $0x6e4] sm:$0xf0]  ;;  %v10348_v33 = vld [vmem:[#allocation3 + $0x2ac] sm:$0xf] }
 0x7fc   : > { %4849 = vmatmul.bf16.vlgmr.msra.gmra.mxu2 %v12524_v31  ;;  %4862 = vmatmul.bf16.vlgmr.msra.gmra.mxu3 %v12528_v54  ;;  %v8127_v52 = vor.u32 %v10291_v38, %v8126_v37  ;;  %v8392_v34 = vld [vmem:[#allocation3 + $0x2e8] sm:$0xf0]  ;;  %v8903_v37 = vor.u32 %v10484_v45, %v8902_v30  ;;  %v8326_v38 = vld [vmem:[#allocation3 + $0x228] sm:$0xf] }
 0x7fd   : > { %v10476_v35 = vld [vmem:[#allocation3 + $0x6ac] sm:$0xf]  ;;  %v8646_v0 = vld [vmem:[#allocation3 + $0x4a8] sm:$0xf] }
 0x7fe   : > { %4868 = vmatpush.bf16.msra.mxu0 %v8447_v53  ;;  %4881 = vmatpush.bf16.msra.mxu1 %v8959_v55  ;;  %v8640_v53 = vld [vmem:[#allocation3 + $0x4e0] sm:$0xf0]  ;;  %v8062_v55 = vld [vmem:[#allocation3 + $0x20] sm:$0xf]  ;;  %v10404_v30 = vld [vmem:[#allocation3 + $0x464] sm:$0xf0] }
 0x7ff   : > { %4894 = vmatpush.bf16.msrb.mxu2 %v8451_v56  ;;  %4907 = vmatpush.bf16.msrb.mxu3 %v8963_v17  ;;  %v10275_v56 = vld [vmem:[#allocation3 + $0x5c] sm:$0xf0]  ;;  %v8643_v51 = vor.u32 %v10411_v10, %v8640_v53  ;;  %v8328_v10 = vld [vmem:[#allocation3 + $0x268] sm:$0xf0] }
 0x800   : > { %v8574_v17 = vld [vmem:[#allocation3 + $0x420] sm:$0xf]  ;;  %v8063_v57 = vor.u32 %v10275_v56, %v8062_v55  ;;  %v10460_v53 = vld [vmem:[#allocation3 + $0x62c] sm:$0xf]  ;;  %v8262_v56 = vld [vmem:[#allocation3 + $0x1a8] sm:$0xf] }
 0x801   : > { %v8575_v47 = vor.u32 %v10403_v49, %v8574_v17  ;;  %v8840_v55 = vld [vmem:[#allocation3 + $0x668] sm:$0xf0]  ;;  %v10324_v17 = vld [vmem:[#allocation3 + $0x1e4] sm:$0xf0]  ;;  %v8331_v49 = vor.u32 %v10332_v44, %v8328_v10  ;;  %v8528_v44 = vld [vmem:[#allocation3 + $0x3f0] sm:$0xf0] }
 0x802   : > { %4869 = vmatpush.bf16.msra.mxu0 %v8383_v58  ;;  %4882 = vmatpush.bf16.msra.mxu1 %v8895_v61  ;;  %v8576_v58 = vld [vmem:[#allocation3 + $0x460] sm:$0xf0]  ;;  %v8518_v61 = vld [vmem:[#allocation3 + $0x3a8] sm:$0xf]  ;;  %v10509_v10 = vld [vmem:[#allocation3 + $0x7b4] sm:$0xf] }
 0x803   : > { %4895 = vmatpush.bf16.msrb.mxu2 %v8387_v2  ;;  %4908 = vmatpush.bf16.msrb.mxu3 %v8899_v28  ;;  %v10516_v2 = vld [vmem:[#allocation3 + $0x7e4] sm:$0xf0]  ;;  %v10380_v28 = vld [vmem:[#allocation3 + $0x3ac] sm:$0xf] }
 0x804   : > { %v9031_v9 = vor.u32 %v10516_v2, %v9030_v1  ;;  %v8198_v2 = vld [vmem:[#allocation3 + $0x128] sm:$0xf] }
 0x806   : > { %4870 = vmatpush.bf16.msra.mxu0 %v8319_v7  ;;  %4883 = vmatpush.bf16.msra.mxu1 %v8831_v8  ;;  %v8579_v7 = vor.u32 %v10395_v62, %v8576_v58  ;;  %v8519_v8 = vor.u32 %v10388_v63, %v8518_v61  ;;  %v8264_v62 = vld [vmem:[#allocation3 + $0x1e8] sm:$0xf0]  ;;  %v8263_v63 = vor.u32 %v10324_v17, %v8262_v56  ;;  %v8462_v17 = vld [vmem:[#allocation3 + $0x330] sm:$0xf] }
 0x807   : > { %4896 = vmatpush.bf16.msrb.mxu2 %v8323_v46  ;;  %4909 = vmatpush.bf16.msrb.mxu3 %v8835_v22  ;;  %v10372_v46 = vld [vmem:[#allocation3 + $0x364] sm:$0xf0]  ;;  %v8523_v22 = vor.u32 %v10380_v28, %v8520_v3  ;;  %v10444_v58 = vld [vmem:[#allocation3 + $0x5ac] sm:$0xf] }
 0x808   : > { %v8776_v61 = vld [vmem:[#allocation3 + $0x5e8] sm:$0xf0]  ;;  %v10308_v28 = vld [vmem:[#allocation3 + $0x164] sm:$0xf0] }
 0x809   : > { %v8710_v3 = vld [vmem:[#allocation3 + $0x528] sm:$0xf] }
 0x80a   : > { %4871 = vmatpush.bf16.msra.mxu0 %v8255_v19  ;;  %4884 = vmatpush.bf16.msra.mxu1 %v8767_v23  ;;  %v8968_v19 = vld [vmem:[#allocation3 + $0x768] sm:$0xf0]  ;;  %v8455_v23 = vor.u32 %v10372_v46, %v8454_v11  ;;  %v8711_v11 = vor.u32 %v10436_v4, %v8710_v3  ;;  %v8134_v46 = vld [vmem:[#allocation3 + $0xa8] sm:$0xf] }
 0x80b   : > { %4897 = vmatpush.bf16.msrb.mxu2 %v8259_v26  ;;  %4910 = vmatpush.bf16.msrb.mxu3 %v8771_v27  ;;  %v10356_v26 = vld [vmem:[#allocation3 + $0x2e4] sm:$0xf0]  ;;  %v8459_v27 = vor.u32 %v10364_v16, %v8456_v18  ;;  %v8971_v59 = vor.u32 %v10492_v40, %v8968_v19  ;;  %v10284_v18 = vld [vmem:[#allocation3 + $0xac] sm:$0xf] }
 0x80c   : > { %v10420_v16 = vld [vmem:[#allocation3 + $0x4e4] sm:$0xf0]  ;;  %v8136_v40 = vld [vmem:[#allocation3 + $0xe8] sm:$0xf0] }
 0x80d   : > { %v10412_v19 = vld [vmem:[#allocation3 + $0x4ac] sm:$0xf]  ;;  %v8139_v45 = vor.u32 %v10284_v18, %v8136_v40  ;;  %v8334_v18 = vld [vmem:[#allocation3 + $0x230] sm:$0xf] }
 0x80e   : > { %4872 = vmatpush.bf16.msra.mxu0 %v8191_v36  ;;  %4885 = vmatpush.bf16.msra.mxu1 %v8703_v32  ;;  %v8904_v36 = vld [vmem:[#allocation3 + $0x6e8] sm:$0xf0]  ;;  %v8391_v32 = vor.u32 %v10356_v26, %v8390_v25  ;;  %v8647_v26 = vor.u32 %v10420_v16, %v8646_v0  ;;  %v10341_v40 = vld [vmem:[#allocation3 + $0x26c] sm:$0xf0] }
 0x80f   : > { %4898 = vmatpush.bf16.msrb.mxu2 %v8195_v39  ;;  %4911 = vmatpush.bf16.msrb.mxu3 %v8707_v41  ;;  %v10340_v39 = vld [vmem:[#allocation3 + $0x264] sm:$0xf0]  ;;  %v8395_v41 = vor.u32 %v10348_v33, %v8392_v34  ;;  %v8907_v43 = vor.u32 %v10476_v35, %v8904_v36  ;;  %v10268_v34 = vld [vmem:[#allocation3 + $0x2c] sm:$0xf] }
 0x810   : > { %v8072_v35 = vld [vmem:[#allocation3 + $0x68] sm:$0xf0] }
 0x811   : > { %v10396_v36 = vld [vmem:[#allocation3 + $0x42c] sm:$0xf] }
 0x812   : > { %4873 = vmatpush.bf16.msra.mxu0 %v8127_v52  ;;  %4886 = vmatpush.bf16.msra.mxu1 %v8639_v48  ;;  %v8327_v52 = vor.u32 %v10340_v39, %v8326_v38  ;;  %v8839_v48 = vor.u32 %v10468_v42, %v8838_v29  ;;  %v10389_v38 = vld [vmem:[#allocation3 + $0x3ec] sm:$0xf0] }
 0x813   : > { %4899 = vmatpush.bf16.msrb.mxu2 %v8131_v5  ;;  %4912 = vmatpush.bf16.msrb.mxu3 %v8643_v51  ;;  %v8843_v5 = vor.u32 %v10460_v53, %v8840_v55  ;;  %v8774_v51 = vld [vmem:[#allocation3 + $0x5a8] sm:$0xf]  ;;  %v9038_v39 = vld [vmem:[#allocation3 + $0x7b0] sm:$0xf]  ;;  %v9040_v53 = vld [vmem:[#allocation3 + $0x7f0] sm:$0xf0]  ;;  %v8075_v55 = vor.u32 %v10268_v34, %v8072_v35  ;;  %v8335_v34 = vor.u32 %v10341_v40, %v8334_v18 }
 0x814   : > { %v8775_v1 = vor.u32 %v10452_v50, %v8774_v51  ;;  %v9043_v50 = vor.u32 %v10509_v10, %v9040_v53  ;;  %v10445_v10 = vld [vmem:[#allocation3 + $0x5b4] sm:$0xf]  ;;  %v8078_v40 = vld [vmem:[#allocation3 + $0x30] sm:$0xf] }
 0x815   : > { %v8784_v53 = vld [vmem:[#allocation3 + $0x5f0] sm:$0xf0] }
 0x816   : > { %4874 = vmatpush.bf16.msra.mxu0 %v8063_v57  ;;  %4887 = vmatpush.bf16.msra.mxu1 %v8575_v47  ;;  %v8267_v57 = vor.u32 %v10316_v21, %v8264_v62  ;;  %v8779_v47 = vor.u32 %v10444_v58, %v8776_v61  ;;  %v10501_v21 = vld [vmem:[#allocation3 + $0x76c] sm:$0xf0]  ;;  %v10365_v62 = vld [vmem:[#allocation3 + $0x334] sm:$0xf]  ;;  %v12553_v58 = vld [vmem:[%s12749_s13] sm:$0xff] }
 0x817   : > { %4900 = vmatpush.bf16.msrb.mxu2 %v8067_v6  ;;  %4913 = vmatpush.bf16.msrb.mxu3 %v8579_v7  ;;  %v8200_v6 = vld [vmem:[#allocation3 + $0x168] sm:$0xf0]  ;;  %v8464_v61 = vld [vmem:[#allocation3 + $0x370] sm:$0xf0]  ;;  %v3347_v3 = vperm.slane %v12553_v58, 0 }
 0x818   : > { %v10428_v7 = vld [vmem:[#allocation3 + $0x52c] sm:$0xf]  ;;  %v8467_v4 = vor.u32 %v10365_v62, %v8464_v61  ;;  %v8718_v62 = vld [vmem:[#allocation3 + $0x530] sm:$0xf] }
 0x819   : > { %4875 = vmatmul.bf16.vlgmr.msra.gmra.mxu0 %v12524_v31  ;;  %4888 = vmatmul.bf16.vlgmr.msra.gmra.mxu1 %v12528_v54  ;;  %v10437_v61 = vld [vmem:[#allocation3 + $0x56c] sm:$0xf0] }
 0x81a   : > { %4919 = vmatpush.bf16.msrb.mxu0 %v8519_v8  ;;  %4932 = vmatpush.bf16.msrb.mxu1 %v9031_v9  ;;  %v8712_v8 = vld [vmem:[#allocation3 + $0x568] sm:$0xf0]  ;;  %v8199_v9 = vor.u32 %v10308_v28, %v8198_v2 }
 0x81b   : > { %4945 = vmatpush.bf16.msra.mxu2 %v8523_v22  ;;  %4958 = vmatpush.bf16.msra.mxu3 %v9035_v13  ;;  %v10292_v22 = vld [vmem:[#allocation3 + $0xe4] sm:$0xf0]  ;;  %v8203_v13 = vor.u32 %v10300_v20, %v8200_v6  ;;  %v8715_v14 = vor.u32 %v10428_v7, %v8712_v8  ;;  %v8910_v6 = vld [vmem:[#allocation3 + $0x6b0] sm:$0xf]  ;;  %v10349_v8 = vld [vmem:[#allocation3 + $0x2b4] sm:$0xf] }
 0x81c   : > { %4901 = vmatmul.bf16.vlgmr.msrb.gmra.mxu2 %v12524_v31  ;;  %4914 = vmatmul.bf16.vlgmr.msrb.gmra.mxu3 %v12528_v54  ;;  %v8135_v25 = vor.u32 %v10292_v22, %v8134_v46  ;;  %v10485_v7 = vld [vmem:[#allocation3 + $0x6ec] sm:$0xf0]  ;;  %v8912_v46 = vld [vmem:[#allocation3 + $0x6f0] sm:$0xf0] }
 0x81d   : > { %v8911_v0 = vor.u32 %v10485_v7, %v8910_v6 }
 0x81e   : > { %4920 = vmatpush.bf16.msrb.mxu0 %v8455_v23  ;;  %4933 = vmatpush.bf16.msrb.mxu1 %v8967_v24  ;;  %v8648_v23 = vld [vmem:[#allocation3 + $0x4e8] sm:$0xf0]  ;;  %v8070_v24 = vld [vmem:[#allocation3 + $0x28] sm:$0xf] }
 0x81f   : > { %4946 = vmatpush.bf16.msra.mxu2 %v8459_v27  ;;  %4959 = vmatpush.bf16.msra.mxu3 %v8971_v59  ;;  %v10276_v27 = vld [vmem:[#allocation3 + $0x64] sm:$0xf0]  ;;  %v8651_v33 = vor.u32 %v10412_v19, %v8648_v23 }
 0x820   : > { %v8582_v59 = vld [vmem:[#allocation3 + $0x428] sm:$0xf]  ;;  %v8071_v29 = vor.u32 %v10276_v27, %v8070_v24  ;;  %v8846_v24 = vld [vmem:[#allocation3 + $0x630] sm:$0xf] }
 0x821   : > { %v8583_v42 = vor.u32 %v10404_v30, %v8582_v59  ;;  %v8336_v59 = vld [vmem:[#allocation3 + $0x270] sm:$0xf0] }
 0x822   : > { %4921 = vmatpush.bf16.msrb.mxu0 %v8391_v32  ;;  %4934 = vmatpush.bf16.msrb.mxu1 %v8903_v37  ;;  %v8584_v32 = vld [vmem:[#allocation3 + $0x468] sm:$0xf0]  ;;  %v8526_v37 = vld [vmem:[#allocation3 + $0x3b0] sm:$0xf]  ;;  %v10461_v30 = vld [vmem:[#allocation3 + $0x634] sm:$0xf] }
 0x823   : > { %4947 = vmatpush.bf16.msra.mxu2 %v8395_v41  ;;  %4960 = vmatpush.bf16.msra.mxu3 %v8907_v43  ;;  %v10517_v41 = vld [vmem:[#allocation3 + $0x7ec] sm:$0xf0]  ;;  %v10381_v43 = vld [vmem:[#allocation3 + $0x3b4] sm:$0xf] }
 0x824   : > { %v9039_v56 = vor.u32 %v10517_v41, %v9038_v39  ;;  %v8531_v51 = vor.u32 %v10381_v43, %v8528_v44  ;;  %v8782_v39 = vld [vmem:[#allocation3 + $0x5b0] sm:$0xf]  ;;  %v10317_v43 = vld [vmem:[#allocation3 + $0x1b4] sm:$0xf] }
 0x825   : > { %v10453_v41 = vld [vmem:[#allocation3 + $0x5ec] sm:$0xf0]  ;;  %v8272_v44 = vld [vmem:[#allocation3 + $0x1f0] sm:$0xf0] }
 0x826   : > { %4922 = vmatpush.bf16.msrb.mxu0 %v8327_v52  ;;  %4935 = vmatpush.bf16.msrb.mxu1 %v8839_v48  ;;  %v8587_v52 = vor.u32 %v10396_v36, %v8584_v32  ;;  %v8527_v48 = vor.u32 %v10389_v38, %v8526_v37  ;;  %v8270_v36 = vld [vmem:[#allocation3 + $0x1b0] sm:$0xf] }
 0x827   : > { %4948 = vmatpush.bf16.msra.mxu2 %v8331_v49  ;;  %4961 = vmatpush.bf16.msra.mxu3 %v8843_v5  ;;  %v10373_v49 = vld [vmem:[#allocation3 + $0x36c] sm:$0xf0] }
 0x828   : > { %v8974_v5 = vld [vmem:[#allocation3 + $0x730] sm:$0xf]  ;;  %v8463_v2 = vor.u32 %v10373_v49, %v8462_v17  ;;  %v8783_v17 = vor.u32 %v10453_v41, %v8782_v39  ;;  %v9046_v39 = vld [vmem:[#allocation3 + $0x7b8] sm:$0xf] }
 0x829   : > { %v8975_v28 = vor.u32 %v10501_v21, %v8974_v5  ;;  %v10325_v32 = vld [vmem:[#allocation3 + $0x1ec] sm:$0xf0]  ;;  %v8787_v21 = vor.u32 %v10445_v10, %v8784_v53  ;;  %v10518_v41 = vld [vmem:[#allocation3 + $0x7f4] sm:$0xf0]  ;;  %v10510_v10 = vld [vmem:[#allocation3 + $0x7bc] sm:$0xf] }
 0x82a   : > { %4923 = vmatpush.bf16.msrb.mxu0 %v8263_v63  ;;  %4936 = vmatpush.bf16.msrb.mxu1 %v8775_v1  ;;  %v10493_v63 = vld [vmem:[#allocation3 + $0x734] sm:$0xf]  ;;  %v8206_v49 = vld [vmem:[#allocation3 + $0x130] sm:$0xf]  ;;  %v9048_v53 = vld [vmem:[#allocation3 + $0x7f8] sm:$0xf0] }
 0x82b   : > { %4949 = vmatpush.bf16.msra.mxu2 %v8267_v57  ;;  %4962 = vmatpush.bf16.msra.mxu3 %v8779_v47  ;;  %v8976_v1 = vld [vmem:[#allocation3 + $0x770] sm:$0xf0]  ;;  %v8398_v57 = vld [vmem:[#allocation3 + $0x2b0] sm:$0xf] }
 0x82c   : > { %v10357_v47 = vld [vmem:[#allocation3 + $0x2ec] sm:$0xf0]  ;;  %v8979_v20 = vor.u32 %v10493_v63, %v8976_v1  ;;  %v10301_v63 = vld [vmem:[#allocation3 + $0x134] sm:$0xf] }
 0x82d   : > { %v10309_v5 = vld [vmem:[#allocation3 + $0x16c] sm:$0xf0]  ;;  %v8208_v1 = vld [vmem:[#allocation3 + $0x170] sm:$0xf0] }
 0x82e   : > { %4924 = vmatpush.bf16.msrb.mxu0 %v8199_v9  ;;  %4937 = vmatpush.bf16.msrb.mxu1 %v8711_v11  ;;  %v8400_v9 = vld [vmem:[#allocation3 + $0x2f0] sm:$0xf0]  ;;  %v8211_v6 = vor.u32 %v10301_v63, %v8208_v1  ;;  %v8982_v1 = vld [vmem:[#allocation3 + $0x738] sm:$0xf] }
 0x82f   : > { %4950 = vmatpush.bf16.msra.mxu2 %v8203_v13  ;;  %4963 = vmatpush.bf16.msra.mxu3 %v8715_v14  ;;  %v10477_v11 = vld [vmem:[#allocation3 + $0x6b4] sm:$0xf]  ;;  %v8399_v14 = vor.u32 %v10357_v47, %v8398_v57  ;;  %v8403_v19 = vor.u32 %v10349_v8, %v8400_v9  ;;  %v8207_v57 = vor.u32 %v10309_v5, %v8206_v49  ;;  %v8654_v8 = vld [vmem:[#allocation3 + $0x4b0] sm:$0xf]  ;;  %v8470_v5 = vld [vmem:[#allocation3 + $0x338] sm:$0xf] }
 0x830   : > { %v8915_v23 = vor.u32 %v10477_v11, %v8912_v46  ;;  %v8719_v47 = vor.u32 %v10437_v61, %v8718_v62  ;;  %v10421_v9 = vld [vmem:[#allocation3 + $0x4ec] sm:$0xf0]  ;;  %v10285_v11 = vld [vmem:[#allocation3 + $0xb4] sm:$0xf]  ;;  %v9051_v62 = vor.u32 %v10510_v10, %v9048_v53  ;;  %v8790_v53 = vld [vmem:[#allocation3 + $0x5b8] sm:$0xf] }
 0x832   : > { %4925 = vmatpush.bf16.msrb.mxu0 %v8135_v25  ;;  %4938 = vmatpush.bf16.msrb.mxu1 %v8647_v26  ;;  %v10469_v25 = vld [vmem:[#allocation3 + $0x66c] sm:$0xf0]  ;;  %v10333_v26 = vld [vmem:[#allocation3 + $0x234] sm:$0xf] }
 0x833   : > { %4951 = vmatpush.bf16.msra.mxu2 %v8139_v45  ;;  %4964 = vmatpush.bf16.msra.mxu3 %v8651_v33  ;;  %v8848_v45 = vld [vmem:[#allocation3 + $0x670] sm:$0xf0]  ;;  %v3348_v33 = vperm.slane %v12553_v58, 1  ;;  %v8847_v35 = vor.u32 %v10469_v25, %v8846_v24  ;;  %v8339_v37 = vor.u32 %v10333_v26, %v8336_v59  ;;  %v10277_v25 = vld [vmem:[#allocation3 + $0x6c] sm:$0xf0] }
 0x834   : > { %v8851_v38 = vor.u32 %v10461_v30, %v8848_v45  ;;  %v8590_v26 = vld [vmem:[#allocation3 + $0x430] sm:$0xf] }
 0x835   : > { %v4668_v22 = vpop.f32.mrf.mxu0  ;;  %v4681_v13 = vpop.f32.mrf.mxu1  ;;  %v10405_v59 = vld [vmem:[#allocation3 + $0x46c] sm:$0xf0] }
 0x836   : > { %4926 = vmatpush.bf16.msrb.mxu0 %v8071_v29  ;;  %4939 = vmatpush.bf16.msrb.mxu1 %v8583_v42  ;;  %v4669_v16 = vadd.f32 %v4668_v22, %v3347_v3  ;;  %v8142_v3 = vld [vmem:[#allocation3 + $0xb0] sm:$0xf] }
 0x837   : > { %4952 = vmatpush.bf16.msra.mxu2 %v8075_v55  ;;  %4965 = vmatpush.bf16.msra.mxu3 %v8587_v52 }
 0x838   : > { %v12560_v27 = vadd.f32 %v4681_v13, %v4669_v16  ;;  %v8144_v13 = vld [vmem:[#allocation3 + $0xf0] sm:$0xf0] }
 0x839   : > { %4927 = vmatmul.bf16.vlgmr.msrb.gmra.mxu0 %v12524_v31  ;;  %4940 = vmatmul.bf16.vlgmr.msrb.gmra.mxu1 %v12528_v54  ;;  %v8147_v30 = vor.u32 %v10285_v11, %v8144_v13  ;;  %v8918_v11 = vld [vmem:[#allocation3 + $0x6b8] sm:$0xf]  ;;  %v8408_v13 = vld [vmem:[#allocation3 + $0x2f8] sm:$0xf0] }
 0x83a   : > { %4971 = vmatpush.bf16.msra.mxu0 %v8527_v48  ;;  %4984 = vmatpush.bf16.msra.mxu1 %v9039_v56  ;;  %v8271_v56 = vor.u32 %v10325_v32, %v8270_v36  ;;  %v8592_v32 = vld [vmem:[#allocation3 + $0x470] sm:$0xf0] }
 0x83b   : > { %4997 = vmatpush.bf16.msrb.mxu2 %v8531_v51  ;;  %5010 = vmatpush.bf16.msrb.mxu3 %v9043_v50  ;;  %v8275_v50 = vor.u32 %v10317_v43, %v8272_v44  ;;  %v10382_v43 = vld [vmem:[#allocation3 + $0x3bc] sm:$0xf] }
 0x83c   : > { %4953 = vmatmul.bf16.vlgmr.msra.gmra.mxu2 %v12524_v31  ;;  %4966 = vmatmul.bf16.vlgmr.msra.gmra.mxu3 %v12528_v54  ;;  %v4694_v29 = vpop.f32.mrf.mxu2  ;;  %v4707_v42 = vpop.f32.mrf.mxu3  ;;  %v8536_v44 = vld [vmem:[#allocation3 + $0x3f8] sm:$0xf0] }
 0x83d   : > { %v4695_v55 = vadd.f32 %v4694_v29, %v3348_v33  ;;  %v4670_v52 = vpop.f32.mrf.mxu0  ;;  %v4683_v48 = vpop.f32.mrf.mxu1  ;;  %v10269_v33 = vld [vmem:[#allocation3 + $0x34] sm:$0xf]  ;;  %v8079_v29 = vor.u32 %v10277_v25, %v8078_v40  ;;  %v10342_v25 = vld [vmem:[#allocation3 + $0x274] sm:$0xf0] }
 0x83e   : > { %4972 = vmatpush.bf16.msra.mxu0 %v8463_v2  ;;  %4985 = vmatpush.bf16.msra.mxu1 %v8975_v28  ;;  %v10429_v2 = vld [vmem:[#allocation3 + $0x534] sm:$0xf] }
 0x83f   : > { %4998 = vmatpush.bf16.msrb.mxu2 %v8467_v4  ;;  %5011 = vmatpush.bf16.msrb.mxu3 %v8979_v20  ;;  %v12563_v51 = vadd.f32 %v4707_v42, %v4695_v55  ;;  %v8720_v28 = vld [vmem:[#allocation3 + $0x570] sm:$0xf0]  ;;  %v10293_v4 = vld [vmem:[#allocation3 + $0xec] sm:$0xf0]  ;;  %v3349_v20 = vperm.slane %v12553_v58, 2  ;;  %v8591_v42 = vor.u32 %v10405_v59, %v8590_v26 }
 0x840   : > { %v8723_v7 = vor.u32 %v10429_v2, %v8720_v28  ;;  %v10502_v2 = vld [vmem:[#allocation3 + $0x774] sm:$0xf0]  ;;  %v10366_v28 = vld [vmem:[#allocation3 + $0x33c] sm:$0xf] }
 0x842   : > { %4973 = vmatpush.bf16.msra.mxu0 %v8399_v14  ;;  %4986 = vmatpush.bf16.msra.mxu1 %v8911_v0  ;;  %v10413_v14 = vld [vmem:[#allocation3 + $0x4b4] sm:$0xf] }
 0x843   : > { %4999 = vmatpush.bf16.msrb.mxu2 %v8403_v19  ;;  %5012 = vmatpush.bf16.msrb.mxu3 %v8915_v23  ;;  %v8656_v0 = vld [vmem:[#allocation3 + $0x4f0] sm:$0xf0]  ;;  %v8143_v19 = vor.u32 %v10293_v4, %v8142_v3  ;;  %v8655_v23 = vor.u32 %v10421_v9, %v8654_v8  ;;  %v8984_v3 = vld [vmem:[#allocation3 + $0x778] sm:$0xf0] }
 0x844   : > { %v4696_v46 = vpop.f32.mrf.mxu2  ;;  %v4709_v22 = vpop.f32.mrf.mxu3  ;;  %v8659_v45 = vor.u32 %v10413_v14, %v8656_v0  ;;  %v10478_v14 = vld [vmem:[#allocation3 + $0x6bc] sm:$0xf] }
 0x845   : > { %v4720_v16 = vpop.f32.mrf.mxu0  ;;  %v4733_v18 = vpop.f32.mrf.mxu1  ;;  %v10486_v46 = vld [vmem:[#allocation3 + $0x6f4] sm:$0xf0]  ;;  %v10350_v22 = vld [vmem:[#allocation3 + $0x2bc] sm:$0xf] }
 0x846   : > { %4974 = vmatpush.bf16.msra.mxu0 %v8335_v34  ;;  %4987 = vmatpush.bf16.msra.mxu1 %v8847_v35  ;;  %v4721_v24 = vadd.f32 %v4720_v16, %v3349_v20  ;;  %v8080_v34 = vld [vmem:[#allocation3 + $0x70] sm:$0xf0]  ;;  %v8983_v20 = vor.u32 %v10502_v2, %v8982_v1  ;;  %v8920_v0 = vld [vmem:[#allocation3 + $0x6f8] sm:$0xf0]  ;;  %v8411_v26 = vor.u32 %v10350_v22, %v8408_v13  ;;  %v10310_v1 = vld [vmem:[#allocation3 + $0x174] sm:$0xf0] }
 0x847   : > { %5000 = vmatpush.bf16.msrb.mxu2 %v8339_v37  ;;  %5013 = vmatpush.bf16.msrb.mxu3 %v8851_v38  ;;  %v10397_v35 = vld [vmem:[#allocation3 + $0x434] sm:$0xf]  ;;  %v8534_v37 = vld [vmem:[#allocation3 + $0x3b8] sm:$0xf]  ;;  %v8083_v55 = vor.u32 %v10269_v33, %v8080_v34  ;;  %v8923_v59 = vor.u32 %v10478_v14, %v8920_v0  ;;  %v10334_v33 = vld [vmem:[#allocation3 + $0x23c] sm:$0xf] }
 0x848   : > { %v12566_v36 = vadd.f32 %v4733_v18, %v4721_v24  ;;  %v10390_v38 = vld [vmem:[#allocation3 + $0x3f4] sm:$0xf0]  ;;  %v8595_v52 = vor.u32 %v10397_v35, %v8592_v32  ;;  %v8919_v18 = vor.u32 %v10486_v46, %v8918_v11  ;;  %v8344_v34 = vld [vmem:[#allocation3 + $0x278] sm:$0xf0] }
 0x849   : > { %v8535_v48 = vor.u32 %v10390_v38, %v8534_v37  ;;  %v8342_v24 = vld [vmem:[#allocation3 + $0x238] sm:$0xf]  ;;  %v10462_v35 = vld [vmem:[#allocation3 + $0x63c] sm:$0xf] }
 0x84a   : > { %4975 = vmatpush.bf16.msra.mxu0 %v8271_v56  ;;  %4988 = vmatpush.bf16.msra.mxu1 %v8783_v17  ;;  %v9047_v56 = vor.u32 %v10518_v41, %v9046_v39  ;;  %v8856_v32 = vld [vmem:[#allocation3 + $0x678] sm:$0xf0]  ;;  %v8343_v41 = vor.u32 %v10342_v25, %v8342_v24  ;;  %v8150_v14 = vld [vmem:[#allocation3 + $0xb8] sm:$0xf] }
 0x84b   : > { %5001 = vmatpush.bf16.msrb.mxu2 %v8275_v50  ;;  %5014 = vmatpush.bf16.msrb.mxu3 %v8787_v21  ;;  %v10374_v50 = vld [vmem:[#allocation3 + $0x374] sm:$0xf0]  ;;  %v8539_v21 = vor.u32 %v10382_v43, %v8536_v44  ;;  %v8347_v44 = vor.u32 %v10334_v33, %v8344_v34  ;;  %v8859_v10 = vor.u32 %v10462_v35, %v8856_v32  ;;  %v10286_v24 = vld [vmem:[#allocation3 + $0xbc] sm:$0xf] }
 0x84c   : > { %v12568_v17 = vpop.f32.mrf.mxu2  ;;  %v12570_v49 = vpop.f32.mrf.mxu3  ;;  %v8471_v4 = vor.u32 %v10374_v50, %v8470_v5  ;;  %v10446_v5 = vld [vmem:[#allocation3 + $0x5bc] sm:$0xf]  ;;  %v10294_v0 = vld [vmem:[#allocation3 + $0xf4] sm:$0xf0] }
 0x84d   : > { %v4722_v61 = vpop.f32.mrf.mxu0  ;;  %v4735_v63 = vpop.f32.mrf.mxu1  ;;  %v8792_v50 = vld [vmem:[#allocation3 + $0x5f8] sm:$0xf0]  ;;  %v10278_v34 = vld [vmem:[#allocation3 + $0x74] sm:$0xf0] }
 0x84e   : > { %4976 = vmatpush.bf16.msra.mxu0 %v8207_v57  ;;  %4989 = vmatpush.bf16.msra.mxu1 %v8719_v47  ;;  %v8472_v57 = vld [vmem:[#allocation3 + $0x378] sm:$0xf0]  ;;  %v8214_v63 = vld [vmem:[#allocation3 + $0x138] sm:$0xf] }
 0x84f   : > { %5002 = vmatpush.bf16.msrb.mxu2 %v8211_v6  ;;  %5015 = vmatpush.bf16.msrb.mxu3 %v8723_v7  ;;  %v10494_v47 = vld [vmem:[#allocation3 + $0x73c] sm:$0xf]  ;;  %v8406_v6 = vld [vmem:[#allocation3 + $0x2b8] sm:$0xf]  ;;  %v8475_v8 = vor.u32 %v10366_v28, %v8472_v57  ;;  %v8795_v28 = vor.u32 %v10446_v5, %v8792_v50  ;;  %v8215_v22 = vor.u32 %v10310_v1, %v8214_v63 }
 0x850   : > { %v10358_v7 = vld [vmem:[#allocation3 + $0x2f4] sm:$0xf0]  ;;  %v8987_v9 = vor.u32 %v10494_v47, %v8984_v3  ;;  %v10302_v3 = vld [vmem:[#allocation3 + $0x13c] sm:$0xf] }
 0x851   : > { %v8407_v16 = vor.u32 %v10358_v7, %v8406_v6  ;;  %v8726_v57 = vld [vmem:[#allocation3 + $0x538] sm:$0xf]  ;;  %v8216_v6 = vld [vmem:[#allocation3 + $0x178] sm:$0xf0] }
 0x852   : > { %4977 = vmatpush.bf16.msra.mxu0 %v8143_v19  ;;  %4990 = vmatpush.bf16.msra.mxu1 %v8655_v23  ;;  %v3351_v23 = vperm.slane %v12553_v58, 4  ;;  %v10438_v47 = vld [vmem:[#allocation3 + $0x574] sm:$0xf0]  ;;  %v10430_v7 = vld [vmem:[#allocation3 + $0x53c] sm:$0xf] }
 0x853   : > { %5003 = vmatpush.bf16.msrb.mxu2 %v8147_v30  ;;  %5016 = vmatpush.bf16.msrb.mxu3 %v8659_v45  ;;  %v8854_v30 = vld [vmem:[#allocation3 + $0x638] sm:$0xf]  ;;  %v8727_v13 = vor.u32 %v10438_v47, %v8726_v57  ;;  %v8152_v25 = vld [vmem:[#allocation3 + $0xf8] sm:$0xf0]  ;;  %v9102_v57 = vld [vmem:[#allocation5 + $0x60] sm:$0xf] }
 0x854   : > { %v4748_v40 = vpop.f32.mrf.mxu2  ;;  %v4761_v19 = vpop.f32.mrf.mxu3  ;;  %v10470_v45 = vld [vmem:[#allocation3 + $0x674] sm:$0xf0]  ;;  %v10532_v47 = vld [vmem:[#allocation5 + $0x64] sm:$0xf0] }
 0x855   : > { %v8855_v43 = vor.u32 %v10470_v45, %v8854_v30  ;;  %v8662_v19 = vld [vmem:[#allocation3 + $0x4b8] sm:$0xf]  ;;  %v8151_v45 = vor.u32 %v10294_v0, %v8150_v14 }
 0x856   : > { %4978 = vmatpush.bf16.msra.mxu0 %v8079_v29  ;;  %4991 = vmatpush.bf16.msra.mxu1 %v8591_v42  ;;  %v4772_v37 = vpop.f32.mrf.mxu0  ;;  %v4785_v38 = vpop.f32.mrf.mxu1  ;;  %v8278_v29 = vld [vmem:[#allocation3 + $0x1b8] sm:$0xf] }
 0x857   : > { %5004 = vmatpush.bf16.msrb.mxu2 %v8083_v55  ;;  %5017 = vmatpush.bf16.msrb.mxu3 %v8595_v52  ;;  %v4773_v39 = vadd.f32 %v4772_v37, %v3351_v23  ;;  %v10326_v42 = vld [vmem:[#allocation3 + $0x1f4] sm:$0xf0]  ;;  %v10318_v52 = vld [vmem:[#allocation3 + $0x1bc] sm:$0xf]  ;;  %v8155_v37 = vor.u32 %v10286_v24, %v8152_v25  ;;  %v9286_v25 = vld [vmem:[#allocation5 + $0x1d0] sm:$0xf] }
 0x858   : > { %v10454_v55 = vld [vmem:[#allocation3 + $0x5f4] sm:$0xf0] }
 0x859   : > { %4979 = vmatmul.bf16.vlgmr.msra.gmra.mxu0 %v12524_v31  ;;  %4992 = vmatmul.bf16.vlgmr.msra.gmra.mxu1 %v12528_v54  ;;  %v8791_v61 = vor.u32 %v10454_v55, %v8790_v53  ;;  %v10422_v23 = vld [vmem:[#allocation3 + $0x4f4] sm:$0xf0]  ;;  %v9174_v55 = vld [vmem:[#allocation5 + $0xf0] sm:$0xf] }
 0x85a   : > { %5023 = vmatpush.bf16.msrb.mxu0 %v8535_v48  ;;  %5036 = vmatpush.bf16.msrb.mxu1 %v9047_v56  ;;  %v12577_v48 = vadd.f32 %v4785_v38, %v4773_v39  ;;  %v8280_v56 = vld [vmem:[#allocation3 + $0x1f8] sm:$0xf0]  ;;  %v8086_v30 = vld [vmem:[#allocation3 + $0x38] sm:$0xf]  ;;  %v8663_v33 = vor.u32 %v10422_v23, %v8662_v19  ;;  %v9222_v23 = vld [vmem:[#allocation5 + $0x150] sm:$0xf] }
 0x85b   : > { %5049 = vmatpush.bf16.msra.mxu2 %v8539_v21  ;;  %5062 = vmatpush.bf16.msra.mxu3 %v9051_v62  ;;  %v3352_v21 = vperm.slane %v12553_v58, 5  ;;  %v8279_v62 = vor.u32 %v10326_v42, %v8278_v29  ;;  %v8283_v2 = vor.u32 %v10318_v52, %v8280_v56  ;;  %v8598_v35 = vld [vmem:[#allocation3 + $0x438] sm:$0xf]  ;;  %v10270_v39 = vld [vmem:[#allocation3 + $0x3c] sm:$0xf]  ;;  %v8087_v5 = vor.u32 %v10278_v34, %v8086_v30 }
 0x85c   : > { %5005 = vmatmul.bf16.vlgmr.msrb.gmra.mxu2 %v12524_v31  ;;  %5018 = vmatmul.bf16.vlgmr.msrb.gmra.mxu3 %v12528_v54  ;;  %v10406_v32 = vld [vmem:[#allocation3 + $0x474] sm:$0xf0]  ;;  %v9238_v56 = vld [vmem:[#allocation5 + $0x170] sm:$0xf] }
 0x85d   : > { %v10534_v53 = vld [vmem:[#allocation5 + $0x74] sm:$0xf0]  ;;  %v8599_v50 = vor.u32 %v10406_v32, %v8598_v35  ;;  %v9150_v32 = vld [vmem:[#allocation5 + $0xc0] sm:$0xf] }
 0x85e   : > { %5024 = vmatpush.bf16.msrb.mxu0 %v8471_v4  ;;  %5037 = vmatpush.bf16.msrb.mxu1 %v8983_v20  ;;  %v4774_v11 = vpop.f32.mrf.mxu0  ;;  %v4787_v46 = vpop.f32.mrf.mxu1  ;;  %v10550_v52 = vld [vmem:[#allocation5 + $0xf4] sm:$0xf0] }
 0x85f   : > { %5050 = vmatpush.bf16.msra.mxu2 %v8475_v8  ;;  %5063 = vmatpush.bf16.msra.mxu3 %v8987_v9  ;;  %v4798_v4 = vpop.f32.mrf.mxu2  ;;  %v4811_v20 = vpop.f32.mrf.mxu3  ;;  %v8728_v8 = vld [vmem:[#allocation3 + $0x578] sm:$0xf0]  ;;  %v10580_v11 = vld [vmem:[#allocation5 + $0x1e4] sm:$0xf0]  ;;  %v9103_v46 = vor.u32 %v10532_v47, %v9102_v57  ;;  %v10530_v14 = vld [vmem:[#allocation5 + $0x54] sm:$0xf0] }
 0x860   : > { %v4799_v9 = vadd.f32 %v4798_v4, %v3352_v21  ;;  %v8731_v40 = vor.u32 %v10430_v7, %v8728_v8  ;;  %v10566_v21 = vld [vmem:[#allocation5 + $0x174] sm:$0xf0]  ;;  %v9230_v7 = vld [vmem:[#allocation5 + $0x160] sm:$0xf]  ;;  %v10564_v8 = vld [vmem:[#allocation5 + $0x164] sm:$0xf0] }
 0x861   : > { %v9231_v0 = vor.u32 %v10564_v8, %v9230_v7  ;;  %v10546_v19 = vld [vmem:[#allocation5 + $0xd4] sm:$0xf0]  ;;  %v10556_v8 = vld [vmem:[#allocation5 + $0x124] sm:$0xf0] }
 0x862   : > { %5025 = vmatpush.bf16.msrb.mxu0 %v8407_v16  ;;  %5038 = vmatpush.bf16.msrb.mxu1 %v8919_v18  ;;  %v12580_v16 = vadd.f32 %v4811_v20, %v4799_v9  ;;  %v8219_v18 = vor.u32 %v10302_v3, %v8216_v6  ;;  %v9239_v3 = vor.u32 %v10566_v21, %v9238_v56  ;;  %v9166_v20 = vld [vmem:[#allocation5 + $0xe0] sm:$0xf]  ;;  %v10548_v6 = vld [vmem:[#allocation5 + $0xe4] sm:$0xf0]  ;;  %v10562_v24 = vld [vmem:[#allocation5 + $0x154] sm:$0xf0] }
 0x863   : > { %5051 = vmatpush.bf16.msra.mxu2 %v8411_v26  ;;  %5064 = vmatpush.bf16.msra.mxu3 %v8923_v59  ;;  %v10414_v26 = vld [vmem:[#allocation3 + $0x4bc] sm:$0xf]  ;;  %v9294_v9 = vld [vmem:[#allocation5 + $0x1e0] sm:$0xf]  ;;  %v9223_v34 = vor.u32 %v10562_v24, %v9222_v23  ;;  %v10542_v56 = vld [vmem:[#allocation5 + $0xb4] sm:$0xf0] }
 0x864   : > { %v8664_v59 = vld [vmem:[#allocation3 + $0x4f8] sm:$0xf0]  ;;  %v9270_v21 = vld [vmem:[#allocation5 + $0x1b0] sm:$0xf]  ;;  %v10538_v23 = vld [vmem:[#allocation5 + $0x94] sm:$0xf0] }
 0x865   : > { %v8667_v38 = vor.u32 %v10414_v26, %v8664_v59  ;;  %v10578_v26 = vld [vmem:[#allocation5 + $0x1d4] sm:$0xf0]  ;;  %v9190_v24 = vld [vmem:[#allocation5 + $0x110] sm:$0xf] }
 0x866   : > { %5026 = vmatpush.bf16.msrb.mxu0 %v8343_v41  ;;  %5039 = vmatpush.bf16.msrb.mxu1 %v8855_v43  ;;  %v8088_v41 = vld [vmem:[#allocation3 + $0x78] sm:$0xf0]  ;;  %v9287_v35 = vor.u32 %v10578_v26, %v9286_v25  ;;  %v10554_v26 = vld [vmem:[#allocation5 + $0x114] sm:$0xf0] }
 0x867   : > { %5052 = vmatpush.bf16.msra.mxu2 %v8347_v44  ;;  %5065 = vmatpush.bf16.msra.mxu3 %v8859_v10  ;;  %v10398_v43 = vld [vmem:[#allocation3 + $0x43c] sm:$0xf]  ;;  %v4800_v29 = vpop.f32.mrf.mxu2  ;;  %v4813_v42 = vpop.f32.mrf.mxu3  ;;  %v9110_v10 = vld [vmem:[#allocation5 + $0x70] sm:$0xf]  ;;  %v8091_v63 = vor.u32 %v10270_v39, %v8088_v41  ;;  %v10560_v39 = vld [vmem:[#allocation5 + $0x144] sm:$0xf0] }
 0x868   : > { %v8600_v44 = vld [vmem:[#allocation3 + $0x478] sm:$0xf0]  ;;  %v9278_v41 = vld [vmem:[#allocation5 + $0x1c0] sm:$0xf] }
 0x869   : > { %v8603_v1 = vor.u32 %v10398_v43, %v8600_v44  ;;  %v10576_v43 = vld [vmem:[#allocation5 + $0x1c4] sm:$0xf0]  ;;  %v9078_v44 = vld [vmem:[#allocation5 + $0x30] sm:$0xf] }
 0x86a   : > { %5027 = vmatpush.bf16.msrb.mxu0 %v8279_v62  ;;  %5040 = vmatpush.bf16.msrb.mxu1 %v8791_v61  ;;  %v9302_v62 = vld [vmem:[#allocation5 + $0x1f0] sm:$0xf]  ;;  %v10582_v61 = vld [vmem:[#allocation5 + $0x1f4] sm:$0xf0] }
 0x86b   : > { %5053 = vmatpush.bf16.msra.mxu2 %v8283_v2  ;;  %5066 = vmatpush.bf16.msra.mxu3 %v8795_v28  ;;  %v9111_v2 = vor.u32 %v10534_v53, %v9110_v10  ;;  %v9175_v28 = vor.u32 %v10550_v52, %v9174_v55  ;;  %v9303_v4 = vor.u32 %v10582_v61, %v9302_v62  ;;  %v10526_v10 = vld [vmem:[#allocation5 + $0x34] sm:$0xf0]  ;;  %v9142_v52 = vld [vmem:[#allocation5 + $0xb0] sm:$0xf]  ;;  %v3350_v61 = vperm.slane %v12553_v58, 3 }
 0x86c   : > { %v9279_v55 = vor.u32 %v10576_v43, %v9278_v41  ;;  %v10574_v62 = vld [vmem:[#allocation5 + $0x1b4] sm:$0xf0]  ;;  %v10572_v58 = vld [vmem:[#allocation5 + $0x1a4] sm:$0xf0]  ;;  %v9182_v41 = vld [vmem:[#allocation5 + $0x100] sm:$0xf] }
 0x86d   : > { %v9271_v47 = vor.u32 %v10574_v62, %v9270_v21  ;;  %v4747_v25 = vadd.f32 %v12568_v17, %v3350_v61  ;;  %v10552_v43 = vld [vmem:[#allocation5 + $0x104] sm:$0xf0]  ;;  %v10630_v62 = vld [vmem:[#allocation5 + $0x374] sm:$0xf0]  ;;  %v9558_v61 = vld [vmem:[#allocation5 + $0x3f0] sm:$0xf] }
 0x86e   : > { %5028 = vmatpush.bf16.msrb.mxu0 %v8215_v22  ;;  %5041 = vmatpush.bf16.msrb.mxu1 %v8727_v13  ;;  %v9167_v22 = vor.u32 %v10548_v6, %v9166_v20  ;;  %v9094_v13 = vld [vmem:[#allocation5 + $0x50] sm:$0xf]  ;;  %v9198_v20 = vld [vmem:[#allocation5 + $0x120] sm:$0xf] }
 0x86f   : > { %5054 = vmatpush.bf16.msra.mxu2 %v8219_v18  ;;  %5067 = vmatpush.bf16.msra.mxu3 %v8731_v40  ;;  %v9295_v18 = vor.u32 %v10580_v11, %v9294_v9  ;;  %v9158_v40 = vld [vmem:[#allocation5 + $0xd0] sm:$0xf]  ;;  %v9095_v59 = vor.u32 %v10530_v14, %v9094_v13  ;;  %v9262_v9 = vld [vmem:[#allocation5 + $0x1a0] sm:$0xf]  ;;  %v4760_v17 = vadd.f32 %v12570_v49, %v4747_v25 }
 0x870   : > { %v9159_v30 = vor.u32 %v10546_v19, %v9158_v40  ;;  %v9062_v14 = vld [vmem:[#allocation5 + $0x10] sm:$0xf]  ;;  %v9263_v40 = vor.u32 %v10572_v58, %v9262_v9  ;;  %v9183_v49 = vor.u32 %v10552_v43, %v9182_v41 }
 0x871   : > { %v9126_v19 = vld [vmem:[#allocation5 + $0x90] sm:$0xf] }
 0x872   : > { %5029 = vmatpush.bf16.msrb.mxu0 %v8151_v45  ;;  %5042 = vmatpush.bf16.msrb.mxu1 %v8663_v33  ;;  %v9086_v45 = vld [vmem:[#allocation5 + $0x40] sm:$0xf]  ;;  %v10528_v33 = vld [vmem:[#allocation5 + $0x44] sm:$0xf0] }
 0x873   : > { %5055 = vmatpush.bf16.msra.mxu2 %v8155_v37  ;;  %5068 = vmatpush.bf16.msra.mxu3 %v8667_v38  ;;  %v10544_v37 = vld [vmem:[#allocation5 + $0xc4] sm:$0xf0]  ;;  %v9214_v38 = vld [vmem:[#allocation5 + $0x140] sm:$0xf] }
 0x874   : > { %v9151_v42 = vor.u32 %v10544_v37, %v9150_v32  ;;  %v9215_v53 = vor.u32 %v10560_v39, %v9214_v38  ;;  %v9118_v32 = vld [vmem:[#allocation5 + $0x80] sm:$0xf]  ;;  %v10536_v37 = vld [vmem:[#allocation5 + $0x84] sm:$0xf0]  ;;  %v9191_v38 = vor.u32 %v10554_v26, %v9190_v24 }
 0x875   : > { %v9119_v21 = vor.u32 %v10536_v37, %v9118_v32 }
 0x876   : > { %5030 = vmatpush.bf16.msrb.mxu0 %v8087_v5  ;;  %5043 = vmatpush.bf16.msrb.mxu1 %v8599_v50  ;;  %v12586_v29 = vpop.f32.mrf.mxu0  ;;  %v9206_v5 = vld [vmem:[#allocation5 + $0x130] sm:$0xf]  ;;  %v10558_v50 = vld [vmem:[#allocation5 + $0x134] sm:$0xf0] }
 0x877   : > { %5056 = vmatpush.bf16.msra.mxu2 %v8091_v63  ;;  %5069 = vmatpush.bf16.msra.mxu3 %v8603_v1  ;;  %v9079_v63 = vor.u32 %v10526_v10, %v9078_v44  ;;  %v9143_v1 = vor.u32 %v10542_v56, %v9142_v52  ;;  %v9207_v57 = vor.u32 %v10558_v50, %v9206_v5  ;;  %v10568_v10 = vld [vmem:[#allocation5 + $0x184] sm:$0xf0]  ;;  %v9430_v52 = vld [vmem:[#allocation5 + $0x2f0] sm:$0xf]  ;;  %v10614_v56 = vld [vmem:[#allocation5 + $0x2f4] sm:$0xf0] }
 0x878   : > { %v9494_v5 = vld [vmem:[#allocation5 + $0x370] sm:$0xf] }
 0x879   : > { %5031 = vmatmul.bf16.vlgmr.msrb.gmra.mxu0 %v12524_v31  ;;  %5044 = vmatmul.bf16.vlgmr.msrb.gmra.mxu1 %v12528_v54  ;;  %v9495_v9 = vor.u32 %v10630_v62, %v9494_v5 }
 0x87a   : > { %6649 = vmatpush.bf16.msra.mxu0 %v9111_v2  ;;  %6662 = vmatpush.bf16.msra.mxu1 %v9175_v28  ;;  %v9070_v2 = vld [vmem:[#allocation5 + $0x20] sm:$0xf]  ;;  %v10524_v28 = vld [vmem:[#allocation5 + $0x24] sm:$0xf0] }
 0x87b   : > { %6675 = vmatpush.bf16.msrb.mxu2 %v9239_v3  ;;  %6688 = vmatpush.bf16.msrb.mxu3 %v9303_v4  ;;  %v9134_v3 = vld [vmem:[#allocation5 + $0xa0] sm:$0xf]  ;;  %v10540_v4 = vld [vmem:[#allocation5 + $0xa4] sm:$0xf0] }
 0x87c   : > { %5057 = vmatmul.bf16.vlgmr.msra.gmra.mxu2 %v12524_v31  ;;  %5070 = vmatmul.bf16.vlgmr.msra.gmra.mxu3 %v12528_v54  ;;  %v12588_v31 = vpop.f32.mrf.mxu1  ;;  %v9087_v54 = vor.u32 %v10528_v33, %v9086_v45  ;;  %v9135_v13 = vor.u32 %v10540_v4, %v9134_v3  ;;  %v9054_v45 = vld [vmem:[#allocation5] sm:$0xf]  ;;  %v9431_v4 = vor.u32 %v10614_v56, %v9430_v52 }
 0x87e   : > { %6650 = vmatpush.bf16.msra.mxu0 %v9103_v46  ;;  %6663 = vmatpush.bf16.msra.mxu1 %v9167_v22  ;;  %v4826_v11 = vpop.f32.mrf.mxu0  ;;  %v9071_v22 = vor.u32 %v10524_v28, %v9070_v2  ;;  %v5076_v2 = vmax.f32 %v12563_v51, 0.0  ;;  %v9550_v51 = vld [vmem:[#allocation5 + $0x3e0] sm:$0xf] }
 0x87f   : > { %6676 = vmatpush.bf16.msrb.mxu2 %v9231_v0  ;;  %6689 = vmatpush.bf16.msrb.mxu3 %v9295_v18  ;;  %v12591_v6 = vpop.f32.mrf.mxu2  ;;  %v12593_v7 = vpop.f32.mrf.mxu3  ;;  %v10522_v0 = vld [vmem:[#allocation5 + $0x14] sm:$0xf0]  ;;  %v9199_v18 = vor.u32 %v10556_v8, %v9198_v20  ;;  %v9358_v20 = vld [vmem:[#allocation5 + $0x260] sm:$0xf]  ;;  %v10596_v8 = vld [vmem:[#allocation5 + $0x264] sm:$0xf0] }
 0x880   : > { %v9063_v33 = vor.u32 %v10522_v0, %v9062_v14  ;;  %v9422_v11 = vld [vmem:[#allocation5 + $0x2e0] sm:$0xf]  ;;  %v12602_v0 = vpack.c.bf16 %v5076_v2, %v5076_v2  ;;  %v9462_v2 = vld [vmem:[#allocation5 + $0x330] sm:$0xf] }
 0x882   : > { %6651 = vmatpush.bf16.msra.mxu0 %v9095_v59  ;;  %6664 = vmatpush.bf16.msra.mxu1 %v9159_v30  ;;  %v9254_v59 = vld [vmem:[#allocation5 + $0x190] sm:$0xf]  ;;  %v10570_v30 = vld [vmem:[#allocation5 + $0x194] sm:$0xf0] }
 0x883   : > { %6677 = vmatpush.bf16.msrb.mxu2 %v9223_v34  ;;  %6690 = vmatpush.bf16.msrb.mxu3 %v9287_v35  ;;  %v9127_v34 = vor.u32 %v10538_v23, %v9126_v19  ;;  %v10520_v35 = vld [vmem:[#allocation5 + $0x4] sm:$0xf0]  ;;  %v9255_v39 = vor.u32 %v10570_v30, %v9254_v59  ;;  %v9350_v19 = vld [vmem:[#allocation5 + $0x250] sm:$0xf]  ;;  %v10594_v23 = vld [vmem:[#allocation5 + $0x254] sm:$0xf0] }
 0x884   : > { %v4839_v46 = vpop.f32.mrf.mxu1  ;;  %v9055_v50 = vor.u32 %v10520_v35, %v9054_v45  ;;  %v9414_v59 = vld [vmem:[#allocation5 + $0x2d0] sm:$0xf]  ;;  %v10610_v30 = vld [vmem:[#allocation5 + $0x2d4] sm:$0xf0]  ;;  %v9351_v32 = vor.u32 %v10594_v23, %v9350_v19  ;;  %v9518_v19 = vld [vmem:[#allocation5 + $0x3a0] sm:$0xf] }
 0x885   : > { %v10612_v46 = vld [vmem:[#allocation5 + $0x2e4] sm:$0xf0]  ;;  %v9478_v45 = vld [vmem:[#allocation5 + $0x350] sm:$0xf]  ;;  %v10642_v35 = vld [vmem:[#allocation5 + $0x3d4] sm:$0xf0]  ;;  %v9415_v37 = vor.u32 %v10610_v30, %v9414_v59 }
 0x886   : > { %6652 = vmatpush.bf16.msra.mxu0 %v9087_v54  ;;  %6665 = vmatpush.bf16.msra.mxu1 %v9151_v42  ;;  %v9246_v54 = vld [vmem:[#allocation5 + $0x180] sm:$0xf]  ;;  %v10636_v23 = vld [vmem:[#allocation5 + $0x3a4] sm:$0xf0] }
 0x887   : > { %6678 = vmatpush.bf16.msrb.mxu2 %v9215_v53  ;;  %6691 = vmatpush.bf16.msrb.mxu3 %v9279_v55  ;;  %v4852_v42 = vpop.f32.mrf.mxu2  ;;  %v4865_v44 = vpop.f32.mrf.mxu3  ;;  %v9366_v53 = vld [vmem:[#allocation5 + $0x270] sm:$0xf]  ;;  %v10598_v55 = vld [vmem:[#allocation5 + $0x274] sm:$0xf0]  ;;  %v9247_v28 = vor.u32 %v10568_v10, %v9246_v54  ;;  %v9406_v54 = vld [vmem:[#allocation5 + $0x2c0] sm:$0xf] }
 0x888   : > { %v9367_v3 = vor.u32 %v10598_v55, %v9366_v53  ;;  %v9470_v42 = vld [vmem:[#allocation5 + $0x340] sm:$0xf]  ;;  %v10624_v44 = vld [vmem:[#allocation5 + $0x344] sm:$0xf0] }
 0x889   : > { %v9534_v10 = vld [vmem:[#allocation5 + $0x3c0] sm:$0xf]  ;;  %v10640_v53 = vld [vmem:[#allocation5 + $0x3c4] sm:$0xf0]  ;;  %v9471_v62 = vor.u32 %v10624_v44, %v9470_v42 }
 0x88a   : > { %6653 = vmatpush.bf16.msra.mxu0 %v9079_v63  ;;  %6666 = vmatpush.bf16.msra.mxu1 %v9143_v1  ;;  %v10646_v63 = vld [vmem:[#allocation5 + $0x3f4] sm:$0xf0]  ;;  %v5075_v1 = vmax.f32 %v12560_v27, 0.0  ;;  %v10628_v27 = vld [vmem:[#allocation5 + $0x364] sm:$0xf0] }
 0x88b   : > { %6679 = vmatpush.bf16.msrb.mxu2 %v9207_v57  ;;  %6692 = vmatpush.bf16.msrb.mxu3 %v9271_v47  ;;  %v5077_v57 = vmax.f32 %v12566_v36, 0.0  ;;  %v5078_v47 = vmax.f32 %v4760_v17, 0.0  ;;  %v9559_v58 = vor.u32 %v10646_v63, %v9558_v61  ;;  %v10608_v17 = vld [vmem:[#allocation5 + $0x2c4] sm:$0xf0]  ;;  %v9535_v61 = vor.u32 %v10640_v53, %v9534_v10  ;;  %v9398_v63 = vld [vmem:[#allocation5 + $0x2b0] sm:$0xf] }
 0x88c   : > { %v12600_v14 = vpack.c.bf16 %v5075_v1, %v5075_v1  ;;  %v9407_v5 = vor.u32 %v10608_v17, %v9406_v54  ;;  %v10606_v1 = vld [vmem:[#allocation5 + $0x2b4] sm:$0xf0]  ;;  %v9510_v54 = vld [vmem:[#allocation5 + $0x390] sm:$0xf]  ;;  %v9310_v42 = vld [vmem:[#allocation5 + $0x200] sm:$0xf] }
 0x88d   : > { %v12604_v36 = vpack.c.bf16 %v5077_v57, %v5077_v57  ;;  %v12606_v24 = vpack.c.bf16 %v5078_v47, %v5078_v47  ;;  %v10638_v57 = vld [vmem:[#allocation5 + $0x3b4] sm:$0xf0]  ;;  %v10858_v47 = vld [vmem:[%s12749_s13] sm:$0xff]  ;;  %v10584_v53 = vld [vmem:[#allocation5 + $0x204] sm:$0xf0] }
 0x88e   : > { %6654 = vmatpush.bf16.msra.mxu0 %v9071_v22  ;;  %6667 = vmatpush.bf16.msra.mxu1 %v9135_v13  ;;  %v9486_v22 = vld [vmem:[#allocation5 + $0x360] sm:$0xf]  ;;  %v10644_v13 = vld [vmem:[#allocation5 + $0x3e4] sm:$0xf0]  ;;  %v10634_v17 = vld [vmem:[#allocation5 + $0x394] sm:$0xf0] }
 0x88f   : > { %6680 = vmatpush.bf16.msrb.mxu2 %v9199_v18  ;;  %6693 = vmatpush.bf16.msrb.mxu3 %v9263_v40  ;;  %v9359_v18 = vor.u32 %v10596_v8, %v9358_v20  ;;  %v9423_v40 = vor.u32 %v10612_v46, %v9422_v11  ;;  %v9487_v25 = vor.u32 %v10628_v27, %v9486_v22  ;;  %v9390_v22 = vld [vmem:[#allocation5 + $0x2a0] sm:$0xf]  ;;  %v10604_v27 = vld [vmem:[#allocation5 + $0x2a4] sm:$0xf0] }
 0x890   : > { %v9551_v26 = vor.u32 %v10644_v13, %v9550_v51  ;;  %v9399_v8 = vor.u32 %v10606_v1, %v9398_v63  ;;  %v9454_v51 = vld [vmem:[#allocation5 + $0x320] sm:$0xf]  ;;  %v9391_v30 = vor.u32 %v10604_v27, %v9390_v22 }
 0x892   : > { %6655 = vmatpush.bf16.msra.mxu0 %v9063_v33  ;;  %6668 = vmatpush.bf16.msra.mxu1 %v9127_v34  ;;  %v10626_v33 = vld [vmem:[#allocation5 + $0x354] sm:$0xf0]  ;;  %v9542_v34 = vld [vmem:[#allocation5 + $0x3d0] sm:$0xf] }
 0x893   : > { %6681 = vmatpush.bf16.msrb.mxu2 %v9191_v38  ;;  %6694 = vmatpush.bf16.msrb.mxu3 %v9255_v39  ;;  %v9342_v38 = vld [vmem:[#allocation5 + $0x240] sm:$0xf]  ;;  %v10592_v39 = vld [vmem:[#allocation5 + $0x244] sm:$0xf0]  ;;  %v9479_v41 = vor.u32 %v10626_v33, %v9478_v45  ;;  %v9543_v43 = vor.u32 %v10642_v35, %v9542_v34  ;;  %v9318_v45 = vld [vmem:[#allocation5 + $0x210] sm:$0xf]  ;;  %v9519_v35 = vor.u32 %v10636_v23, %v9518_v19 }
 0x894   : > { %v9343_v56 = vor.u32 %v10592_v39, %v9342_v38  ;;  %v10586_v33 = vld [vmem:[#allocation5 + $0x214] sm:$0xf0]  ;;  %v9446_v38 = vld [vmem:[#allocation5 + $0x310] sm:$0xf]  ;;  %v9614_v23 = vld [vmem:[#allocation5 + $0x460] sm:$0xf] }
 0x895   : > { %v9319_v44 = vor.u32 %v10586_v33, %v9318_v45  ;;  %v10676_v45 = vld [vmem:[#allocation5 + $0x4e4] sm:$0xf0]  ;;  %v9742_v33 = vld [vmem:[#allocation5 + $0x560] sm:$0xf] }
 0x896   : > { %6656 = vmatpush.bf16.msra.mxu0 %v9055_v50  ;;  %6669 = vmatpush.bf16.msra.mxu1 %v9119_v21  ;;  %v12612_v55 = vpop.f32.mrf.mxu0  ;;  %v12614_v52 = vpop.f32.mrf.mxu1  ;;  %v9334_v50 = vld [vmem:[#allocation5 + $0x230] sm:$0xf]  ;;  %v10590_v21 = vld [vmem:[#allocation5 + $0x234] sm:$0xf0] }
 0x897   : > { %6682 = vmatpush.bf16.msrb.mxu2 %v9183_v49  ;;  %6695 = vmatpush.bf16.msrb.mxu3 %v9247_v28  ;;  %v10622_v49 = vld [vmem:[#allocation5 + $0x334] sm:$0xf0]  ;;  %v9526_v28 = vld [vmem:[#allocation5 + $0x3b0] sm:$0xf]  ;;  %v9335_v20 = vor.u32 %v10590_v21, %v9334_v50  ;;  %v9511_v21 = vor.u32 %v10634_v17, %v9510_v54 }
 0x898   : > { %v9463_v11 = vor.u32 %v10622_v49, %v9462_v2  ;;  %v9527_v46 = vor.u32 %v10638_v57, %v9526_v28  ;;  %v10632_v49 = vld [vmem:[#allocation5 + $0x384] sm:$0xf0]  ;;  %v9622_v28 = vld [vmem:[#allocation5 + $0x470] sm:$0xf]  ;;  %v10662_v57 = vld [vmem:[#allocation5 + $0x474] sm:$0xf0] }
 0x899   : > { %6657 = vmatmul.bf16.vlgmr.msra.gmra.mxu0 %v12600_v14  ;;  %6670 = vmatmul.bf16.vlgmr.msra.gmra.mxu1 %v12602_v0 }
 0x89a   : > { %6701 = vmatpush.bf16.msrb.mxu0 %v9367_v3  ;;  %6714 = vmatpush.bf16.msrb.mxu1 %v9431_v4  ;;  %v3353_v3 = vperm.slane %v10858_v47, 6  ;;  %v3354_v4 = vperm.slane %v10858_v47, 7  ;;  %v9686_v47 = vld [vmem:[#allocation5 + $0x4f0] sm:$0xf] }
 0x89b   : > { %6727 = vmatpush.bf16.msra.mxu2 %v9495_v9  ;;  %6740 = vmatpush.bf16.msra.mxu3 %v9559_v58  ;;  %v9326_v9 = vld [vmem:[#allocation5 + $0x220] sm:$0xf]  ;;  %v10588_v58 = vld [vmem:[#allocation5 + $0x224] sm:$0xf0] }
 0x89c   : > { %6683 = vmatmul.bf16.vlgmr.msrb.gmra.mxu2 %v12604_v36  ;;  %6696 = vmatmul.bf16.vlgmr.msrb.gmra.mxu3 %v12606_v24  ;;  %v9327_v59 = vor.u32 %v10588_v58, %v9326_v9  ;;  %v4825_v39 = vadd.f32 %v12586_v29, %v3353_v3  ;;  %v9502_v29 = vld [vmem:[#allocation5 + $0x380] sm:$0xf]  ;;  %v10678_v3 = vld [vmem:[#allocation5 + $0x4f4] sm:$0xf0]  ;;  %v9814_v58 = vld [vmem:[#allocation5 + $0x5f0] sm:$0xf] }
 0x89d   : > { %v10694_v9 = vld [vmem:[#allocation5 + $0x574] sm:$0xf0]  ;;  %v9503_v22 = vor.u32 %v10632_v49, %v9502_v29  ;;  %v9687_v19 = vor.u32 %v10678_v3, %v9686_v47  ;;  %v10656_v29 = vld [vmem:[#allocation5 + $0x444] sm:$0xf0]  ;;  %v9726_v49 = vld [vmem:[#allocation5 + $0x540] sm:$0xf] }
 0x89e   : > { %6702 = vmatpush.bf16.msrb.mxu0 %v9359_v18  ;;  %6715 = vmatpush.bf16.msrb.mxu1 %v9423_v40  ;;  %v10620_v40 = vld [vmem:[#allocation5 + $0x324] sm:$0xf0] }
 0x89f   : > { %6728 = vmatpush.bf16.msra.mxu2 %v9487_v25  ;;  %6741 = vmatpush.bf16.msra.mxu3 %v9551_v26  ;;  %v12619_v13 = vpop.f32.mrf.mxu2  ;;  %v12621_v18 = vpop.f32.mrf.mxu3  ;;  %v9455_v34 = vor.u32 %v10620_v40, %v9454_v51  ;;  %v9623_v40 = vor.u32 %v10662_v57, %v9622_v28  ;;  %v10688_v28 = vld [vmem:[#allocation5 + $0x544] sm:$0xf0]  ;;  %v9790_v57 = vld [vmem:[#allocation5 + $0x5c0] sm:$0xf] }
 0x8a0   : > { %v4878_v25 = vpop.f32.mrf.mxu0  ;;  %v4891_v26 = vpop.f32.mrf.mxu1  ;;  %v10704_v47 = vld [vmem:[#allocation5 + $0x5c4] sm:$0xf0] }
 0x8a1   : > { %v10660_v25 = vld [vmem:[#allocation5 + $0x464] sm:$0xf0] }
 0x8a2   : > { %6703 = vmatpush.bf16.msrb.mxu0 %v9351_v32  ;;  %6716 = vmatpush.bf16.msrb.mxu1 %v9415_v37  ;;  %v9382_v32 = vld [vmem:[#allocation5 + $0x290] sm:$0xf]  ;;  %v10602_v37 = vld [vmem:[#allocation5 + $0x294] sm:$0xf0] }
 0x8a3   : > { %6729 = vmatpush.bf16.msra.mxu2 %v9479_v41  ;;  %6742 = vmatpush.bf16.msra.mxu3 %v9543_v43  ;;  %v4851_v41 = vadd.f32 %v12591_v6, %v3354_v4  ;;  %v10618_v43 = vld [vmem:[#allocation5 + $0x314] sm:$0xf0]  ;;  %v9383_v10 = vor.u32 %v10602_v37, %v9382_v32  ;;  %v4838_v6 = vadd.f32 %v12588_v31, %v4825_v39  ;;  %v9750_v4 = vld [vmem:[#allocation5 + $0x570] sm:$0xf]  ;;  %v5080_v31 = vmax.f32 %v12580_v16, 0.0 }
 0x8a4   : > { %v9447_v50 = vor.u32 %v10618_v43, %v9446_v38  ;;  %v9751_v26 = vor.u32 %v10694_v9, %v9750_v4  ;;  %v10708_v16 = vld [vmem:[#allocation5 + $0x5e4] sm:$0xf0]  ;;  %v9615_v38 = vor.u32 %v10660_v25, %v9614_v23  ;;  %v10658_v43 = vld [vmem:[#allocation5 + $0x454] sm:$0xf0] }
 0x8a5   : > { %v4864_v63 = vadd.f32 %v12593_v7, %v4851_v41  ;;  %v5081_v27 = vmax.f32 %v4838_v6, 0.0  ;;  %v12631_v32 = vpack.c.bf16 %v5080_v31, %v5080_v31  ;;  %v9606_v41 = vld [vmem:[#allocation5 + $0x450] sm:$0xf]  ;;  %v9791_v31 = vor.u32 %v10704_v47, %v9790_v57  ;;  %v10698_v47 = vld [vmem:[#allocation5 + $0x594] sm:$0xf0] }
 0x8a6   : > { %6704 = vmatpush.bf16.msrb.mxu0 %v9343_v56  ;;  %6717 = vmatpush.bf16.msrb.mxu1 %v9407_v5  ;;  %v9374_v56 = vld [vmem:[#allocation5 + $0x280] sm:$0xf]  ;;  %v10600_v5 = vld [vmem:[#allocation5 + $0x284] sm:$0xf0]  ;;  %v9766_v57 = vld [vmem:[#allocation5 + $0x590] sm:$0xf] }
 0x8a7   : > { %6730 = vmatpush.bf16.msra.mxu2 %v9471_v62  ;;  %6743 = vmatpush.bf16.msra.mxu3 %v9535_v61  ;;  %v9438_v62 = vld [vmem:[#allocation5 + $0x300] sm:$0xf]  ;;  %v10616_v61 = vld [vmem:[#allocation5 + $0x304] sm:$0xf0]  ;;  %v4904_v1 = vpop.f32.mrf.mxu2  ;;  %v4917_v2 = vpop.f32.mrf.mxu3  ;;  %v5082_v51 = vmax.f32 %v4864_v63, 0.0  ;;  %v12633_v37 = vpack.c.bf16 %v5081_v27, %v5081_v27 }
 0x8a8   : > { %v9439_v7 = vor.u32 %v10616_v61, %v9438_v62  ;;  %v9598_v61 = vld [vmem:[#allocation5 + $0x440] sm:$0xf]  ;;  %v10672_v2 = vld [vmem:[#allocation5 + $0x4c4] sm:$0xf0]  ;;  %v9718_v27 = vld [vmem:[#allocation5 + $0x530] sm:$0xf] }
 0x8a9   : > { %v12635_v54 = vpack.c.bf16 %v5082_v51, %v5082_v51  ;;  %v9662_v1 = vld [vmem:[#allocation5 + $0x4c0] sm:$0xf]  ;;  %v10686_v51 = vld [vmem:[#allocation5 + $0x534] sm:$0xf0] }
 0x8aa   : > { %6705 = vmatpush.bf16.msrb.mxu0 %v9335_v20  ;;  %6718 = vmatpush.bf16.msrb.mxu1 %v9399_v8  ;;  %v9311_v20 = vor.u32 %v10584_v53, %v9310_v42  ;;  %v9375_v8 = vor.u32 %v10600_v5, %v9374_v56  ;;  %v9734_v53 = vld [vmem:[#allocation5 + $0x550] sm:$0xf]  ;;  %v10690_v56 = vld [vmem:[#allocation5 + $0x554] sm:$0xf0]  ;;  %v9663_v9 = vor.u32 %v10672_v2, %v9662_v1 }
 0x8ab   : > { %6731 = vmatpush.bf16.msra.mxu2 %v9463_v11  ;;  %6744 = vmatpush.bf16.msra.mxu3 %v9527_v46  ;;  %v10710_v11 = vld [vmem:[#allocation5 + $0x5f4] sm:$0xf0]  ;;  %v5079_v46 = vmax.f32 %v12577_v48, 0.0  ;;  %v10692_v48 = vld [vmem:[#allocation5 + $0x564] sm:$0xf0]  ;;  %v9735_v6 = vor.u32 %v10690_v56, %v9734_v53 }
 0x8ac   : > { %v9743_v17 = vor.u32 %v10692_v48, %v9742_v33  ;;  %v9798_v5 = vld [vmem:[#allocation5 + $0x5d0] sm:$0xf]  ;;  %v9719_v33 = vor.u32 %v10686_v51, %v9718_v27  ;;  %v10666_v2 = vld [vmem:[#allocation5 + $0x494] sm:$0xf0]  ;;  %v9767_v51 = vor.u32 %v10698_v47, %v9766_v57 }
 0x8ad   : > { %v9638_v1 = vld [vmem:[#allocation5 + $0x490] sm:$0xf] }
 0x8ae   : > { %6706 = vmatpush.bf16.msrb.mxu0 %v9327_v59  ;;  %6719 = vmatpush.bf16.msrb.mxu1 %v9391_v30  ;;  %v9815_v59 = vor.u32 %v10710_v11, %v9814_v58  ;;  %v9678_v30 = vld [vmem:[#allocation5 + $0x4e0] sm:$0xf]  ;;  %v9590_v58 = vld [vmem:[#allocation5 + $0x430] sm:$0xf]  ;;  %v10654_v11 = vld [vmem:[#allocation5 + $0x434] sm:$0xf0] }
 0x8af   : > { %6732 = vmatpush.bf16.msra.mxu2 %v9455_v34  ;;  %6745 = vmatpush.bf16.msra.mxu3 %v9519_v35  ;;  %v9806_v34 = vld [vmem:[#allocation5 + $0x5e0] sm:$0xf]  ;;  %v12629_v35 = vpack.c.bf16 %v5079_v46, %v5079_v46  ;;  %v9679_v39 = vor.u32 %v10676_v45, %v9678_v30  ;;  %v9727_v46 = vor.u32 %v10688_v28, %v9726_v49  ;;  %v10652_v45 = vld [vmem:[#allocation5 + $0x424] sm:$0xf0]  ;;  %v9702_v49 = vld [vmem:[#allocation5 + $0x510] sm:$0xf] }
 0x8b0   : > { %v9807_v42 = vor.u32 %v10708_v16, %v9806_v34  ;;  %v9582_v30 = vld [vmem:[#allocation5 + $0x420] sm:$0xf]  ;;  %v10668_v16 = vld [vmem:[#allocation5 + $0x4a4] sm:$0xf0]  ;;  %v10682_v28 = vld [vmem:[#allocation5 + $0x514] sm:$0xf0] }
 0x8b1   : > { %v9646_v34 = vld [vmem:[#allocation5 + $0x4a0] sm:$0xf]  ;;  %v9703_v27 = vor.u32 %v10682_v28, %v9702_v49 }
 0x8b2   : > { %6707 = vmatpush.bf16.msrb.mxu0 %v9319_v44  ;;  %6720 = vmatpush.bf16.msrb.mxu1 %v9383_v10  ;;  %v9670_v44 = vld [vmem:[#allocation5 + $0x4d0] sm:$0xf]  ;;  %v10674_v10 = vld [vmem:[#allocation5 + $0x4d4] sm:$0xf0] }
 0x8b3   : > { %6733 = vmatpush.bf16.msra.mxu2 %v9447_v50  ;;  %6746 = vmatpush.bf16.msra.mxu3 %v9511_v21  ;;  %v10706_v50 = vld [vmem:[#allocation5 + $0x5d4] sm:$0xf0]  ;;  %v9607_v21 = vor.u32 %v10658_v43, %v9606_v41  ;;  %v9671_v62 = vor.u32 %v10674_v10, %v9670_v44  ;;  %v10684_v43 = vld [vmem:[#allocation5 + $0x524] sm:$0xf0] }
 0x8b4   : > { %v9799_v63 = vor.u32 %v10706_v50, %v9798_v5  ;;  %v9583_v50 = vor.u32 %v10652_v45, %v9582_v30 }
 0x8b6   : > { %6708 = vmatpush.bf16.msrb.mxu0 %v9311_v20  ;;  %6721 = vmatpush.bf16.msrb.mxu1 %v9375_v8  ;;  %v4928_v3 = vpop.f32.mrf.mxu0  ;;  %v12641_v4 = vpop.f32.mrf.mxu1  ;;  %v12646_v20 = vld [vmem:[%s12749_s13 + $0x8] sm:$0xff]  ;;  %v9599_v8 = vor.u32 %v10656_v29, %v9598_v61  ;;  %v10650_v61 = vld [vmem:[#allocation5 + $0x414] sm:$0xf0] }
 0x8b7   : > { %6734 = vmatpush.bf16.msra.mxu2 %v9439_v7  ;;  %6747 = vmatpush.bf16.msra.mxu3 %v9503_v22  ;;  %v9654_v7 = vld [vmem:[#allocation5 + $0x4b0] sm:$0xf]  ;;  %v10670_v22 = vld [vmem:[#allocation5 + $0x4b4] sm:$0xf0]  ;;  %v3355_v23 = vperm.slane %v12646_v20, 0  ;;  %v3356_v25 = vperm.slane %v12646_v20, 1 }
 0x8b8   : > { %v3357_v44 = vperm.slane %v12646_v20, 2  ;;  %v3358_v10 = vperm.slane %v12646_v20, 3 }
 0x8b9   : > { %6709 = vmatmul.bf16.vlgmr.msrb.gmra.mxu0 %v12629_v35  ;;  %6722 = vmatmul.bf16.vlgmr.msrb.gmra.mxu1 %v12631_v32  ;;  %v4877_v5 = vadd.f32 %v12612_v55, %v3355_v23  ;;  %v4903_v29 = vadd.f32 %v12619_v13, %v3356_v25  ;;  %v10648_v13 = vld [vmem:[#allocation5 + $0x404] sm:$0xf0] }
 0x8ba   : > { %6753 = vmatpush.bf16.msra.mxu0 %v9623_v40  ;;  %6766 = vmatpush.bf16.msra.mxu1 %v9687_v19  ;;  %v9782_v40 = vld [vmem:[#allocation5 + $0x5b0] sm:$0xf]  ;;  %v10702_v19 = vld [vmem:[#allocation5 + $0x5b4] sm:$0xf0] }
 0x8bb   : > { %6779 = vmatpush.bf16.msrb.mxu2 %v9751_v26  ;;  %6792 = vmatpush.bf16.msrb.mxu3 %v9815_v59  ;;  %v9591_v26 = vor.u32 %v10654_v11, %v9590_v58  ;;  %v9655_v59 = vor.u32 %v10670_v22, %v9654_v7  ;;  %v9783_v48 = vor.u32 %v10702_v19, %v9782_v40  ;;  %v10664_v7 = vld [vmem:[#allocation5 + $0x484] sm:$0xf0]  ;;  %v9694_v40 = vld [vmem:[#allocation5 + $0x500] sm:$0xf] }
 0x8bc   : > { %6735 = vmatmul.bf16.vlgmr.msra.gmra.mxu2 %v12633_v37  ;;  %6748 = vmatmul.bf16.vlgmr.msra.gmra.mxu3 %v12635_v54  ;;  %v4890_v58 = vadd.f32 %v12614_v52, %v4877_v5  ;;  %v4916_v22 = vadd.f32 %v12621_v18, %v4903_v29  ;;  %v10680_v19 = vld [vmem:[#allocation5 + $0x504] sm:$0xf0]  ;;  %v9878_v52 = vld [vmem:[#allocation5 + $0x670] sm:$0xf]  ;;  %v9934_v5 = vld [vmem:[#allocation5 + $0x6e0] sm:$0xf] }
 0x8be   : > { %6754 = vmatpush.bf16.msra.mxu0 %v9615_v38  ;;  %6767 = vmatpush.bf16.msra.mxu1 %v9679_v39  ;;  %v9710_v38 = vld [vmem:[#allocation5 + $0x520] sm:$0xf]  ;;  %v4930_v53 = vpop.f32.mrf.mxu0  ;;  %v4943_v56 = vpop.f32.mrf.mxu1 }
 0x8bf   : > { %6780 = vmatpush.bf16.msrb.mxu2 %v9743_v17  ;;  %6793 = vmatpush.bf16.msrb.mxu3 %v9807_v42  ;;  %v4954_v39 = vpop.f32.mrf.mxu2  ;;  %v4967_v41 = vpop.f32.mrf.mxu3  ;;  %v9774_v17 = vld [vmem:[#allocation5 + $0x5a0] sm:$0xf]  ;;  %v10700_v42 = vld [vmem:[#allocation5 + $0x5a4] sm:$0xf0] }
 0x8c0   : > { %v4955_v55 = vadd.f32 %v4954_v39, %v3358_v10  ;;  %v10070_v39 = vld [vmem:[#allocation5 + $0x7f0] sm:$0xf]  ;;  %v9870_v53 = vld [vmem:[#allocation5 + $0x660] sm:$0xf] }
 0x8c2   : > { %6755 = vmatpush.bf16.msra.mxu0 %v9607_v21  ;;  %6768 = vmatpush.bf16.msra.mxu1 %v9671_v62  ;;  %v9647_v21 = vor.u32 %v10668_v16, %v9646_v34  ;;  %v9574_v62 = vld [vmem:[#allocation5 + $0x410] sm:$0xf]  ;;  %v4968_v45 = vadd.f32 %v4967_v41, %v4955_v55  ;;  %v10724_v41 = vld [vmem:[#allocation5 + $0x664] sm:$0xf0] }
 0x8c3   : > { %6781 = vmatpush.bf16.msrb.mxu2 %v9735_v6  ;;  %6794 = vmatpush.bf16.msrb.mxu3 %v9799_v63  ;;  %v9711_v6 = vor.u32 %v10684_v43, %v9710_v38  ;;  %v9775_v63 = vor.u32 %v10700_v42, %v9774_v17  ;;  %v9575_v11 = vor.u32 %v10650_v61, %v9574_v62  ;;  %v10006_v34 = vld [vmem:[#allocation5 + $0x770] sm:$0xf]  ;;  %v10758_v38 = vld [vmem:[#allocation5 + $0x774] sm:$0xf0]  ;;  %v5083_v17 = vmax.f32 %v4890_v58, 0.0 }
 0x8c4   : > { %v10774_v43 = vld [vmem:[#allocation5 + $0x7f4] sm:$0xf0]  ;;  %v5084_v42 = vmax.f32 %v4916_v22, 0.0  ;;  %v5086_v62 = vmax.f32 %v4968_v45, 0.0  ;;  %v10007_v61 = vor.u32 %v10758_v38, %v10006_v34  ;;  %v9871_v57 = vor.u32 %v10724_v41, %v9870_v53  ;;  %v9862_v55 = vld [vmem:[#allocation5 + $0x650] sm:$0xf] }
 0x8c5   : > { %v10071_v29 = vor.u32 %v10774_v43, %v10070_v39  ;;  %v12657_v49 = vpack.c.bf16 %v5083_v17, %v5083_v17  ;;  %v10754_v22 = vld [vmem:[#allocation5 + $0x754] sm:$0xf0]  ;;  %v10752_v45 = vld [vmem:[#allocation5 + $0x744] sm:$0xf0]  ;;  %v9846_v39 = vld [vmem:[#allocation5 + $0x630] sm:$0xf] }
 0x8c6   : > { %6756 = vmatpush.bf16.msra.mxu0 %v9599_v8  ;;  %6769 = vmatpush.bf16.msra.mxu1 %v9663_v9  ;;  %v4929_v8 = vadd.f32 %v4928_v3, %v3357_v44  ;;  %v9566_v9 = vld [vmem:[#allocation5 + $0x400] sm:$0xf]  ;;  %v9695_v44 = vor.u32 %v10680_v19, %v9694_v40  ;;  %v12659_v28 = vpack.c.bf16 %v5084_v42, %v5084_v42  ;;  %v10718_v43 = vld [vmem:[#allocation5 + $0x634] sm:$0xf0]  ;;  %v9974_v53 = vld [vmem:[#allocation5 + $0x730] sm:$0xf] }
 0x8c7   : > { %6782 = vmatpush.bf16.msrb.mxu2 %v9727_v46  ;;  %6795 = vmatpush.bf16.msrb.mxu3 %v9791_v31  ;;  %v9639_v46 = vor.u32 %v10666_v2, %v9638_v1  ;;  %v9630_v31 = vld [vmem:[#allocation5 + $0x480] sm:$0xf]  ;;  %v4956_v23 = vpop.f32.mrf.mxu2  ;;  %v4969_v25 = vpop.f32.mrf.mxu3  ;;  %v9567_v18 = vor.u32 %v10648_v13, %v9566_v9  ;;  %v10772_v2 = vld [vmem:[#allocation5 + $0x7e4] sm:$0xf0]  ;;  %v10722_v9 = vld [vmem:[#allocation5 + $0x654] sm:$0xf0] }
 0x8c8   : > { %v9758_v3 = vld [vmem:[#allocation5 + $0x580] sm:$0xf]  ;;  %v4942_v30 = vadd.f32 %v12641_v4, %v4929_v8  ;;  %v9631_v16 = vor.u32 %v10664_v7, %v9630_v31  ;;  %v9926_v13 = vld [vmem:[#allocation5 + $0x6d0] sm:$0xf]  ;;  %v10738_v31 = vld [vmem:[#allocation5 + $0x6d4] sm:$0xf0]  ;;  %v9863_v40 = vor.u32 %v10722_v9, %v9862_v55 }
 0x8c9   : > { %v10062_v1 = vld [vmem:[#allocation5 + $0x7e0] sm:$0xf]  ;;  %v9990_v7 = vld [vmem:[#allocation5 + $0x750] sm:$0xf]  ;;  %v9927_v19 = vor.u32 %v10738_v31, %v9926_v13  ;;  %v10720_v23 = vld [vmem:[#allocation5 + $0x644] sm:$0xf0] }
 0x8ca   : > { %6757 = vmatpush.bf16.msra.mxu0 %v9591_v26  ;;  %6770 = vmatpush.bf16.msra.mxu1 %v9655_v59  ;;  %v10696_v26 = vld [vmem:[#allocation5 + $0x584] sm:$0xf0]  ;;  %v10726_v59 = vld [vmem:[#allocation5 + $0x674] sm:$0xf0]  ;;  %v9991_v25 = vor.u32 %v10754_v22, %v9990_v7  ;;  %v10030_v9 = vld [vmem:[#allocation5 + $0x7a0] sm:$0xf] }
 0x8cb   : > { %6783 = vmatpush.bf16.msrb.mxu2 %v9719_v33  ;;  %6796 = vmatpush.bf16.msrb.mxu3 %v9783_v48  ;;  %v9942_v33 = vld [vmem:[#allocation5 + $0x6f0] sm:$0xf]  ;;  %v10742_v48 = vld [vmem:[#allocation5 + $0x6f4] sm:$0xf0]  ;;  %v9759_v10 = vor.u32 %v10696_v26, %v9758_v3  ;;  %v9879_v56 = vor.u32 %v10726_v59, %v9878_v52  ;;  %v9854_v3 = vld [vmem:[#allocation5 + $0x640] sm:$0xf] }
 0x8cc   : > { %v9943_v4 = vor.u32 %v10742_v48, %v9942_v33  ;;  %v9918_v52 = vld [vmem:[#allocation5 + $0x6c0] sm:$0xf]  ;;  %v10736_v59 = vld [vmem:[#allocation5 + $0x6c4] sm:$0xf0]  ;;  %v10766_v41 = vld [vmem:[#allocation5 + $0x7b4] sm:$0xf0] }
 0x8cd   : > { %v10046_v33 = vld [vmem:[#allocation5 + $0x7c0] sm:$0xf]  ;;  %v10768_v48 = vld [vmem:[#allocation5 + $0x7c4] sm:$0xf0]  ;;  %v9919_v38 = vor.u32 %v10736_v59, %v9918_v52  ;;  %v10746_v59 = vld [vmem:[#allocation5 + $0x714] sm:$0xf0] }
 0x8ce   : > { %6758 = vmatpush.bf16.msra.mxu0 %v9583_v50  ;;  %6771 = vmatpush.bf16.msra.mxu1 %v9647_v21  ;;  %v10740_v50 = vld [vmem:[#allocation5 + $0x6e4] sm:$0xf0]  ;;  %v5085_v21 = vmax.f32 %v4942_v30, 0.0  ;;  %v9982_v30 = vld [vmem:[#allocation5 + $0x740] sm:$0xf]  ;;  %v10047_v42 = vor.u32 %v10768_v48, %v10046_v33 }
 0x8cf   : > { %6784 = vmatpush.bf16.msrb.mxu2 %v9711_v6  ;;  %6797 = vmatpush.bf16.msrb.mxu3 %v9775_v63  ;;  %v9998_v6 = vld [vmem:[#allocation5 + $0x760] sm:$0xf]  ;;  %v10756_v63 = vld [vmem:[#allocation5 + $0x764] sm:$0xf0]  ;;  %v9935_v47 = vor.u32 %v10740_v50, %v9934_v5  ;;  %v9983_v17 = vor.u32 %v10752_v45, %v9982_v30  ;;  %v3359_v5 = vperm.slane %v12646_v20, 4  ;;  %v9847_v50 = vor.u32 %v10718_v43, %v9846_v39 }
 0x8d0   : > { %v9999_v8 = vor.u32 %v10756_v63, %v9998_v6  ;;  %v12661_v58 = vpack.c.bf16 %v5085_v21, %v5085_v21  ;;  %v10748_v55 = vld [vmem:[#allocation5 + $0x724] sm:$0xf0]  ;;  %v10022_v30 = vld [vmem:[#allocation5 + $0x790] sm:$0xf]  ;;  %v10762_v45 = vld [vmem:[#allocation5 + $0x794] sm:$0xf0] }
 0x8d1   : > { %v9822_v33 = vld [vmem:[#allocation5 + $0x600] sm:$0xf]  ;;  %v10728_v43 = vld [vmem:[#allocation5 + $0x684] sm:$0xf0] }
 0x8d2   : > { %6759 = vmatpush.bf16.msra.mxu0 %v9575_v11  ;;  %6772 = vmatpush.bf16.msra.mxu1 %v9639_v46  ;;  %v12663_v11 = vpack.c.bf16 %v5086_v62, %v5086_v62  ;;  %v10063_v46 = vor.u32 %v10772_v2, %v10062_v1  ;;  %v3360_v62 = vperm.slane %v12646_v20, 5  ;;  %v9902_v1 = vld [vmem:[#allocation5 + $0x6a0] sm:$0xf]  ;;  %v10732_v2 = vld [vmem:[#allocation5 + $0x6a4] sm:$0xf0] }
 0x8d3   : > { %6785 = vmatpush.bf16.msrb.mxu2 %v9703_v27  ;;  %6798 = vmatpush.bf16.msrb.mxu3 %v9767_v51  ;;  %v10054_v27 = vld [vmem:[#allocation5 + $0x7d0] sm:$0xf]  ;;  %v10770_v51 = vld [vmem:[#allocation5 + $0x7d4] sm:$0xf0]  ;;  %v9903_v22 = vor.u32 %v10732_v2, %v9902_v1  ;;  %v9886_v39 = vld [vmem:[#allocation5 + $0x680] sm:$0xf] }
 0x8d4   : > { %v10055_v26 = vor.u32 %v10770_v51, %v10054_v27  ;;  %v9830_v27 = vld [vmem:[#allocation5 + $0x610] sm:$0xf]  ;;  %v10714_v51 = vld [vmem:[#allocation5 + $0x614] sm:$0xf0]  ;;  %v9240_v1 = vld [vmem:[#allocation5 + $0x178] sm:$0xf0] }
 0x8d5   : > { %v9831_v48 = vor.u32 %v10714_v51, %v9830_v27  ;;  %v10581_v2 = vld [vmem:[#allocation5 + $0x1f4] sm:$0xf]  ;;  %v10547_v27 = vld [vmem:[#allocation5 + $0xe4] sm:$0xf]  ;;  %v9168_v51 = vld [vmem:[#allocation5 + $0xe8] sm:$0xf0] }
 0x8d6   : > { %6760 = vmatpush.bf16.msra.mxu0 %v9567_v18  ;;  %6773 = vmatpush.bf16.msra.mxu1 %v9631_v16  ;;  %v4980_v34 = vpop.f32.mrf.mxu0  ;;  %v12669_v18 = vpop.f32.mrf.mxu1  ;;  %v9855_v16 = vor.u32 %v10720_v23, %v9854_v3  ;;  %v9894_v3 = vld [vmem:[#allocation5 + $0x690] sm:$0xf]  ;;  %v10730_v23 = vld [vmem:[#allocation5 + $0x694] sm:$0xf0] }
 0x8d7   : > { %6786 = vmatpush.bf16.msrb.mxu2 %v9695_v44  ;;  %6799 = vmatpush.bf16.msrb.mxu3 %v9759_v10  ;;  %v9910_v44 = vld [vmem:[#allocation5 + $0x6b0] sm:$0xf]  ;;  %v10734_v10 = vld [vmem:[#allocation5 + $0x6b4] sm:$0xf0] }
 0x8d8   : > { %v9911_v21 = vor.u32 %v10734_v10, %v9910_v44  ;;  %v9950_v44 = vld [vmem:[#allocation5 + $0x700] sm:$0xf]  ;;  %v10744_v10 = vld [vmem:[#allocation5 + $0x704] sm:$0xf0] }
 0x8d9   : > { %6761 = vmatmul.bf16.vlgmr.msra.gmra.mxu0 %v12657_v49  ;;  %6774 = vmatmul.bf16.vlgmr.msra.gmra.mxu1 %v12659_v28 }
 0x8da   : > { %6805 = vmatpush.bf16.msrb.mxu0 %v9879_v56  ;;  %6818 = vmatpush.bf16.msrb.mxu1 %v9943_v4  ;;  %v10750_v56 = vld [vmem:[#allocation5 + $0x734] sm:$0xf0]  ;;  %v10038_v4 = vld [vmem:[#allocation5 + $0x7b0] sm:$0xf] }
 0x8db   : > { %6831 = vmatpush.bf16.msra.mxu2 %v10007_v61  ;;  %6844 = vmatpush.bf16.msra.mxu3 %v10071_v29  ;;  %v9838_v61 = vld [vmem:[#allocation5 + $0x620] sm:$0xf]  ;;  %v10716_v29 = vld [vmem:[#allocation5 + $0x624] sm:$0xf0]  ;;  %v9975_v6 = vor.u32 %v10750_v56, %v9974_v53  ;;  %v10039_v63 = vor.u32 %v10766_v41, %v10038_v4 }
 0x8dc   : > { %6787 = vmatmul.bf16.vlgmr.msrb.gmra.mxu2 %v12661_v58  ;;  %6800 = vmatmul.bf16.vlgmr.msrb.gmra.mxu3 %v12663_v11  ;;  %v9839_v7 = vor.u32 %v10716_v29, %v9838_v61  ;;  %v10014_v53 = vld [vmem:[#allocation5 + $0x780] sm:$0xf]  ;;  %v9176_v61 = vld [vmem:[#allocation5 + $0xf8] sm:$0xf0]  ;;  %v10565_v29 = vld [vmem:[#allocation5 + $0x174] sm:$0xf] }
 0x8de   : > { %6806 = vmatpush.bf16.msrb.mxu0 %v9871_v57  ;;  %6819 = vmatpush.bf16.msrb.mxu1 %v9935_v47  ;;  %v9966_v57 = vld [vmem:[#allocation5 + $0x720] sm:$0xf]  ;;  %v4982_v13 = vpop.f32.mrf.mxu0  ;;  %v4995_v31 = vpop.f32.mrf.mxu1 }
 0x8df   : > { %6832 = vmatpush.bf16.msra.mxu2 %v9999_v8  ;;  %6845 = vmatpush.bf16.msra.mxu3 %v10063_v46  ;;  %v5006_v47 = vpop.f32.mrf.mxu2  ;;  %v5019_v8 = vpop.f32.mrf.mxu3  ;;  %v10764_v46 = vld [vmem:[#allocation5 + $0x7a4] sm:$0xf0]  ;;  %v10531_v13 = vld [vmem:[#allocation5 + $0x64] sm:$0xf]  ;;  %v9104_v31 = vld [vmem:[#allocation5 + $0x68] sm:$0xf0] }
 0x8e0   : > { %v5007_v52 = vadd.f32 %v5006_v47, %v3360_v62  ;;  %v10549_v62 = vld [vmem:[#allocation5 + $0xf4] sm:$0xf]  ;;  %v9951_v47 = vor.u32 %v10744_v10, %v9950_v44 }
 0x8e2   : > { %6807 = vmatpush.bf16.msrb.mxu0 %v9863_v40  ;;  %6820 = vmatpush.bf16.msrb.mxu1 %v9927_v19  ;;  %v9967_v40 = vor.u32 %v10748_v55, %v9966_v57  ;;  %v10031_v19 = vor.u32 %v10764_v46, %v10030_v9  ;;  %v5020_v56 = vadd.f32 %v5019_v8, %v5007_v52  ;;  %v9304_v57 = vld [vmem:[#allocation5 + $0x1f8] sm:$0xf0] }
 0x8e3   : > { %6833 = vmatpush.bf16.msra.mxu2 %v9991_v25  ;;  %6846 = vmatpush.bf16.msra.mxu3 %v10055_v26  ;;  %v9958_v25 = vld [vmem:[#allocation5 + $0x710] sm:$0xf]  ;;  %v4981_v26 = vadd.f32 %v4980_v34, %v3359_v5  ;;  %v10760_v5 = vld [vmem:[#allocation5 + $0x784] sm:$0xf0]  ;;  %v9179_v46 = vor.u32 %v10549_v62, %v9176_v61  ;;  %v9216_v62 = vld [vmem:[#allocation5 + $0x148] sm:$0xf0] }
 0x8e4   : > { %v5088_v55 = vmax.f32 %v5020_v56, 0.0  ;;  %v9088_v56 = vld [vmem:[#allocation5 + $0x48] sm:$0xf0]  ;;  %v10575_v61 = vld [vmem:[#allocation5 + $0x1c4] sm:$0xf] }
 0x8e5   : > { %v4994_v34 = vadd.f32 %v12669_v18, %v4981_v26  ;;  %v10015_v18 = vor.u32 %v10760_v5, %v10014_v53  ;;  %v3361_v53 = vperm.slane %v12646_v20, 6  ;;  %v10543_v5 = vld [vmem:[#allocation5 + $0xc4] sm:$0xf] }
 0x8e6   : > { %6808 = vmatpush.bf16.msrb.mxu0 %v9855_v16  ;;  %6821 = vmatpush.bf16.msrb.mxu1 %v9919_v38  ;;  %v9895_v16 = vor.u32 %v10730_v23, %v9894_v3  ;;  %v10712_v38 = vld [vmem:[#allocation5 + $0x604] sm:$0xf0]  ;;  %v10579_v3 = vld [vmem:[#allocation5 + $0x1e4] sm:$0xf]  ;;  %v9296_v23 = vld [vmem:[#allocation5 + $0x1e8] sm:$0xf0]  ;;  %v12676_v52 = vpack.c.bf16 %v5088_v55, %v5088_v55 }
 0x8e7   : > { %6834 = vmatpush.bf16.msra.mxu2 %v9983_v17  ;;  %6847 = vmatpush.bf16.msra.mxu3 %v10047_v42  ;;  %v9959_v17 = vor.u32 %v10746_v59, %v9958_v25  ;;  %v10023_v42 = vor.u32 %v10762_v45, %v10022_v30  ;;  %v5008_v4 = vpop.f32.mrf.mxu2  ;;  %v5021_v41 = vpop.f32.mrf.mxu3  ;;  %v5087_v8 = vmax.f32 %v4994_v34, 0.0  ;;  %v9107_v25 = vor.u32 %v10531_v13, %v9104_v31  ;;  %v10529_v30 = vld [vmem:[#allocation5 + $0x54] sm:$0xf]  ;;  %v9096_v45 = vld [vmem:[#allocation5 + $0x58] sm:$0xf0] }
 0x8e8   : > { %v9171_v59 = vor.u32 %v10547_v27, %v9168_v51  ;;  %v9099_v44 = vor.u32 %v10529_v30, %v9096_v45  ;;  %v10527_v34 = vld [vmem:[#allocation5 + $0x44] sm:$0xf]  ;;  %v10557_v13 = vld [vmem:[#allocation5 + $0x134] sm:$0xf]  ;;  %v9272_v27 = vld [vmem:[#allocation5 + $0x1b8] sm:$0xf0] }
 0x8e9   : > { %v12674_v26 = vpack.c.bf16 %v5087_v8, %v5087_v8  ;;  %v3362_v51 = vperm.slane %v12646_v20, 7  ;;  %v10539_v45 = vld [vmem:[#allocation5 + $0xa4] sm:$0xf] }
 0x8ea   : > { %6809 = vmatpush.bf16.msrb.mxu0 %v9847_v50  ;;  %6822 = vmatpush.bf16.msrb.mxu1 %v9911_v21  ;;  %v10533_v50 = vld [vmem:[#allocation5 + $0x74] sm:$0xf]  ;;  %v9112_v21 = vld [vmem:[#allocation5 + $0x78] sm:$0xf0]  ;;  %v10571_v20 = vld [vmem:[#allocation5 + $0x1a4] sm:$0xf] }
 0x8eb   : > { %6835 = vmatpush.bf16.msra.mxu2 %v9975_v6  ;;  %6848 = vmatpush.bf16.msra.mxu3 %v10039_v63  ;;  %v9823_v6 = vor.u32 %v10712_v38, %v9822_v33  ;;  %v9887_v63 = vor.u32 %v10728_v43, %v9886_v39  ;;  %v9115_v9 = vor.u32 %v10533_v50, %v9112_v21  ;;  %v9160_v38 = vld [vmem:[#allocation5 + $0xd8] sm:$0xf0]  ;;  %v10561_v39 = vld [vmem:[#allocation5 + $0x154] sm:$0xf]  ;;  %v9152_v50 = vld [vmem:[#allocation5 + $0xc8] sm:$0xf0] }
 0x8ec   : > { %v9224_v43 = vld [vmem:[#allocation5 + $0x158] sm:$0xf0]  ;;  %v10559_v21 = vld [vmem:[#allocation5 + $0x144] sm:$0xf] }
 0x8ed   : > { %v9227_v4 = vor.u32 %v10561_v39, %v9224_v43  ;;  %v9219_v8 = vor.u32 %v10559_v21, %v9216_v62  ;;  %v9200_v43 = vld [vmem:[#allocation5 + $0x128] sm:$0xf0]  ;;  %v10537_v21 = vld [vmem:[#allocation5 + $0x94] sm:$0xf]  ;;  %v9128_v62 = vld [vmem:[#allocation5 + $0x98] sm:$0xf0] }
 0x8ee   : > { %6810 = vmatpush.bf16.msrb.mxu0 %v9839_v7  ;;  %6823 = vmatpush.bf16.msrb.mxu1 %v9903_v22  ;;  %v9243_v7 = vor.u32 %v10565_v29, %v9240_v1  ;;  %v9307_v22 = vor.u32 %v10581_v2, %v9304_v57  ;;  %v9280_v29 = vld [vmem:[#allocation5 + $0x1c8] sm:$0xf0]  ;;  %v9091_v2 = vor.u32 %v10527_v34, %v9088_v56  ;;  %v10521_v56 = vld [vmem:[#allocation5 + $0x14] sm:$0xf] }
 0x8ef   : > { %6836 = vmatpush.bf16.msra.mxu2 %v9967_v40  ;;  %6849 = vmatpush.bf16.msra.mxu3 %v10031_v19  ;;  %v10563_v40 = vld [vmem:[#allocation5 + $0x164] sm:$0xf]  ;;  %v9232_v19 = vld [vmem:[#allocation5 + $0x168] sm:$0xf0]  ;;  %v9155_v57 = vor.u32 %v10543_v5, %v9152_v50  ;;  %v9283_v55 = vor.u32 %v10575_v61, %v9280_v29  ;;  %v10553_v61 = vld [vmem:[#allocation5 + $0x114] sm:$0xf] }
 0x8f0   : > { %v9235_v33 = vor.u32 %v10563_v40, %v9232_v19  ;;  %v9192_v29 = vld [vmem:[#allocation5 + $0x118] sm:$0xf0] }
 0x8f2   : > { %6811 = vmatpush.bf16.msrb.mxu0 %v9831_v48  ;;  %6824 = vmatpush.bf16.msrb.mxu1 %v9895_v16  ;;  %v9299_v48 = vor.u32 %v10579_v3, %v9296_v23  ;;  %v10545_v16 = vld [vmem:[#allocation5 + $0xd4] sm:$0xf]  ;;  %v10523_v23 = vld [vmem:[#allocation5 + $0x24] sm:$0xf] }
 0x8f3   : > { %6837 = vmatpush.bf16.msra.mxu2 %v9959_v17  ;;  %6850 = vmatpush.bf16.msra.mxu3 %v10023_v42  ;;  %v10577_v17 = vld [vmem:[#allocation5 + $0x1d4] sm:$0xf]  ;;  %v9288_v42 = vld [vmem:[#allocation5 + $0x1d8] sm:$0xf0]  ;;  %v9163_v10 = vor.u32 %v10545_v16, %v9160_v38 }
 0x8f4   : > { %v9291_v41 = vor.u32 %v10577_v17, %v9288_v42  ;;  %v9264_v17 = vld [vmem:[#allocation5 + $0x1a8] sm:$0xf0] }
 0x8f5   : > { %v9267_v50 = vor.u32 %v10571_v20, %v9264_v17 }
 0x8f6   : > { %6812 = vmatpush.bf16.msrb.mxu0 %v9823_v6  ;;  %6825 = vmatpush.bf16.msrb.mxu1 %v9887_v63  ;;  %v5032_v6 = vpop.f32.mrf.mxu0  ;;  %v5045_v63 = vpop.f32.mrf.mxu1 }
 0x8f7   : > { %6838 = vmatpush.bf16.msra.mxu2 %v9951_v47  ;;  %6851 = vmatpush.bf16.msra.mxu3 %v10015_v18  ;;  %v5033_v1 = vadd.f32 %v5032_v6, %v3361_v53  ;;  %v10525_v47 = vld [vmem:[#allocation5 + $0x34] sm:$0xf]  ;;  %v9080_v18 = vld [vmem:[#allocation5 + $0x38] sm:$0xf0] }
 0x8f8   : > { %v9083_v19 = vor.u32 %v10525_v47, %v9080_v18  ;;  %v10569_v6 = vld [vmem:[#allocation5 + $0x194] sm:$0xf]  ;;  %v9131_v47 = vor.u32 %v10537_v21, %v9128_v62  ;;  %v9056_v18 = vld [vmem:[#allocation5 + $0x8] sm:$0xf0] }
 0x8f9   : > { %6813 = vmatmul.bf16.vlgmr.msrb.gmra.mxu0 %v12674_v26  ;;  %6826 = vmatmul.bf16.vlgmr.msrb.gmra.mxu1 %v12676_v52  ;;  %v5046_v31 = vadd.f32 %v5045_v63, %v5033_v1  ;;  %v9256_v63 = vld [vmem:[#allocation5 + $0x198] sm:$0xf0] }
 0x8fa   : > { %6857 = vmatpush.bf16.msra.mxu0 %v9115_v9  ;;  %6870 = vmatpush.bf16.msra.mxu1 %v9179_v46  ;;  %v10541_v9 = vld [vmem:[#allocation5 + $0xb4] sm:$0xf]  ;;  %v9144_v46 = vld [vmem:[#allocation5 + $0xb8] sm:$0xf0] }
 0x8fb   : > { %6883 = vmatpush.bf16.msrb.mxu2 %v9243_v7  ;;  %6896 = vmatpush.bf16.msrb.mxu3 %v9307_v22  ;;  %v9208_v7 = vld [vmem:[#allocation5 + $0x138] sm:$0xf0]  ;;  %v10573_v22 = vld [vmem:[#allocation5 + $0x1b4] sm:$0xf]  ;;  %v5089_v40 = vmax.f32 %v5046_v31, 0.0  ;;  %v9147_v3 = vor.u32 %v10541_v9, %v9144_v46  ;;  %v9195_v46 = vor.u32 %v10553_v61, %v9192_v29 }
 0x8fc   : > { %v9275_v30 = vor.u32 %v10573_v22, %v9272_v27  ;;  %v10551_v31 = vld [vmem:[#allocation5 + $0x104] sm:$0xf]  ;;  %v10593_v61 = vld [vmem:[#allocation5 + $0x254] sm:$0xf]  ;;  %v9352_v29 = vld [vmem:[#allocation5 + $0x258] sm:$0xf0] }
 0x8fd   : > { %v12682_v16 = vpack.c.bf16 %v5089_v40, %v5089_v40  ;;  %v10567_v22 = vld [vmem:[#allocation5 + $0x184] sm:$0xf]  ;;  %v9248_v40 = vld [vmem:[#allocation5 + $0x188] sm:$0xf0] }
 0x8fe   : > { %6858 = vmatpush.bf16.msra.mxu0 %v9107_v25  ;;  %6871 = vmatpush.bf16.msra.mxu1 %v9171_v59  ;;  %v9072_v25 = vld [vmem:[#allocation5 + $0x28] sm:$0xf0]  ;;  %v9211_v59 = vor.u32 %v10557_v13, %v9208_v7  ;;  %v9259_v13 = vor.u32 %v10569_v6, %v9256_v63  ;;  %v10609_v6 = vld [vmem:[#allocation5 + $0x2d4] sm:$0xf] }
 0x8ff   : > { %6884 = vmatpush.bf16.msrb.mxu2 %v9235_v33  ;;  %6897 = vmatpush.bf16.msrb.mxu3 %v9299_v48  ;;  %v9136_v33 = vld [vmem:[#allocation5 + $0xa8] sm:$0xf0]  ;;  %v10555_v48 = vld [vmem:[#allocation5 + $0x124] sm:$0xf]  ;;  %v5058_v38 = vpop.f32.mrf.mxu2  ;;  %v5071_v39 = vpop.f32.mrf.mxu3  ;;  %v9075_v53 = vor.u32 %v10523_v23, %v9072_v25  ;;  %v10613_v23 = vld [vmem:[#allocation5 + $0x2f4] sm:$0xf] }
 0x900   : > { %v5059_v42 = vadd.f32 %v5058_v38, %v3362_v51  ;;  %v9139_v34 = vor.u32 %v10539_v45, %v9136_v33  ;;  %v9203_v5 = vor.u32 %v10555_v48, %v9200_v43  ;;  %6839 = vmatmul.bf16.vlgmr.msra.gmra.mxu2 %v12682_v16  ;;  %v9184_v7 = vld [vmem:[#allocation5 + $0x108] sm:$0xf0]  ;;  %v9432_v25 = vld [vmem:[#allocation5 + $0x2f8] sm:$0xf0]  ;;  %v10645_v48 = vld [vmem:[#allocation5 + $0x3f4] sm:$0xf]  ;;  %v9251_v43 = vor.u32 %v10567_v22, %v9248_v40 }
 0x901   : > { %v9496_v33 = vld [vmem:[#allocation5 + $0x378] sm:$0xf0]  ;;  %v9435_v17 = vor.u32 %v10613_v23, %v9432_v25  ;;  %v9344_v22 = vld [vmem:[#allocation5 + $0x248] sm:$0xf0]  ;;  %v10607_v40 = vld [vmem:[#allocation5 + $0x2c4] sm:$0xf] }
 0x902   : > { %6859 = vmatpush.bf16.msra.mxu0 %v9099_v44  ;;  %6872 = vmatpush.bf16.msra.mxu1 %v9163_v10  ;;  %v5034_v44 = vpop.f32.mrf.mxu0  ;;  %v5047_v10 = vpop.f32.mrf.mxu1  ;;  %v9560_v38 = vld [vmem:[#allocation5 + $0x3f8] sm:$0xf0]  ;;  %v9536_v23 = vld [vmem:[#allocation5 + $0x3c8] sm:$0xf0] }
 0x903   : > { %6885 = vmatpush.bf16.msrb.mxu2 %v9227_v4  ;;  %6898 = vmatpush.bf16.msrb.mxu3 %v9291_v41  ;;  %v9064_v4 = vld [vmem:[#allocation5 + $0x18] sm:$0xf0]  ;;  %v5072_v41 = vadd.f32 %v5071_v39, %v5059_v42  ;;  %v9187_v39 = vor.u32 %v10551_v31, %v9184_v7  ;;  %v10595_v42 = vld [vmem:[#allocation5 + $0x264] sm:$0xf]  ;;  %v9360_v44 = vld [vmem:[#allocation5 + $0x268] sm:$0xf0] }
 0x904   : > { %v9363_v21 = vor.u32 %v10595_v42, %v9360_v44  ;;  %v10591_v7 = vld [vmem:[#allocation5 + $0x244] sm:$0xf]  ;;  %v10621_v42 = vld [vmem:[#allocation5 + $0x334] sm:$0xf]  ;;  %v9464_v44 = vld [vmem:[#allocation5 + $0x338] sm:$0xf0] }
 0x905   : > { %v5090_v1 = vmax.f32 %v5072_v41, 0.0  ;;  %v9488_v41 = vld [vmem:[#allocation5 + $0x368] sm:$0xf0] }
 0x906   : > { %6860 = vmatpush.bf16.msra.mxu0 %v9091_v2  ;;  %6873 = vmatpush.bf16.msra.mxu1 %v9155_v57  ;;  %v10519_v2 = vld [vmem:[#allocation5 + $0x4] sm:$0xf]  ;;  %v9067_v57 = vor.u32 %v10521_v56, %v9064_v4  ;;  %v9424_v56 = vld [vmem:[#allocation5 + $0x2e8] sm:$0xf0] }
 0x907   : > { %6886 = vmatpush.bf16.msrb.mxu2 %v9219_v8  ;;  %6899 = vmatpush.bf16.msrb.mxu3 %v9283_v55  ;;  %v10535_v8 = vld [vmem:[#allocation5 + $0x84] sm:$0xf]  ;;  %v9120_v55 = vld [vmem:[#allocation5 + $0x88] sm:$0xf0]  ;;  %v12685_v9 = vpack.c.bf16 %v5090_v1, %v5090_v1  ;;  %v5060_v27 = vpop.f32.mrf.mxu2  ;;  %v5073_v51 = vpop.f32.mrf.mxu3 }
 0x908   : > { %v9123_v45 = vor.u32 %v10535_v8, %v9120_v55  ;;  %v10627_v4 = vld [vmem:[#allocation5 + $0x364] sm:$0xf]  ;;  %v10641_v8 = vld [vmem:[#allocation5 + $0x3d4] sm:$0xf]  ;;  %v9544_v55 = vld [vmem:[#allocation5 + $0x3d8] sm:$0xf0] }
 0x909   : > { %6852 = vmatmul.bf16.vlgmr.msra.gmra.mxu3 %v12685_v9  ;;  %v9491_v63 = vor.u32 %v10627_v4, %v9488_v41  ;;  %v9547_v51 = vor.u32 %v10641_v8, %v9544_v55  ;;  %v10587_v4 = vld [vmem:[#allocation5 + $0x224] sm:$0xf]  ;;  %v9328_v41 = vld [vmem:[#allocation5 + $0x228] sm:$0xf0] }
 0x90a   : > { %6861 = vmatpush.bf16.msra.mxu0 %v9083_v19  ;;  %6874 = vmatpush.bf16.msra.mxu1 %v9147_v3  ;;  %v10597_v19 = vld [vmem:[#allocation5 + $0x274] sm:$0xf]  ;;  %v9368_v3 = vld [vmem:[#allocation5 + $0x278] sm:$0xf0]  ;;  %v9331_v8 = vor.u32 %v10587_v4, %v9328_v41 }
 0x90b   : > { %6887 = vmatpush.bf16.msrb.mxu2 %v9211_v59  ;;  %6900 = vmatpush.bf16.msrb.mxu3 %v9275_v30  ;;  %v10629_v59 = vld [vmem:[#allocation5 + $0x374] sm:$0xf]  ;;  %v9059_v30 = vor.u32 %v10519_v2, %v9056_v18  ;;  %v9371_v20 = vor.u32 %v10597_v19, %v9368_v3  ;;  %v9416_v2 = vld [vmem:[#allocation5 + $0x2d8] sm:$0xf0]  ;;  %v9408_v19 = vld [vmem:[#allocation5 + $0x2c8] sm:$0xf0] }
 0x90c   : > { %v9499_v10 = vor.u32 %v10629_v59, %v9496_v33  ;;  %v9480_v18 = vld [vmem:[#allocation5 + $0x358] sm:$0xf0]  ;;  %v10639_v3 = vld [vmem:[#allocation5 + $0x3c4] sm:$0xf]  ;;  %v9411_v33 = vor.u32 %v10607_v40, %v9408_v19  ;;  %v10617_v40 = vld [vmem:[#allocation5 + $0x314] sm:$0xf] }
 0x90d   : > { %v9448_v19 = vld [vmem:[#allocation5 + $0x318] sm:$0xf0] }
 0x90e   : > { %6862 = vmatpush.bf16.msra.mxu0 %v9075_v53  ;;  %6875 = vmatpush.bf16.msra.mxu1 %v9139_v34  ;;  %v9563_v53 = vor.u32 %v10645_v48, %v9560_v38  ;;  %v10611_v34 = vld [vmem:[#allocation5 + $0x2e4] sm:$0xf]  ;;  %v10589_v48 = vld [vmem:[#allocation5 + $0x234] sm:$0xf]  ;;  %v9336_v38 = vld [vmem:[#allocation5 + $0x238] sm:$0xf0] }
 0x90f   : > { %6888 = vmatpush.bf16.msrb.mxu2 %v9203_v5  ;;  %6901 = vmatpush.bf16.msrb.mxu3 %v9267_v50  ;;  %v10643_v5 = vld [vmem:[#allocation5 + $0x3e4] sm:$0xf]  ;;  %v9552_v50 = vld [vmem:[#allocation5 + $0x3e8] sm:$0xf0]  ;;  %v9427_v62 = vor.u32 %v10611_v34, %v9424_v56  ;;  %v9339_v34 = vor.u32 %v10589_v48, %v9336_v38  ;;  %v9752_v41 = vld [vmem:[#allocation5 + $0x578] sm:$0xf0] }
 0x910   : > { %v9555_v1 = vor.u32 %v10643_v5, %v9552_v50  ;;  %v9467_v5 = vor.u32 %v10621_v42, %v9464_v44  ;;  %v10615_v38 = vld [vmem:[#allocation5 + $0x304] sm:$0xf]  ;;  %v9504_v42 = vld [vmem:[#allocation5 + $0x388] sm:$0xf0]  ;;  %v9624_v44 = vld [vmem:[#allocation5 + $0x478] sm:$0xf0] }
 0x912   : > { %6863 = vmatpush.bf16.msra.mxu0 %v9067_v57  ;;  %6876 = vmatpush.bf16.msra.mxu1 %v9131_v47  ;;  %v10625_v57 = vld [vmem:[#allocation5 + $0x354] sm:$0xf]  ;;  %v12691_v47 = vld [vmem:[%s12751_s15] sm:$0x3] }
 0x913   : > { %6889 = vmatpush.bf16.msrb.mxu2 %v9195_v46  ;;  %6902 = vmatpush.bf16.msrb.mxu3 %v9259_v13  ;;  %v9355_v46 = vor.u32 %v10593_v61, %v9352_v29  ;;  %v9419_v13 = vor.u32 %v10609_v6, %v9416_v2  ;;  %v5365_v31 = vperm.slane %v12691_v47, 0  ;;  %v9483_v27 = vor.u32 %v10625_v57, %v9480_v18  ;;  %v10619_v61 = vld [vmem:[#allocation5 + $0x324] sm:$0xf] }
 0x916   : > { %6864 = vmatpush.bf16.msra.mxu0 %v9059_v30  ;;  %6877 = vmatpush.bf16.msra.mxu1 %v9123_v45  ;;  %v6658_v25 = vpop.f32.mrf.mxu0  ;;  %v6671_v59 = vpop.f32.mrf.mxu1  ;;  %v9347_v45 = vor.u32 %v10591_v7, %v9344_v22 }
 0x917   : > { %6890 = vmatpush.bf16.msrb.mxu2 %v9187_v39  ;;  %6903 = vmatpush.bf16.msrb.mxu3 %v9251_v43  ;;  %v6659_v30 = vadd.f32 %v6658_v25, %v5365_v31  ;;  %v9539_v43 = vor.u32 %v10639_v3, %v9536_v23  ;;  %v10583_v3 = vld [vmem:[#allocation5 + $0x204] sm:$0xf] }
 0x919   : > { %6865 = vmatmul.bf16.vlgmr.msra.gmra.mxu0 %v12600_v14  ;;  %6878 = vmatmul.bf16.vlgmr.msra.gmra.mxu1 %v12602_v0  ;;  %v10623_v14 = vld [vmem:[#allocation5 + $0x344] sm:$0xf]  ;;  %v9472_v0 = vld [vmem:[#allocation5 + $0x348] sm:$0xf0] }
 0x91a   : > { %6909 = vmatpush.bf16.msrb.mxu0 %v9371_v20  ;;  %6922 = vmatpush.bf16.msrb.mxu1 %v9435_v17  ;;  %v9475_v39 = vor.u32 %v10623_v14, %v9472_v0  ;;  %v10605_v20 = vld [vmem:[#allocation5 + $0x2b4] sm:$0xf]  ;;  %v9400_v17 = vld [vmem:[#allocation5 + $0x2b8] sm:$0xf0] }
 0x91b   : > { %6935 = vmatpush.bf16.msra.mxu2 %v9499_v10  ;;  %6948 = vmatpush.bf16.msra.mxu3 %v9563_v53  ;;  %v10637_v10 = vld [vmem:[#allocation5 + $0x3b4] sm:$0xf]  ;;  %v9528_v53 = vld [vmem:[#allocation5 + $0x3b8] sm:$0xf0]  ;;  %v9403_v56 = vor.u32 %v10605_v20, %v9400_v17 }
 0x91c   : > { %6891 = vmatmul.bf16.vlgmr.msrb.gmra.mxu2 %v12604_v36  ;;  %v6672_v36 = vadd.f32 %v6671_v59, %v6659_v30  ;;  %6904 = vmatmul.bf16.vlgmr.msrb.gmra.mxu3 %v12606_v24  ;;  %v9531_v50 = vor.u32 %v10637_v10, %v9528_v53  ;;  %v10635_v24 = vld [vmem:[#allocation5 + $0x3a4] sm:$0xf]  ;;  %v10633_v14 = vld [vmem:[#allocation5 + $0x394] sm:$0xf]  ;;  %v9512_v0 = vld [vmem:[#allocation5 + $0x398] sm:$0xf0] }
 0x91d   : > { %v9312_v59 = vld [vmem:[#allocation5 + $0x208] sm:$0xf0]  ;;  %v10599_v30 = vld [vmem:[#allocation5 + $0x284] sm:$0xf]  ;;  %v9515_v48 = vor.u32 %v10633_v14, %v9512_v0  ;;  %v10677_v10 = vld [vmem:[#allocation5 + $0x4f4] sm:$0xf] }
 0x91e   : > { %6910 = vmatpush.bf16.msrb.mxu0 %v9363_v21  ;;  %6923 = vmatpush.bf16.msrb.mxu1 %v9427_v62  ;;  %v10603_v21 = vld [vmem:[#allocation5 + $0x2a4] sm:$0xf]  ;;  %v9392_v62 = vld [vmem:[#allocation5 + $0x2a8] sm:$0xf0]  ;;  %v6660_v57 = vpop.f32.mrf.mxu0  ;;  %v6673_v18 = vpop.f32.mrf.mxu1  ;;  %v9688_v53 = vld [vmem:[#allocation5 + $0x4f8] sm:$0xf0] }
 0x91f   : > { %6936 = vmatpush.bf16.msra.mxu2 %v9491_v63  ;;  %6949 = vmatpush.bf16.msra.mxu3 %v9555_v1  ;;  %v6684_v29 = vpop.f32.mrf.mxu2  ;;  %v6697_v6 = vpop.f32.mrf.mxu3  ;;  %v9456_v63 = vld [vmem:[#allocation5 + $0x328] sm:$0xf0]  ;;  %v9395_v55 = vor.u32 %v10603_v21, %v9392_v62  ;;  %v10691_v18 = vld [vmem:[#allocation5 + $0x564] sm:$0xf]  ;;  %v9672_v14 = vld [vmem:[#allocation5 + $0x4d8] sm:$0xf0] }
 0x920   : > { %v9520_v1 = vld [vmem:[#allocation5 + $0x3a8] sm:$0xf0]  ;;  %v6685_v2 = vadd.f32 %v6684_v29, %v6672_v36  ;;  %v9459_v7 = vor.u32 %v10619_v61, %v9456_v63  ;;  %v10661_v36 = vld [vmem:[#allocation5 + $0x474] sm:$0xf]  ;;  %v9691_v29 = vor.u32 %v10677_v10, %v9688_v53  ;;  %v9592_v53 = vld [vmem:[#allocation5 + $0x438] sm:$0xf0] }
 0x921   : > { %v9523_v22 = vor.u32 %v10635_v24, %v9520_v1  ;;  %v9627_v61 = vor.u32 %v10661_v36, %v9624_v44  ;;  %v9616_v63 = vld [vmem:[#allocation5 + $0x468] sm:$0xf0]  ;;  %v10689_v0 = vld [vmem:[#allocation5 + $0x554] sm:$0xf] }
 0x922   : > { %6911 = vmatpush.bf16.msrb.mxu0 %v9355_v46  ;;  %6924 = vmatpush.bf16.msrb.mxu1 %v9419_v13  ;;  %v10585_v46 = vld [vmem:[#allocation5 + $0x214] sm:$0xf]  ;;  %v9320_v13 = vld [vmem:[#allocation5 + $0x218] sm:$0xf0]  ;;  %v12698_v31 = vadd.f32 %v6697_v6, %v6685_v2  ;;  %v10659_v6 = vld [vmem:[#allocation5 + $0x464] sm:$0xf] }
 0x923   : > { %6937 = vmatpush.bf16.msra.mxu2 %v9483_v27  ;;  %6950 = vmatpush.bf16.msra.mxu3 %v9547_v51  ;;  %v10601_v27 = vld [vmem:[#allocation5 + $0x294] sm:$0xf]  ;;  %v9384_v51 = vld [vmem:[#allocation5 + $0x298] sm:$0xf0]  ;;  %v9323_v23 = vor.u32 %v10585_v46, %v9320_v13  ;;  %v10675_v2 = vld [vmem:[#allocation5 + $0x4e4] sm:$0xf]  ;;  %v9619_v13 = vor.u32 %v10659_v6, %v9616_v63 }
 0x924   : > { %v9387_v25 = vor.u32 %v10601_v27, %v9384_v51  ;;  %v9680_v57 = vld [vmem:[#allocation5 + $0x4e8] sm:$0xf0]  ;;  %v9608_v27 = vld [vmem:[#allocation5 + $0x458] sm:$0xf0]  ;;  %v10653_v10 = vld [vmem:[#allocation5 + $0x434] sm:$0xf] }
 0x925   : > { %v9808_v46 = vld [vmem:[#allocation5 + $0x5e8] sm:$0xf0] }
 0x926   : > { %6912 = vmatpush.bf16.msrb.mxu0 %v9347_v45  ;;  %6925 = vmatpush.bf16.msrb.mxu1 %v9411_v33  ;;  %v9376_v45 = vld [vmem:[#allocation5 + $0x288] sm:$0xf0]  ;;  %v9451_v33 = vor.u32 %v10617_v40, %v9448_v19  ;;  %v10673_v19 = vld [vmem:[#allocation5 + $0x4d4] sm:$0xf] }
 0x927   : > { %6938 = vmatpush.bf16.msra.mxu2 %v9475_v39  ;;  %6951 = vmatpush.bf16.msra.mxu3 %v9539_v43  ;;  %v9440_v39 = vld [vmem:[#allocation5 + $0x308] sm:$0xf0]  ;;  %v10631_v43 = vld [vmem:[#allocation5 + $0x384] sm:$0xf]  ;;  %v6686_v20 = vpop.f32.mrf.mxu2  ;;  %v6699_v17 = vpop.f32.mrf.mxu3  ;;  %v9379_v4 = vor.u32 %v10599_v30, %v9376_v45  ;;  %v9675_v30 = vor.u32 %v10673_v19, %v9672_v14  ;;  %v10649_v14 = vld [vmem:[#allocation5 + $0x414] sm:$0xf] }
 0x928   : > { %v9443_v21 = vor.u32 %v10615_v38, %v9440_v39  ;;  %v9507_v62 = vor.u32 %v10631_v43, %v9504_v42  ;;  %v10655_v45 = vld [vmem:[#allocation5 + $0x444] sm:$0xf]  ;;  %v9664_v39 = vld [vmem:[#allocation5 + $0x4c8] sm:$0xf0] }
 0x929   : > { %v9728_v43 = vld [vmem:[#allocation5 + $0x548] sm:$0xf0]  ;;  %v10703_v20 = vld [vmem:[#allocation5 + $0x5c4] sm:$0xf] }
 0x92a   : > { %6913 = vmatpush.bf16.msrb.mxu0 %v9339_v34  ;;  %6926 = vmatpush.bf16.msrb.mxu1 %v9403_v56  ;;  %v10693_v34 = vld [vmem:[#allocation5 + $0x574] sm:$0xf]  ;;  %v9315_v56 = vor.u32 %v10583_v3, %v9312_v59  ;;  %v9736_v3 = vld [vmem:[#allocation5 + $0x558] sm:$0xf0]  ;;  %v9792_v17 = vld [vmem:[#allocation5 + $0x5c8] sm:$0xf0] }
 0x92b   : > { %6939 = vmatpush.bf16.msra.mxu2 %v9467_v5  ;;  %6952 = vmatpush.bf16.msra.mxu3 %v9531_v50  ;;  %v10709_v5 = vld [vmem:[#allocation5 + $0x5f4] sm:$0xf]  ;;  %v9816_v50 = vld [vmem:[#allocation5 + $0x5f8] sm:$0xf0]  ;;  %v9755_v24 = vor.u32 %v10693_v34, %v9752_v41  ;;  %v9584_v63 = vld [vmem:[#allocation5 + $0x428] sm:$0xf0] }
 0x92c   : > { %v9819_v1 = vor.u32 %v10709_v5, %v9816_v50  ;;  %v9656_v41 = vld [vmem:[#allocation5 + $0x4b8] sm:$0xf0]  ;;  %v10685_v5 = vld [vmem:[#allocation5 + $0x534] sm:$0xf] }
 0x92e   : > { %6914 = vmatpush.bf16.msrb.mxu0 %v9331_v8  ;;  %6927 = vmatpush.bf16.msrb.mxu1 %v9395_v55  ;;  %v9744_v8 = vld [vmem:[#allocation5 + $0x568] sm:$0xf0]  ;;  %v10707_v55 = vld [vmem:[#allocation5 + $0x5e4] sm:$0xf] }
 0x92f   : > { %6940 = vmatpush.bf16.msra.mxu2 %v9459_v7  ;;  %6953 = vmatpush.bf16.msra.mxu3 %v9523_v22  ;;  %v9683_v7 = vor.u32 %v10675_v2, %v9680_v57  ;;  %v10657_v22 = vld [vmem:[#allocation5 + $0x454] sm:$0xf]  ;;  %v9747_v51 = vor.u32 %v10691_v18, %v9744_v8  ;;  %v9811_v40 = vor.u32 %v10707_v55, %v9808_v46  ;;  %v10667_v2 = vld [vmem:[#allocation5 + $0x4a4] sm:$0xf]  ;;  %v9648_v57 = vld [vmem:[#allocation5 + $0x4a8] sm:$0xf0] }
 0x930   : > { %v9611_v59 = vor.u32 %v10657_v22, %v9608_v27  ;;  %v10683_v18 = vld [vmem:[#allocation5 + $0x524] sm:$0xf]  ;;  %v9712_v46 = vld [vmem:[#allocation5 + $0x528] sm:$0xf0]  ;;  %v9651_v19 = vor.u32 %v10667_v2, %v9648_v57 }
 0x931   : > { %v10723_v2 = vld [vmem:[#allocation5 + $0x664] sm:$0xf]  ;;  %v9872_v57 = vld [vmem:[#allocation5 + $0x668] sm:$0xf0] }
 0x932   : > { %6915 = vmatpush.bf16.msrb.mxu0 %v9323_v23  ;;  %6928 = vmatpush.bf16.msrb.mxu1 %v9387_v25  ;;  %v10705_v23 = vld [vmem:[#allocation5 + $0x5d4] sm:$0xf]  ;;  %v9800_v25 = vld [vmem:[#allocation5 + $0x5d8] sm:$0xf0] }
 0x933   : > { %6941 = vmatpush.bf16.msra.mxu2 %v9451_v33  ;;  %6954 = vmatpush.bf16.msra.mxu3 %v9515_v48  ;;  %v9600_v33 = vld [vmem:[#allocation5 + $0x448] sm:$0xf0]  ;;  %v9739_v48 = vor.u32 %v10689_v0, %v9736_v3  ;;  %v9803_v38 = vor.u32 %v10705_v23, %v9800_v25  ;;  %v9576_v0 = vld [vmem:[#allocation5 + $0x418] sm:$0xf0]  ;;  %v9715_v23 = vor.u32 %v10683_v18, %v9712_v46 }
 0x934   : > { %v9603_v36 = vor.u32 %v10655_v45, %v9600_v33  ;;  %v10681_v45 = vld [vmem:[#allocation5 + $0x514] sm:$0xf]  ;;  %v9704_v33 = vld [vmem:[#allocation5 + $0x518] sm:$0xf0]  ;;  %v9936_v46 = vld [vmem:[#allocation5 + $0x6e8] sm:$0xf0] }
 0x936   : > { %6916 = vmatpush.bf16.msrb.mxu0 %v9315_v56  ;;  %6929 = vmatpush.bf16.msrb.mxu1 %v9379_v4  ;;  %v6710_v42 = vpop.f32.mrf.mxu0  ;;  %v9795_v56 = vor.u32 %v10703_v20, %v9792_v17  ;;  %v10669_v4 = vld [vmem:[#allocation5 + $0x4b4] sm:$0xf]  ;;  %v10663_v20 = vld [vmem:[#allocation5 + $0x484] sm:$0xf]  ;;  %v9632_v17 = vld [vmem:[#allocation5 + $0x488] sm:$0xf0] }
 0x937   : > { %6942 = vmatpush.bf16.msra.mxu2 %v9443_v21  ;;  %6955 = vmatpush.bf16.msra.mxu3 %v9507_v62  ;;  %v9720_v21 = vld [vmem:[#allocation5 + $0x538] sm:$0xf0]  ;;  %v10701_v62 = vld [vmem:[#allocation5 + $0x5b4] sm:$0xf]  ;;  %v9659_v6 = vor.u32 %v10669_v4, %v9656_v41 }
 0x938   : > { %v9880_v4 = vld [vmem:[#allocation5 + $0x678] sm:$0xf0]  ;;  %v10741_v41 = vld [vmem:[#allocation5 + $0x6f4] sm:$0xf] }
 0x939   : > { %6917 = vmatmul.bf16.vlgmr.msrb.gmra.mxu0 %v12629_v35  ;;  %6930 = vmatmul.bf16.vlgmr.msrb.gmra.mxu1 %v12631_v32  ;;  %v10671_v35 = vld [vmem:[#allocation5 + $0x4c4] sm:$0xf] }
 0x93a   : > { %6961 = vmatpush.bf16.msra.mxu0 %v9627_v61  ;;  %6974 = vmatpush.bf16.msra.mxu1 %v9691_v29  ;;  %v10687_v32 = vld [vmem:[#allocation5 + $0x544] sm:$0xf]  ;;  %v9667_v44 = vor.u32 %v10671_v35, %v9664_v39  ;;  %v9784_v61 = vld [vmem:[#allocation5 + $0x5b8] sm:$0xf0]  ;;  %v9595_v29 = vor.u32 %v10653_v10, %v9592_v53  ;;  %v9579_v39 = vor.u32 %v10649_v14, %v9576_v0 }
 0x93b   : > { %6987 = vmatpush.bf16.msrb.mxu2 %v9755_v24  ;;  %7000 = vmatpush.bf16.msrb.mxu3 %v9819_v1  ;;  %v9731_v34 = vor.u32 %v10687_v32, %v9728_v43  ;;  %v9723_v24 = vor.u32 %v10685_v5, %v9720_v21  ;;  %v9787_v1 = vor.u32 %v10701_v62, %v9784_v61  ;;  %v10647_v35 = vld [vmem:[#allocation5 + $0x404] sm:$0xf]  ;;  %v9568_v43 = vld [vmem:[#allocation5 + $0x408] sm:$0xf0]  ;;  %v9944_v5 = vld [vmem:[#allocation5 + $0x6f8] sm:$0xf0] }
 0x93c   : > { %6943 = vmatmul.bf16.vlgmr.msra.gmra.mxu2 %v12633_v37  ;;  %6956 = vmatmul.bf16.vlgmr.msra.gmra.mxu3 %v12635_v54  ;;  %v6723_v37 = vpop.f32.mrf.mxu1  ;;  %v6711_v54 = vadd.f32 %v6710_v42, %v12698_v31  ;;  %v10651_v31 = vld [vmem:[#allocation5 + $0x424] sm:$0xf]  ;;  %v9707_v42 = vor.u32 %v10681_v45, %v9704_v33  ;;  %v9571_v21 = vor.u32 %v10647_v35, %v9568_v43  ;;  %v10008_v61 = vld [vmem:[#allocation5 + $0x778] sm:$0xf0]  ;;  %v10769_v33 = vld [vmem:[#allocation5 + $0x7d4] sm:$0xf] }
 0x93d   : > { %v9635_v62 = vor.u32 %v10663_v20, %v9632_v17  ;;  %v9864_v14 = vld [vmem:[#allocation5 + $0x658] sm:$0xf0]  ;;  %v9920_v17 = vld [vmem:[#allocation5 + $0x6c8] sm:$0xf0] }
 0x93e   : > { %6962 = vmatpush.bf16.msra.mxu0 %v9619_v13  ;;  %6975 = vmatpush.bf16.msra.mxu1 %v9683_v7  ;;  %v6724_v50 = vadd.f32 %v6723_v37, %v6711_v54  ;;  %v10699_v13 = vld [vmem:[#allocation5 + $0x5a4] sm:$0xf]  ;;  %v9776_v7 = vld [vmem:[#allocation5 + $0x5a8] sm:$0xf0]  ;;  %v6712_v27 = vpop.f32.mrf.mxu0  ;;  %v9992_v45 = vld [vmem:[#allocation5 + $0x758] sm:$0xf0] }
 0x93f   : > { %6988 = vmatpush.bf16.msrb.mxu2 %v9747_v51  ;;  %7001 = vmatpush.bf16.msrb.mxu3 %v9811_v40  ;;  %v6736_v8 = vpop.f32.mrf.mxu2  ;;  %v6749_v55 = vpop.f32.mrf.mxu3  ;;  %v9587_v40 = vor.u32 %v10651_v31, %v9584_v63  ;;  %v9779_v25 = vor.u32 %v10699_v13, %v9776_v7  ;;  %v10679_v54 = vld [vmem:[#allocation5 + $0x504] sm:$0xf]  ;;  %v10000_v7 = vld [vmem:[#allocation5 + $0x768] sm:$0xf0] }
 0x940   : > { %v6737_v22 = vadd.f32 %v6736_v8, %v6724_v50  ;;  %v10757_v50 = vld [vmem:[#allocation5 + $0x774] sm:$0xf]  ;;  %v10755_v13 = vld [vmem:[#allocation5 + $0x764] sm:$0xf]  ;;  %v10064_v27 = vld [vmem:[#allocation5 + $0x7e8] sm:$0xf0] }
 0x941   : > { %v10011_v18 = vor.u32 %v10757_v50, %v10008_v61  ;;  %v10003_v0 = vor.u32 %v10755_v13, %v10000_v7  ;;  %v10749_v50 = vld [vmem:[#allocation5 + $0x734] sm:$0xf]  ;;  %v10763_v13 = vld [vmem:[#allocation5 + $0x7a4] sm:$0xf]  ;;  %v10032_v7 = vld [vmem:[#allocation5 + $0x7a8] sm:$0xf0] }
 0x942   : > { %6963 = vmatpush.bf16.msra.mxu0 %v9611_v59  ;;  %6976 = vmatpush.bf16.msra.mxu1 %v9675_v30  ;;  %v12705_v3 = vadd.f32 %v6749_v55, %v6737_v22  ;;  %v10665_v59 = vld [vmem:[#allocation5 + $0x494] sm:$0xf]  ;;  %v9640_v30 = vld [vmem:[#allocation5 + $0x498] sm:$0xf0]  ;;  %v10739_v55 = vld [vmem:[#allocation5 + $0x6e4] sm:$0xf] }
 0x943   : > { %6989 = vmatpush.bf16.msrb.mxu2 %v9739_v48  ;;  %7002 = vmatpush.bf16.msrb.mxu3 %v9803_v38  ;;  %v10697_v48 = vld [vmem:[#allocation5 + $0x594] sm:$0xf]  ;;  %v9768_v38 = vld [vmem:[#allocation5 + $0x598] sm:$0xf0]  ;;  %v9643_v32 = vor.u32 %v10665_v59, %v9640_v30  ;;  %v10771_v22 = vld [vmem:[#allocation5 + $0x7e4] sm:$0xf] }
 0x944   : > { %v6725_v51 = vpop.f32.mrf.mxu1  ;;  %v9771_v37 = vor.u32 %v10697_v48, %v9768_v38  ;;  %v9928_v59 = vld [vmem:[#allocation5 + $0x6d8] sm:$0xf0]  ;;  %v10753_v30 = vld [vmem:[#allocation5 + $0x754] sm:$0xf] }
 0x945   : > { %v9875_v51 = vor.u32 %v10723_v2, %v9872_v57  ;;  %v10056_v48 = vld [vmem:[#allocation5 + $0x7d8] sm:$0xf0]  ;;  %v9995_v43 = vor.u32 %v10753_v30, %v9992_v45  ;;  %v10765_v61 = vld [vmem:[#allocation5 + $0x7b4] sm:$0xf]  ;;  %v10731_v2 = vld [vmem:[#allocation5 + $0x6a4] sm:$0xf] }
 0x946   : > { %6964 = vmatpush.bf16.msra.mxu0 %v9603_v36  ;;  %6977 = vmatpush.bf16.msra.mxu1 %v9667_v44  ;;  %v9696_v36 = vld [vmem:[#allocation5 + $0x508] sm:$0xf0]  ;;  %v10695_v44 = vld [vmem:[#allocation5 + $0x584] sm:$0xf]  ;;  %v10059_v20 = vor.u32 %v10769_v33, %v10056_v48  ;;  %v10729_v30 = vld [vmem:[#allocation5 + $0x694] sm:$0xf] }
 0x947   : > { %6990 = vmatpush.bf16.msrb.mxu2 %v9731_v34  ;;  %7003 = vmatpush.bf16.msrb.mxu3 %v9795_v56  ;;  %v6738_v10 = vpop.f32.mrf.mxu2  ;;  %v6751_v53 = vpop.f32.mrf.mxu3  ;;  %v9760_v34 = vld [vmem:[#allocation5 + $0x588] sm:$0xf0]  ;;  %v10725_v56 = vld [vmem:[#allocation5 + $0x674] sm:$0xf]  ;;  %v9699_v31 = vor.u32 %v10679_v54, %v9696_v36  ;;  %v9896_v45 = vld [vmem:[#allocation5 + $0x698] sm:$0xf0] }
 0x948   : > { %v9763_v63 = vor.u32 %v10695_v44, %v9760_v34  ;;  %v10048_v54 = vld [vmem:[#allocation5 + $0x7c8] sm:$0xf0]  ;;  %v10717_v53 = vld [vmem:[#allocation5 + $0x634] sm:$0xf]  ;;  %v9848_v34 = vld [vmem:[#allocation5 + $0x638] sm:$0xf0] }
 0x949   : > { %v9904_v57 = vld [vmem:[#allocation5 + $0x6a8] sm:$0xf0]  ;;  %v10745_v33 = vld [vmem:[#allocation5 + $0x714] sm:$0xf]  ;;  %v9960_v48 = vld [vmem:[#allocation5 + $0x718] sm:$0xf0] }
 0x94a   : > { %6965 = vmatpush.bf16.msra.mxu0 %v9595_v29  ;;  %6978 = vmatpush.bf16.msra.mxu1 %v9659_v6  ;;  %v10773_v29 = vld [vmem:[#allocation5 + $0x7f4] sm:$0xf]  ;;  %v10072_v6 = vld [vmem:[#allocation5 + $0x7f8] sm:$0xf0] }
 0x94b   : > { %6991 = vmatpush.bf16.msrb.mxu2 %v9723_v24  ;;  %7004 = vmatpush.bf16.msrb.mxu3 %v9787_v1  ;;  %v9883_v24 = vor.u32 %v10725_v56, %v9880_v4  ;;  %v9947_v1 = vor.u32 %v10741_v41, %v9944_v5  ;;  %v10075_v8 = vor.u32 %v10773_v29, %v10072_v6  ;;  %v10733_v41 = vld [vmem:[#allocation5 + $0x6b4] sm:$0xf]  ;;  %v9912_v5 = vld [vmem:[#allocation5 + $0x6b8] sm:$0xf0] }
 0x94c   : > { %v10040_v29 = vld [vmem:[#allocation5 + $0x7b8] sm:$0xf0]  ;;  %v9851_v6 = vor.u32 %v10717_v53, %v9848_v34 }
 0x94e   : > { %6966 = vmatpush.bf16.msra.mxu0 %v9587_v40  ;;  %6979 = vmatpush.bf16.msra.mxu1 %v9651_v19  ;;  %v9939_v40 = vor.u32 %v10739_v55, %v9936_v46  ;;  %v10721_v19 = vld [vmem:[#allocation5 + $0x654] sm:$0xf]  ;;  %v9968_v46 = vld [vmem:[#allocation5 + $0x728] sm:$0xf0] }
 0x94f   : > { %6992 = vmatpush.bf16.msrb.mxu2 %v9715_v23  ;;  %7005 = vmatpush.bf16.msrb.mxu3 %v9779_v25  ;;  %v10067_v23 = vor.u32 %v10771_v22, %v10064_v27  ;;  %v10737_v25 = vld [vmem:[#allocation5 + $0x6d4] sm:$0xf]  ;;  %v9867_v38 = vor.u32 %v10721_v19, %v9864_v14  ;;  %v9907_v19 = vor.u32 %v10731_v2, %v9904_v57 }
 0x950   : > { %v9931_v35 = vor.u32 %v10737_v25, %v9928_v59  ;;  %v10713_v14 = vld [vmem:[#allocation5 + $0x614] sm:$0xf]  ;;  %v10035_v59 = vor.u32 %v10763_v13, %v10032_v7 }
 0x952   : > { %6967 = vmatpush.bf16.msra.mxu0 %v9579_v39  ;;  %6980 = vmatpush.bf16.msra.mxu1 %v9643_v32  ;;  %v10719_v39 = vld [vmem:[#allocation5 + $0x644] sm:$0xf]  ;;  %v9856_v32 = vld [vmem:[#allocation5 + $0x648] sm:$0xf0] }
 0x953   : > { %6993 = vmatpush.bf16.msrb.mxu2 %v9707_v42  ;;  %7006 = vmatpush.bf16.msrb.mxu3 %v9771_v37  ;;  %v9984_v42 = vld [vmem:[#allocation5 + $0x748] sm:$0xf0]  ;;  %v10767_v37 = vld [vmem:[#allocation5 + $0x7c4] sm:$0xf]  ;;  %v9859_v44 = vor.u32 %v10719_v39, %v9856_v32  ;;  %v9899_v32 = vor.u32 %v10729_v30, %v9896_v45 }
 0x954   : > { %v10051_v4 = vor.u32 %v10767_v37, %v10048_v54  ;;  %v10743_v37 = vld [vmem:[#allocation5 + $0x704] sm:$0xf] }
 0x956   : > { %6968 = vmatpush.bf16.msra.mxu0 %v9571_v21  ;;  %6981 = vmatpush.bf16.msra.mxu1 %v9635_v62  ;;  %v6762_v36 = vpop.f32.mrf.mxu0  ;;  %v9976_v62 = vld [vmem:[#allocation5 + $0x738] sm:$0xf0] }
 0x957   : > { %6994 = vmatpush.bf16.msrb.mxu2 %v9699_v31  ;;  %7007 = vmatpush.bf16.msrb.mxu3 %v9763_v63  ;;  %v9915_v31 = vor.u32 %v10733_v41, %v9912_v5  ;;  %v9840_v63 = vld [vmem:[#allocation5 + $0x628] sm:$0xf0] }
 0x959   : > { %6969 = vmatmul.bf16.vlgmr.msra.gmra.mxu0 %v12657_v49  ;;  %6982 = vmatmul.bf16.vlgmr.msra.gmra.mxu1 %v12659_v28  ;;  %v10735_v49 = vld [vmem:[#allocation5 + $0x6c4] sm:$0xf] }
 0x95a   : > { %7013 = vmatpush.bf16.msrb.mxu0 %v9883_v24  ;;  %7026 = vmatpush.bf16.msrb.mxu1 %v9947_v1  ;;  %v10751_v28 = vld [vmem:[#allocation5 + $0x744] sm:$0xf]  ;;  %v9923_v10 = vor.u32 %v10735_v49, %v9920_v17  ;;  %v9979_v24 = vor.u32 %v10749_v50, %v9976_v62  ;;  %v10043_v1 = vor.u32 %v10765_v61, %v10040_v29 }
 0x95b   : > { %7039 = vmatpush.bf16.msra.mxu2 %v10011_v18  ;;  %7052 = vmatpush.bf16.msra.mxu3 %v10075_v8  ;;  %v9987_v56 = vor.u32 %v10751_v28, %v9984_v42  ;;  %v10747_v18 = vld [vmem:[#allocation5 + $0x724] sm:$0xf]  ;;  %v9963_v49 = vor.u32 %v10745_v33, %v9960_v48  ;;  %v9888_v42 = vld [vmem:[#allocation5 + $0x688] sm:$0xf0] }
 0x95c   : > { %6995 = vmatmul.bf16.vlgmr.msrb.gmra.mxu2 %v12661_v58  ;;  %7008 = vmatmul.bf16.vlgmr.msrb.gmra.mxu3 %v12663_v11  ;;  %v6775_v58 = vpop.f32.mrf.mxu1  ;;  %v6763_v11 = vadd.f32 %v6762_v36, %v12705_v3  ;;  %v10715_v3 = vld [vmem:[#allocation5 + $0x624] sm:$0xf]  ;;  %v9971_v25 = vor.u32 %v10747_v18, %v9968_v46 }
 0x95d   : > { %v10727_v28 = vld [vmem:[#allocation5 + $0x684] sm:$0xf] }
 0x95e   : > { %7014 = vmatpush.bf16.msrb.mxu0 %v9875_v51  ;;  %7027 = vmatpush.bf16.msrb.mxu1 %v9939_v40  ;;  %v6776_v21 = vadd.f32 %v6775_v58, %v6763_v11  ;;  %v6764_v27 = vpop.f32.mrf.mxu0  ;;  %v9843_v40 = vor.u32 %v10715_v3, %v9840_v63  ;;  %v9952_v58 = vld [vmem:[#allocation5 + $0x708] sm:$0xf0]  ;;  %v10759_v11 = vld [vmem:[#allocation5 + $0x784] sm:$0xf]  ;;  %v9891_v53 = vor.u32 %v10727_v28, %v9888_v42 }
 0x95f   : > { %7040 = vmatpush.bf16.msra.mxu2 %v10003_v0  ;;  %7053 = vmatpush.bf16.msra.mxu3 %v10067_v23  ;;  %v6788_v8 = vpop.f32.mrf.mxu2  ;;  %v6801_v55 = vpop.f32.mrf.mxu3  ;;  %v9832_v0 = vld [vmem:[#allocation5 + $0x618] sm:$0xf0]  ;;  %v9955_v34 = vor.u32 %v10743_v37, %v9952_v58 }
 0x960   : > { %v6789_v22 = vadd.f32 %v6788_v8, %v6776_v21  ;;  %v9835_v39 = vor.u32 %v10713_v14, %v9832_v0 }
 0x962   : > { %7015 = vmatpush.bf16.msrb.mxu0 %v9867_v38  ;;  %7028 = vmatpush.bf16.msrb.mxu1 %v9931_v35  ;;  %v6802_v23 = vadd.f32 %v6801_v55, %v6789_v22  ;;  %v10761_v38 = vld [vmem:[#allocation5 + $0x794] sm:$0xf]  ;;  %v10024_v35 = vld [vmem:[#allocation5 + $0x798] sm:$0xf0] }
 0x963   : > { %7041 = vmatpush.bf16.msra.mxu2 %v9995_v43  ;;  %7054 = vmatpush.bf16.msra.mxu3 %v10059_v20  ;;  %v10711_v43 = vld [vmem:[#allocation5 + $0x604] sm:$0xf]  ;;  %v9824_v20 = vld [vmem:[#allocation5 + $0x608] sm:$0xf0]  ;;  %v10027_v17 = vor.u32 %v10761_v38, %v10024_v35 }
 0x964   : > { %v6777_v51 = vpop.f32.mrf.mxu1 }
 0x966   : > { %7016 = vmatpush.bf16.msrb.mxu0 %v9859_v44  ;;  %7029 = vmatpush.bf16.msrb.mxu1 %v9923_v10  ;;  %v10016_v44 = vld [vmem:[#allocation5 + $0x788] sm:$0xf0]  ;;  %v9827_v10 = vor.u32 %v10711_v43, %v9824_v20 }
 0x967   : > { %7042 = vmatpush.bf16.msra.mxu2 %v9987_v56  ;;  %7055 = vmatpush.bf16.msra.mxu3 %v10051_v4  ;;  %v6790_v54 = vpop.f32.mrf.mxu2  ;;  %v6803_v36 = vpop.f32.mrf.mxu3  ;;  %v10019_v56 = vor.u32 %v10759_v11, %v10016_v44 }
 0x96a   : > { %7017 = vmatpush.bf16.msrb.mxu0 %v9851_v6  ;;  %7030 = vmatpush.bf16.msrb.mxu1 %v9915_v31  ;;  %v5366_v6 = vperm.slane %v12691_v47, 1 }
 0x96b   : > { %7043 = vmatpush.bf16.msra.mxu2 %v9979_v24  ;;  %7056 = vmatpush.bf16.msra.mxu3 %v10043_v1 }
 0x96e   : > { %7018 = vmatpush.bf16.msrb.mxu0 %v9843_v40  ;;  %7031 = vmatpush.bf16.msrb.mxu1 %v9907_v19 }
 0x96f   : > { %7044 = vmatpush.bf16.msra.mxu2 %v9971_v25  ;;  %7057 = vmatpush.bf16.msra.mxu3 %v10035_v59 }
 0x972   : > { %7019 = vmatpush.bf16.msrb.mxu0 %v9835_v39  ;;  %7032 = vmatpush.bf16.msrb.mxu1 %v9899_v32 }
 0x973   : > { %7045 = vmatpush.bf16.msra.mxu2 %v9963_v49  ;;  %7058 = vmatpush.bf16.msra.mxu3 %v10027_v17 }
 0x976   : > { %7020 = vmatpush.bf16.msrb.mxu0 %v9827_v10  ;;  %7033 = vmatpush.bf16.msrb.mxu1 %v9891_v53  ;;  %v6814_v4 = vpop.f32.mrf.mxu0  ;;  %v6827_v41 = vpop.f32.mrf.mxu1 }
 0x977   : > { %7046 = vmatpush.bf16.msra.mxu2 %v9955_v34  ;;  %7059 = vmatpush.bf16.msra.mxu3 %v10019_v56  ;;  %v6815_v5 = vadd.f32 %v6814_v4, %v6802_v23 }
 0x979   : > { %7021 = vmatmul.bf16.vlgmr.msrb.gmra.mxu0 %v12674_v26  ;;  %7034 = vmatmul.bf16.vlgmr.msrb.gmra.mxu1 %v12676_v52  ;;  %v6828_v50 = vadd.f32 %v6827_v41, %v6815_v5 }
 0x97a   : > { %7047 = vmatmul.bf16.vlgmr.msra.gmra.mxu2 %v12682_v16  ;;  %7060 = vmatmul.bf16.vlgmr.msra.gmra.mxu3 %v12685_v9 }
 0x97e   : > { %v6816_v21 = vpop.f32.mrf.mxu0  ;;  %v6829_v62 = vpop.f32.mrf.mxu1 }
 0x983   : > { %v6840_v61 = vpop.f32.mrf.mxu2 }
 0x984   : > { %v6841_v29 = vadd.f32 %v6840_v61, %v6828_v50 }
 0x98b   : > { %v6842_v52 = vpop.f32.mrf.mxu2 }
 0x98c   : > { %v6853_v31 = vpop.f32.mrf.mxu3 }
 0x98d   : > { %v6854_v3 = vadd.f32 %v6853_v31, %v6841_v29 }
 0x98f   : > { %v7065_v34 = vadd.f32 %v6854_v3, %v12518_v15 }
 0x994   : > { %v6855_v16 = vpop.f32.mrf.mxu3 }
 0x996   : > { %v6866_v63 = vpop.f32.mrf.mxu0  ;;  %v6879_v26 = vpop.f32.mrf.mxu1 }
 0x997   : > { %v6867_v24 = vadd.f32 %v6866_v63, %v5366_v6 }
 0x999   : > { %v6880_v1 = vadd.f32 %v6879_v26, %v6867_v24 }
 0x99e   : > { %v6868_v2 = vpop.f32.mrf.mxu0  ;;  %v6881_v9 = vpop.f32.mrf.mxu1 }
 0x99f   : > { %v6892_v57 = vpop.f32.mrf.mxu2  ;;  %v6905_v18 = vpop.f32.mrf.mxu3  ;;  %v7067_v2 = vld [vmem:[%s12752_s16] sm:$0x3] }
 0x9a0   : > { %v6893_v0 = vadd.f32 %v6892_v57, %v6880_v1  ;;  %v7097_v57 = vperm.slane %v7067_v2, 0 }
 0x9a2   : > { %v6906_v23 = vadd.f32 %v6905_v18, %v6893_v0  ;;  %v7098_v18 = vperm.slane %v7067_v2, 1 }
 0x9a7   : > { %v6894_v8 = vpop.f32.mrf.mxu2  ;;  %v6907_v55 = vpop.f32.mrf.mxu3 }
 0x9a8   : > { %v7110_v55 = vld [vmem:[%s12754_s18] sm:$0x3] }
 0x9b6   : > { %v6918_v46 = vpop.f32.mrf.mxu0  ;;  %v6931_v13 = vpop.f32.mrf.mxu1 }
 0x9b7   : > { %v6919_v25 = vadd.f32 %v6918_v46, %v6906_v23 }
 0x9b9   : > { %v6932_v48 = vadd.f32 %v6931_v13, %v6919_v25 }
 0x9be   : > { %v6920_v27 = vpop.f32.mrf.mxu0  ;;  %v6933_v47 = vpop.f32.mrf.mxu1 }
 0x9bf   : > { %v6944_v7 = vpop.f32.mrf.mxu2  ;;  %v6957_v22 = vpop.f32.mrf.mxu3 }
 0x9c0   : > { %v6945_v38 = vadd.f32 %v6944_v7, %v6932_v48 }
 0x9c2   : > { %v6958_v32 = vadd.f32 %v6957_v22, %v6945_v38 }
 0x9c7   : > { %v6946_v51 = vpop.f32.mrf.mxu2  ;;  %v6959_v40 = vpop.f32.mrf.mxu3 }
 0x9c8   : > { %v7112_v51 = vperm.slane %v7110_v55, 0  ;;  %v7113_v40 = vperm.slane %v7110_v55, 1 }
 0x9d6   : > { %v6970_v19 = vpop.f32.mrf.mxu0  ;;  %v6983_v14 = vpop.f32.mrf.mxu1 }
 0x9d7   : > { %v6971_v43 = vadd.f32 %v6970_v19, %v6958_v32 }
 0x9d9   : > { %v6984_v20 = vadd.f32 %v6983_v14, %v6971_v43 }
 0x9de   : > { %v6972_v45 = vpop.f32.mrf.mxu0  ;;  %v6985_v33 = vpop.f32.mrf.mxu1 }
 0x9df   : > { %v6996_v59 = vpop.f32.mrf.mxu2  ;;  %v7009_v30 = vpop.f32.mrf.mxu3 }
 0x9e0   : > { %v6997_v49 = vadd.f32 %v6996_v59, %v6984_v20  ;;  %v10813_v59 = vld [vmem:[#allocation2] ss:$0 sm:$0xff] }
 0x9e2   : > { %v7010_v17 = vadd.f32 %v7009_v30, %v6997_v49 }
 0x9e7   : > { %v6998_v35 = vpop.f32.mrf.mxu2  ;;  %v7011_v39 = vpop.f32.mrf.mxu3 }
 0x9f6   : > { %v7022_v28 = vpop.f32.mrf.mxu0  ;;  %v7035_v42 = vpop.f32.mrf.mxu1 }
 0x9f7   : > { %v7023_v37 = vadd.f32 %v7022_v28, %v7010_v17 }
 0x9f9   : > { %v7036_v54 = vadd.f32 %v7035_v42, %v7023_v37 }
 0x9fd   : > { %v7048_v36 = vpop.f32.mrf.mxu2  ;;  %v7061_v58 = vpop.f32.mrf.mxu3 }
 0x9fe   : > { %v7049_v11 = vadd.f32 %v7048_v36, %v7036_v54  ;;  %v7024_v44 = vpop.f32.mrf.mxu0  ;;  %v7037_v10 = vpop.f32.mrf.mxu1 }
 0xa00   : > { %v7062_v53 = vadd.f32 %v7061_v58, %v7049_v11 }
 0xa02   : > { %v7066_v56 = vadd.f32 %v7062_v53, %v12520_v12 }
 0xa04   : > { %v7069_v4 = vadd.f32 %v7066_v56, %v7065_v34 }
 0xa05   : > { %v7050_v41 = vpop.f32.mrf.mxu2  ;;  %v7063_v5 = vpop.f32.mrf.mxu3 }
 0xa06   : > { %7070 = vadd.xlane.f32.xlu1 %v7069_v4 }
 0xa79   : > { %v7071_v50 = vpop.xlane.xlu1 %7070 }
 0xa7a   : > { %v7072_v21 = vmul.f32 0.004, %v7071_v50 }
 0xa7c   : > { %v7073_v62 = vsub.f32 %v7065_v34, %v7072_v21  ;;  %v7074_v61 = vsub.f32 %v7066_v56, %v7072_v21 }
 0xa7e   : > { %v7076_v29 = vmul.f32 %v12497_v60, %v7074_v61  ;;  %v7077_v6 = vmul.f32 %v7073_v62, %v7073_v62  ;;  %v7068_v60 = vld [vmem:[%s12753_s17] sm:$0x3] }
 0xa7f   : > { %v7104_v7 = vperm.slane %v7068_v60, 0  ;;  %v7105_v22 = vperm.slane %v7068_v60, 1 }
 0xa80   : > { %v7078_v31 = vmul.f32 %v7076_v29, %v7076_v29 }
 0xa82   : > { %v7079_v63 = vadd.f32 %v7078_v31, %v7077_v6 }
 0xa84   : > { %7080 = vadd.xlane.f32.xlu1 %v7079_v63 }
 0xaf7   : > { %v7081_v26 = vpop.xlane.xlu1 %7080 }
 0xaf8   : > { %v7082_v24 = vmul.f32 0.004, %v7081_v26 }
 0xafa   : > { %v7083_v52 = vadd.f32 1e-05, %v7082_v24 }
 0xafc   : > { %10856 = vrsqrt.f32 %v7083_v52  ;;  %vm7090_vm9 = vweird.f32 %v7083_v52 }
 0xb02   : > { %v10857_v15 = vpop.eup %10856 }
 0xb03   : > { %v7085_v12 = vmul.f32 %v10857_v15, %v7083_v52  ;;  %vm7091_vm8 = vweird.f32 %v10857_v15 }
 0xb04   : > { %vm7092_vm10 = vmor %vm7090_vm9, %vm7091_vm8 }
 0xb05   : > { %v7086_v3 = vmul.f32 %v10857_v15, %v7085_v12 }
 0xb07   : > { %v7087_v1 = vmul.f32 0.5, %v7086_v3 }
 0xb09   : > { %v7088_v16 = vsub.f32 1.5, %v7087_v1 }
 0xb0b   : > { %v7089_v9 = vmul.f32 %v10857_v15, %v7088_v16 }
 0xb0d   : > { %v7093_v8 = vsel %vm7092_vm10, %v10857_v15, %v7089_v9 }
 0xb0e   : > { %v7094_v46 = vmul.f32 %v7093_v8, %v7073_v62  ;;  %v7095_v13 = vmul.f32 %v7093_v8, %v7076_v29 }
 0xb10   : > { %v7101_v27 = vmul.f32 %v7097_v57, %v7094_v46  ;;  %v7102_v47 = vmul.f32 %v7098_v18, %v7095_v13 }
 0xb12   : > { %v7108_v19 = vadd.f32 %v7104_v7, %v7101_v27  ;;  %v7109_v14 = vadd.f32 %v7105_v22, %v7102_v47 }
 0xb14   : > { %v7116_v0 = vmul.f32 %v7112_v51, %v7108_v19  ;;  %v7117_v23 = vmul.f32 %v7113_v40, %v7109_v14 }
 0xb16   : > { %v7118_v25 = vadd.f32 %v7117_v23, %v7116_v0 }
 0xb18   : > { %7119 = vadd.xlane.f32.xlu2 %v7118_v25 }
 0xb8b   : > { %v7120_v30 = vpop.xlane.xlu2 %7119 }
 0xb8c   : > { %v7125_v45 = vadd.f32 %v10813_v59, %v7120_v30 }
 0xb8e   : > { %7127 = vst.msk [vmem:[%s663_s4] sm:$0xff] %vm7126_vm11, %v7125_v45 }
 0xb8f PF: > { %s34_s23 = sadd.s32 1, %s10933_s23  }
 0xb90   : > { %p31_p7 = scmp.ge.s32.totalorder %s34_s23, 4  }
 0xb92   :  { %33 = sbr.rel (!%p31_p7) target bundleno = 10 (0xa), region = 148 }
 0xb97   :  { %7147 = vsyncpa [#allocation4], 1 }
 0xb98   :  { %7149 = vsyncpa [#allocation4 + $0x1], 1 }
 0xb99   :  { %7150 = vsyncpa [#allocation6], 1 }

</bundles_post_ra>
